<compile_context>
chip_gen: v6e
topology: v6e:2x2x1
jax: 0.10.0
libtpu: 0.0.40
codegen_flags: <defaults>
</compile_context>

<pallas_src>
import functools
import math

import jax
import jax.numpy as jnp
from jax.experimental import pallas as pl
from jax.experimental.pallas import tpu as pltpu

BN_EPS = 1e-5
_VMEM_LIMIT = 32 * 1024 * 1024

_MM_PARAMS = pltpu.CompilerParams(
    dimension_semantics=("parallel", "parallel", "arbitrary"),
    vmem_limit_bytes=_VMEM_LIMIT)
_ROW_PARAMS = pltpu.CompilerParams(
    dimension_semantics=("parallel",),
    vmem_limit_bytes=_VMEM_LIMIT)


def _round_up(x, m):
    return ((x + m - 1) // m) * m


# ----------------------------- Pallas kernels ------------------------------

def _mm_stats_kernel(a_ref, b_ref, y_ref, s_ref, q_ref, acc_ref):
    """(tm,tk)@(tk,tn) tile, f32 accumulate; epilogue also writes per-column
    sum / sum-of-squares of the f32 result (fused BatchNorm statistics)."""
    @pl.when(pl.program_id(2) == 0)
    def _():
        acc_ref[...] = jnp.zeros_like(acc_ref)

    acc_ref[...] += jnp.dot(a_ref[...], b_ref[...],
                            preferred_element_type=jnp.float32)

    @pl.when(pl.program_id(2) == pl.num_programs(2) - 1)
    def _():
        acc = acc_ref[...]
        y_ref[...] = acc.astype(y_ref.dtype)
        row0 = jax.lax.broadcasted_iota(jnp.int32, s_ref.shape[1:], 0) == 0
        s_ref[0] = jnp.where(row0, jnp.sum(acc, axis=0, keepdims=True), 0.0)
        q_ref[0] = jnp.where(row0, jnp.sum(acc * acc, axis=0, keepdims=True), 0.0)


def _mm_bias_kernel(a_ref, b_ref, bias_ref, y_ref, acc_ref):
    @pl.when(pl.program_id(2) == 0)
    def _():
        acc_ref[...] = jnp.zeros_like(acc_ref)

    acc_ref[...] += jnp.dot(a_ref[...], b_ref[...],
                            preferred_element_type=jnp.float32)

    @pl.when(pl.program_id(2) == pl.num_programs(2) - 1)
    def _():
        y_ref[...] = (acc_ref[...] + bias_ref[...]).astype(y_ref.dtype)


def _bn_relu_kernel(y_ref, scale_ref, shift_ref, o_ref):
    # relu(y * scale + shift); math in f32, bf16 activation storage.
    cout = o_ref.shape[-1]
    y = y_ref[...].astype(jnp.float32)
    v = jnp.maximum(y * scale_ref[...] + shift_ref[...], 0.0)
    o_ref[...] = v[:, :cout].astype(o_ref.dtype)


def _maxpool_kernel(x_ref, o_ref):
    # x block: (tb, 2, Wo, 2, C).  H-pair max via leading-dim select,
    # W-pair max via a (second-minor) sublane reduce with keepdims.
    x = x_ref[...]
    m = jnp.maximum(x[:, 0], x[:, 1])                 # (tb, Wo, 2, C)
    o_ref[...] = jnp.max(m, axis=2, keepdims=True)    # (tb, Wo, 1, C)


# ----------------------------- tiled-matmul wrappers ------------------------

def _matmul_tiles(M, K, Ncol):
    # Row tiles (M): 512 keeps double-buffered operands ~3 MiB (fits v7x).
    if M % 512 == 0:
        tm, Mp = 512, M
    elif M <= 512:
        tm = _round_up(M, 16)
        Mp = tm
    else:
        tm, Mp = 512, _round_up(M, 512)
    # Contraction tiles (K): split only when it divides cleanly; otherwise a
    # single full-extent K block (sizes in this net are <= 9*256 in that case).
    if K % 512 == 0 and K > 512:
        tk, Kp = 512, K
    else:
        tk, Kp = K, K
    # Column tiles (N): lane-dense, 256 matches the v6e/v7x 2x256 MXU.
    Np = _round_up(Ncol, 128)
    tn = 256 if Np % 256 == 0 else 128
    tn = min(tn, Np)
    return tm, tk, tn, Mp, Kp, Np


def matmul_stats(a, b):
    """a:(M,K) @ b:(K,Ncol) -> y:(Mp,Np) bf16, col_sum:(Np,), col_sumsq:(Np,)."""
    M, K = a.shape
    Ncol = b.shape[1]
    tm, tk, tn, Mp, Kp, Np = _matmul_tiles(M, K, Ncol)
    a = a.astype(jnp.bfloat16)
    b = b.astype(jnp.bfloat16)
    if (Mp, Kp) != (M, K):
        a = jnp.pad(a, ((0, Mp - M), (0, Kp - K)))
    if (Kp, Np) != (K, Ncol):
        b = jnp.pad(b, ((0, Kp - K), (0, Np - Ncol)))
    gi, gj, gk = Mp // tm, Np // tn, Kp // tk
    y, s, q = pl.pallas_call(
        _mm_stats_kernel,
        out_shape=(jax.ShapeDtypeStruct((Mp, Np), jnp.bfloat16),
                   jax.ShapeDtypeStruct((gi, 8, Np), jnp.float32),
                   jax.ShapeDtypeStruct((gi, 8, Np), jnp.float32)),
        grid_spec=pltpu.PrefetchScalarGridSpec(
            num_scalar_prefetch=0,
            grid=(gi, gj, gk),
            in_specs=[pl.BlockSpec((tm, tk), lambda i, j, k: (i, k)),
                      pl.BlockSpec((tk, tn), lambda i, j, k: (k, j))],
            out_specs=(pl.BlockSpec((tm, tn), lambda i, j, k: (i, j)),
                       pl.BlockSpec((1, 8, tn), lambda i, j, k: (i, 0, j)),
                       pl.BlockSpec((1, 8, tn), lambda i, j, k: (i, 0, j))),
            scratch_shapes=[pltpu.VMEM((tm, tn), jnp.float32)]),
        compiler_params=_MM_PARAMS,
    )(a, b)
    col_sum = jnp.sum(s, axis=(0, 1))
    col_sumsq = jnp.sum(q, axis=(0, 1))
    return y, col_sum, col_sumsq, Mp, Np


def matmul_bias(a, b, bias, out_dtype=jnp.bfloat16):
    M, K = a.shape
    Ncol = b.shape[1]
    tm, tk, tn, Mp, Kp, Np = _matmul_tiles(M, K, Ncol)
    a = a.astype(jnp.bfloat16)
    b = b.astype(jnp.bfloat16)
    if (Mp, Kp) != (M, K):
        a = jnp.pad(a, ((0, Mp - M), (0, Kp - K)))
    if (Kp, Np) != (K, Ncol):
        b = jnp.pad(b, ((0, Kp - K), (0, Np - Ncol)))
    bias_p = jnp.pad(bias.astype(jnp.float32), (0, Np - Ncol)).reshape(1, Np)
    gi, gj, gk = Mp // tm, Np // tn, Kp // tk
    y = pl.pallas_call(
        _mm_bias_kernel,
        out_shape=jax.ShapeDtypeStruct((Mp, Np), out_dtype),
        grid_spec=pltpu.PrefetchScalarGridSpec(
            num_scalar_prefetch=0,
            grid=(gi, gj, gk),
            in_specs=[pl.BlockSpec((tm, tk), lambda i, j, k: (i, k)),
                      pl.BlockSpec((tk, tn), lambda i, j, k: (k, j)),
                      pl.BlockSpec((1, tn), lambda i, j, k: (0, j))],
            out_specs=pl.BlockSpec((tm, tn), lambda i, j, k: (i, j)),
            scratch_shapes=[pltpu.VMEM((tm, tn), jnp.float32)]),
        compiler_params=_MM_PARAMS,
    )(a, b, bias_p)
    return y[:M, :Ncol]


def bn_relu_apply(y_pad, scale, shift, M, cout):
    """Normalize+ReLU the padded conv output; returns (M, cout) bf16."""
    Mp, Np = y_pad.shape
    tmb = 512 if Mp % 512 == 0 else Mp
    out = pl.pallas_call(
        _bn_relu_kernel,
        out_shape=jax.ShapeDtypeStruct((Mp, cout), jnp.bfloat16),
        grid_spec=pltpu.PrefetchScalarGridSpec(
            num_scalar_prefetch=0,
            grid=(Mp // tmb,),
            in_specs=[pl.BlockSpec((tmb, Np), lambda i: (i, 0)),
                      pl.BlockSpec((1, Np), lambda i: (0, 0)),
                      pl.BlockSpec((1, Np), lambda i: (0, 0))],
            out_specs=pl.BlockSpec((tmb, cout), lambda i: (i, 0))),
        compiler_params=_ROW_PARAMS,
    )(y_pad, scale.reshape(1, Np), shift.reshape(1, Np))
    return out[:M]


def maxpool2x2(x):
    N, H, W, C = x.shape
    Ho, Wo = H // 2, W // 2
    R = N * Ho
    xr = x.reshape(R, 2, Wo, 2, C)          # free reshape (adjacent split/merge)
    tb = math.gcd(R, 32)
    y = pl.pallas_call(
        _maxpool_kernel,
        out_shape=jax.ShapeDtypeStruct((R, Wo, 1, C), x.dtype),
        grid_spec=pltpu.PrefetchScalarGridSpec(
            num_scalar_prefetch=0,
            grid=(R // tb,),
            in_specs=[pl.BlockSpec((tb, 2, Wo, 2, C),
                                   lambda i: (i, 0, 0, 0, 0))],
            out_specs=pl.BlockSpec((tb, Wo, 1, C), lambda i: (i, 0, 0, 0))),
        compiler_params=_ROW_PARAMS,
    )(xr)
    return y.reshape(N, Ho, Wo, C)


# ----------------------------- conv building blocks -------------------------

def _im2col_3x3(xs):
    """im2col for 3x3/pad-1 conv over the channel-concatenation of `xs`
    (folds torch.cat((skip, x), dim=1) into the slab build).  Emitted in bf16."""
    N, H, W = xs[0].shape[:3]
    pads = [jnp.pad(x.astype(jnp.bfloat16), ((0, 0), (1, 1), (1, 1), (0, 0)))
            for x in xs]
    cols = []
    for dy in range(3):
        for dx in range(3):
            for xp in pads:
                cols.append(xp[:, dy:dy + H, dx:dx + W, :])
    return jnp.concatenate(cols, axis=-1).reshape(N * H * W, -1)


def conv3x3_bn_relu(w, gamma, beta, xs):
    """Conv2d(k=3, pad=1, no bias) -> training-mode BatchNorm -> ReLU."""
    N, H, W = xs[0].shape[:3]
    cin = sum(x.shape[-1] for x in xs)
    cout = w.shape[-1]
    a = _im2col_3x3(xs)                               # (M, 9*cin) bf16
    wm = w.reshape(9 * cin, cout)
    y, col_sum, col_sumsq, Mp, Np = matmul_stats(a, wm)
    M = N * H * W
    mean = col_sum / M
    var = jnp.maximum(col_sumsq / M - mean * mean, 0.0)     # biased, as PyTorch BN
    gp = jnp.pad(gamma.astype(jnp.float32), (0, Np - cout))
    bp = jnp.pad(beta.astype(jnp.float32), (0, Np - cout))
    scale = gp * jax.lax.rsqrt(var + BN_EPS)
    shift = bp - mean * scale
    out = bn_relu_apply(y, scale, shift, M, cout)
    return out.reshape(N, H, W, cout)


def conv_block(p, xs):
    x = conv3x3_bn_relu(p["w1"], p["g1"], p["be1"], xs)
    x = conv3x3_bn_relu(p["w2"], p["g2"], p["be2"], [x])
    return x


def conv_transpose2x2(p, x):
    # PyTorch ConvTranspose2d(k=2, s=2): each input pixel emits a 2x2 block.
    w, b = p["w"], p["b"]                  # w: (Cin, 2, 2, Cout)
    N, H, W, Cin = x.shape
    Cout = w.shape[-1]
    wm = w.reshape(Cin, 4 * Cout)
    bias4 = jnp.tile(b, 4)
    y = matmul_bias(x.reshape(N * H * W, Cin), wm, bias4, out_dtype=jnp.bfloat16)
    y = y.reshape(N, H, W, 2, 2, Cout)
    y = jnp.transpose(y, (0, 1, 3, 2, 4, 5)).reshape(N, 2 * H, 2 * W, Cout)
    return y


def final_conv1x1(p, x):
    N, H, W, Cin = x.shape
    Cout = p["w"].shape[-1]
    y = matmul_bias(x.reshape(N * H * W, Cin), p["w"], p["b"],
                    out_dtype=jnp.float32)
    return y.reshape(N, H, W, Cout)


# ----------------------------- parameters -----------------------------------

def _normal(key, shape, scale=0.1):
    return scale * jax.random.normal(key, shape, dtype=jnp.float32)


def init_unet_params(key, in_channels, out_channels, features):
    keys = iter(jax.random.split(key, 256))

    def block(cin, cout):
        # Conv biases before training-mode BatchNorm cancel exactly (BN subtracts
        # the batch mean), so they are omitted.
        return dict(
            w1=_normal(next(keys), (3, 3, cin, cout)),
            g1=jnp.ones((cout,), jnp.float32),
            be1=jnp.zeros((cout,), jnp.float32),
            w2=_normal(next(keys), (3, 3, cout, cout)),
            g2=jnp.ones((cout,), jnp.float32),
            be2=jnp.zeros((cout,), jnp.float32),
        )

    params = {"enc": [], "up": [], "dec": []}
    cin = in_channels
    for f in features:
        params["enc"].append(block(cin, f))
        cin = f
    params["bottleneck"] = block(features[-1], features[-1] * 2)
    for f in reversed(features):
        params["up"].append(dict(w=_normal(next(keys), (f * 2, 2, 2, f)),
                                 b=_normal(next(keys), (f,))))
        params["dec"].append(block(f * 2, f))
    params["final"] = dict(w=_normal(next(keys), (features[0], out_channels)),
                           b=_normal(next(keys), (out_channels,)))
    return params


# ----------------------------- forward pass ----------------------------------

def unet_forward(params, x_nchw, *, features):
    x = jnp.transpose(x_nchw, (0, 2, 3, 1)).astype(jnp.float32)   # NCHW -> NHWC
    skips = []
    for i in range(len(features)):
        x = conv_block(params["enc"][i], [x])
        skips.append(x)
        x = maxpool2x2(x)
    x = conv_block(params["bottleneck"], [x])
    skips = skips[::-1]
    for i in range(len(features)):
        x = conv_transpose2x2(params["up"][i], x)
        # torch.cat((skip, x), dim=1) is folded into the decoder conv's im2col.
        x = conv_block(params["dec"][i], [skips[i], x])
    x = final_conv1x1(params["final"], x)
    return jnp.transpose(x, (0, 3, 1, 2))           # NHWC -> NCHW


# ----------------------------- main ------------------------------------------

if __name__ == "__main__":
    key = jax.random.PRNGKey(0)
    k_param, k_x = jax.random.split(key)

    in_channels, out_channels = 1, 1
    features = (8, 16)                       # small stand-in for [64,128,256,512]
    N, H, W = 2, 16, 16

    params = init_unet_params(k_param, in_channels, out_channels, list(features))
    x = jax.random.normal(k_x, (N, in_channels, H, W), dtype=jnp.float32)

    fwd = jax.jit(functools.partial(unet_forward, features=features))
    out = jax.block_until_ready(fwd(params, x))

    assert out.shape == (N, out_channels, H, W), out.shape
    assert bool(jnp.all(jnp.isfinite(out)))
    print("KERNEL_OK")
</pallas_src>

<mosaic_0001>
module attributes {stable_mosaic.version = 11 : i64} {
  func.func @_mm_stats_kernel(%arg0: i32, %arg1: i32, %arg2: i32, %arg3: memref<512x9xbf16, #tpu.memory_space<vmem>>, %arg4: memref<9x128xbf16, #tpu.memory_space<vmem>>, %arg5: memref<512x128xbf16, #tpu.memory_space<vmem>>, %arg6: memref<1x8x128xf32, #tpu.memory_space<vmem>>, %arg7: memref<1x8x128xf32, #tpu.memory_space<vmem>>, %arg8: memref<512x128xf32, #tpu.memory_space<vmem>>) attributes {dimension_semantics = [#tpu.dimension_semantics<parallel>, #tpu.dimension_semantics<parallel>, #tpu.dimension_semantics<arbitrary>], iteration_bounds = array<i64: 1, 1, 1>, scalar_prefetch = 0 : i64, scratch_operands = 1 : i64, tpu.core_type = #tpu.core_type<tc>, window_params = [{transform_indices = @transform_0, window_bounds = array<i64: 512, 9>}, {transform_indices = @transform_1, window_bounds = array<i64: 9, 128>}, {transform_indices = @transform_2, window_bounds = array<i64: 512, 128>}, {transform_indices = @transform_3, window_bounds = array<i64: 1, 8, 128>}, {transform_indices = @transform_4, window_bounds = array<i64: 1, 8, 128>}]} {
    %c0_i32 = arith.constant 0 : i32
    %0 = arith.cmpi eq, %arg2, %c0_i32 : i32
    %1 = arith.extui %0 : i1 to i32
    %c0_i32_0 = arith.constant 0 : i32
    %2 = arith.cmpi ne, %1, %c0_i32_0 : i32
    scf.if %2 {
      %cst_10 = arith.constant 0.000000e+00 : f32
      %12 = vector.broadcast %cst_10 : f32 to vector<512x128xf32>
      %c0_11 = arith.constant 0 : index
      %c0_12 = arith.constant 0 : index
      %13 = vector.load %arg8[%c0_11, %c0_12] : memref<512x128xf32, #tpu.memory_space<vmem>>, vector<512x128xf32>
      tpu.vector_store %arg8[%c0_11, %c0_12], %12 {strides = array<i32>} : memref<512x128xf32, #tpu.memory_space<vmem>>, vector<512x128xf32>,
    } else {
    }
    %c0 = arith.constant 0 : index
    %c0_1 = arith.constant 0 : index
    %3 = vector.load %arg8[%c0, %c0_1] : memref<512x128xf32, #tpu.memory_space<vmem>>, vector<512x128xf32>
    %c0_2 = arith.constant 0 : index
    %c0_3 = arith.constant 0 : index
    %4 = vector.load %arg3[%c0_2, %c0_3] : memref<512x9xbf16, #tpu.memory_space<vmem>>, vector<512x9xbf16>
    %c0_4 = arith.constant 0 : index
    %c0_5 = arith.constant 0 : index
    %5 = vector.load %arg4[%c0_4, %c0_5] : memref<9x128xbf16, #tpu.memory_space<vmem>>, vector<9x128xbf16>
    %cst = arith.constant dense<0.000000e+00> : vector<512x128xf32>
    %6 = tpu.matmul %4, %5, %cst {dimension_numbers = #tpu.dot_dimension_numbers<[1], [0], [0], [1], [0, 0, 1, 1], [], []>} : vector<512x9xbf16>, vector<9x128xbf16>, vector<512x128xf32> -> vector<512x128xf32>
    %7 = arith.addf %3, %6 : vector<512x128xf32>
    %c0_6 = arith.constant 0 : index
    %c0_7 = arith.constant 0 : index
    %8 = vector.load %arg8[%c0_6, %c0_7] : memref<512x128xf32, #tpu.memory_space<vmem>>, vector<512x128xf32>
    tpu.vector_store %arg8[%c0_6, %c0_7], %7 {strides = array<i32>} : memref<512x128xf32, #tpu.memory_space<vmem>>, vector<512x128xf32>,
    %c0_i32_8 = arith.constant 0 : i32
    %9 = arith.cmpi eq, %arg2, %c0_i32_8 : i32
    %10 = arith.extui %9 : i1 to i32
    %c0_i32_9 = arith.constant 0 : i32
    %11 = arith.cmpi ne, %10, %c0_i32_9 : i32
    scf.if %11 {
      %c0_10 = arith.constant 0 : index
      %c0_11 = arith.constant 0 : index
      %12 = vector.load %arg8[%c0_10, %c0_11] : memref<512x128xf32, #tpu.memory_space<vmem>>, vector<512x128xf32>
      %13 = arith.truncf %12 : vector<512x128xf32> to vector<512x128xbf16>
      %c0_12 = arith.constant 0 : index
      %c0_13 = arith.constant 0 : index
      %14 = vector.load %arg5[%c0_12, %c0_13] : memref<512x128xbf16, #tpu.memory_space<vmem>>, vector<512x128xbf16>
      tpu.vector_store %arg5[%c0_12, %c0_13], %13 {strides = array<i32>} : memref<512x128xbf16, #tpu.memory_space<vmem>>, vector<512x128xbf16>,
      %15 = tpu.iota {dimensions = array<i32: 0>} : vector<8x128xi32>
      %c0_i32_14 = arith.constant 0 : i32
      %16 = vector.broadcast %c0_i32_14 : i32 to vector<8x128xi32>
      %17 = arith.cmpi eq, %15, %16 : vector<8x128xi32>
      %cst_15 = arith.constant dense<0.000000e+00> : vector<128xf32>
      %18 = vector.multi_reduction <add>, %12, %cst_15 [0] : vector<512x128xf32> to vector<128xf32>
      %19 = vector.shape_cast %18 : vector<128xf32> to vector<1x128xf32>
      %cst_16 = arith.constant 0.000000e+00 : f32
      %20 = vector.shape_cast %19 : vector<1x128xf32> to vector<1x128xf32>
      %21 = vector.broadcast %20 : vector<1x128xf32> to vector<8x128xf32>
      %22 = vector.broadcast %cst_16 : f32 to vector<8x128xf32>
      %23 = arith.select %17, %21, %22 : vector<8x128xi1>, vector<8x128xf32>
      %c0_17 = arith.constant 0 : index
      %c0_18 = arith.constant 0 : index
      %c0_19 = arith.constant 0 : index
      %24 = vector.load %arg6[%c0_17, %c0_18, %c0_19] : memref<1x8x128xf32, #tpu.memory_space<vmem>>, vector<1x8x128xf32>
      %25 = vector.shape_cast %24 : vector<1x8x128xf32> to vector<8x128xf32>
      %26 = vector.shape_cast %23 : vector<8x128xf32> to vector<1x8x128xf32>
      tpu.vector_store %arg6[%c0_17, %c0_18, %c0_19], %26 {strides = array<i32>} : memref<1x8x128xf32, #tpu.memory_space<vmem>>, vector<1x8x128xf32>,
      %27 = arith.mulf %12, %12 : vector<512x128xf32>
      %cst_20 = arith.constant dense<0.000000e+00> : vector<128xf32>
      %28 = vector.multi_reduction <add>, %27, %cst_20 [0] : vector<512x128xf32> to vector<128xf32>
      %29 = vector.shape_cast %28 : vector<128xf32> to vector<1x128xf32>
      %cst_21 = arith.constant 0.000000e+00 : f32
      %30 = vector.shape_cast %29 : vector<1x128xf32> to vector<1x128xf32>
      %31 = vector.broadcast %30 : vector<1x128xf32> to vector<8x128xf32>
      %32 = vector.broadcast %cst_21 : f32 to vector<8x128xf32>
      %33 = arith.select %17, %31, %32 : vector<8x128xi1>, vector<8x128xf32>
      %c0_22 = arith.constant 0 : index
      %c0_23 = arith.constant 0 : index
      %c0_24 = arith.constant 0 : index
      %34 = vector.load %arg7[%c0_22, %c0_23, %c0_24] : memref<1x8x128xf32, #tpu.memory_space<vmem>>, vector<1x8x128xf32>
      %35 = vector.shape_cast %34 : vector<1x8x128xf32> to vector<8x128xf32>
      %36 = vector.shape_cast %33 : vector<8x128xf32> to vector<1x8x128xf32>
      tpu.vector_store %arg7[%c0_22, %c0_23, %c0_24], %36 {strides = array<i32>} : memref<1x8x128xf32, #tpu.memory_space<vmem>>, vector<1x8x128xf32>,
    } else {
    }
    return
  }
  func.func @transform_0(%arg0: i32, %arg1: i32, %arg2: i32) -> (i32, i32) {
    %c0_i32 = arith.constant 0 : i32
    return %arg0, %arg2 : i32, i32
  }
  func.func @transform_1(%arg0: i32, %arg1: i32, %arg2: i32) -> (i32, i32) {
    %c0_i32 = arith.constant 0 : i32
    return %arg2, %arg1 : i32, i32
  }
  func.func @transform_2(%arg0: i32, %arg1: i32, %arg2: i32) -> (i32, i32) {
    %c0_i32 = arith.constant 0 : i32
    return %arg0, %arg1 : i32, i32
  }
  func.func @transform_3(%arg0: i32, %arg1: i32, %arg2: i32) -> (i32, i32, i32) {
    %c0_i32 = arith.constant 0 : i32
    %c0_i32_0 = arith.constant 0 : i32
    return %arg0, %c0_i32, %arg1 : i32, i32, i32
  }
  func.func @transform_4(%arg0: i32, %arg1: i32, %arg2: i32) -> (i32, i32, i32) {
    %c0_i32 = arith.constant 0 : i32
    %c0_i32_0 = arith.constant 0 : i32
    return %arg0, %c0_i32, %arg1 : i32, i32, i32
  }
}

module attributes {stable_mosaic.version = 11 : i64} {
  func.func @_bn_relu_kernel(%arg0: i32, %arg1: memref<512x128xbf16, #tpu.memory_space<vmem>>, %arg2: memref<1x128xf32, #tpu.memory_space<vmem>>, %arg3: memref<1x128xf32, #tpu.memory_space<vmem>>, %arg4: memref<512x8xbf16, #tpu.memory_space<vmem>>) attributes {dimension_semantics = [#tpu.dimension_semantics<parallel>], iteration_bounds = array<i64: 1>, scalar_prefetch = 0 : i64, scratch_operands = 0 : i64, tpu.core_type = #tpu.core_type<tc>, window_params = [{transform_indices = @transform_0, window_bounds = array<i64: 512, 128>}, {pipeline_mode = #tpu.pipeline_mode<synchronous>, transform_indices = @transform_1, window_bounds = array<i64: 1, 128>}, {pipeline_mode = #tpu.pipeline_mode<synchronous>, transform_indices = @transform_2, window_bounds = array<i64: 1, 128>}, {transform_indices = @transform_3, window_bounds = array<i64: 512, 8>}]} {
    %c0 = arith.constant 0 : index
    %c0_0 = arith.constant 0 : index
    %0 = vector.load %arg1[%c0, %c0_0] : memref<512x128xbf16, #tpu.memory_space<vmem>>, vector<512x128xbf16>
    %1 = arith.extf %0 : vector<512x128xbf16> to vector<512x128xf32>
    %c0_1 = arith.constant 0 : index
    %c0_2 = arith.constant 0 : index
    %2 = vector.load %arg2[%c0_1, %c0_2] : memref<1x128xf32, #tpu.memory_space<vmem>>, vector<1x128xf32>
    %3 = vector.broadcast %2 : vector<1x128xf32> to vector<512x128xf32>
    %4 = arith.mulf %1, %3 : vector<512x128xf32>
    %c0_3 = arith.constant 0 : index
    %c0_4 = arith.constant 0 : index
    %5 = vector.load %arg3[%c0_3, %c0_4] : memref<1x128xf32, #tpu.memory_space<vmem>>, vector<1x128xf32>
    %6 = vector.broadcast %5 : vector<1x128xf32> to vector<512x128xf32>
    %7 = arith.addf %4, %6 : vector<512x128xf32>
    %cst = arith.constant 0.000000e+00 : f32
    %8 = vector.broadcast %cst : f32 to vector<512x128xf32>
    %9 = arith.maximumf %7, %8 : vector<512x128xf32>
    %10 = vector.extract_strided_slice %9 {offsets = [0, 0], sizes = [512, 8], strides = [1, 1]} : vector<512x128xf32> to vector<512x8xf32>
    %11 = arith.truncf %10 : vector<512x8xf32> to vector<512x8xbf16>
    %c0_5 = arith.constant 0 : index
    %c0_6 = arith.constant 0 : index
    %12 = vector.load %arg4[%c0_5, %c0_6] : memref<512x8xbf16, #tpu.memory_space<vmem>>, vector<512x8xbf16>
    tpu.vector_store %arg4[%c0_5, %c0_6], %11 {strides = array<i32>} : memref<512x8xbf16, #tpu.memory_space<vmem>>, vector<512x8xbf16>,
    return
  }
  func.func @transform_0(%arg0: i32) -> (i32, i32) {
    %c0_i32 = arith.constant 0 : i32
    %c0_i32_0 = arith.constant 0 : i32
    return %arg0, %c0_i32 : i32, i32
  }
  func.func @transform_1(%arg0: i32) -> (i32, i32) {
    %c0_i32 = arith.constant 0 : i32
    %c0_i32_0 = arith.constant 0 : i32
    %c0_i32_1 = arith.constant 0 : i32
    return %c0_i32, %c0_i32_0 : i32, i32
  }
  func.func @transform_2(%arg0: i32) -> (i32, i32) {
    %c0_i32 = arith.constant 0 : i32
    %c0_i32_0 = arith.constant 0 : i32
    %c0_i32_1 = arith.constant 0 : i32
    return %c0_i32, %c0_i32_0 : i32, i32
  }
  func.func @transform_3(%arg0: i32) -> (i32, i32) {
    %c0_i32 = arith.constant 0 : i32
    %c0_i32_0 = arith.constant 0 : i32
    return %arg0, %c0_i32 : i32, i32
  }
}

module attributes {stable_mosaic.version = 11 : i64} {
  func.func @_mm_stats_kernel(%arg0: i32, %arg1: i32, %arg2: i32, %arg3: memref<512x72xbf16, #tpu.memory_space<vmem>>, %arg4: memref<72x128xbf16, #tpu.memory_space<vmem>>, %arg5: memref<512x128xbf16, #tpu.memory_space<vmem>>, %arg6: memref<1x8x128xf32, #tpu.memory_space<vmem>>, %arg7: memref<1x8x128xf32, #tpu.memory_space<vmem>>, %arg8: memref<512x128xf32, #tpu.memory_space<vmem>>) attributes {dimension_semantics = [#tpu.dimension_semantics<parallel>, #tpu.dimension_semantics<parallel>, #tpu.dimension_semantics<arbitrary>], iteration_bounds = array<i64: 1, 1, 1>, scalar_prefetch = 0 : i64, scratch_operands = 1 : i64, tpu.core_type = #tpu.core_type<tc>, window_params = [{transform_indices = @transform_0, window_bounds = array<i64: 512, 72>}, {transform_indices = @transform_1, window_bounds = array<i64: 72, 128>}, {transform_indices = @transform_2, window_bounds = array<i64: 512, 128>}, {transform_indices = @transform_3, window_bounds = array<i64: 1, 8, 128>}, {transform_indices = @transform_4, window_bounds = array<i64: 1, 8, 128>}]} {
    %c0_i32 = arith.constant 0 : i32
    %0 = arith.cmpi eq, %arg2, %c0_i32 : i32
    %1 = arith.extui %0 : i1 to i32
    %c0_i32_0 = arith.constant 0 : i32
    %2 = arith.cmpi ne, %1, %c0_i32_0 : i32
    scf.if %2 {
      %cst_10 = arith.constant 0.000000e+00 : f32
      %12 = vector.broadcast %cst_10 : f32 to vector<512x128xf32>
      %c0_11 = arith.constant 0 : index
      %c0_12 = arith.constant 0 : index
      %13 = vector.load %arg8[%c0_11, %c0_12] : memref<512x128xf32, #tpu.memory_space<vmem>>, vector<512x128xf32>
      tpu.vector_store %arg8[%c0_11, %c0_12], %12 {strides = array<i32>} : memref<512x128xf32, #tpu.memory_space<vmem>>, vector<512x128xf32>,
    } else {
    }
    %c0 = arith.constant 0 : index
    %c0_1 = arith.constant 0 : index
    %3 = vector.load %arg8[%c0, %c0_1] : memref<512x128xf32, #tpu.memory_space<vmem>>, vector<512x128xf32>
    %c0_2 = arith.constant 0 : index
    %c0_3 = arith.constant 0 : index
    %4 = vector.load %arg3[%c0_2, %c0_3] : memref<512x72xbf16, #tpu.memory_space<vmem>>, vector<512x72xbf16>
    %c0_4 = arith.constant 0 : index
    %c0_5 = arith.constant 0 : index
    %5 = vector.load %arg4[%c0_4, %c0_5] : memref<72x128xbf16, #tpu.memory_space<vmem>>, vector<72x128xbf16>
    %cst = arith.constant dense<0.000000e+00> : vector<512x128xf32>
    %6 = tpu.matmul %4, %5, %cst {dimension_numbers = #tpu.dot_dimension_numbers<[1], [0], [0], [1], [0, 0, 1, 1], [], []>} : vector<512x72xbf16>, vector<72x128xbf16>, vector<512x128xf32> -> vector<512x128xf32>
    %7 = arith.addf %3, %6 : vector<512x128xf32>
    %c0_6 = arith.constant 0 : index
    %c0_7 = arith.constant 0 : index
    %8 = vector.load %arg8[%c0_6, %c0_7] : memref<512x128xf32, #tpu.memory_space<vmem>>, vector<512x128xf32>
    tpu.vector_store %arg8[%c0_6, %c0_7], %7 {strides = array<i32>} : memref<512x128xf32, #tpu.memory_space<vmem>>, vector<512x128xf32>,
    %c0_i32_8 = arith.constant 0 : i32
    %9 = arith.cmpi eq, %arg2, %c0_i32_8 : i32
    %10 = arith.extui %9 : i1 to i32
    %c0_i32_9 = arith.constant 0 : i32
    %11 = arith.cmpi ne, %10, %c0_i32_9 : i32
    scf.if %11 {
      %c0_10 = arith.constant 0 : index
      %c0_11 = arith.constant 0 : index
      %12 = vector.load %arg8[%c0_10, %c0_11] : memref<512x128xf32, #tpu.memory_space<vmem>>, vector<512x128xf32>
      %13 = arith.truncf %12 : vector<512x128xf32> to vector<512x128xbf16>
      %c0_12 = arith.constant 0 : index
      %c0_13 = arith.constant 0 : index
      %14 = vector.load %arg5[%c0_12, %c0_13] : memref<512x128xbf16, #tpu.memory_space<vmem>>, vector<512x128xbf16>
      tpu.vector_store %arg5[%c0_12, %c0_13], %13 {strides = array<i32>} : memref<512x128xbf16, #tpu.memory_space<vmem>>, vector<512x128xbf16>,
      %15 = tpu.iota {dimensions = array<i32: 0>} : vector<8x128xi32>
      %c0_i32_14 = arith.constant 0 : i32
      %16 = vector.broadcast %c0_i32_14 : i32 to vector<8x128xi32>
      %17 = arith.cmpi eq, %15, %16 : vector<8x128xi32>
      %cst_15 = arith.constant dense<0.000000e+00> : vector<128xf32>
      %18 = vector.multi_reduction <add>, %12, %cst_15 [0] : vector<512x128xf32> to vector<128xf32>
      %19 = vector.shape_cast %18 : vector<128xf32> to vector<1x128xf32>
      %cst_16 = arith.constant 0.000000e+00 : f32
      %20 = vector.shape_cast %19 : vector<1x128xf32> to vector<1x128xf32>
      %21 = vector.broadcast %20 : vector<1x128xf32> to vector<8x128xf32>
      %22 = vector.broadcast %cst_16 : f32 to vector<8x128xf32>
      %23 = arith.select %17, %21, %22 : vector<8x128xi1>, vector<8x128xf32>
      %c0_17 = arith.constant 0 : index
      %c0_18 = arith.constant 0 : index
      %c0_19 = arith.constant 0 : index
      %24 = vector.load %arg6[%c0_17, %c0_18, %c0_19] : memref<1x8x128xf32, #tpu.memory_space<vmem>>, vector<1x8x128xf32>
      %25 = vector.shape_cast %24 : vector<1x8x128xf32> to vector<8x128xf32>
      %26 = vector.shape_cast %23 : vector<8x128xf32> to vector<1x8x128xf32>
      tpu.vector_store %arg6[%c0_17, %c0_18, %c0_19], %26 {strides = array<i32>} : memref<1x8x128xf32, #tpu.memory_space<vmem>>, vector<1x8x128xf32>,
      %27 = arith.mulf %12, %12 : vector<512x128xf32>
      %cst_20 = arith.constant dense<0.000000e+00> : vector<128xf32>
      %28 = vector.multi_reduction <add>, %27, %cst_20 [0] : vector<512x128xf32> to vector<128xf32>
      %29 = vector.shape_cast %28 : vector<128xf32> to vector<1x128xf32>
      %cst_21 = arith.constant 0.000000e+00 : f32
      %30 = vector.shape_cast %29 : vector<1x128xf32> to vector<1x128xf32>
      %31 = vector.broadcast %30 : vector<1x128xf32> to vector<8x128xf32>
      %32 = vector.broadcast %cst_21 : f32 to vector<8x128xf32>
      %33 = arith.select %17, %31, %32 : vector<8x128xi1>, vector<8x128xf32>
      %c0_22 = arith.constant 0 : index
      %c0_23 = arith.constant 0 : index
      %c0_24 = arith.constant 0 : index
      %34 = vector.load %arg7[%c0_22, %c0_23, %c0_24] : memref<1x8x128xf32, #tpu.memory_space<vmem>>, vector<1x8x128xf32>
      %35 = vector.shape_cast %34 : vector<1x8x128xf32> to vector<8x128xf32>
      %36 = vector.shape_cast %33 : vector<8x128xf32> to vector<1x8x128xf32>
      tpu.vector_store %arg7[%c0_22, %c0_23, %c0_24], %36 {strides = array<i32>} : memref<1x8x128xf32, #tpu.memory_space<vmem>>, vector<1x8x128xf32>,
    } else {
    }
    return
  }
  func.func @transform_0(%arg0: i32, %arg1: i32, %arg2: i32) -> (i32, i32) {
    %c0_i32 = arith.constant 0 : i32
    return %arg0, %arg2 : i32, i32
  }
  func.func @transform_1(%arg0: i32, %arg1: i32, %arg2: i32) -> (i32, i32) {
    %c0_i32 = arith.constant 0 : i32
    return %arg2, %arg1 : i32, i32
  }
  func.func @transform_2(%arg0: i32, %arg1: i32, %arg2: i32) -> (i32, i32) {
    %c0_i32 = arith.constant 0 : i32
    return %arg0, %arg1 : i32, i32
  }
  func.func @transform_3(%arg0: i32, %arg1: i32, %arg2: i32) -> (i32, i32, i32) {
    %c0_i32 = arith.constant 0 : i32
    %c0_i32_0 = arith.constant 0 : i32
    return %arg0, %c0_i32, %arg1 : i32, i32, i32
  }
  func.func @transform_4(%arg0: i32, %arg1: i32, %arg2: i32) -> (i32, i32, i32) {
    %c0_i32 = arith.constant 0 : i32
    %c0_i32_0 = arith.constant 0 : i32
    return %arg0, %c0_i32, %arg1 : i32, i32, i32
  }
}

module attributes {stable_mosaic.version = 11 : i64} {
  func.func @_maxpool_kernel(%arg0: i32, %arg1: memref<16x2x8x2x8xbf16, #tpu.memory_space<vmem>>, %arg2: memref<16x8x1x8xbf16, #tpu.memory_space<vmem>>) attributes {dimension_semantics = [#tpu.dimension_semantics<parallel>], iteration_bounds = array<i64: 1>, scalar_prefetch = 0 : i64, scratch_operands = 0 : i64, tpu.core_type = #tpu.core_type<tc>, window_params = [{transform_indices = @transform_0, window_bounds = array<i64: 16, 2, 8, 2, 8>}, {transform_indices = @transform_1, window_bounds = array<i64: 16, 8, 1, 8>}]} {
    %c0 = arith.constant 0 : index
    %c0_0 = arith.constant 0 : index
    %c0_1 = arith.constant 0 : index
    %c0_2 = arith.constant 0 : index
    %c0_3 = arith.constant 0 : index
    %0 = vector.load %arg1[%c0, %c0_0, %c0_1, %c0_2, %c0_3] : memref<16x2x8x2x8xbf16, #tpu.memory_space<vmem>>, vector<16x2x8x2x8xbf16>
    %1 = vector.extract_strided_slice %0 {offsets = [0, 0, 0, 0, 0], sizes = [16, 1, 8, 2, 8], strides = [1, 1, 1, 1, 1]} : vector<16x2x8x2x8xbf16> to vector<16x1x8x2x8xbf16>
    %2 = vector.shape_cast %1 : vector<16x1x8x2x8xbf16> to vector<16x8x2x8xbf16>
    %3 = vector.extract_strided_slice %0 {offsets = [0, 1, 0, 0, 0], sizes = [16, 1, 8, 2, 8], strides = [1, 1, 1, 1, 1]} : vector<16x2x8x2x8xbf16> to vector<16x1x8x2x8xbf16>
    %4 = vector.shape_cast %3 : vector<16x1x8x2x8xbf16> to vector<16x8x2x8xbf16>
    %5 = arith.maximumf %2, %4 : vector<16x8x2x8xbf16>
    %cst = arith.constant dense<0xFF80> : vector<16x8x8xbf16>
    %6 = vector.multi_reduction <maximumf>, %5, %cst [2] : vector<16x8x2x8xbf16> to vector<16x8x8xbf16>
    %7 = vector.shape_cast %6 : vector<16x8x8xbf16> to vector<16x8x1x8xbf16>
    %c0_4 = arith.constant 0 : index
    %c0_5 = arith.constant 0 : index
    %c0_6 = arith.constant 0 : index
    %c0_7 = arith.constant 0 : index
    %8 = vector.load %arg2[%c0_4, %c0_5, %c0_6, %c0_7] : memref<16x8x1x8xbf16, #tpu.memory_space<vmem>>, vector<16x8x1x8xbf16>
    tpu.vector_store %arg2[%c0_4, %c0_5, %c0_6, %c0_7], %7 {strides = array<i32>} : memref<16x8x1x8xbf16, #tpu.memory_space<vmem>>, vector<16x8x1x8xbf16>,
    return
  }
  func.func @transform_0(%arg0: i32) -> (i32, i32, i32, i32, i32) {
    %c0_i32 = arith.constant 0 : i32
    %c0_i32_0 = arith.constant 0 : i32
    %c0_i32_1 = arith.constant 0 : i32
    %c0_i32_2 = arith.constant 0 : i32
    %c0_i32_3 = arith.constant 0 : i32
    return %arg0, %c0_i32, %c0_i32_0, %c0_i32_1, %c0_i32_2 : i32, i32, i32, i32, i32
  }
  func.func @transform_1(%arg0: i32) -> (i32, i32, i32, i32) {
    %c0_i32 = arith.constant 0 : i32
    %c0_i32_0 = arith.constant 0 : i32
    %c0_i32_1 = arith.constant 0 : i32
    %c0_i32_2 = arith.constant 0 : i32
    return %arg0, %c0_i32, %c0_i32_0, %c0_i32_1 : i32, i32, i32, i32
  }
}

module attributes {stable_mosaic.version = 11 : i64} {
  func.func @_mm_stats_kernel(%arg0: i32, %arg1: i32, %arg2: i32, %arg3: memref<128x72xbf16, #tpu.memory_space<vmem>>, %arg4: memref<72x128xbf16, #tpu.memory_space<vmem>>, %arg5: memref<128x128xbf16, #tpu.memory_space<vmem>>, %arg6: memref<1x8x128xf32, #tpu.memory_space<vmem>>, %arg7: memref<1x8x128xf32, #tpu.memory_space<vmem>>, %arg8: memref<128x128xf32, #tpu.memory_space<vmem>>) attributes {dimension_semantics = [#tpu.dimension_semantics<parallel>, #tpu.dimension_semantics<parallel>, #tpu.dimension_semantics<arbitrary>], iteration_bounds = array<i64: 1, 1, 1>, scalar_prefetch = 0 : i64, scratch_operands = 1 : i64, tpu.core_type = #tpu.core_type<tc>, window_params = [{transform_indices = @transform_0, window_bounds = array<i64: 128, 72>}, {transform_indices = @transform_1, window_bounds = array<i64: 72, 128>}, {transform_indices = @transform_2, window_bounds = array<i64: 128, 128>}, {transform_indices = @transform_3, window_bounds = array<i64: 1, 8, 128>}, {transform_indices = @transform_4, window_bounds = array<i64: 1, 8, 128>}]} {
    %c0_i32 = arith.constant 0 : i32
    %0 = arith.cmpi eq, %arg2, %c0_i32 : i32
    %1 = arith.extui %0 : i1 to i32
    %c0_i32_0 = arith.constant 0 : i32
    %2 = arith.cmpi ne, %1, %c0_i32_0 : i32
    scf.if %2 {
      %cst_10 = arith.constant 0.000000e+00 : f32
      %12 = vector.broadcast %cst_10 : f32 to vector<128x128xf32>
      %c0_11 = arith.constant 0 : index
      %c0_12 = arith.constant 0 : index
      %13 = vector.load %arg8[%c0_11, %c0_12] : memref<128x128xf32, #tpu.memory_space<vmem>>, vector<128x128xf32>
      tpu.vector_store %arg8[%c0_11, %c0_12], %12 {strides = array<i32>} : memref<128x128xf32, #tpu.memory_space<vmem>>, vector<128x128xf32>,
    } else {
    }
    %c0 = arith.constant 0 : index
    %c0_1 = arith.constant 0 : index
    %3 = vector.load %arg8[%c0, %c0_1] : memref<128x128xf32, #tpu.memory_space<vmem>>, vector<128x128xf32>
    %c0_2 = arith.constant 0 : index
    %c0_3 = arith.constant 0 : index
    %4 = vector.load %arg3[%c0_2, %c0_3] : memref<128x72xbf16, #tpu.memory_space<vmem>>, vector<128x72xbf16>
    %c0_4 = arith.constant 0 : index
    %c0_5 = arith.constant 0 : index
    %5 = vector.load %arg4[%c0_4, %c0_5] : memref<72x128xbf16, #tpu.memory_space<vmem>>, vector<72x128xbf16>
    %cst = arith.constant dense<0.000000e+00> : vector<128x128xf32>
    %6 = tpu.matmul %4, %5, %cst {dimension_numbers = #tpu.dot_dimension_numbers<[1], [0], [0], [1], [0, 0, 1, 1], [], []>} : vector<128x72xbf16>, vector<72x128xbf16>, vector<128x128xf32> -> vector<128x128xf32>
    %7 = arith.addf %3, %6 : vector<128x128xf32>
    %c0_6 = arith.constant 0 : index
    %c0_7 = arith.constant 0 : index
    %8 = vector.load %arg8[%c0_6, %c0_7] : memref<128x128xf32, #tpu.memory_space<vmem>>, vector<128x128xf32>
    tpu.vector_store %arg8[%c0_6, %c0_7], %7 {strides = array<i32>} : memref<128x128xf32, #tpu.memory_space<vmem>>, vector<128x128xf32>,
    %c0_i32_8 = arith.constant 0 : i32
    %9 = arith.cmpi eq, %arg2, %c0_i32_8 : i32
    %10 = arith.extui %9 : i1 to i32
    %c0_i32_9 = arith.constant 0 : i32
    %11 = arith.cmpi ne, %10, %c0_i32_9 : i32
    scf.if %11 {
      %c0_10 = arith.constant 0 : index
      %c0_11 = arith.constant 0 : index
      %12 = vector.load %arg8[%c0_10, %c0_11] : memref<128x128xf32, #tpu.memory_space<vmem>>, vector<128x128xf32>
      %13 = arith.truncf %12 : vector<128x128xf32> to vector<128x128xbf16>
      %c0_12 = arith.constant 0 : index
      %c0_13 = arith.constant 0 : index
      %14 = vector.load %arg5[%c0_12, %c0_13] : memref<128x128xbf16, #tpu.memory_space<vmem>>, vector<128x128xbf16>
      tpu.vector_store %arg5[%c0_12, %c0_13], %13 {strides = array<i32>} : memref<128x128xbf16, #tpu.memory_space<vmem>>, vector<128x128xbf16>,
      %15 = tpu.iota {dimensions = array<i32: 0>} : vector<8x128xi32>
      %c0_i32_14 = arith.constant 0 : i32
      %16 = vector.broadcast %c0_i32_14 : i32 to vector<8x128xi32>
      %17 = arith.cmpi eq, %15, %16 : vector<8x128xi32>
      %cst_15 = arith.constant dense<0.000000e+00> : vector<128xf32>
      %18 = vector.multi_reduction <add>, %12, %cst_15 [0] : vector<128x128xf32> to vector<128xf32>
      %19 = vector.shape_cast %18 : vector<128xf32> to vector<1x128xf32>
      %cst_16 = arith.constant 0.000000e+00 : f32
      %20 = vector.shape_cast %19 : vector<1x128xf32> to vector<1x128xf32>
      %21 = vector.broadcast %20 : vector<1x128xf32> to vector<8x128xf32>
      %22 = vector.broadcast %cst_16 : f32 to vector<8x128xf32>
      %23 = arith.select %17, %21, %22 : vector<8x128xi1>, vector<8x128xf32>
      %c0_17 = arith.constant 0 : index
      %c0_18 = arith.constant 0 : index
      %c0_19 = arith.constant 0 : index
      %24 = vector.load %arg6[%c0_17, %c0_18, %c0_19] : memref<1x8x128xf32, #tpu.memory_space<vmem>>, vector<1x8x128xf32>
      %25 = vector.shape_cast %24 : vector<1x8x128xf32> to vector<8x128xf32>
      %26 = vector.shape_cast %23 : vector<8x128xf32> to vector<1x8x128xf32>
      tpu.vector_store %arg6[%c0_17, %c0_18, %c0_19], %26 {strides = array<i32>} : memref<1x8x128xf32, #tpu.memory_space<vmem>>, vector<1x8x128xf32>,
      %27 = arith.mulf %12, %12 : vector<128x128xf32>
      %cst_20 = arith.constant dense<0.000000e+00> : vector<128xf32>
      %28 = vector.multi_reduction <add>, %27, %cst_20 [0] : vector<128x128xf32> to vector<128xf32>
      %29 = vector.shape_cast %28 : vector<128xf32> to vector<1x128xf32>
      %cst_21 = arith.constant 0.000000e+00 : f32
      %30 = vector.shape_cast %29 : vector<1x128xf32> to vector<1x128xf32>
      %31 = vector.broadcast %30 : vector<1x128xf32> to vector<8x128xf32>
      %32 = vector.broadcast %cst_21 : f32 to vector<8x128xf32>
      %33 = arith.select %17, %31, %32 : vector<8x128xi1>, vector<8x128xf32>
      %c0_22 = arith.constant 0 : index
      %c0_23 = arith.constant 0 : index
      %c0_24 = arith.constant 0 : index
      %34 = vector.load %arg7[%c0_22, %c0_23, %c0_24] : memref<1x8x128xf32, #tpu.memory_space<vmem>>, vector<1x8x128xf32>
      %35 = vector.shape_cast %34 : vector<1x8x128xf32> to vector<8x128xf32>
      %36 = vector.shape_cast %33 : vector<8x128xf32> to vector<1x8x128xf32>
      tpu.vector_store %arg7[%c0_22, %c0_23, %c0_24], %36 {strides = array<i32>} : memref<1x8x128xf32, #tpu.memory_space<vmem>>, vector<1x8x128xf32>,
    } else {
    }
    return
  }
  func.func @transform_0(%arg0: i32, %arg1: i32, %arg2: i32) -> (i32, i32) {
    %c0_i32 = arith.constant 0 : i32
    return %arg0, %arg2 : i32, i32
  }
  func.func @transform_1(%arg0: i32, %arg1: i32, %arg2: i32) -> (i32, i32) {
    %c0_i32 = arith.constant 0 : i32
    return %arg2, %arg1 : i32, i32
  }
  func.func @transform_2(%arg0: i32, %arg1: i32, %arg2: i32) -> (i32, i32) {
    %c0_i32 = arith.constant 0 : i32
    return %arg0, %arg1 : i32, i32
  }
  func.func @transform_3(%arg0: i32, %arg1: i32, %arg2: i32) -> (i32, i32, i32) {
    %c0_i32 = arith.constant 0 : i32
    %c0_i32_0 = arith.constant 0 : i32
    return %arg0, %c0_i32, %arg1 : i32, i32, i32
  }
  func.func @transform_4(%arg0: i32, %arg1: i32, %arg2: i32) -> (i32, i32, i32) {
    %c0_i32 = arith.constant 0 : i32
    %c0_i32_0 = arith.constant 0 : i32
    return %arg0, %c0_i32, %arg1 : i32, i32, i32
  }
}

module attributes {stable_mosaic.version = 11 : i64} {
  func.func @_bn_relu_kernel(%arg0: i32, %arg1: memref<128x128xbf16, #tpu.memory_space<vmem>>, %arg2: memref<1x128xf32, #tpu.memory_space<vmem>>, %arg3: memref<1x128xf32, #tpu.memory_space<vmem>>, %arg4: memref<128x16xbf16, #tpu.memory_space<vmem>>) attributes {dimension_semantics = [#tpu.dimension_semantics<parallel>], iteration_bounds = array<i64: 1>, scalar_prefetch = 0 : i64, scratch_operands = 0 : i64, tpu.core_type = #tpu.core_type<tc>, window_params = [{transform_indices = @transform_0, window_bounds = array<i64: 128, 128>}, {pipeline_mode = #tpu.pipeline_mode<synchronous>, transform_indices = @transform_1, window_bounds = array<i64: 1, 128>}, {pipeline_mode = #tpu.pipeline_mode<synchronous>, transform_indices = @transform_2, window_bounds = array<i64: 1, 128>}, {transform_indices = @transform_3, window_bounds = array<i64: 128, 16>}]} {
    %c0 = arith.constant 0 : index
    %c0_0 = arith.constant 0 : index
    %0 = vector.load %arg1[%c0, %c0_0] : memref<128x128xbf16, #tpu.memory_space<vmem>>, vector<128x128xbf16>
    %1 = arith.extf %0 : vector<128x128xbf16> to vector<128x128xf32>
    %c0_1 = arith.constant 0 : index
    %c0_2 = arith.constant 0 : index
    %2 = vector.load %arg2[%c0_1, %c0_2] : memref<1x128xf32, #tpu.memory_space<vmem>>, vector<1x128xf32>
    %3 = vector.broadcast %2 : vector<1x128xf32> to vector<128x128xf32>
    %4 = arith.mulf %1, %3 : vector<128x128xf32>
    %c0_3 = arith.constant 0 : index
    %c0_4 = arith.constant 0 : index
    %5 = vector.load %arg3[%c0_3, %c0_4] : memref<1x128xf32, #tpu.memory_space<vmem>>, vector<1x128xf32>
    %6 = vector.broadcast %5 : vector<1x128xf32> to vector<128x128xf32>
    %7 = arith.addf %4, %6 : vector<128x128xf32>
    %cst = arith.constant 0.000000e+00 : f32
    %8 = vector.broadcast %cst : f32 to vector<128x128xf32>
    %9 = arith.maximumf %7, %8 : vector<128x128xf32>
    %10 = vector.extract_strided_slice %9 {offsets = [0, 0], sizes = [128, 16], strides = [1, 1]} : vector<128x128xf32> to vector<128x16xf32>
    %11 = arith.truncf %10 : vector<128x16xf32> to vector<128x16xbf16>
    %c0_5 = arith.constant 0 : index
    %c0_6 = arith.constant 0 : index
    %12 = vector.load %arg4[%c0_5, %c0_6] : memref<128x16xbf16, #tpu.memory_space<vmem>>, vector<128x16xbf16>
    tpu.vector_store %arg4[%c0_5, %c0_6], %11 {strides = array<i32>} : memref<128x16xbf16, #tpu.memory_space<vmem>>, vector<128x16xbf16>,
    return
  }
  func.func @transform_0(%arg0: i32) -> (i32, i32) {
    %c0_i32 = arith.constant 0 : i32
    %c0_i32_0 = arith.constant 0 : i32
    return %arg0, %c0_i32 : i32, i32
  }
  func.func @transform_1(%arg0: i32) -> (i32, i32) {
    %c0_i32 = arith.constant 0 : i32
    %c0_i32_0 = arith.constant 0 : i32
    %c0_i32_1 = arith.constant 0 : i32
    return %c0_i32, %c0_i32_0 : i32, i32
  }
  func.func @transform_2(%arg0: i32) -> (i32, i32) {
    %c0_i32 = arith.constant 0 : i32
    %c0_i32_0 = arith.constant 0 : i32
    %c0_i32_1 = arith.constant 0 : i32
    return %c0_i32, %c0_i32_0 : i32, i32
  }
  func.func @transform_3(%arg0: i32) -> (i32, i32) {
    %c0_i32 = arith.constant 0 : i32
    %c0_i32_0 = arith.constant 0 : i32
    return %arg0, %c0_i32 : i32, i32
  }
}

module attributes {stable_mosaic.version = 11 : i64} {
  func.func @_mm_stats_kernel(%arg0: i32, %arg1: i32, %arg2: i32, %arg3: memref<128x144xbf16, #tpu.memory_space<vmem>>, %arg4: memref<144x128xbf16, #tpu.memory_space<vmem>>, %arg5: memref<128x128xbf16, #tpu.memory_space<vmem>>, %arg6: memref<1x8x128xf32, #tpu.memory_space<vmem>>, %arg7: memref<1x8x128xf32, #tpu.memory_space<vmem>>, %arg8: memref<128x128xf32, #tpu.memory_space<vmem>>) attributes {dimension_semantics = [#tpu.dimension_semantics<parallel>, #tpu.dimension_semantics<parallel>, #tpu.dimension_semantics<arbitrary>], iteration_bounds = array<i64: 1, 1, 1>, scalar_prefetch = 0 : i64, scratch_operands = 1 : i64, tpu.core_type = #tpu.core_type<tc>, window_params = [{transform_indices = @transform_0, window_bounds = array<i64: 128, 144>}, {transform_indices = @transform_1, window_bounds = array<i64: 144, 128>}, {transform_indices = @transform_2, window_bounds = array<i64: 128, 128>}, {transform_indices = @transform_3, window_bounds = array<i64: 1, 8, 128>}, {transform_indices = @transform_4, window_bounds = array<i64: 1, 8, 128>}]} {
    %c0_i32 = arith.constant 0 : i32
    %0 = arith.cmpi eq, %arg2, %c0_i32 : i32
    %1 = arith.extui %0 : i1 to i32
    %c0_i32_0 = arith.constant 0 : i32
    %2 = arith.cmpi ne, %1, %c0_i32_0 : i32
    scf.if %2 {
      %cst_10 = arith.constant 0.000000e+00 : f32
      %12 = vector.broadcast %cst_10 : f32 to vector<128x128xf32>
      %c0_11 = arith.constant 0 : index
      %c0_12 = arith.constant 0 : index
      %13 = vector.load %arg8[%c0_11, %c0_12] : memref<128x128xf32, #tpu.memory_space<vmem>>, vector<128x128xf32>
      tpu.vector_store %arg8[%c0_11, %c0_12], %12 {strides = array<i32>} : memref<128x128xf32, #tpu.memory_space<vmem>>, vector<128x128xf32>,
    } else {
    }
    %c0 = arith.constant 0 : index
    %c0_1 = arith.constant 0 : index
    %3 = vector.load %arg8[%c0, %c0_1] : memref<128x128xf32, #tpu.memory_space<vmem>>, vector<128x128xf32>
    %c0_2 = arith.constant 0 : index
    %c0_3 = arith.constant 0 : index
    %4 = vector.load %arg3[%c0_2, %c0_3] : memref<128x144xbf16, #tpu.memory_space<vmem>>, vector<128x144xbf16>
    %c0_4 = arith.constant 0 : index
    %c0_5 = arith.constant 0 : index
    %5 = vector.load %arg4[%c0_4, %c0_5] : memref<144x128xbf16, #tpu.memory_space<vmem>>, vector<144x128xbf16>
    %cst = arith.constant dense<0.000000e+00> : vector<128x128xf32>
    %6 = tpu.matmul %4, %5, %cst {dimension_numbers = #tpu.dot_dimension_numbers<[1], [0], [0], [1], [0, 0, 1, 1], [], []>} : vector<128x144xbf16>, vector<144x128xbf16>, vector<128x128xf32> -> vector<128x128xf32>
    %7 = arith.addf %3, %6 : vector<128x128xf32>
    %c0_6 = arith.constant 0 : index
    %c0_7 = arith.constant 0 : index
    %8 = vector.load %arg8[%c0_6, %c0_7] : memref<128x128xf32, #tpu.memory_space<vmem>>, vector<128x128xf32>
    tpu.vector_store %arg8[%c0_6, %c0_7], %7 {strides = array<i32>} : memref<128x128xf32, #tpu.memory_space<vmem>>, vector<128x128xf32>,
    %c0_i32_8 = arith.constant 0 : i32
    %9 = arith.cmpi eq, %arg2, %c0_i32_8 : i32
    %10 = arith.extui %9 : i1 to i32
    %c0_i32_9 = arith.constant 0 : i32
    %11 = arith.cmpi ne, %10, %c0_i32_9 : i32
    scf.if %11 {
      %c0_10 = arith.constant 0 : index
      %c0_11 = arith.constant 0 : index
      %12 = vector.load %arg8[%c0_10, %c0_11] : memref<128x128xf32, #tpu.memory_space<vmem>>, vector<128x128xf32>
      %13 = arith.truncf %12 : vector<128x128xf32> to vector<128x128xbf16>
      %c0_12 = arith.constant 0 : index
      %c0_13 = arith.constant 0 : index
      %14 = vector.load %arg5[%c0_12, %c0_13] : memref<128x128xbf16, #tpu.memory_space<vmem>>, vector<128x128xbf16>
      tpu.vector_store %arg5[%c0_12, %c0_13], %13 {strides = array<i32>} : memref<128x128xbf16, #tpu.memory_space<vmem>>, vector<128x128xbf16>,
      %15 = tpu.iota {dimensions = array<i32: 0>} : vector<8x128xi32>
      %c0_i32_14 = arith.constant 0 : i32
      %16 = vector.broadcast %c0_i32_14 : i32 to vector<8x128xi32>
      %17 = arith.cmpi eq, %15, %16 : vector<8x128xi32>
      %cst_15 = arith.constant dense<0.000000e+00> : vector<128xf32>
      %18 = vector.multi_reduction <add>, %12, %cst_15 [0] : vector<128x128xf32> to vector<128xf32>
      %19 = vector.shape_cast %18 : vector<128xf32> to vector<1x128xf32>
      %cst_16 = arith.constant 0.000000e+00 : f32
      %20 = vector.shape_cast %19 : vector<1x128xf32> to vector<1x128xf32>
      %21 = vector.broadcast %20 : vector<1x128xf32> to vector<8x128xf32>
      %22 = vector.broadcast %cst_16 : f32 to vector<8x128xf32>
      %23 = arith.select %17, %21, %22 : vector<8x128xi1>, vector<8x128xf32>
      %c0_17 = arith.constant 0 : index
      %c0_18 = arith.constant 0 : index
      %c0_19 = arith.constant 0 : index
      %24 = vector.load %arg6[%c0_17, %c0_18, %c0_19] : memref<1x8x128xf32, #tpu.memory_space<vmem>>, vector<1x8x128xf32>
      %25 = vector.shape_cast %24 : vector<1x8x128xf32> to vector<8x128xf32>
      %26 = vector.shape_cast %23 : vector<8x128xf32> to vector<1x8x128xf32>
      tpu.vector_store %arg6[%c0_17, %c0_18, %c0_19], %26 {strides = array<i32>} : memref<1x8x128xf32, #tpu.memory_space<vmem>>, vector<1x8x128xf32>,
      %27 = arith.mulf %12, %12 : vector<128x128xf32>
      %cst_20 = arith.constant dense<0.000000e+00> : vector<128xf32>
      %28 = vector.multi_reduction <add>, %27, %cst_20 [0] : vector<128x128xf32> to vector<128xf32>
      %29 = vector.shape_cast %28 : vector<128xf32> to vector<1x128xf32>
      %cst_21 = arith.constant 0.000000e+00 : f32
      %30 = vector.shape_cast %29 : vector<1x128xf32> to vector<1x128xf32>
      %31 = vector.broadcast %30 : vector<1x128xf32> to vector<8x128xf32>
      %32 = vector.broadcast %cst_21 : f32 to vector<8x128xf32>
      %33 = arith.select %17, %31, %32 : vector<8x128xi1>, vector<8x128xf32>
      %c0_22 = arith.constant 0 : index
      %c0_23 = arith.constant 0 : index
      %c0_24 = arith.constant 0 : index
      %34 = vector.load %arg7[%c0_22, %c0_23, %c0_24] : memref<1x8x128xf32, #tpu.memory_space<vmem>>, vector<1x8x128xf32>
      %35 = vector.shape_cast %34 : vector<1x8x128xf32> to vector<8x128xf32>
      %36 = vector.shape_cast %33 : vector<8x128xf32> to vector<1x8x128xf32>
      tpu.vector_store %arg7[%c0_22, %c0_23, %c0_24], %36 {strides = array<i32>} : memref<1x8x128xf32, #tpu.memory_space<vmem>>, vector<1x8x128xf32>,
    } else {
    }
    return
  }
  func.func @transform_0(%arg0: i32, %arg1: i32, %arg2: i32) -> (i32, i32) {
    %c0_i32 = arith.constant 0 : i32
    return %arg0, %arg2 : i32, i32
  }
  func.func @transform_1(%arg0: i32, %arg1: i32, %arg2: i32) -> (i32, i32) {
    %c0_i32 = arith.constant 0 : i32
    return %arg2, %arg1 : i32, i32
  }
  func.func @transform_2(%arg0: i32, %arg1: i32, %arg2: i32) -> (i32, i32) {
    %c0_i32 = arith.constant 0 : i32
    return %arg0, %arg1 : i32, i32
  }
  func.func @transform_3(%arg0: i32, %arg1: i32, %arg2: i32) -> (i32, i32, i32) {
    %c0_i32 = arith.constant 0 : i32
    %c0_i32_0 = arith.constant 0 : i32
    return %arg0, %c0_i32, %arg1 : i32, i32, i32
  }
  func.func @transform_4(%arg0: i32, %arg1: i32, %arg2: i32) -> (i32, i32, i32) {
    %c0_i32 = arith.constant 0 : i32
    %c0_i32_0 = arith.constant 0 : i32
    return %arg0, %c0_i32, %arg1 : i32, i32, i32
  }
}

module attributes {stable_mosaic.version = 11 : i64} {
  func.func @_maxpool_kernel(%arg0: i32, %arg1: memref<8x2x4x2x16xbf16, #tpu.memory_space<vmem>>, %arg2: memref<8x4x1x16xbf16, #tpu.memory_space<vmem>>) attributes {dimension_semantics = [#tpu.dimension_semantics<parallel>], iteration_bounds = array<i64: 1>, scalar_prefetch = 0 : i64, scratch_operands = 0 : i64, tpu.core_type = #tpu.core_type<tc>, window_params = [{transform_indices = @transform_0, window_bounds = array<i64: 8, 2, 4, 2, 16>}, {transform_indices = @transform_1, window_bounds = array<i64: 8, 4, 1, 16>}]} {
    %c0 = arith.constant 0 : index
    %c0_0 = arith.constant 0 : index
    %c0_1 = arith.constant 0 : index
    %c0_2 = arith.constant 0 : index
    %c0_3 = arith.constant 0 : index
    %0 = vector.load %arg1[%c0, %c0_0, %c0_1, %c0_2, %c0_3] : memref<8x2x4x2x16xbf16, #tpu.memory_space<vmem>>, vector<8x2x4x2x16xbf16>
    %1 = vector.extract_strided_slice %0 {offsets = [0, 0, 0, 0, 0], sizes = [8, 1, 4, 2, 16], strides = [1, 1, 1, 1, 1]} : vector<8x2x4x2x16xbf16> to vector<8x1x4x2x16xbf16>
    %2 = vector.shape_cast %1 : vector<8x1x4x2x16xbf16> to vector<8x4x2x16xbf16>
    %3 = vector.extract_strided_slice %0 {offsets = [0, 1, 0, 0, 0], sizes = [8, 1, 4, 2, 16], strides = [1, 1, 1, 1, 1]} : vector<8x2x4x2x16xbf16> to vector<8x1x4x2x16xbf16>
    %4 = vector.shape_cast %3 : vector<8x1x4x2x16xbf16> to vector<8x4x2x16xbf16>
    %5 = arith.maximumf %2, %4 : vector<8x4x2x16xbf16>
    %cst = arith.constant dense<0xFF80> : vector<8x4x16xbf16>
    %6 = vector.multi_reduction <maximumf>, %5, %cst [2] : vector<8x4x2x16xbf16> to vector<8x4x16xbf16>
    %7 = vector.shape_cast %6 : vector<8x4x16xbf16> to vector<8x4x1x16xbf16>
    %c0_4 = arith.constant 0 : index
    %c0_5 = arith.constant 0 : index
    %c0_6 = arith.constant 0 : index
    %c0_7 = arith.constant 0 : index
    %8 = vector.load %arg2[%c0_4, %c0_5, %c0_6, %c0_7] : memref<8x4x1x16xbf16, #tpu.memory_space<vmem>>, vector<8x4x1x16xbf16>
    tpu.vector_store %arg2[%c0_4, %c0_5, %c0_6, %c0_7], %7 {strides = array<i32>} : memref<8x4x1x16xbf16, #tpu.memory_space<vmem>>, vector<8x4x1x16xbf16>,
    return
  }
  func.func @transform_0(%arg0: i32) -> (i32, i32, i32, i32, i32) {
    %c0_i32 = arith.constant 0 : i32
    %c0_i32_0 = arith.constant 0 : i32
    %c0_i32_1 = arith.constant 0 : i32
    %c0_i32_2 = arith.constant 0 : i32
    %c0_i32_3 = arith.constant 0 : i32
    return %arg0, %c0_i32, %c0_i32_0, %c0_i32_1, %c0_i32_2 : i32, i32, i32, i32, i32
  }
  func.func @transform_1(%arg0: i32) -> (i32, i32, i32, i32) {
    %c0_i32 = arith.constant 0 : i32
    %c0_i32_0 = arith.constant 0 : i32
    %c0_i32_1 = arith.constant 0 : i32
    %c0_i32_2 = arith.constant 0 : i32
    return %arg0, %c0_i32, %c0_i32_0, %c0_i32_1 : i32, i32, i32, i32
  }
}

module attributes {stable_mosaic.version = 11 : i64} {
  func.func @_mm_stats_kernel(%arg0: i32, %arg1: i32, %arg2: i32, %arg3: memref<32x144xbf16, #tpu.memory_space<vmem>>, %arg4: memref<144x128xbf16, #tpu.memory_space<vmem>>, %arg5: memref<32x128xbf16, #tpu.memory_space<vmem>>, %arg6: memref<1x8x128xf32, #tpu.memory_space<vmem>>, %arg7: memref<1x8x128xf32, #tpu.memory_space<vmem>>, %arg8: memref<32x128xf32, #tpu.memory_space<vmem>>) attributes {dimension_semantics = [#tpu.dimension_semantics<parallel>, #tpu.dimension_semantics<parallel>, #tpu.dimension_semantics<arbitrary>], iteration_bounds = array<i64: 1, 1, 1>, scalar_prefetch = 0 : i64, scratch_operands = 1 : i64, tpu.core_type = #tpu.core_type<tc>, window_params = [{transform_indices = @transform_0, window_bounds = array<i64: 32, 144>}, {transform_indices = @transform_1, window_bounds = array<i64: 144, 128>}, {transform_indices = @transform_2, window_bounds = array<i64: 32, 128>}, {transform_indices = @transform_3, window_bounds = array<i64: 1, 8, 128>}, {transform_indices = @transform_4, window_bounds = array<i64: 1, 8, 128>}]} {
    %c0_i32 = arith.constant 0 : i32
    %0 = arith.cmpi eq, %arg2, %c0_i32 : i32
    %1 = arith.extui %0 : i1 to i32
    %c0_i32_0 = arith.constant 0 : i32
    %2 = arith.cmpi ne, %1, %c0_i32_0 : i32
    scf.if %2 {
      %cst_10 = arith.constant 0.000000e+00 : f32
      %12 = vector.broadcast %cst_10 : f32 to vector<32x128xf32>
      %c0_11 = arith.constant 0 : index
      %c0_12 = arith.constant 0 : index
      %13 = vector.load %arg8[%c0_11, %c0_12] : memref<32x128xf32, #tpu.memory_space<vmem>>, vector<32x128xf32>
      tpu.vector_store %arg8[%c0_11, %c0_12], %12 {strides = array<i32>} : memref<32x128xf32, #tpu.memory_space<vmem>>, vector<32x128xf32>,
    } else {
    }
    %c0 = arith.constant 0 : index
    %c0_1 = arith.constant 0 : index
    %3 = vector.load %arg8[%c0, %c0_1] : memref<32x128xf32, #tpu.memory_space<vmem>>, vector<32x128xf32>
    %c0_2 = arith.constant 0 : index
    %c0_3 = arith.constant 0 : index
    %4 = vector.load %arg3[%c0_2, %c0_3] : memref<32x144xbf16, #tpu.memory_space<vmem>>, vector<32x144xbf16>
    %c0_4 = arith.constant 0 : index
    %c0_5 = arith.constant 0 : index
    %5 = vector.load %arg4[%c0_4, %c0_5] : memref<144x128xbf16, #tpu.memory_space<vmem>>, vector<144x128xbf16>
    %cst = arith.constant dense<0.000000e+00> : vector<32x128xf32>
    %6 = tpu.matmul %4, %5, %cst {dimension_numbers = #tpu.dot_dimension_numbers<[1], [0], [0], [1], [0, 0, 1, 1], [], []>} : vector<32x144xbf16>, vector<144x128xbf16>, vector<32x128xf32> -> vector<32x128xf32>
    %7 = arith.addf %3, %6 : vector<32x128xf32>
    %c0_6 = arith.constant 0 : index
    %c0_7 = arith.constant 0 : index
    %8 = vector.load %arg8[%c0_6, %c0_7] : memref<32x128xf32, #tpu.memory_space<vmem>>, vector<32x128xf32>
    tpu.vector_store %arg8[%c0_6, %c0_7], %7 {strides = array<i32>} : memref<32x128xf32, #tpu.memory_space<vmem>>, vector<32x128xf32>,
    %c0_i32_8 = arith.constant 0 : i32
    %9 = arith.cmpi eq, %arg2, %c0_i32_8 : i32
    %10 = arith.extui %9 : i1 to i32
    %c0_i32_9 = arith.constant 0 : i32
    %11 = arith.cmpi ne, %10, %c0_i32_9 : i32
    scf.if %11 {
      %c0_10 = arith.constant 0 : index
      %c0_11 = arith.constant 0 : index
      %12 = vector.load %arg8[%c0_10, %c0_11] : memref<32x128xf32, #tpu.memory_space<vmem>>, vector<32x128xf32>
      %13 = arith.truncf %12 : vector<32x128xf32> to vector<32x128xbf16>
      %c0_12 = arith.constant 0 : index
      %c0_13 = arith.constant 0 : index
      %14 = vector.load %arg5[%c0_12, %c0_13] : memref<32x128xbf16, #tpu.memory_space<vmem>>, vector<32x128xbf16>
      tpu.vector_store %arg5[%c0_12, %c0_13], %13 {strides = array<i32>} : memref<32x128xbf16, #tpu.memory_space<vmem>>, vector<32x128xbf16>,
      %15 = tpu.iota {dimensions = array<i32: 0>} : vector<8x128xi32>
      %c0_i32_14 = arith.constant 0 : i32
      %16 = vector.broadcast %c0_i32_14 : i32 to vector<8x128xi32>
      %17 = arith.cmpi eq, %15, %16 : vector<8x128xi32>
      %cst_15 = arith.constant dense<0.000000e+00> : vector<128xf32>
      %18 = vector.multi_reduction <add>, %12, %cst_15 [0] : vector<32x128xf32> to vector<128xf32>
      %19 = vector.shape_cast %18 : vector<128xf32> to vector<1x128xf32>
      %cst_16 = arith.constant 0.000000e+00 : f32
      %20 = vector.shape_cast %19 : vector<1x128xf32> to vector<1x128xf32>
      %21 = vector.broadcast %20 : vector<1x128xf32> to vector<8x128xf32>
      %22 = vector.broadcast %cst_16 : f32 to vector<8x128xf32>
      %23 = arith.select %17, %21, %22 : vector<8x128xi1>, vector<8x128xf32>
      %c0_17 = arith.constant 0 : index
      %c0_18 = arith.constant 0 : index
      %c0_19 = arith.constant 0 : index
      %24 = vector.load %arg6[%c0_17, %c0_18, %c0_19] : memref<1x8x128xf32, #tpu.memory_space<vmem>>, vector<1x8x128xf32>
      %25 = vector.shape_cast %24 : vector<1x8x128xf32> to vector<8x128xf32>
      %26 = vector.shape_cast %23 : vector<8x128xf32> to vector<1x8x128xf32>
      tpu.vector_store %arg6[%c0_17, %c0_18, %c0_19], %26 {strides = array<i32>} : memref<1x8x128xf32, #tpu.memory_space<vmem>>, vector<1x8x128xf32>,
      %27 = arith.mulf %12, %12 : vector<32x128xf32>
      %cst_20 = arith.constant dense<0.000000e+00> : vector<128xf32>
      %28 = vector.multi_reduction <add>, %27, %cst_20 [0] : vector<32x128xf32> to vector<128xf32>
      %29 = vector.shape_cast %28 : vector<128xf32> to vector<1x128xf32>
      %cst_21 = arith.constant 0.000000e+00 : f32
      %30 = vector.shape_cast %29 : vector<1x128xf32> to vector<1x128xf32>
      %31 = vector.broadcast %30 : vector<1x128xf32> to vector<8x128xf32>
      %32 = vector.broadcast %cst_21 : f32 to vector<8x128xf32>
      %33 = arith.select %17, %31, %32 : vector<8x128xi1>, vector<8x128xf32>
      %c0_22 = arith.constant 0 : index
      %c0_23 = arith.constant 0 : index
      %c0_24 = arith.constant 0 : index
      %34 = vector.load %arg7[%c0_22, %c0_23, %c0_24] : memref<1x8x128xf32, #tpu.memory_space<vmem>>, vector<1x8x128xf32>
      %35 = vector.shape_cast %34 : vector<1x8x128xf32> to vector<8x128xf32>
      %36 = vector.shape_cast %33 : vector<8x128xf32> to vector<1x8x128xf32>
      tpu.vector_store %arg7[%c0_22, %c0_23, %c0_24], %36 {strides = array<i32>} : memref<1x8x128xf32, #tpu.memory_space<vmem>>, vector<1x8x128xf32>,
    } else {
    }
    return
  }
  func.func @transform_0(%arg0: i32, %arg1: i32, %arg2: i32) -> (i32, i32) {
    %c0_i32 = arith.constant 0 : i32
    return %arg0, %arg2 : i32, i32
  }
  func.func @transform_1(%arg0: i32, %arg1: i32, %arg2: i32) -> (i32, i32) {
    %c0_i32 = arith.constant 0 : i32
    return %arg2, %arg1 : i32, i32
  }
  func.func @transform_2(%arg0: i32, %arg1: i32, %arg2: i32) -> (i32, i32) {
    %c0_i32 = arith.constant 0 : i32
    return %arg0, %arg1 : i32, i32
  }
  func.func @transform_3(%arg0: i32, %arg1: i32, %arg2: i32) -> (i32, i32, i32) {
    %c0_i32 = arith.constant 0 : i32
    %c0_i32_0 = arith.constant 0 : i32
    return %arg0, %c0_i32, %arg1 : i32, i32, i32
  }
  func.func @transform_4(%arg0: i32, %arg1: i32, %arg2: i32) -> (i32, i32, i32) {
    %c0_i32 = arith.constant 0 : i32
    %c0_i32_0 = arith.constant 0 : i32
    return %arg0, %c0_i32, %arg1 : i32, i32, i32
  }
}

module attributes {stable_mosaic.version = 11 : i64} {
  func.func @_bn_relu_kernel(%arg0: i32, %arg1: memref<32x128xbf16, #tpu.memory_space<vmem>>, %arg2: memref<1x128xf32, #tpu.memory_space<vmem>>, %arg3: memref<1x128xf32, #tpu.memory_space<vmem>>, %arg4: memref<32x32xbf16, #tpu.memory_space<vmem>>) attributes {dimension_semantics = [#tpu.dimension_semantics<parallel>], iteration_bounds = array<i64: 1>, scalar_prefetch = 0 : i64, scratch_operands = 0 : i64, tpu.core_type = #tpu.core_type<tc>, window_params = [{transform_indices = @transform_0, window_bounds = array<i64: 32, 128>}, {pipeline_mode = #tpu.pipeline_mode<synchronous>, transform_indices = @transform_1, window_bounds = array<i64: 1, 128>}, {pipeline_mode = #tpu.pipeline_mode<synchronous>, transform_indices = @transform_2, window_bounds = array<i64: 1, 128>}, {transform_indices = @transform_3, window_bounds = array<i64: 32, 32>}]} {
    %c0 = arith.constant 0 : index
    %c0_0 = arith.constant 0 : index
    %0 = vector.load %arg1[%c0, %c0_0] : memref<32x128xbf16, #tpu.memory_space<vmem>>, vector<32x128xbf16>
    %1 = arith.extf %0 : vector<32x128xbf16> to vector<32x128xf32>
    %c0_1 = arith.constant 0 : index
    %c0_2 = arith.constant 0 : index
    %2 = vector.load %arg2[%c0_1, %c0_2] : memref<1x128xf32, #tpu.memory_space<vmem>>, vector<1x128xf32>
    %3 = vector.broadcast %2 : vector<1x128xf32> to vector<32x128xf32>
    %4 = arith.mulf %1, %3 : vector<32x128xf32>
    %c0_3 = arith.constant 0 : index
    %c0_4 = arith.constant 0 : index
    %5 = vector.load %arg3[%c0_3, %c0_4] : memref<1x128xf32, #tpu.memory_space<vmem>>, vector<1x128xf32>
    %6 = vector.broadcast %5 : vector<1x128xf32> to vector<32x128xf32>
    %7 = arith.addf %4, %6 : vector<32x128xf32>
    %cst = arith.constant 0.000000e+00 : f32
    %8 = vector.broadcast %cst : f32 to vector<32x128xf32>
    %9 = arith.maximumf %7, %8 : vector<32x128xf32>
    %10 = vector.extract_strided_slice %9 {offsets = [0, 0], sizes = [32, 32], strides = [1, 1]} : vector<32x128xf32> to vector<32x32xf32>
    %11 = arith.truncf %10 : vector<32x32xf32> to vector<32x32xbf16>
    %c0_5 = arith.constant 0 : index
    %c0_6 = arith.constant 0 : index
    %12 = vector.load %arg4[%c0_5, %c0_6] : memref<32x32xbf16, #tpu.memory_space<vmem>>, vector<32x32xbf16>
    tpu.vector_store %arg4[%c0_5, %c0_6], %11 {strides = array<i32>} : memref<32x32xbf16, #tpu.memory_space<vmem>>, vector<32x32xbf16>,
    return
  }
  func.func @transform_0(%arg0: i32) -> (i32, i32) {
    %c0_i32 = arith.constant 0 : i32
    %c0_i32_0 = arith.constant 0 : i32
    return %arg0, %c0_i32 : i32, i32
  }
  func.func @transform_1(%arg0: i32) -> (i32, i32) {
    %c0_i32 = arith.constant 0 : i32
    %c0_i32_0 = arith.constant 0 : i32
    %c0_i32_1 = arith.constant 0 : i32
    return %c0_i32, %c0_i32_0 : i32, i32
  }
  func.func @transform_2(%arg0: i32) -> (i32, i32) {
    %c0_i32 = arith.constant 0 : i32
    %c0_i32_0 = arith.constant 0 : i32
    %c0_i32_1 = arith.constant 0 : i32
    return %c0_i32, %c0_i32_0 : i32, i32
  }
  func.func @transform_3(%arg0: i32) -> (i32, i32) {
    %c0_i32 = arith.constant 0 : i32
    %c0_i32_0 = arith.constant 0 : i32
    return %arg0, %c0_i32 : i32, i32
  }
}

module attributes {stable_mosaic.version = 11 : i64} {
  func.func @_mm_bias_kernel(%arg0: i32, %arg1: i32, %arg2: i32, %arg3: memref<32x32xbf16, #tpu.memory_space<vmem>>, %arg4: memref<32x128xbf16, #tpu.memory_space<vmem>>, %arg5: memref<1x128xf32, #tpu.memory_space<vmem>>, %arg6: memref<32x128xbf16, #tpu.memory_space<vmem>>, %arg7: memref<32x128xf32, #tpu.memory_space<vmem>>) attributes {dimension_semantics = [#tpu.dimension_semantics<parallel>, #tpu.dimension_semantics<parallel>, #tpu.dimension_semantics<arbitrary>], iteration_bounds = array<i64: 1, 1, 1>, scalar_prefetch = 0 : i64, scratch_operands = 1 : i64, tpu.core_type = #tpu.core_type<tc>, window_params = [{transform_indices = @transform_0, window_bounds = array<i64: 32, 32>}, {transform_indices = @transform_1, window_bounds = array<i64: 32, 128>}, {transform_indices = @transform_2, window_bounds = array<i64: 1, 128>}, {transform_indices = @transform_3, window_bounds = array<i64: 32, 128>}]} {
    %c0_i32 = arith.constant 0 : i32
    %0 = arith.cmpi eq, %arg2, %c0_i32 : i32
    %1 = arith.extui %0 : i1 to i32
    %c0_i32_0 = arith.constant 0 : i32
    %2 = arith.cmpi ne, %1, %c0_i32_0 : i32
    scf.if %2 {
      %cst_10 = arith.constant 0.000000e+00 : f32
      %12 = vector.broadcast %cst_10 : f32 to vector<32x128xf32>
      %c0_11 = arith.constant 0 : index
      %c0_12 = arith.constant 0 : index
      %13 = vector.load %arg7[%c0_11, %c0_12] : memref<32x128xf32, #tpu.memory_space<vmem>>, vector<32x128xf32>
      tpu.vector_store %arg7[%c0_11, %c0_12], %12 {strides = array<i32>} : memref<32x128xf32, #tpu.memory_space<vmem>>, vector<32x128xf32>,
    } else {
    }
    %c0 = arith.constant 0 : index
    %c0_1 = arith.constant 0 : index
    %3 = vector.load %arg7[%c0, %c0_1] : memref<32x128xf32, #tpu.memory_space<vmem>>, vector<32x128xf32>
    %c0_2 = arith.constant 0 : index
    %c0_3 = arith.constant 0 : index
    %4 = vector.load %arg3[%c0_2, %c0_3] : memref<32x32xbf16, #tpu.memory_space<vmem>>, vector<32x32xbf16>
    %c0_4 = arith.constant 0 : index
    %c0_5 = arith.constant 0 : index
    %5 = vector.load %arg4[%c0_4, %c0_5] : memref<32x128xbf16, #tpu.memory_space<vmem>>, vector<32x128xbf16>
    %cst = arith.constant dense<0.000000e+00> : vector<32x128xf32>
    %6 = tpu.matmul %4, %5, %cst {dimension_numbers = #tpu.dot_dimension_numbers<[1], [0], [0], [1], [0, 0, 1, 1], [], []>} : vector<32x32xbf16>, vector<32x128xbf16>, vector<32x128xf32> -> vector<32x128xf32>
    %7 = arith.addf %3, %6 : vector<32x128xf32>
    %c0_6 = arith.constant 0 : index
    %c0_7 = arith.constant 0 : index
    %8 = vector.load %arg7[%c0_6, %c0_7] : memref<32x128xf32, #tpu.memory_space<vmem>>, vector<32x128xf32>
    tpu.vector_store %arg7[%c0_6, %c0_7], %7 {strides = array<i32>} : memref<32x128xf32, #tpu.memory_space<vmem>>, vector<32x128xf32>,
    %c0_i32_8 = arith.constant 0 : i32
    %9 = arith.cmpi eq, %arg2, %c0_i32_8 : i32
    %10 = arith.extui %9 : i1 to i32
    %c0_i32_9 = arith.constant 0 : i32
    %11 = arith.cmpi ne, %10, %c0_i32_9 : i32
    scf.if %11 {
      %c0_10 = arith.constant 0 : index
      %c0_11 = arith.constant 0 : index
      %12 = vector.load %arg7[%c0_10, %c0_11] : memref<32x128xf32, #tpu.memory_space<vmem>>, vector<32x128xf32>
      %c0_12 = arith.constant 0 : index
      %c0_13 = arith.constant 0 : index
      %13 = vector.load %arg5[%c0_12, %c0_13] : memref<1x128xf32, #tpu.memory_space<vmem>>, vector<1x128xf32>
      %14 = vector.broadcast %13 : vector<1x128xf32> to vector<32x128xf32>
      %15 = arith.addf %12, %14 : vector<32x128xf32>
      %16 = arith.truncf %15 : vector<32x128xf32> to vector<32x128xbf16>
      %c0_14 = arith.constant 0 : index
      %c0_15 = arith.constant 0 : index
      %17 = vector.load %arg6[%c0_14, %c0_15] : memref<32x128xbf16, #tpu.memory_space<vmem>>, vector<32x128xbf16>
      tpu.vector_store %arg6[%c0_14, %c0_15], %16 {strides = array<i32>} : memref<32x128xbf16, #tpu.memory_space<vmem>>, vector<32x128xbf16>,
    } else {
    }
    return
  }
  func.func @transform_0(%arg0: i32, %arg1: i32, %arg2: i32) -> (i32, i32) {
    %c0_i32 = arith.constant 0 : i32
    return %arg0, %arg2 : i32, i32
  }
  func.func @transform_1(%arg0: i32, %arg1: i32, %arg2: i32) -> (i32, i32) {
    %c0_i32 = arith.constant 0 : i32
    return %arg2, %arg1 : i32, i32
  }
  func.func @transform_2(%arg0: i32, %arg1: i32, %arg2: i32) -> (i32, i32) {
    %c0_i32 = arith.constant 0 : i32
    %c0_i32_0 = arith.constant 0 : i32
    return %c0_i32, %arg1 : i32, i32
  }
  func.func @transform_3(%arg0: i32, %arg1: i32, %arg2: i32) -> (i32, i32) {
    %c0_i32 = arith.constant 0 : i32
    return %arg0, %arg1 : i32, i32
  }
}

module attributes {stable_mosaic.version = 11 : i64} {
  func.func @_mm_stats_kernel(%arg0: i32, %arg1: i32, %arg2: i32, %arg3: memref<32x288xbf16, #tpu.memory_space<vmem>>, %arg4: memref<288x128xbf16, #tpu.memory_space<vmem>>, %arg5: memref<32x128xbf16, #tpu.memory_space<vmem>>, %arg6: memref<1x8x128xf32, #tpu.memory_space<vmem>>, %arg7: memref<1x8x128xf32, #tpu.memory_space<vmem>>, %arg8: memref<32x128xf32, #tpu.memory_space<vmem>>) attributes {dimension_semantics = [#tpu.dimension_semantics<parallel>, #tpu.dimension_semantics<parallel>, #tpu.dimension_semantics<arbitrary>], iteration_bounds = array<i64: 1, 1, 1>, scalar_prefetch = 0 : i64, scratch_operands = 1 : i64, tpu.core_type = #tpu.core_type<tc>, window_params = [{transform_indices = @transform_0, window_bounds = array<i64: 32, 288>}, {transform_indices = @transform_1, window_bounds = array<i64: 288, 128>}, {transform_indices = @transform_2, window_bounds = array<i64: 32, 128>}, {transform_indices = @transform_3, window_bounds = array<i64: 1, 8, 128>}, {transform_indices = @transform_4, window_bounds = array<i64: 1, 8, 128>}]} {
    %c0_i32 = arith.constant 0 : i32
    %0 = arith.cmpi eq, %arg2, %c0_i32 : i32
    %1 = arith.extui %0 : i1 to i32
    %c0_i32_0 = arith.constant 0 : i32
    %2 = arith.cmpi ne, %1, %c0_i32_0 : i32
    scf.if %2 {
      %cst_10 = arith.constant 0.000000e+00 : f32
      %12 = vector.broadcast %cst_10 : f32 to vector<32x128xf32>
      %c0_11 = arith.constant 0 : index
      %c0_12 = arith.constant 0 : index
      %13 = vector.load %arg8[%c0_11, %c0_12] : memref<32x128xf32, #tpu.memory_space<vmem>>, vector<32x128xf32>
      tpu.vector_store %arg8[%c0_11, %c0_12], %12 {strides = array<i32>} : memref<32x128xf32, #tpu.memory_space<vmem>>, vector<32x128xf32>,
    } else {
    }
    %c0 = arith.constant 0 : index
    %c0_1 = arith.constant 0 : index
    %3 = vector.load %arg8[%c0, %c0_1] : memref<32x128xf32, #tpu.memory_space<vmem>>, vector<32x128xf32>
    %c0_2 = arith.constant 0 : index
    %c0_3 = arith.constant 0 : index
    %4 = vector.load %arg3[%c0_2, %c0_3] : memref<32x288xbf16, #tpu.memory_space<vmem>>, vector<32x288xbf16>
    %c0_4 = arith.constant 0 : index
    %c0_5 = arith.constant 0 : index
    %5 = vector.load %arg4[%c0_4, %c0_5] : memref<288x128xbf16, #tpu.memory_space<vmem>>, vector<288x128xbf16>
    %cst = arith.constant dense<0.000000e+00> : vector<32x128xf32>
    %6 = tpu.matmul %4, %5, %cst {dimension_numbers = #tpu.dot_dimension_numbers<[1], [0], [0], [1], [0, 0, 1, 1], [], []>} : vector<32x288xbf16>, vector<288x128xbf16>, vector<32x128xf32> -> vector<32x128xf32>
    %7 = arith.addf %3, %6 : vector<32x128xf32>
    %c0_6 = arith.constant 0 : index
    %c0_7 = arith.constant 0 : index
    %8 = vector.load %arg8[%c0_6, %c0_7] : memref<32x128xf32, #tpu.memory_space<vmem>>, vector<32x128xf32>
    tpu.vector_store %arg8[%c0_6, %c0_7], %7 {strides = array<i32>} : memref<32x128xf32, #tpu.memory_space<vmem>>, vector<32x128xf32>,
    %c0_i32_8 = arith.constant 0 : i32
    %9 = arith.cmpi eq, %arg2, %c0_i32_8 : i32
    %10 = arith.extui %9 : i1 to i32
    %c0_i32_9 = arith.constant 0 : i32
    %11 = arith.cmpi ne, %10, %c0_i32_9 : i32
    scf.if %11 {
      %c0_10 = arith.constant 0 : index
      %c0_11 = arith.constant 0 : index
      %12 = vector.load %arg8[%c0_10, %c0_11] : memref<32x128xf32, #tpu.memory_space<vmem>>, vector<32x128xf32>
      %13 = arith.truncf %12 : vector<32x128xf32> to vector<32x128xbf16>
      %c0_12 = arith.constant 0 : index
      %c0_13 = arith.constant 0 : index
      %14 = vector.load %arg5[%c0_12, %c0_13] : memref<32x128xbf16, #tpu.memory_space<vmem>>, vector<32x128xbf16>
      tpu.vector_store %arg5[%c0_12, %c0_13], %13 {strides = array<i32>} : memref<32x128xbf16, #tpu.memory_space<vmem>>, vector<32x128xbf16>,
      %15 = tpu.iota {dimensions = array<i32: 0>} : vector<8x128xi32>
      %c0_i32_14 = arith.constant 0 : i32
      %16 = vector.broadcast %c0_i32_14 : i32 to vector<8x128xi32>
      %17 = arith.cmpi eq, %15, %16 : vector<8x128xi32>
      %cst_15 = arith.constant dense<0.000000e+00> : vector<128xf32>
      %18 = vector.multi_reduction <add>, %12, %cst_15 [0] : vector<32x128xf32> to vector<128xf32>
      %19 = vector.shape_cast %18 : vector<128xf32> to vector<1x128xf32>
      %cst_16 = arith.constant 0.000000e+00 : f32
      %20 = vector.shape_cast %19 : vector<1x128xf32> to vector<1x128xf32>
      %21 = vector.broadcast %20 : vector<1x128xf32> to vector<8x128xf32>
      %22 = vector.broadcast %cst_16 : f32 to vector<8x128xf32>
      %23 = arith.select %17, %21, %22 : vector<8x128xi1>, vector<8x128xf32>
      %c0_17 = arith.constant 0 : index
      %c0_18 = arith.constant 0 : index
      %c0_19 = arith.constant 0 : index
      %24 = vector.load %arg6[%c0_17, %c0_18, %c0_19] : memref<1x8x128xf32, #tpu.memory_space<vmem>>, vector<1x8x128xf32>
      %25 = vector.shape_cast %24 : vector<1x8x128xf32> to vector<8x128xf32>
      %26 = vector.shape_cast %23 : vector<8x128xf32> to vector<1x8x128xf32>
      tpu.vector_store %arg6[%c0_17, %c0_18, %c0_19], %26 {strides = array<i32>} : memref<1x8x128xf32, #tpu.memory_space<vmem>>, vector<1x8x128xf32>,
      %27 = arith.mulf %12, %12 : vector<32x128xf32>
      %cst_20 = arith.constant dense<0.000000e+00> : vector<128xf32>
      %28 = vector.multi_reduction <add>, %27, %cst_20 [0] : vector<32x128xf32> to vector<128xf32>
      %29 = vector.shape_cast %28 : vector<128xf32> to vector<1x128xf32>
      %cst_21 = arith.constant 0.000000e+00 : f32
      %30 = vector.shape_cast %29 : vector<1x128xf32> to vector<1x128xf32>
      %31 = vector.broadcast %30 : vector<1x128xf32> to vector<8x128xf32>
      %32 = vector.broadcast %cst_21 : f32 to vector<8x128xf32>
      %33 = arith.select %17, %31, %32 : vector<8x128xi1>, vector<8x128xf32>
      %c0_22 = arith.constant 0 : index
      %c0_23 = arith.constant 0 : index
      %c0_24 = arith.constant 0 : index
      %34 = vector.load %arg7[%c0_22, %c0_23, %c0_24] : memref<1x8x128xf32, #tpu.memory_space<vmem>>, vector<1x8x128xf32>
      %35 = vector.shape_cast %34 : vector<1x8x128xf32> to vector<8x128xf32>
      %36 = vector.shape_cast %33 : vector<8x128xf32> to vector<1x8x128xf32>
      tpu.vector_store %arg7[%c0_22, %c0_23, %c0_24], %36 {strides = array<i32>} : memref<1x8x128xf32, #tpu.memory_space<vmem>>, vector<1x8x128xf32>,
    } else {
    }
    return
  }
  func.func @transform_0(%arg0: i32, %arg1: i32, %arg2: i32) -> (i32, i32) {
    %c0_i32 = arith.constant 0 : i32
    return %arg0, %arg2 : i32, i32
  }
  func.func @transform_1(%arg0: i32, %arg1: i32, %arg2: i32) -> (i32, i32) {
    %c0_i32 = arith.constant 0 : i32
    return %arg2, %arg1 : i32, i32
  }
  func.func @transform_2(%arg0: i32, %arg1: i32, %arg2: i32) -> (i32, i32) {
    %c0_i32 = arith.constant 0 : i32
    return %arg0, %arg1 : i32, i32
  }
  func.func @transform_3(%arg0: i32, %arg1: i32, %arg2: i32) -> (i32, i32, i32) {
    %c0_i32 = arith.constant 0 : i32
    %c0_i32_0 = arith.constant 0 : i32
    return %arg0, %c0_i32, %arg1 : i32, i32, i32
  }
  func.func @transform_4(%arg0: i32, %arg1: i32, %arg2: i32) -> (i32, i32, i32) {
    %c0_i32 = arith.constant 0 : i32
    %c0_i32_0 = arith.constant 0 : i32
    return %arg0, %c0_i32, %arg1 : i32, i32, i32
  }
}

module attributes {stable_mosaic.version = 11 : i64} {
  func.func @_mm_stats_kernel(%arg0: i32, %arg1: i32, %arg2: i32, %arg3: memref<128x288xbf16, #tpu.memory_space<vmem>>, %arg4: memref<288x128xbf16, #tpu.memory_space<vmem>>, %arg5: memref<128x128xbf16, #tpu.memory_space<vmem>>, %arg6: memref<1x8x128xf32, #tpu.memory_space<vmem>>, %arg7: memref<1x8x128xf32, #tpu.memory_space<vmem>>, %arg8: memref<128x128xf32, #tpu.memory_space<vmem>>) attributes {dimension_semantics = [#tpu.dimension_semantics<parallel>, #tpu.dimension_semantics<parallel>, #tpu.dimension_semantics<arbitrary>], iteration_bounds = array<i64: 1, 1, 1>, scalar_prefetch = 0 : i64, scratch_operands = 1 : i64, tpu.core_type = #tpu.core_type<tc>, window_params = [{transform_indices = @transform_0, window_bounds = array<i64: 128, 288>}, {transform_indices = @transform_1, window_bounds = array<i64: 288, 128>}, {transform_indices = @transform_2, window_bounds = array<i64: 128, 128>}, {transform_indices = @transform_3, window_bounds = array<i64: 1, 8, 128>}, {transform_indices = @transform_4, window_bounds = array<i64: 1, 8, 128>}]} {
    %c0_i32 = arith.constant 0 : i32
    %0 = arith.cmpi eq, %arg2, %c0_i32 : i32
    %1 = arith.extui %0 : i1 to i32
    %c0_i32_0 = arith.constant 0 : i32
    %2 = arith.cmpi ne, %1, %c0_i32_0 : i32
    scf.if %2 {
      %cst_10 = arith.constant 0.000000e+00 : f32
      %12 = vector.broadcast %cst_10 : f32 to vector<128x128xf32>
      %c0_11 = arith.constant 0 : index
      %c0_12 = arith.constant 0 : index
      %13 = vector.load %arg8[%c0_11, %c0_12] : memref<128x128xf32, #tpu.memory_space<vmem>>, vector<128x128xf32>
      tpu.vector_store %arg8[%c0_11, %c0_12], %12 {strides = array<i32>} : memref<128x128xf32, #tpu.memory_space<vmem>>, vector<128x128xf32>,
    } else {
    }
    %c0 = arith.constant 0 : index
    %c0_1 = arith.constant 0 : index
    %3 = vector.load %arg8[%c0, %c0_1] : memref<128x128xf32, #tpu.memory_space<vmem>>, vector<128x128xf32>
    %c0_2 = arith.constant 0 : index
    %c0_3 = arith.constant 0 : index
    %4 = vector.load %arg3[%c0_2, %c0_3] : memref<128x288xbf16, #tpu.memory_space<vmem>>, vector<128x288xbf16>
    %c0_4 = arith.constant 0 : index
    %c0_5 = arith.constant 0 : index
    %5 = vector.load %arg4[%c0_4, %c0_5] : memref<288x128xbf16, #tpu.memory_space<vmem>>, vector<288x128xbf16>
    %cst = arith.constant dense<0.000000e+00> : vector<128x128xf32>
    %6 = tpu.matmul %4, %5, %cst {dimension_numbers = #tpu.dot_dimension_numbers<[1], [0], [0], [1], [0, 0, 1, 1], [], []>} : vector<128x288xbf16>, vector<288x128xbf16>, vector<128x128xf32> -> vector<128x128xf32>
    %7 = arith.addf %3, %6 : vector<128x128xf32>
    %c0_6 = arith.constant 0 : index
    %c0_7 = arith.constant 0 : index
    %8 = vector.load %arg8[%c0_6, %c0_7] : memref<128x128xf32, #tpu.memory_space<vmem>>, vector<128x128xf32>
    tpu.vector_store %arg8[%c0_6, %c0_7], %7 {strides = array<i32>} : memref<128x128xf32, #tpu.memory_space<vmem>>, vector<128x128xf32>,
    %c0_i32_8 = arith.constant 0 : i32
    %9 = arith.cmpi eq, %arg2, %c0_i32_8 : i32
    %10 = arith.extui %9 : i1 to i32
    %c0_i32_9 = arith.constant 0 : i32
    %11 = arith.cmpi ne, %10, %c0_i32_9 : i32
    scf.if %11 {
      %c0_10 = arith.constant 0 : index
      %c0_11 = arith.constant 0 : index
      %12 = vector.load %arg8[%c0_10, %c0_11] : memref<128x128xf32, #tpu.memory_space<vmem>>, vector<128x128xf32>
      %13 = arith.truncf %12 : vector<128x128xf32> to vector<128x128xbf16>
      %c0_12 = arith.constant 0 : index
      %c0_13 = arith.constant 0 : index
      %14 = vector.load %arg5[%c0_12, %c0_13] : memref<128x128xbf16, #tpu.memory_space<vmem>>, vector<128x128xbf16>
      tpu.vector_store %arg5[%c0_12, %c0_13], %13 {strides = array<i32>} : memref<128x128xbf16, #tpu.memory_space<vmem>>, vector<128x128xbf16>,
      %15 = tpu.iota {dimensions = array<i32: 0>} : vector<8x128xi32>
      %c0_i32_14 = arith.constant 0 : i32
      %16 = vector.broadcast %c0_i32_14 : i32 to vector<8x128xi32>
      %17 = arith.cmpi eq, %15, %16 : vector<8x128xi32>
      %cst_15 = arith.constant dense<0.000000e+00> : vector<128xf32>
      %18 = vector.multi_reduction <add>, %12, %cst_15 [0] : vector<128x128xf32> to vector<128xf32>
      %19 = vector.shape_cast %18 : vector<128xf32> to vector<1x128xf32>
      %cst_16 = arith.constant 0.000000e+00 : f32
      %20 = vector.shape_cast %19 : vector<1x128xf32> to vector<1x128xf32>
      %21 = vector.broadcast %20 : vector<1x128xf32> to vector<8x128xf32>
      %22 = vector.broadcast %cst_16 : f32 to vector<8x128xf32>
      %23 = arith.select %17, %21, %22 : vector<8x128xi1>, vector<8x128xf32>
      %c0_17 = arith.constant 0 : index
      %c0_18 = arith.constant 0 : index
      %c0_19 = arith.constant 0 : index
      %24 = vector.load %arg6[%c0_17, %c0_18, %c0_19] : memref<1x8x128xf32, #tpu.memory_space<vmem>>, vector<1x8x128xf32>
      %25 = vector.shape_cast %24 : vector<1x8x128xf32> to vector<8x128xf32>
      %26 = vector.shape_cast %23 : vector<8x128xf32> to vector<1x8x128xf32>
      tpu.vector_store %arg6[%c0_17, %c0_18, %c0_19], %26 {strides = array<i32>} : memref<1x8x128xf32, #tpu.memory_space<vmem>>, vector<1x8x128xf32>,
      %27 = arith.mulf %12, %12 : vector<128x128xf32>
      %cst_20 = arith.constant dense<0.000000e+00> : vector<128xf32>
      %28 = vector.multi_reduction <add>, %27, %cst_20 [0] : vector<128x128xf32> to vector<128xf32>
      %29 = vector.shape_cast %28 : vector<128xf32> to vector<1x128xf32>
      %cst_21 = arith.constant 0.000000e+00 : f32
      %30 = vector.shape_cast %29 : vector<1x128xf32> to vector<1x128xf32>
      %31 = vector.broadcast %30 : vector<1x128xf32> to vector<8x128xf32>
      %32 = vector.broadcast %cst_21 : f32 to vector<8x128xf32>
      %33 = arith.select %17, %31, %32 : vector<8x128xi1>, vector<8x128xf32>
      %c0_22 = arith.constant 0 : index
      %c0_23 = arith.constant 0 : index
      %c0_24 = arith.constant 0 : index
      %34 = vector.load %arg7[%c0_22, %c0_23, %c0_24] : memref<1x8x128xf32, #tpu.memory_space<vmem>>, vector<1x8x128xf32>
      %35 = vector.shape_cast %34 : vector<1x8x128xf32> to vector<8x128xf32>
      %36 = vector.shape_cast %33 : vector<8x128xf32> to vector<1x8x128xf32>
      tpu.vector_store %arg7[%c0_22, %c0_23, %c0_24], %36 {strides = array<i32>} : memref<1x8x128xf32, #tpu.memory_space<vmem>>, vector<1x8x128xf32>,
    } else {
    }
    return
  }
  func.func @transform_0(%arg0: i32, %arg1: i32, %arg2: i32) -> (i32, i32) {
    %c0_i32 = arith.constant 0 : i32
    return %arg0, %arg2 : i32, i32
  }
  func.func @transform_1(%arg0: i32, %arg1: i32, %arg2: i32) -> (i32, i32) {
    %c0_i32 = arith.constant 0 : i32
    return %arg2, %arg1 : i32, i32
  }
  func.func @transform_2(%arg0: i32, %arg1: i32, %arg2: i32) -> (i32, i32) {
    %c0_i32 = arith.constant 0 : i32
    return %arg0, %arg1 : i32, i32
  }
  func.func @transform_3(%arg0: i32, %arg1: i32, %arg2: i32) -> (i32, i32, i32) {
    %c0_i32 = arith.constant 0 : i32
    %c0_i32_0 = arith.constant 0 : i32
    return %arg0, %c0_i32, %arg1 : i32, i32, i32
  }
  func.func @transform_4(%arg0: i32, %arg1: i32, %arg2: i32) -> (i32, i32, i32) {
    %c0_i32 = arith.constant 0 : i32
    %c0_i32_0 = arith.constant 0 : i32
    return %arg0, %c0_i32, %arg1 : i32, i32, i32
  }
}

module attributes {stable_mosaic.version = 11 : i64} {
  func.func @_mm_bias_kernel(%arg0: i32, %arg1: i32, %arg2: i32, %arg3: memref<128x16xbf16, #tpu.memory_space<vmem>>, %arg4: memref<16x128xbf16, #tpu.memory_space<vmem>>, %arg5: memref<1x128xf32, #tpu.memory_space<vmem>>, %arg6: memref<128x128xbf16, #tpu.memory_space<vmem>>, %arg7: memref<128x128xf32, #tpu.memory_space<vmem>>) attributes {dimension_semantics = [#tpu.dimension_semantics<parallel>, #tpu.dimension_semantics<parallel>, #tpu.dimension_semantics<arbitrary>], iteration_bounds = array<i64: 1, 1, 1>, scalar_prefetch = 0 : i64, scratch_operands = 1 : i64, tpu.core_type = #tpu.core_type<tc>, window_params = [{transform_indices = @transform_0, window_bounds = array<i64: 128, 16>}, {transform_indices = @transform_1, window_bounds = array<i64: 16, 128>}, {transform_indices = @transform_2, window_bounds = array<i64: 1, 128>}, {transform_indices = @transform_3, window_bounds = array<i64: 128, 128>}]} {
    %c0_i32 = arith.constant 0 : i32
    %0 = arith.cmpi eq, %arg2, %c0_i32 : i32
    %1 = arith.extui %0 : i1 to i32
    %c0_i32_0 = arith.constant 0 : i32
    %2 = arith.cmpi ne, %1, %c0_i32_0 : i32
    scf.if %2 {
      %cst_10 = arith.constant 0.000000e+00 : f32
      %12 = vector.broadcast %cst_10 : f32 to vector<128x128xf32>
      %c0_11 = arith.constant 0 : index
      %c0_12 = arith.constant 0 : index
      %13 = vector.load %arg7[%c0_11, %c0_12] : memref<128x128xf32, #tpu.memory_space<vmem>>, vector<128x128xf32>
      tpu.vector_store %arg7[%c0_11, %c0_12], %12 {strides = array<i32>} : memref<128x128xf32, #tpu.memory_space<vmem>>, vector<128x128xf32>,
    } else {
    }
    %c0 = arith.constant 0 : index
    %c0_1 = arith.constant 0 : index
    %3 = vector.load %arg7[%c0, %c0_1] : memref<128x128xf32, #tpu.memory_space<vmem>>, vector<128x128xf32>
    %c0_2 = arith.constant 0 : index
    %c0_3 = arith.constant 0 : index
    %4 = vector.load %arg3[%c0_2, %c0_3] : memref<128x16xbf16, #tpu.memory_space<vmem>>, vector<128x16xbf16>
    %c0_4 = arith.constant 0 : index
    %c0_5 = arith.constant 0 : index
    %5 = vector.load %arg4[%c0_4, %c0_5] : memref<16x128xbf16, #tpu.memory_space<vmem>>, vector<16x128xbf16>
    %cst = arith.constant dense<0.000000e+00> : vector<128x128xf32>
    %6 = tpu.matmul %4, %5, %cst {dimension_numbers = #tpu.dot_dimension_numbers<[1], [0], [0], [1], [0, 0, 1, 1], [], []>} : vector<128x16xbf16>, vector<16x128xbf16>, vector<128x128xf32> -> vector<128x128xf32>
    %7 = arith.addf %3, %6 : vector<128x128xf32>
    %c0_6 = arith.constant 0 : index
    %c0_7 = arith.constant 0 : index
    %8 = vector.load %arg7[%c0_6, %c0_7] : memref<128x128xf32, #tpu.memory_space<vmem>>, vector<128x128xf32>
    tpu.vector_store %arg7[%c0_6, %c0_7], %7 {strides = array<i32>} : memref<128x128xf32, #tpu.memory_space<vmem>>, vector<128x128xf32>,
    %c0_i32_8 = arith.constant 0 : i32
    %9 = arith.cmpi eq, %arg2, %c0_i32_8 : i32
    %10 = arith.extui %9 : i1 to i32
    %c0_i32_9 = arith.constant 0 : i32
    %11 = arith.cmpi ne, %10, %c0_i32_9 : i32
    scf.if %11 {
      %c0_10 = arith.constant 0 : index
      %c0_11 = arith.constant 0 : index
      %12 = vector.load %arg7[%c0_10, %c0_11] : memref<128x128xf32, #tpu.memory_space<vmem>>, vector<128x128xf32>
      %c0_12 = arith.constant 0 : index
      %c0_13 = arith.constant 0 : index
      %13 = vector.load %arg5[%c0_12, %c0_13] : memref<1x128xf32, #tpu.memory_space<vmem>>, vector<1x128xf32>
      %14 = vector.broadcast %13 : vector<1x128xf32> to vector<128x128xf32>
      %15 = arith.addf %12, %14 : vector<128x128xf32>
      %16 = arith.truncf %15 : vector<128x128xf32> to vector<128x128xbf16>
      %c0_14 = arith.constant 0 : index
      %c0_15 = arith.constant 0 : index
      %17 = vector.load %arg6[%c0_14, %c0_15] : memref<128x128xbf16, #tpu.memory_space<vmem>>, vector<128x128xbf16>
      tpu.vector_store %arg6[%c0_14, %c0_15], %16 {strides = array<i32>} : memref<128x128xbf16, #tpu.memory_space<vmem>>, vector<128x128xbf16>,
    } else {
    }
    return
  }
  func.func @transform_0(%arg0: i32, %arg1: i32, %arg2: i32) -> (i32, i32) {
    %c0_i32 = arith.constant 0 : i32
    return %arg0, %arg2 : i32, i32
  }
  func.func @transform_1(%arg0: i32, %arg1: i32, %arg2: i32) -> (i32, i32) {
    %c0_i32 = arith.constant 0 : i32
    return %arg2, %arg1 : i32, i32
  }
  func.func @transform_2(%arg0: i32, %arg1: i32, %arg2: i32) -> (i32, i32) {
    %c0_i32 = arith.constant 0 : i32
    %c0_i32_0 = arith.constant 0 : i32
    return %c0_i32, %arg1 : i32, i32
  }
  func.func @transform_3(%arg0: i32, %arg1: i32, %arg2: i32) -> (i32, i32) {
    %c0_i32 = arith.constant 0 : i32
    return %arg0, %arg1 : i32, i32
  }
}

module attributes {stable_mosaic.version = 11 : i64} {
  func.func @_mm_stats_kernel(%arg0: i32, %arg1: i32, %arg2: i32, %arg3: memref<512x144xbf16, #tpu.memory_space<vmem>>, %arg4: memref<144x128xbf16, #tpu.memory_space<vmem>>, %arg5: memref<512x128xbf16, #tpu.memory_space<vmem>>, %arg6: memref<1x8x128xf32, #tpu.memory_space<vmem>>, %arg7: memref<1x8x128xf32, #tpu.memory_space<vmem>>, %arg8: memref<512x128xf32, #tpu.memory_space<vmem>>) attributes {dimension_semantics = [#tpu.dimension_semantics<parallel>, #tpu.dimension_semantics<parallel>, #tpu.dimension_semantics<arbitrary>], iteration_bounds = array<i64: 1, 1, 1>, scalar_prefetch = 0 : i64, scratch_operands = 1 : i64, tpu.core_type = #tpu.core_type<tc>, window_params = [{transform_indices = @transform_0, window_bounds = array<i64: 512, 144>}, {transform_indices = @transform_1, window_bounds = array<i64: 144, 128>}, {transform_indices = @transform_2, window_bounds = array<i64: 512, 128>}, {transform_indices = @transform_3, window_bounds = array<i64: 1, 8, 128>}, {transform_indices = @transform_4, window_bounds = array<i64: 1, 8, 128>}]} {
    %c0_i32 = arith.constant 0 : i32
    %0 = arith.cmpi eq, %arg2, %c0_i32 : i32
    %1 = arith.extui %0 : i1 to i32
    %c0_i32_0 = arith.constant 0 : i32
    %2 = arith.cmpi ne, %1, %c0_i32_0 : i32
    scf.if %2 {
      %cst_10 = arith.constant 0.000000e+00 : f32
      %12 = vector.broadcast %cst_10 : f32 to vector<512x128xf32>
      %c0_11 = arith.constant 0 : index
      %c0_12 = arith.constant 0 : index
      %13 = vector.load %arg8[%c0_11, %c0_12] : memref<512x128xf32, #tpu.memory_space<vmem>>, vector<512x128xf32>
      tpu.vector_store %arg8[%c0_11, %c0_12], %12 {strides = array<i32>} : memref<512x128xf32, #tpu.memory_space<vmem>>, vector<512x128xf32>,
    } else {
    }
    %c0 = arith.constant 0 : index
    %c0_1 = arith.constant 0 : index
    %3 = vector.load %arg8[%c0, %c0_1] : memref<512x128xf32, #tpu.memory_space<vmem>>, vector<512x128xf32>
    %c0_2 = arith.constant 0 : index
    %c0_3 = arith.constant 0 : index
    %4 = vector.load %arg3[%c0_2, %c0_3] : memref<512x144xbf16, #tpu.memory_space<vmem>>, vector<512x144xbf16>
    %c0_4 = arith.constant 0 : index
    %c0_5 = arith.constant 0 : index
    %5 = vector.load %arg4[%c0_4, %c0_5] : memref<144x128xbf16, #tpu.memory_space<vmem>>, vector<144x128xbf16>
    %cst = arith.constant dense<0.000000e+00> : vector<512x128xf32>
    %6 = tpu.matmul %4, %5, %cst {dimension_numbers = #tpu.dot_dimension_numbers<[1], [0], [0], [1], [0, 0, 1, 1], [], []>} : vector<512x144xbf16>, vector<144x128xbf16>, vector<512x128xf32> -> vector<512x128xf32>
    %7 = arith.addf %3, %6 : vector<512x128xf32>
    %c0_6 = arith.constant 0 : index
    %c0_7 = arith.constant 0 : index
    %8 = vector.load %arg8[%c0_6, %c0_7] : memref<512x128xf32, #tpu.memory_space<vmem>>, vector<512x128xf32>
    tpu.vector_store %arg8[%c0_6, %c0_7], %7 {strides = array<i32>} : memref<512x128xf32, #tpu.memory_space<vmem>>, vector<512x128xf32>,
    %c0_i32_8 = arith.constant 0 : i32
    %9 = arith.cmpi eq, %arg2, %c0_i32_8 : i32
    %10 = arith.extui %9 : i1 to i32
    %c0_i32_9 = arith.constant 0 : i32
    %11 = arith.cmpi ne, %10, %c0_i32_9 : i32
    scf.if %11 {
      %c0_10 = arith.constant 0 : index
      %c0_11 = arith.constant 0 : index
      %12 = vector.load %arg8[%c0_10, %c0_11] : memref<512x128xf32, #tpu.memory_space<vmem>>, vector<512x128xf32>
      %13 = arith.truncf %12 : vector<512x128xf32> to vector<512x128xbf16>
      %c0_12 = arith.constant 0 : index
      %c0_13 = arith.constant 0 : index
      %14 = vector.load %arg5[%c0_12, %c0_13] : memref<512x128xbf16, #tpu.memory_space<vmem>>, vector<512x128xbf16>
      tpu.vector_store %arg5[%c0_12, %c0_13], %13 {strides = array<i32>} : memref<512x128xbf16, #tpu.memory_space<vmem>>, vector<512x128xbf16>,
      %15 = tpu.iota {dimensions = array<i32: 0>} : vector<8x128xi32>
      %c0_i32_14 = arith.constant 0 : i32
      %16 = vector.broadcast %c0_i32_14 : i32 to vector<8x128xi32>
      %17 = arith.cmpi eq, %15, %16 : vector<8x128xi32>
      %cst_15 = arith.constant dense<0.000000e+00> : vector<128xf32>
      %18 = vector.multi_reduction <add>, %12, %cst_15 [0] : vector<512x128xf32> to vector<128xf32>
      %19 = vector.shape_cast %18 : vector<128xf32> to vector<1x128xf32>
      %cst_16 = arith.constant 0.000000e+00 : f32
      %20 = vector.shape_cast %19 : vector<1x128xf32> to vector<1x128xf32>
      %21 = vector.broadcast %20 : vector<1x128xf32> to vector<8x128xf32>
      %22 = vector.broadcast %cst_16 : f32 to vector<8x128xf32>
      %23 = arith.select %17, %21, %22 : vector<8x128xi1>, vector<8x128xf32>
      %c0_17 = arith.constant 0 : index
      %c0_18 = arith.constant 0 : index
      %c0_19 = arith.constant 0 : index
      %24 = vector.load %arg6[%c0_17, %c0_18, %c0_19] : memref<1x8x128xf32, #tpu.memory_space<vmem>>, vector<1x8x128xf32>
      %25 = vector.shape_cast %24 : vector<1x8x128xf32> to vector<8x128xf32>
      %26 = vector.shape_cast %23 : vector<8x128xf32> to vector<1x8x128xf32>
      tpu.vector_store %arg6[%c0_17, %c0_18, %c0_19], %26 {strides = array<i32>} : memref<1x8x128xf32, #tpu.memory_space<vmem>>, vector<1x8x128xf32>,
      %27 = arith.mulf %12, %12 : vector<512x128xf32>
      %cst_20 = arith.constant dense<0.000000e+00> : vector<128xf32>
      %28 = vector.multi_reduction <add>, %27, %cst_20 [0] : vector<512x128xf32> to vector<128xf32>
      %29 = vector.shape_cast %28 : vector<128xf32> to vector<1x128xf32>
      %cst_21 = arith.constant 0.000000e+00 : f32
      %30 = vector.shape_cast %29 : vector<1x128xf32> to vector<1x128xf32>
      %31 = vector.broadcast %30 : vector<1x128xf32> to vector<8x128xf32>
      %32 = vector.broadcast %cst_21 : f32 to vector<8x128xf32>
      %33 = arith.select %17, %31, %32 : vector<8x128xi1>, vector<8x128xf32>
      %c0_22 = arith.constant 0 : index
      %c0_23 = arith.constant 0 : index
      %c0_24 = arith.constant 0 : index
      %34 = vector.load %arg7[%c0_22, %c0_23, %c0_24] : memref<1x8x128xf32, #tpu.memory_space<vmem>>, vector<1x8x128xf32>
      %35 = vector.shape_cast %34 : vector<1x8x128xf32> to vector<8x128xf32>
      %36 = vector.shape_cast %33 : vector<8x128xf32> to vector<1x8x128xf32>
      tpu.vector_store %arg7[%c0_22, %c0_23, %c0_24], %36 {strides = array<i32>} : memref<1x8x128xf32, #tpu.memory_space<vmem>>, vector<1x8x128xf32>,
    } else {
    }
    return
  }
  func.func @transform_0(%arg0: i32, %arg1: i32, %arg2: i32) -> (i32, i32) {
    %c0_i32 = arith.constant 0 : i32
    return %arg0, %arg2 : i32, i32
  }
  func.func @transform_1(%arg0: i32, %arg1: i32, %arg2: i32) -> (i32, i32) {
    %c0_i32 = arith.constant 0 : i32
    return %arg2, %arg1 : i32, i32
  }
  func.func @transform_2(%arg0: i32, %arg1: i32, %arg2: i32) -> (i32, i32) {
    %c0_i32 = arith.constant 0 : i32
    return %arg0, %arg1 : i32, i32
  }
  func.func @transform_3(%arg0: i32, %arg1: i32, %arg2: i32) -> (i32, i32, i32) {
    %c0_i32 = arith.constant 0 : i32
    %c0_i32_0 = arith.constant 0 : i32
    return %arg0, %c0_i32, %arg1 : i32, i32, i32
  }
  func.func @transform_4(%arg0: i32, %arg1: i32, %arg2: i32) -> (i32, i32, i32) {
    %c0_i32 = arith.constant 0 : i32
    %c0_i32_0 = arith.constant 0 : i32
    return %arg0, %c0_i32, %arg1 : i32, i32, i32
  }
}

module attributes {stable_mosaic.version = 11 : i64} {
  func.func @_mm_bias_kernel(%arg0: i32, %arg1: i32, %arg2: i32, %arg3: memref<512x8xbf16, #tpu.memory_space<vmem>>, %arg4: memref<8x128xbf16, #tpu.memory_space<vmem>>, %arg5: memref<1x128xf32, #tpu.memory_space<vmem>>, %arg6: memref<512x128xf32, #tpu.memory_space<vmem>>, %arg7: memref<512x128xf32, #tpu.memory_space<vmem>>) attributes {dimension_semantics = [#tpu.dimension_semantics<parallel>, #tpu.dimension_semantics<parallel>, #tpu.dimension_semantics<arbitrary>], iteration_bounds = array<i64: 1, 1, 1>, scalar_prefetch = 0 : i64, scratch_operands = 1 : i64, tpu.core_type = #tpu.core_type<tc>, window_params = [{transform_indices = @transform_0, window_bounds = array<i64: 512, 8>}, {transform_indices = @transform_1, window_bounds = array<i64: 8, 128>}, {transform_indices = @transform_2, window_bounds = array<i64: 1, 128>}, {transform_indices = @transform_3, window_bounds = array<i64: 512, 128>}]} {
    %c0_i32 = arith.constant 0 : i32
    %0 = arith.cmpi eq, %arg2, %c0_i32 : i32
    %1 = arith.extui %0 : i1 to i32
    %c0_i32_0 = arith.constant 0 : i32
    %2 = arith.cmpi ne, %1, %c0_i32_0 : i32
    scf.if %2 {
      %cst_10 = arith.constant 0.000000e+00 : f32
      %12 = vector.broadcast %cst_10 : f32 to vector<512x128xf32>
      %c0_11 = arith.constant 0 : index
      %c0_12 = arith.constant 0 : index
      %13 = vector.load %arg7[%c0_11, %c0_12] : memref<512x128xf32, #tpu.memory_space<vmem>>, vector<512x128xf32>
      tpu.vector_store %arg7[%c0_11, %c0_12], %12 {strides = array<i32>} : memref<512x128xf32, #tpu.memory_space<vmem>>, vector<512x128xf32>,
    } else {
    }
    %c0 = arith.constant 0 : index
    %c0_1 = arith.constant 0 : index
    %3 = vector.load %arg7[%c0, %c0_1] : memref<512x128xf32, #tpu.memory_space<vmem>>, vector<512x128xf32>
    %c0_2 = arith.constant 0 : index
    %c0_3 = arith.constant 0 : index
    %4 = vector.load %arg3[%c0_2, %c0_3] : memref<512x8xbf16, #tpu.memory_space<vmem>>, vector<512x8xbf16>
    %c0_4 = arith.constant 0 : index
    %c0_5 = arith.constant 0 : index
    %5 = vector.load %arg4[%c0_4, %c0_5] : memref<8x128xbf16, #tpu.memory_space<vmem>>, vector<8x128xbf16>
    %cst = arith.constant dense<0.000000e+00> : vector<512x128xf32>
    %6 = tpu.matmul %4, %5, %cst {dimension_numbers = #tpu.dot_dimension_numbers<[1], [0], [0], [1], [0, 0, 1, 1], [], []>} : vector<512x8xbf16>, vector<8x128xbf16>, vector<512x128xf32> -> vector<512x128xf32>
    %7 = arith.addf %3, %6 : vector<512x128xf32>
    %c0_6 = arith.constant 0 : index
    %c0_7 = arith.constant 0 : index
    %8 = vector.load %arg7[%c0_6, %c0_7] : memref<512x128xf32, #tpu.memory_space<vmem>>, vector<512x128xf32>
    tpu.vector_store %arg7[%c0_6, %c0_7], %7 {strides = array<i32>} : memref<512x128xf32, #tpu.memory_space<vmem>>, vector<512x128xf32>,
    %c0_i32_8 = arith.constant 0 : i32
    %9 = arith.cmpi eq, %arg2, %c0_i32_8 : i32
    %10 = arith.extui %9 : i1 to i32
    %c0_i32_9 = arith.constant 0 : i32
    %11 = arith.cmpi ne, %10, %c0_i32_9 : i32
    scf.if %11 {
      %c0_10 = arith.constant 0 : index
      %c0_11 = arith.constant 0 : index
      %12 = vector.load %arg7[%c0_10, %c0_11] : memref<512x128xf32, #tpu.memory_space<vmem>>, vector<512x128xf32>
      %c0_12 = arith.constant 0 : index
      %c0_13 = arith.constant 0 : index
      %13 = vector.load %arg5[%c0_12, %c0_13] : memref<1x128xf32, #tpu.memory_space<vmem>>, vector<1x128xf32>
      %14 = vector.broadcast %13 : vector<1x128xf32> to vector<512x128xf32>
      %15 = arith.addf %12, %14 : vector<512x128xf32>
      %c0_14 = arith.constant 0 : index
      %c0_15 = arith.constant 0 : index
      %16 = vector.load %arg6[%c0_14, %c0_15] : memref<512x128xf32, #tpu.memory_space<vmem>>, vector<512x128xf32>
      tpu.vector_store %arg6[%c0_14, %c0_15], %15 {strides = array<i32>} : memref<512x128xf32, #tpu.memory_space<vmem>>, vector<512x128xf32>,
    } else {
    }
    return
  }
  func.func @transform_0(%arg0: i32, %arg1: i32, %arg2: i32) -> (i32, i32) {
    %c0_i32 = arith.constant 0 : i32
    return %arg0, %arg2 : i32, i32
  }
  func.func @transform_1(%arg0: i32, %arg1: i32, %arg2: i32) -> (i32, i32) {
    %c0_i32 = arith.constant 0 : i32
    return %arg2, %arg1 : i32, i32
  }
  func.func @transform_2(%arg0: i32, %arg1: i32, %arg2: i32) -> (i32, i32) {
    %c0_i32 = arith.constant 0 : i32
    %c0_i32_0 = arith.constant 0 : i32
    return %c0_i32, %arg1 : i32, i32
  }
  func.func @transform_3(%arg0: i32, %arg1: i32, %arg2: i32) -> (i32, i32) {
    %c0_i32 = arith.constant 0 : i32
    return %arg0, %arg1 : i32, i32
  }
}

</mosaic_0001>

<bundles_post_ra>
// kernel: unet_forward.26
= control target key start
LH: loop header
LB: loop body
LE: loop exit
PB: predicated region body
PF: predicated region fallthrough
CT: control target
= control target key end

     0   :  { %vm604_vm0 = vcmask 60416   ;;  %s1472_s0 = inlined_call_operand.vmem [shape: bf16[512,128], index: 0, kind: input, shape index: {}]   ;;  %s1473_s1 = inlined_call_operand.vmem [shape: f32[1,128], index: 1, kind: input, shape index: {}]   ;;  %s1474_s2 = inlined_call_operand.vmem [shape: f32[1,128], index: 2, kind: input, shape index: {}]   ;;  %s1475_s3 = inlined_call_operand.vmem [shape: bf16[512,8], index: 3, kind: output, shape index: {}]  }
   0x1   :  { %v804_v0 = vld [vmem:[%s1472_s0] sm:$0xff]   ;;  %v931_v4 = vld [vmem:[%s1472_s0 + $0x8] sm:$0xff]   ;;  %v932_v5 = vld [vmem:[%s1472_s0 + $0x10] sm:$0xff]  }
   0x2   :  { %v988_v1 = vld [vmem:[%s1473_s1] ss:$0 sm:$0xff]  ;;  %v805_v2 = vunpack.c.l.bf16 %v804_v0  ;;  %v806_v3 = vunpack.c.h.bf16 %v804_v0  ;;  %v933_v6 = vld [vmem:[%s1472_s0 + $0x18] sm:$0xff]   ;;  %v809_v8 = vunpack.c.l.bf16 %v931_v4  ;;  %v810_v9 = vunpack.c.h.bf16 %v931_v4  ;;  %v935_v41 = vld [vmem:[%s1472_s0 + $0x28] sm:$0xff]  }
   0x3   :  { %v1002_v7 = vld [vmem:[%s1474_s2] ss:$0 sm:$0xff]  ;;  %v813_v10 = vunpack.c.l.bf16 %v932_v5  ;;  %v814_v11 = vunpack.c.h.bf16 %v932_v5  ;;  %v817_v14 = vunpack.c.l.bf16 %v933_v6  ;;  %v818_v15 = vunpack.c.h.bf16 %v933_v6  ;;  %v936_v42 = vld [vmem:[%s1472_s0 + $0x30] sm:$0xff]   ;;  %v937_v47 = vld [vmem:[%s1472_s0 + $0x38] sm:$0xff]  }
   0x4   :  { %v149_v12 = vmul.f32 %v805_v2, %v988_v1  ;;  %v150_v13 = vmul.f32 %v806_v3, %v988_v1  ;;  %v151_v16 = vmul.f32 %v809_v8, %v988_v1  ;;  %v152_v17 = vmul.f32 %v810_v9, %v988_v1  ;;  %v934_v36 = vld [vmem:[%s1472_s0 + $0x20] sm:$0xff]  }
   0x5   :  { %v153_v18 = vmul.f32 %v813_v10, %v988_v1  ;;  %v154_v19 = vmul.f32 %v814_v11, %v988_v1  ;;  %v155_v22 = vmul.f32 %v817_v14, %v988_v1  ;;  %v156_v23 = vmul.f32 %v818_v15, %v988_v1 }
   0x6   :  { %v220_v20 = vadd.f32 %v1002_v7, %v149_v12  ;;  %v221_v21 = vadd.f32 %v1002_v7, %v150_v13  ;;  %v222_v24 = vadd.f32 %v1002_v7, %v151_v16  ;;  %v223_v25 = vadd.f32 %v1002_v7, %v152_v17 }
   0x7   :  { %v224_v26 = vadd.f32 %v1002_v7, %v153_v18  ;;  %v225_v27 = vadd.f32 %v1002_v7, %v154_v19  ;;  %v226_v30 = vadd.f32 %v1002_v7, %v155_v22  ;;  %v227_v31 = vadd.f32 %v1002_v7, %v156_v23  ;;  %v938_v18 = vld [vmem:[%s1472_s0 + $0x40] sm:$0xff]   ;;  %v939_v23 = vld [vmem:[%s1472_s0 + $0x48] sm:$0xff]  }
   0x8   :  { %v284_v28 = vmax.f32 %v220_v20, 0.0  ;;  %v285_v29 = vmax.f32 %v221_v21, 0.0  ;;  %v286_v32 = vmax.f32 %v222_v24, 0.0  ;;  %v287_v33 = vmax.f32 %v223_v25, 0.0  ;;  %v940_v24 = vld [vmem:[%s1472_s0 + $0x50] sm:$0xff]  }
   0x9   :  { %v288_v34 = vmax.f32 %v224_v26, 0.0  ;;  %v289_v35 = vmax.f32 %v225_v27, 0.0  ;;  %v290_v39 = vmax.f32 %v226_v30, 0.0  ;;  %v291_v40 = vmax.f32 %v227_v31, 0.0 }
   0xa   :  { %v739_v37 = vpack.c.bf16 %v284_v28, %v284_v28  ;;  %v740_v38 = vpack.c.bf16 %v285_v29, %v285_v29  ;;  %v741_v43 = vpack.c.bf16 %v286_v32, %v286_v32  ;;  %v742_v44 = vpack.c.bf16 %v287_v33, %v287_v33  ;;  %v941_v29 = vld [vmem:[%s1472_s0 + $0x58] sm:$0xff]  }
   0xb   :  { %v743_v45 = vpack.c.bf16 %v288_v34, %v288_v34  ;;  %v744_v46 = vpack.c.bf16 %v289_v35, %v289_v35  ;;  %v745_v48 = vpack.c.bf16 %v290_v39, %v290_v39  ;;  %v746_v49 = vpack.c.bf16 %v291_v40, %v291_v40 }
   0xc   :  { %605 = vst.msk [vmem:[%s1475_s3] sm:$0xf] %vm604_vm0, %v739_v37  ;;  %606 = vst.msk [vmem:[%s1475_s3 + $0x4] sm:$0xf] %vm604_vm0, %v740_v38  ;;  %v821_v50 = vunpack.c.l.bf16 %v934_v36  ;;  %v822_v51 = vunpack.c.h.bf16 %v934_v36  ;;  %v825_v52 = vunpack.c.l.bf16 %v935_v41  ;;  %v826_v53 = vunpack.c.h.bf16 %v935_v41 }
   0xd   :  { %607 = vst.msk [vmem:[%s1475_s3 + $0x8] sm:$0xf] %vm604_vm0, %v741_v43  ;;  %608 = vst.msk [vmem:[%s1475_s3 + $0xc] sm:$0xf] %vm604_vm0, %v742_v44  ;;  %v829_v54 = vunpack.c.l.bf16 %v936_v42  ;;  %v830_v55 = vunpack.c.h.bf16 %v936_v42  ;;  %v833_v58 = vunpack.c.l.bf16 %v937_v47  ;;  %v834_v59 = vunpack.c.h.bf16 %v937_v47 }
   0xe   :  { %609 = vst.msk [vmem:[%s1475_s3 + $0x10] sm:$0xf] %vm604_vm0, %v743_v45  ;;  %610 = vst.msk [vmem:[%s1475_s3 + $0x14] sm:$0xf] %vm604_vm0, %v744_v46  ;;  %v157_v56 = vmul.f32 %v821_v50, %v988_v1  ;;  %v158_v57 = vmul.f32 %v822_v51, %v988_v1  ;;  %v159_v60 = vmul.f32 %v825_v52, %v988_v1  ;;  %v837_v32 = vunpack.c.l.bf16 %v938_v18 }
   0xf   :  { %611 = vst.msk [vmem:[%s1475_s3 + $0x18] sm:$0xf] %vm604_vm0, %v745_v48  ;;  %612 = vst.msk [vmem:[%s1475_s3 + $0x1c] sm:$0xf] %vm604_vm0, %v746_v49  ;;  %v160_v61 = vmul.f32 %v826_v53, %v988_v1  ;;  %v161_v62 = vmul.f32 %v829_v54, %v988_v1  ;;  %v162_v63 = vmul.f32 %v830_v55, %v988_v1  ;;  %v838_v33 = vunpack.c.h.bf16 %v938_v18 }
  0x10   :  { %v228_v0 = vadd.f32 %v1002_v7, %v157_v56  ;;  %v229_v2 = vadd.f32 %v1002_v7, %v158_v57  ;;  %v163_v3 = vmul.f32 %v833_v58, %v988_v1  ;;  %v164_v4 = vmul.f32 %v834_v59, %v988_v1 }
  0x11   :  { %v230_v5 = vadd.f32 %v1002_v7, %v159_v60  ;;  %v231_v6 = vadd.f32 %v1002_v7, %v160_v61  ;;  %v232_v8 = vadd.f32 %v1002_v7, %v161_v62  ;;  %v233_v9 = vadd.f32 %v1002_v7, %v162_v63  ;;  %v942_v62 = vld [vmem:[%s1472_s0 + $0x60] sm:$0xff]  }
  0x12   :  { %v292_v10 = vmax.f32 %v228_v0, 0.0  ;;  %v293_v11 = vmax.f32 %v229_v2, 0.0  ;;  %v234_v12 = vadd.f32 %v1002_v7, %v163_v3  ;;  %v235_v13 = vadd.f32 %v1002_v7, %v164_v4  ;;  %v943_v4 = vld [vmem:[%s1472_s0 + $0x68] sm:$0xff]  }
  0x13   :  { %v294_v14 = vmax.f32 %v230_v5, 0.0  ;;  %v295_v15 = vmax.f32 %v231_v6, 0.0  ;;  %v296_v16 = vmax.f32 %v232_v8, 0.0  ;;  %v297_v17 = vmax.f32 %v233_v9, 0.0  ;;  %v944_v5 = vld [vmem:[%s1472_s0 + $0x70] sm:$0xff]  }
  0x14   :  { %v747_v19 = vpack.c.bf16 %v292_v10, %v292_v10  ;;  %v748_v20 = vpack.c.bf16 %v293_v11, %v293_v11  ;;  %v298_v21 = vmax.f32 %v234_v12, 0.0  ;;  %v299_v22 = vmax.f32 %v235_v13, 0.0  ;;  %v945_v11 = vld [vmem:[%s1472_s0 + $0x78] sm:$0xff]  }
  0x15   :  { %v749_v25 = vpack.c.bf16 %v294_v14, %v294_v14  ;;  %v750_v26 = vpack.c.bf16 %v295_v15, %v295_v15  ;;  %v751_v27 = vpack.c.bf16 %v296_v16, %v296_v16  ;;  %v752_v28 = vpack.c.bf16 %v297_v17, %v297_v17 }
  0x16   :  { %613 = vst.msk [vmem:[%s1475_s3 + $0x20] sm:$0xf] %vm604_vm0, %v747_v19  ;;  %614 = vst.msk [vmem:[%s1475_s3 + $0x24] sm:$0xf] %vm604_vm0, %v748_v20  ;;  %v753_v30 = vpack.c.bf16 %v298_v21, %v298_v21  ;;  %v754_v31 = vpack.c.bf16 %v299_v22, %v299_v22  ;;  %v841_v34 = vunpack.c.l.bf16 %v939_v23  ;;  %v842_v35 = vunpack.c.h.bf16 %v939_v23 }
  0x17   :  { %615 = vst.msk [vmem:[%s1475_s3 + $0x28] sm:$0xf] %vm604_vm0, %v749_v25  ;;  %616 = vst.msk [vmem:[%s1475_s3 + $0x2c] sm:$0xf] %vm604_vm0, %v750_v26  ;;  %v845_v36 = vunpack.c.l.bf16 %v940_v24  ;;  %v846_v37 = vunpack.c.h.bf16 %v940_v24  ;;  %v165_v38 = vmul.f32 %v837_v32, %v988_v1  ;;  %v166_v39 = vmul.f32 %v838_v33, %v988_v1 }
  0x18   :  { %617 = vst.msk [vmem:[%s1475_s3 + $0x30] sm:$0xf] %vm604_vm0, %v751_v27  ;;  %618 = vst.msk [vmem:[%s1475_s3 + $0x34] sm:$0xf] %vm604_vm0, %v752_v28  ;;  %v849_v40 = vunpack.c.l.bf16 %v941_v29  ;;  %v850_v41 = vunpack.c.h.bf16 %v941_v29  ;;  %v167_v42 = vmul.f32 %v841_v34, %v988_v1  ;;  %v168_v43 = vmul.f32 %v842_v35, %v988_v1 }
  0x19   :  { %619 = vst.msk [vmem:[%s1475_s3 + $0x38] sm:$0xf] %vm604_vm0, %v753_v30  ;;  %620 = vst.msk [vmem:[%s1475_s3 + $0x3c] sm:$0xf] %vm604_vm0, %v754_v31  ;;  %v169_v44 = vmul.f32 %v845_v36, %v988_v1  ;;  %v170_v45 = vmul.f32 %v846_v37, %v988_v1  ;;  %v236_v46 = vadd.f32 %v1002_v7, %v165_v38  ;;  %v853_v14 = vunpack.c.l.bf16 %v942_v62 }
  0x1a   :  { %v237_v47 = vadd.f32 %v1002_v7, %v166_v39  ;;  %v171_v48 = vmul.f32 %v849_v40, %v988_v1  ;;  %v172_v49 = vmul.f32 %v850_v41, %v988_v1  ;;  %v238_v50 = vadd.f32 %v1002_v7, %v167_v42 }
  0x1b   :  { %v239_v51 = vadd.f32 %v1002_v7, %v168_v43  ;;  %v240_v52 = vadd.f32 %v1002_v7, %v169_v44  ;;  %v241_v53 = vadd.f32 %v1002_v7, %v170_v45  ;;  %v300_v54 = vmax.f32 %v236_v46, 0.0  ;;  %v946_v44 = vld [vmem:[%s1472_s0 + $0x80] sm:$0xff]  }
  0x1c   :  { %v301_v55 = vmax.f32 %v237_v47, 0.0  ;;  %v242_v56 = vadd.f32 %v1002_v7, %v171_v48  ;;  %v243_v57 = vadd.f32 %v1002_v7, %v172_v49  ;;  %v302_v58 = vmax.f32 %v238_v50, 0.0  ;;  %v947_v49 = vld [vmem:[%s1472_s0 + $0x88] sm:$0xff]   ;;  %v948_v50 = vld [vmem:[%s1472_s0 + $0x90] sm:$0xff]  }
  0x1d   :  { %v303_v59 = vmax.f32 %v239_v51, 0.0  ;;  %v304_v60 = vmax.f32 %v240_v52, 0.0  ;;  %v305_v61 = vmax.f32 %v241_v53, 0.0  ;;  %v755_v63 = vpack.c.bf16 %v300_v54, %v300_v54 }
  0x1e   :  { %v756_v0 = vpack.c.bf16 %v301_v55, %v301_v55  ;;  %v306_v2 = vmax.f32 %v242_v56, 0.0  ;;  %v307_v3 = vmax.f32 %v243_v57, 0.0  ;;  %v757_v6 = vpack.c.bf16 %v302_v58, %v302_v58  ;;  %v949_v55 = vld [vmem:[%s1472_s0 + $0x98] sm:$0xff]  }
  0x1f   :  { %v758_v8 = vpack.c.bf16 %v303_v59, %v303_v59  ;;  %v759_v9 = vpack.c.bf16 %v304_v60, %v304_v60  ;;  %v760_v10 = vpack.c.bf16 %v305_v61, %v305_v61  ;;  %621 = vst.msk [vmem:[%s1475_s3 + $0x40] sm:$0xf] %vm604_vm0, %v755_v63  ;;  %v854_v15 = vunpack.c.h.bf16 %v942_v62 }
  0x20   :  { %622 = vst.msk [vmem:[%s1475_s3 + $0x44] sm:$0xf] %vm604_vm0, %v756_v0  ;;  %v761_v12 = vpack.c.bf16 %v306_v2, %v306_v2  ;;  %v762_v13 = vpack.c.bf16 %v307_v3, %v307_v3  ;;  %623 = vst.msk [vmem:[%s1475_s3 + $0x48] sm:$0xf] %vm604_vm0, %v757_v6  ;;  %v857_v16 = vunpack.c.l.bf16 %v943_v4  ;;  %v858_v17 = vunpack.c.h.bf16 %v943_v4 }
  0x21   :  { %624 = vst.msk [vmem:[%s1475_s3 + $0x4c] sm:$0xf] %vm604_vm0, %v758_v8  ;;  %625 = vst.msk [vmem:[%s1475_s3 + $0x50] sm:$0xf] %vm604_vm0, %v759_v9  ;;  %v861_v18 = vunpack.c.l.bf16 %v944_v5  ;;  %v862_v19 = vunpack.c.h.bf16 %v944_v5  ;;  %v173_v20 = vmul.f32 %v853_v14, %v988_v1  ;;  %v174_v21 = vmul.f32 %v854_v15, %v988_v1 }
  0x22   :  { %626 = vst.msk [vmem:[%s1475_s3 + $0x54] sm:$0xf] %vm604_vm0, %v760_v10  ;;  %627 = vst.msk [vmem:[%s1475_s3 + $0x58] sm:$0xf] %vm604_vm0, %v761_v12  ;;  %v865_v22 = vunpack.c.l.bf16 %v945_v11  ;;  %v866_v23 = vunpack.c.h.bf16 %v945_v11  ;;  %v175_v24 = vmul.f32 %v857_v16, %v988_v1  ;;  %v176_v25 = vmul.f32 %v858_v17, %v988_v1 }
  0x23   :  { %628 = vst.msk [vmem:[%s1475_s3 + $0x5c] sm:$0xf] %vm604_vm0, %v762_v13  ;;  %v177_v26 = vmul.f32 %v861_v18, %v988_v1  ;;  %v178_v27 = vmul.f32 %v862_v19, %v988_v1  ;;  %v244_v28 = vadd.f32 %v1002_v7, %v173_v20  ;;  %v245_v29 = vadd.f32 %v1002_v7, %v174_v21 }
  0x24   :  { %v179_v30 = vmul.f32 %v865_v22, %v988_v1  ;;  %v180_v31 = vmul.f32 %v866_v23, %v988_v1  ;;  %v246_v32 = vadd.f32 %v1002_v7, %v175_v24  ;;  %v247_v33 = vadd.f32 %v1002_v7, %v176_v25 }
  0x25   :  { %v248_v34 = vadd.f32 %v1002_v7, %v177_v26  ;;  %v249_v35 = vadd.f32 %v1002_v7, %v178_v27  ;;  %v308_v36 = vmax.f32 %v244_v28, 0.0  ;;  %v309_v37 = vmax.f32 %v245_v29, 0.0  ;;  %v950_v26 = vld [vmem:[%s1472_s0 + $0xa0] sm:$0xff]  }
  0x26   :  { %v250_v38 = vadd.f32 %v1002_v7, %v179_v30  ;;  %v251_v39 = vadd.f32 %v1002_v7, %v180_v31  ;;  %v310_v40 = vmax.f32 %v246_v32, 0.0  ;;  %v311_v41 = vmax.f32 %v247_v33, 0.0  ;;  %v951_v31 = vld [vmem:[%s1472_s0 + $0xa8] sm:$0xff]   ;;  %v952_v32 = vld [vmem:[%s1472_s0 + $0xb0] sm:$0xff]  }
  0x27   :  { %v312_v42 = vmax.f32 %v248_v34, 0.0  ;;  %v313_v43 = vmax.f32 %v249_v35, 0.0  ;;  %v763_v45 = vpack.c.bf16 %v308_v36, %v308_v36  ;;  %v764_v46 = vpack.c.bf16 %v309_v37, %v309_v37  ;;  %v953_v37 = vld [vmem:[%s1472_s0 + $0xb8] sm:$0xff]  }
  0x28   :  { %v314_v47 = vmax.f32 %v250_v38, 0.0  ;;  %v315_v48 = vmax.f32 %v251_v39, 0.0  ;;  %v765_v51 = vpack.c.bf16 %v310_v40, %v310_v40  ;;  %v766_v52 = vpack.c.bf16 %v311_v41, %v311_v41 }
  0x29   :  { %v767_v53 = vpack.c.bf16 %v312_v42, %v312_v42  ;;  %v768_v54 = vpack.c.bf16 %v313_v43, %v313_v43  ;;  %629 = vst.msk [vmem:[%s1475_s3 + $0x60] sm:$0xf] %vm604_vm0, %v763_v45  ;;  %630 = vst.msk [vmem:[%s1475_s3 + $0x64] sm:$0xf] %vm604_vm0, %v764_v46  ;;  %v869_v58 = vunpack.c.l.bf16 %v946_v44  ;;  %v870_v59 = vunpack.c.h.bf16 %v946_v44 }
  0x2a   :  { %v769_v56 = vpack.c.bf16 %v314_v47, %v314_v47  ;;  %v770_v57 = vpack.c.bf16 %v315_v48, %v315_v48  ;;  %631 = vst.msk [vmem:[%s1475_s3 + $0x68] sm:$0xf] %vm604_vm0, %v765_v51  ;;  %632 = vst.msk [vmem:[%s1475_s3 + $0x6c] sm:$0xf] %vm604_vm0, %v766_v52  ;;  %v873_v60 = vunpack.c.l.bf16 %v947_v49  ;;  %v874_v61 = vunpack.c.h.bf16 %v947_v49 }
  0x2b   :  { %633 = vst.msk [vmem:[%s1475_s3 + $0x70] sm:$0xf] %vm604_vm0, %v767_v53  ;;  %634 = vst.msk [vmem:[%s1475_s3 + $0x74] sm:$0xf] %vm604_vm0, %v768_v54  ;;  %v877_v62 = vunpack.c.l.bf16 %v948_v50  ;;  %v878_v63 = vunpack.c.h.bf16 %v948_v50  ;;  %v181_v0 = vmul.f32 %v869_v58, %v988_v1  ;;  %v182_v2 = vmul.f32 %v870_v59, %v988_v1 }
  0x2c   :  { %635 = vst.msk [vmem:[%s1475_s3 + $0x78] sm:$0xf] %vm604_vm0, %v769_v56  ;;  %636 = vst.msk [vmem:[%s1475_s3 + $0x7c] sm:$0xf] %vm604_vm0, %v770_v57  ;;  %v881_v3 = vunpack.c.l.bf16 %v949_v55  ;;  %v882_v4 = vunpack.c.h.bf16 %v949_v55  ;;  %v183_v5 = vmul.f32 %v873_v60, %v988_v1  ;;  %v184_v6 = vmul.f32 %v874_v61, %v988_v1 }
  0x2d   :  { %v185_v8 = vmul.f32 %v877_v62, %v988_v1  ;;  %v186_v9 = vmul.f32 %v878_v63, %v988_v1  ;;  %v252_v10 = vadd.f32 %v1002_v7, %v181_v0  ;;  %v253_v11 = vadd.f32 %v1002_v7, %v182_v2 }
  0x2e   :  { %v187_v12 = vmul.f32 %v881_v3, %v988_v1  ;;  %v188_v13 = vmul.f32 %v882_v4, %v988_v1  ;;  %v254_v14 = vadd.f32 %v1002_v7, %v183_v5  ;;  %v255_v15 = vadd.f32 %v1002_v7, %v184_v6 }
  0x2f   :  { %v256_v16 = vadd.f32 %v1002_v7, %v185_v8  ;;  %v257_v17 = vadd.f32 %v1002_v7, %v186_v9  ;;  %v316_v18 = vmax.f32 %v252_v10, 0.0  ;;  %v317_v19 = vmax.f32 %v253_v11, 0.0  ;;  %v954_v8 = vld [vmem:[%s1472_s0 + $0xc0] sm:$0xff]  }
  0x30   :  { %v258_v20 = vadd.f32 %v1002_v7, %v187_v12  ;;  %v259_v21 = vadd.f32 %v1002_v7, %v188_v13  ;;  %v318_v22 = vmax.f32 %v254_v14, 0.0  ;;  %v319_v23 = vmax.f32 %v255_v15, 0.0  ;;  %v955_v13 = vld [vmem:[%s1472_s0 + $0xc8] sm:$0xff]   ;;  %v956_v14 = vld [vmem:[%s1472_s0 + $0xd0] sm:$0xff]  }
  0x31   :  { %v320_v24 = vmax.f32 %v256_v16, 0.0  ;;  %v321_v25 = vmax.f32 %v257_v17, 0.0  ;;  %v771_v27 = vpack.c.bf16 %v316_v18, %v316_v18  ;;  %v772_v28 = vpack.c.bf16 %v317_v19, %v317_v19  ;;  %v957_v19 = vld [vmem:[%s1472_s0 + $0xd8] sm:$0xff]  }
  0x32   :  { %v322_v29 = vmax.f32 %v258_v20, 0.0  ;;  %v323_v30 = vmax.f32 %v259_v21, 0.0  ;;  %v773_v33 = vpack.c.bf16 %v318_v22, %v318_v22  ;;  %v774_v34 = vpack.c.bf16 %v319_v23, %v319_v23 }
  0x33   :  { %v775_v35 = vpack.c.bf16 %v320_v24, %v320_v24  ;;  %v776_v36 = vpack.c.bf16 %v321_v25, %v321_v25  ;;  %637 = vst.msk [vmem:[%s1475_s3 + $0x80] sm:$0xf] %vm604_vm0, %v771_v27  ;;  %638 = vst.msk [vmem:[%s1475_s3 + $0x84] sm:$0xf] %vm604_vm0, %v772_v28  ;;  %v885_v40 = vunpack.c.l.bf16 %v950_v26  ;;  %v886_v41 = vunpack.c.h.bf16 %v950_v26 }
  0x34   :  { %v777_v38 = vpack.c.bf16 %v322_v29, %v322_v29  ;;  %v778_v39 = vpack.c.bf16 %v323_v30, %v323_v30  ;;  %639 = vst.msk [vmem:[%s1475_s3 + $0x88] sm:$0xf] %vm604_vm0, %v773_v33  ;;  %640 = vst.msk [vmem:[%s1475_s3 + $0x8c] sm:$0xf] %vm604_vm0, %v774_v34  ;;  %v889_v42 = vunpack.c.l.bf16 %v951_v31  ;;  %v890_v43 = vunpack.c.h.bf16 %v951_v31 }
  0x35   :  { %641 = vst.msk [vmem:[%s1475_s3 + $0x90] sm:$0xf] %vm604_vm0, %v775_v35  ;;  %642 = vst.msk [vmem:[%s1475_s3 + $0x94] sm:$0xf] %vm604_vm0, %v776_v36  ;;  %v893_v44 = vunpack.c.l.bf16 %v952_v32  ;;  %v894_v45 = vunpack.c.h.bf16 %v952_v32  ;;  %v189_v46 = vmul.f32 %v885_v40, %v988_v1  ;;  %v190_v47 = vmul.f32 %v886_v41, %v988_v1 }
  0x36   :  { %643 = vst.msk [vmem:[%s1475_s3 + $0x98] sm:$0xf] %vm604_vm0, %v777_v38  ;;  %644 = vst.msk [vmem:[%s1475_s3 + $0x9c] sm:$0xf] %vm604_vm0, %v778_v39  ;;  %v897_v48 = vunpack.c.l.bf16 %v953_v37  ;;  %v898_v49 = vunpack.c.h.bf16 %v953_v37  ;;  %v191_v50 = vmul.f32 %v889_v42, %v988_v1  ;;  %v192_v51 = vmul.f32 %v890_v43, %v988_v1 }
  0x37   :  { %v193_v52 = vmul.f32 %v893_v44, %v988_v1  ;;  %v194_v53 = vmul.f32 %v894_v45, %v988_v1  ;;  %v260_v54 = vadd.f32 %v1002_v7, %v189_v46  ;;  %v261_v55 = vadd.f32 %v1002_v7, %v190_v47 }
  0x38   :  { %v195_v56 = vmul.f32 %v897_v48, %v988_v1  ;;  %v196_v57 = vmul.f32 %v898_v49, %v988_v1  ;;  %v262_v58 = vadd.f32 %v1002_v7, %v191_v50  ;;  %v263_v59 = vadd.f32 %v1002_v7, %v192_v51 }
  0x39   :  { %v264_v60 = vadd.f32 %v1002_v7, %v193_v52  ;;  %v265_v61 = vadd.f32 %v1002_v7, %v194_v53  ;;  %v324_v62 = vmax.f32 %v260_v54, 0.0  ;;  %v325_v63 = vmax.f32 %v261_v55, 0.0  ;;  %v958_v52 = vld [vmem:[%s1472_s0 + $0xe0] sm:$0xff]  }
  0x3a   :  { %v266_v0 = vadd.f32 %v1002_v7, %v195_v56  ;;  %v267_v2 = vadd.f32 %v1002_v7, %v196_v57  ;;  %v326_v3 = vmax.f32 %v262_v58, 0.0  ;;  %v327_v4 = vmax.f32 %v263_v59, 0.0  ;;  %v959_v57 = vld [vmem:[%s1472_s0 + $0xe8] sm:$0xff]   ;;  %v960_v58 = vld [vmem:[%s1472_s0 + $0xf0] sm:$0xff]  }
  0x3b   :  { %v328_v5 = vmax.f32 %v264_v60, 0.0  ;;  %v329_v6 = vmax.f32 %v265_v61, 0.0  ;;  %v779_v9 = vpack.c.bf16 %v324_v62, %v324_v62  ;;  %v780_v10 = vpack.c.bf16 %v325_v63, %v325_v63  ;;  %v961_v63 = vld [vmem:[%s1472_s0 + $0xf8] sm:$0xff]  }
  0x3c   :  { %v330_v11 = vmax.f32 %v266_v0, 0.0  ;;  %v331_v12 = vmax.f32 %v267_v2, 0.0  ;;  %v781_v15 = vpack.c.bf16 %v326_v3, %v326_v3  ;;  %v782_v16 = vpack.c.bf16 %v327_v4, %v327_v4 }
  0x3d   :  { %v783_v17 = vpack.c.bf16 %v328_v5, %v328_v5  ;;  %v784_v18 = vpack.c.bf16 %v329_v6, %v329_v6  ;;  %645 = vst.msk [vmem:[%s1475_s3 + $0xa0] sm:$0xf] %vm604_vm0, %v779_v9  ;;  %646 = vst.msk [vmem:[%s1475_s3 + $0xa4] sm:$0xf] %vm604_vm0, %v780_v10  ;;  %v901_v22 = vunpack.c.l.bf16 %v954_v8  ;;  %v902_v23 = vunpack.c.h.bf16 %v954_v8 }
  0x3e   :  { %v785_v20 = vpack.c.bf16 %v330_v11, %v330_v11  ;;  %v786_v21 = vpack.c.bf16 %v331_v12, %v331_v12  ;;  %647 = vst.msk [vmem:[%s1475_s3 + $0xa8] sm:$0xf] %vm604_vm0, %v781_v15  ;;  %648 = vst.msk [vmem:[%s1475_s3 + $0xac] sm:$0xf] %vm604_vm0, %v782_v16  ;;  %v905_v24 = vunpack.c.l.bf16 %v955_v13  ;;  %v906_v25 = vunpack.c.h.bf16 %v955_v13 }
  0x3f   :  { %649 = vst.msk [vmem:[%s1475_s3 + $0xb0] sm:$0xf] %vm604_vm0, %v783_v17  ;;  %650 = vst.msk [vmem:[%s1475_s3 + $0xb4] sm:$0xf] %vm604_vm0, %v784_v18  ;;  %v909_v26 = vunpack.c.l.bf16 %v956_v14  ;;  %v910_v27 = vunpack.c.h.bf16 %v956_v14  ;;  %v197_v28 = vmul.f32 %v901_v22, %v988_v1  ;;  %v198_v29 = vmul.f32 %v902_v23, %v988_v1 }
  0x40   :  { %651 = vst.msk [vmem:[%s1475_s3 + $0xb8] sm:$0xf] %vm604_vm0, %v785_v20  ;;  %652 = vst.msk [vmem:[%s1475_s3 + $0xbc] sm:$0xf] %vm604_vm0, %v786_v21  ;;  %v913_v30 = vunpack.c.l.bf16 %v957_v19  ;;  %v914_v31 = vunpack.c.h.bf16 %v957_v19  ;;  %v199_v32 = vmul.f32 %v905_v24, %v988_v1  ;;  %v200_v33 = vmul.f32 %v906_v25, %v988_v1 }
  0x41   :  { %v201_v34 = vmul.f32 %v909_v26, %v988_v1  ;;  %v202_v35 = vmul.f32 %v910_v27, %v988_v1  ;;  %v268_v36 = vadd.f32 %v1002_v7, %v197_v28  ;;  %v269_v37 = vadd.f32 %v1002_v7, %v198_v29 }
  0x42   :  { %v203_v38 = vmul.f32 %v913_v30, %v988_v1  ;;  %v204_v39 = vmul.f32 %v914_v31, %v988_v1  ;;  %v270_v40 = vadd.f32 %v1002_v7, %v199_v32  ;;  %v271_v41 = vadd.f32 %v1002_v7, %v200_v33 }
  0x43   :  { %v272_v42 = vadd.f32 %v1002_v7, %v201_v34  ;;  %v273_v43 = vadd.f32 %v1002_v7, %v202_v35  ;;  %v332_v44 = vmax.f32 %v268_v36, 0.0  ;;  %v333_v45 = vmax.f32 %v269_v37, 0.0 }
  0x44   :  { %v274_v46 = vadd.f32 %v1002_v7, %v203_v38  ;;  %v275_v47 = vadd.f32 %v1002_v7, %v204_v39  ;;  %v334_v48 = vmax.f32 %v270_v40, 0.0  ;;  %v335_v49 = vmax.f32 %v271_v41, 0.0 }
  0x45   :  { %v336_v50 = vmax.f32 %v272_v42, 0.0  ;;  %v337_v51 = vmax.f32 %v273_v43, 0.0  ;;  %v787_v53 = vpack.c.bf16 %v332_v44, %v332_v44  ;;  %v788_v54 = vpack.c.bf16 %v333_v45, %v333_v45 }
  0x46   :  { %v338_v55 = vmax.f32 %v274_v46, 0.0  ;;  %v339_v56 = vmax.f32 %v275_v47, 0.0  ;;  %v789_v59 = vpack.c.bf16 %v334_v48, %v334_v48  ;;  %v790_v60 = vpack.c.bf16 %v335_v49, %v335_v49 }
  0x47   :  { %v791_v61 = vpack.c.bf16 %v336_v50, %v336_v50  ;;  %v792_v62 = vpack.c.bf16 %v337_v51, %v337_v51  ;;  %653 = vst.msk [vmem:[%s1475_s3 + $0xc0] sm:$0xf] %vm604_vm0, %v787_v53  ;;  %654 = vst.msk [vmem:[%s1475_s3 + $0xc4] sm:$0xf] %vm604_vm0, %v788_v54  ;;  %v917_v3 = vunpack.c.l.bf16 %v958_v52  ;;  %v918_v4 = vunpack.c.h.bf16 %v958_v52 }
  0x48   :  { %v793_v0 = vpack.c.bf16 %v338_v55, %v338_v55  ;;  %v794_v2 = vpack.c.bf16 %v339_v56, %v339_v56  ;;  %655 = vst.msk [vmem:[%s1475_s3 + $0xc8] sm:$0xf] %vm604_vm0, %v789_v59  ;;  %656 = vst.msk [vmem:[%s1475_s3 + $0xcc] sm:$0xf] %vm604_vm0, %v790_v60  ;;  %v921_v5 = vunpack.c.l.bf16 %v959_v57  ;;  %v922_v6 = vunpack.c.h.bf16 %v959_v57 }
  0x49   :  { %657 = vst.msk [vmem:[%s1475_s3 + $0xd0] sm:$0xf] %vm604_vm0, %v791_v61  ;;  %658 = vst.msk [vmem:[%s1475_s3 + $0xd4] sm:$0xf] %vm604_vm0, %v792_v62  ;;  %v925_v8 = vunpack.c.l.bf16 %v960_v58  ;;  %v926_v9 = vunpack.c.h.bf16 %v960_v58  ;;  %v205_v10 = vmul.f32 %v917_v3, %v988_v1  ;;  %v206_v11 = vmul.f32 %v918_v4, %v988_v1 }
  0x4a   :  { %659 = vst.msk [vmem:[%s1475_s3 + $0xd8] sm:$0xf] %vm604_vm0, %v793_v0  ;;  %660 = vst.msk [vmem:[%s1475_s3 + $0xdc] sm:$0xf] %vm604_vm0, %v794_v2  ;;  %v929_v12 = vunpack.c.l.bf16 %v961_v63  ;;  %v930_v13 = vunpack.c.h.bf16 %v961_v63  ;;  %v207_v14 = vmul.f32 %v921_v5, %v988_v1  ;;  %v208_v15 = vmul.f32 %v922_v6, %v988_v1 }
  0x4b   :  { %v209_v16 = vmul.f32 %v925_v8, %v988_v1  ;;  %v210_v17 = vmul.f32 %v926_v9, %v988_v1  ;;  %v276_v18 = vadd.f32 %v1002_v7, %v205_v10  ;;  %v277_v19 = vadd.f32 %v1002_v7, %v206_v11 }
  0x4c   :  { %v211_v20 = vmul.f32 %v929_v12, %v988_v1  ;;  %v212_v21 = vmul.f32 %v930_v13, %v988_v1  ;;  %v278_v22 = vadd.f32 %v1002_v7, %v207_v14  ;;  %v279_v23 = vadd.f32 %v1002_v7, %v208_v15 }
  0x4d   :  { %v280_v24 = vadd.f32 %v1002_v7, %v209_v16  ;;  %v281_v25 = vadd.f32 %v1002_v7, %v210_v17  ;;  %v340_v26 = vmax.f32 %v276_v18, 0.0  ;;  %v341_v27 = vmax.f32 %v277_v19, 0.0 }
  0x4e   :  { %v282_v28 = vadd.f32 %v1002_v7, %v211_v20  ;;  %v283_v29 = vadd.f32 %v1002_v7, %v212_v21  ;;  %v342_v30 = vmax.f32 %v278_v22, 0.0  ;;  %v343_v31 = vmax.f32 %v279_v23, 0.0 }
  0x4f   :  { %v344_v32 = vmax.f32 %v280_v24, 0.0  ;;  %v345_v33 = vmax.f32 %v281_v25, 0.0  ;;  %v795_v34 = vpack.c.bf16 %v340_v26, %v340_v26  ;;  %v796_v1 = vpack.c.bf16 %v341_v27, %v341_v27 }
  0x50   :  { %v346_v35 = vmax.f32 %v282_v28, 0.0  ;;  %v347_v36 = vmax.f32 %v283_v29, 0.0  ;;  %v797_v37 = vpack.c.bf16 %v342_v30, %v342_v30  ;;  %v798_v38 = vpack.c.bf16 %v343_v31, %v343_v31 }
  0x51   :  { %v799_v39 = vpack.c.bf16 %v344_v32, %v344_v32  ;;  %v800_v40 = vpack.c.bf16 %v345_v33, %v345_v33  ;;  %661 = vst.msk [vmem:[%s1475_s3 + $0xe0] sm:$0xf] %vm604_vm0, %v795_v34  ;;  %662 = vst.msk [vmem:[%s1475_s3 + $0xe4] sm:$0xf] %vm604_vm0, %v796_v1 }
  0x52   :  { %v801_v7 = vpack.c.bf16 %v346_v35, %v346_v35  ;;  %v802_v41 = vpack.c.bf16 %v347_v36, %v347_v36  ;;  %663 = vst.msk [vmem:[%s1475_s3 + $0xe8] sm:$0xf] %vm604_vm0, %v797_v37  ;;  %664 = vst.msk [vmem:[%s1475_s3 + $0xec] sm:$0xf] %vm604_vm0, %v798_v38 }
  0x53   :  { %665 = vst.msk [vmem:[%s1475_s3 + $0xf0] sm:$0xf] %vm604_vm0, %v799_v39  ;;  %666 = vst.msk [vmem:[%s1475_s3 + $0xf4] sm:$0xf] %vm604_vm0, %v800_v40 }
  0x54   :  { %667 = vst.msk [vmem:[%s1475_s3 + $0xf8] sm:$0xf] %vm604_vm0, %v801_v7  ;;  %668 = vst.msk [vmem:[%s1475_s3 + $0xfc] sm:$0xf] %vm604_vm0, %v802_v41 }

// kernel: unet_forward.25
= control target key start
LH: loop header
LB: loop body
LE: loop exit
PB: predicated region body
PF: predicated region fallthrough
CT: control target
= control target key end

     0   :  { %vm475_vm0 = vcmask 1043456   ;;  %vm476_vm1 = vcmask 1044480   ;;  %vm378_vm2 = vcmask 72704   ;;  %v2026_v1 = vmov 65535   ;;  %s2477_s1 = inlined_call_operand.vmem [shape: bf16[9,128], index: 1, kind: input, shape index: {}]   ;;  %s2478_s0 = inlined_call_operand.vmem [shape: bf16[512,9], index: 0, kind: input, shape index: {}]   ;;  %s2479_s2 = inlined_call_operand.vmem [shape: bf16[512,128], index: 2, kind: output, shape index: {0}]   ;;  %s2480_s3 = inlined_call_operand.vmem [shape: f32[1,8,128], index: 3, kind: output, shape index: {1}]   ;;  %s2481_s4 = inlined_call_operand.vmem [shape: f32[1,8,128], index: 4, kind: output, shape index: {2}]  }
   0x1   :  { %v1993_v0 = vld [vmem:[%s2477_s1] sm:$0x1f]   ;;  %v477_v2 = vsel %vm475_vm0, 4294967295, %v2026_v1  ;;  %v1995_v6 = vld [vmem:[%s2478_s0 + $0x8] sm:$0xff]   ;;  %v1996_v7 = vld [vmem:[%s2478_s0 + $0x10] sm:$0xff]  }
   0x2   :  { %v1994_v3 = vld [vmem:[%s2478_s0] sm:$0xff]   ;;  %v478_v4 = vsel %vm476_vm1, %v477_v2, 0  ;;  %v1997_v8 = vld [vmem:[%s2478_s0 + $0x18] sm:$0xff]   ;;  %v2011_v11 = vld [vmem:[%s2478_s0 + $0x88] sm:$0xff]  }
   0x3   :  { %v480_v5 = vand.u32 %v1993_v0, %v478_v4  ;;  %1926 = vmatprep.mubr.msk.bf16.mxu0 %vm378_vm2, %v1994_v3  ;;  %v1998_v9 = vld [vmem:[%s2478_s0 + $0x20] sm:$0xff]   ;;  %v2012_v12 = vld [vmem:[%s2478_s0 + $0x90] sm:$0xff]   ;;  %v1999_v13 = vld [vmem:[%s2478_s0 + $0x28] sm:$0xff]  }
   0x4   :  { %v2010_v10 = vld [vmem:[%s2478_s0 + $0x80] sm:$0xff]   ;;  %v2000_v14 = vld [vmem:[%s2478_s0 + $0x30] sm:$0xff]   ;;  %v2013_v15 = vld [vmem:[%s2478_s0 + $0x98] sm:$0xff]  }
   0x5   :  { %1924 = vmatprep.subr.bf16.mxu0 %v480_v5  ;;  %1990 = vmatprep.subr.bf16.mxu1 %v480_v5  ;;  %v2014_v16 = vld [vmem:[%s2478_s0 + $0xa0] sm:$0xff]   ;;  %v2001_v17 = vld [vmem:[%s2478_s0 + $0x38] sm:$0xff]   ;;  %v2015_v19 = vld [vmem:[%s2478_s0 + $0xa8] sm:$0xff]  }
   0x6   :  { %1925 = vmatpush3.bf16.msra.mxu0 %v480_v5  ;;  %1991 = vmatpush3.bf16.msra.mxu1 %v480_v5  ;;  %v2002_v18 = vld [vmem:[%s2478_s0 + $0x40] sm:$0xff]   ;;  %v2016_v20 = vld [vmem:[%s2478_s0 + $0xb0] sm:$0xff]   ;;  %v2003_v21 = vld [vmem:[%s2478_s0 + $0x48] sm:$0xff]  }
   0x7   :  { %1958 = vmatprep.mubr.msk.bf16.mxu1 %vm378_vm2, %v2010_v10  ;;  %v2004_v22 = vld [vmem:[%s2478_s0 + $0x50] sm:$0xff]   ;;  %v2017_v23 = vld [vmem:[%s2478_s0 + $0xb8] sm:$0xff]   ;;  %v2018_v24 = vld [vmem:[%s2478_s0 + $0xc0] sm:$0xff]  }
   0x8   :  { %v2005_v25 = vld [vmem:[%s2478_s0 + $0x58] sm:$0xff]   ;;  %v2006_v26 = vld [vmem:[%s2478_s0 + $0x60] sm:$0xff]   ;;  %v2019_v27 = vld [vmem:[%s2478_s0 + $0xc8] sm:$0xff]  }
   0x9   :  { %1927 = vmatmul.mubr.msk.bf16.vlgmr.msra.gmra.mxu0 %vm378_vm2, %v1995_v6  ;;  %1959 = vmatmul.mubr.msk.bf16.vlgmr.msra.gmra.mxu1 %vm378_vm2, %v2011_v11  ;;  %v2020_v28 = vld [vmem:[%s2478_s0 + $0xd0] sm:$0xff]   ;;  %v2007_v29 = vld [vmem:[%s2478_s0 + $0x68] sm:$0xff]   ;;  %v2021_v31 = vld [vmem:[%s2478_s0 + $0xd8] sm:$0xff]  }
   0xa   :  { %1930 = vmatprep.mubr.msk.bf16.mxu0 %vm378_vm2, %v1996_v7  ;;  %1962 = vmatprep.mubr.msk.bf16.mxu1 %vm378_vm2, %v2012_v12  ;;  %v2008_v30 = vld [vmem:[%s2478_s0 + $0x70] sm:$0xff]   ;;  %v2022_v32 = vld [vmem:[%s2478_s0 + $0xe0] sm:$0xff]   ;;  %v2009_v33 = vld [vmem:[%s2478_s0 + $0x78] sm:$0xff]  }
   0xb   :  { %v2023_v34 = vld [vmem:[%s2478_s0 + $0xe8] sm:$0xff]   ;;  %v2024_v35 = vld [vmem:[%s2478_s0 + $0xf0] sm:$0xff]   ;;  %v2025_v36 = vld [vmem:[%s2478_s0 + $0xf8] sm:$0xff]  }
  0x11   :  { %1931 = vmatmul.mubr.msk.bf16.gmra.mxu0 %vm378_vm2, %v1997_v8  ;;  %1963 = vmatmul.mubr.msk.bf16.gmra.mxu1 %vm378_vm2, %v2013_v15 }
  0x12   :  { %1934 = vmatprep.mubr.msk.bf16.mxu0 %vm378_vm2, %v1998_v9  ;;  %1966 = vmatprep.mubr.msk.bf16.mxu1 %vm378_vm2, %v2014_v16 }
  0x19   :  { %1935 = vmatmul.mubr.msk.bf16.gmra.mxu0 %vm378_vm2, %v1999_v13  ;;  %1967 = vmatmul.mubr.msk.bf16.gmra.mxu1 %vm378_vm2, %v2015_v19 }
  0x1a   :  { %1938 = vmatprep.mubr.msk.bf16.mxu0 %vm378_vm2, %v2000_v14  ;;  %1970 = vmatprep.mubr.msk.bf16.mxu1 %vm378_vm2, %v2016_v20 }
  0x21   :  { %1939 = vmatmul.mubr.msk.bf16.gmra.mxu0 %vm378_vm2, %v2001_v17  ;;  %1971 = vmatmul.mubr.msk.bf16.gmra.mxu1 %vm378_vm2, %v2017_v23 }
  0x22   :  { %1942 = vmatprep.mubr.msk.bf16.mxu0 %vm378_vm2, %v2002_v18  ;;  %1974 = vmatprep.mubr.msk.bf16.mxu1 %vm378_vm2, %v2018_v24 }
  0x29   :  { %1943 = vmatmul.mubr.msk.bf16.gmra.mxu0 %vm378_vm2, %v2003_v21  ;;  %1975 = vmatmul.mubr.msk.bf16.gmra.mxu1 %vm378_vm2, %v2019_v27 }
  0x2a   :  { %1946 = vmatprep.mubr.msk.bf16.mxu0 %vm378_vm2, %v2004_v22  ;;  %1978 = vmatprep.mubr.msk.bf16.mxu1 %vm378_vm2, %v2020_v28 }
  0x31   :  { %1947 = vmatmul.mubr.msk.bf16.gmra.mxu0 %vm378_vm2, %v2005_v25  ;;  %1979 = vmatmul.mubr.msk.bf16.gmra.mxu1 %vm378_vm2, %v2021_v31 }
  0x32   :  { %1950 = vmatprep.mubr.msk.bf16.mxu0 %vm378_vm2, %v2006_v26  ;;  %1982 = vmatprep.mubr.msk.bf16.mxu1 %vm378_vm2, %v2022_v32 }
  0x39   :  { %1951 = vmatmul.mubr.msk.bf16.gmra.mxu0 %vm378_vm2, %v2007_v29  ;;  %1983 = vmatmul.mubr.msk.bf16.gmra.mxu1 %vm378_vm2, %v2023_v34 }
  0x3a   :  { %1954 = vmatprep.mubr.msk.bf16.mxu0 %vm378_vm2, %v2008_v30  ;;  %1986 = vmatprep.mubr.msk.bf16.mxu1 %vm378_vm2, %v2024_v35 }
  0x41   :  { %1955 = vmatmul.mubr.msk.bf16.gmra.mxu0 %vm378_vm2, %v2009_v33  ;;  %1987 = vmatmul.mubr.msk.bf16.gmra.mxu1 %vm378_vm2, %v2025_v36 }
  0xc9   :  { %v1928_v37 = vpop.f32.mrf.mxu0  ;;  %v2189_v54 = vpop.f32.mrf.mxu1 }
  0xca   :  { %v1362_v47 = vmul.f32 %v1928_v37, %v1928_v37 }
  0xcb   :  { %v516_v38 = vpop.f32.mrf.mxu0  ;;  %v2191_v60 = vpop.f32.mrf.mxu1 }
  0xcc   :  { %v1360_v42 = vmul.f32 %v516_v38, %v516_v38 }
  0xcd   :  { %v1929_v39 = vpop.f32.mrf.mxu0  ;;  %v2196_v2 = vpop.f32.mrf.mxu1 }
  0xce   :  { %v1708_v40 = vpack.c.bf16 %v1929_v39, %v1928_v37  ;;  %v1363_v51 = vmul.f32 %v1929_v39, %v1929_v39  ;;  %v1788_v4 = vpack.c.bf16 %v2196_v2, %v2189_v54 }
  0xcf   :  { %v519_v41 = vpop.f32.mrf.mxu0  ;;  %v2203_v8 = vpop.f32.mrf.mxu1 }
  0xd0   :  { %1860 = vst [vmem:[%s2479_s2 + $0x8] sm:$0xff] %v1708_v40   ;;  %v1703_v43 = vpack.c.bf16 %v519_v41, %v516_v38  ;;  %v1289_v44 = vadd.f32 %v519_v41, %v516_v38  ;;  %v1361_v45 = vmul.f32 %v519_v41, %v519_v41  ;;  %1876 = vst [vmem:[%s2479_s2 + $0x88] sm:$0xff] %v1788_v4  }
  0xd1   :  { %v1932_v46 = vpop.f32.mrf.mxu0  ;;  %v1783_v10 = vpack.c.bf16 %v2203_v8, %v2191_v60  ;;  %v2210_v14 = vpop.f32.mrf.mxu1 }
  0xd2   :  { %1704 = vst [vmem:[%s2479_s2] sm:$0xff] %v1703_v43   ;;  %v1290_v48 = vadd.f32 %v1928_v37, %v1289_v44  ;;  %v1424_v49 = vadd.f32 %v1361_v45, %v1360_v42  ;;  %v1366_v5 = vmul.f32 %v1932_v46, %v1932_v46 }
  0xd3   :  { %v532_v50 = vpop.f32.mrf.mxu0  ;;  %1875 = vst [vmem:[%s2479_s2 + $0x80] sm:$0xff] %v1783_v10   ;;  %v2215_v20 = vpop.f32.mrf.mxu1 }
  0xd4   :  { %v1425_v52 = vadd.f32 %v1424_v49, %v1362_v47  ;;  %v1291_v53 = vadd.f32 %v1929_v39, %v1290_v48  ;;  %v1364_v57 = vmul.f32 %v532_v50, %v532_v50 }
  0xd5   :  { %v1933_v55 = vpop.f32.mrf.mxu0  ;;  %v2220_v26 = vpop.f32.mrf.mxu1 }
  0xd6   :  { %v1292_v56 = vadd.f32 %v1291_v53, %v532_v50  ;;  %v1426_v58 = vadd.f32 %v1425_v52, %v1363_v51  ;;  %v1718_v59 = vpack.c.bf16 %v1933_v55, %v1932_v46  ;;  %v1367_v11 = vmul.f32 %v1933_v55, %v1933_v55 }
  0xd7   :  { %v535_v61 = vpop.f32.mrf.mxu0  ;;  %v1798_v28 = vpack.c.bf16 %v2220_v26, %v2210_v14  ;;  %v2227_v32 = vpop.f32.mrf.mxu1 }
  0xd8   :  { %v1427_v62 = vadd.f32 %v1426_v58, %v1364_v57  ;;  %1862 = vst [vmem:[%s2479_s2 + $0x18] sm:$0xff] %v1718_v59   ;;  %v1713_v63 = vpack.c.bf16 %v535_v61, %v532_v50  ;;  %v1293_v0 = vadd.f32 %v1292_v56, %v535_v61  ;;  %v1365_v1 = vmul.f32 %v535_v61, %v535_v61 }
  0xd9   :  { %v1936_v3 = vpop.f32.mrf.mxu0  ;;  %1878 = vst [vmem:[%s2479_s2 + $0x98] sm:$0xff] %v1798_v28   ;;  %v1793_v34 = vpack.c.bf16 %v2227_v32, %v2215_v20  ;;  %v2234_v38 = vpop.f32.mrf.mxu1 }
  0xda   :  { %1861 = vst [vmem:[%s2479_s2 + $0x10] sm:$0xff] %v1713_v63   ;;  %v1294_v6 = vadd.f32 %v1932_v46, %v1293_v0  ;;  %v1428_v7 = vadd.f32 %v1427_v62, %v1365_v1  ;;  %v1370_v29 = vmul.f32 %v1936_v3, %v1936_v3 }
  0xdb   :  { %v548_v9 = vpop.f32.mrf.mxu0  ;;  %1877 = vst [vmem:[%s2479_s2 + $0x90] sm:$0xff] %v1793_v34   ;;  %v2239_v44 = vpop.f32.mrf.mxu1 }
  0xdc   :  { %v1429_v12 = vadd.f32 %v1428_v7, %v1366_v5  ;;  %v1295_v13 = vadd.f32 %v1933_v55, %v1294_v6  ;;  %v1368_v17 = vmul.f32 %v548_v9, %v548_v9 }
  0xdd   :  { %v1937_v15 = vpop.f32.mrf.mxu0  ;;  %v2244_v50 = vpop.f32.mrf.mxu1 }
  0xde   :  { %v1296_v16 = vadd.f32 %v1295_v13, %v548_v9  ;;  %v1430_v18 = vadd.f32 %v1429_v12, %v1367_v11  ;;  %v1728_v19 = vpack.c.bf16 %v1937_v15, %v1936_v3  ;;  %v1371_v35 = vmul.f32 %v1937_v15, %v1937_v15 }
  0xdf   :  { %v551_v21 = vpop.f32.mrf.mxu0  ;;  %v1808_v52 = vpack.c.bf16 %v2244_v50, %v2234_v38  ;;  %v2251_v57 = vpop.f32.mrf.mxu1 }
  0xe0   :  { %v1431_v22 = vadd.f32 %v1430_v18, %v1368_v17  ;;  %1864 = vst [vmem:[%s2479_s2 + $0x28] sm:$0xff] %v1728_v19   ;;  %v1723_v23 = vpack.c.bf16 %v551_v21, %v548_v9  ;;  %v1297_v24 = vadd.f32 %v1296_v16, %v551_v21  ;;  %v1369_v25 = vmul.f32 %v551_v21, %v551_v21 }
  0xe1   :  { %v1940_v27 = vpop.f32.mrf.mxu0  ;;  %1880 = vst [vmem:[%s2479_s2 + $0xa8] sm:$0xff] %v1808_v52   ;;  %v1803_v59 = vpack.c.bf16 %v2251_v57, %v2239_v44  ;;  %v2258_v0 = vpop.f32.mrf.mxu1 }
  0xe2   :  { %1863 = vst [vmem:[%s2479_s2 + $0x20] sm:$0xff] %v1723_v23   ;;  %v1298_v30 = vadd.f32 %v1936_v3, %v1297_v24  ;;  %v1432_v31 = vadd.f32 %v1431_v22, %v1369_v25  ;;  %v1374_v53 = vmul.f32 %v1940_v27, %v1940_v27 }
  0xe3   :  { %v564_v33 = vpop.f32.mrf.mxu0  ;;  %1879 = vst [vmem:[%s2479_s2 + $0xa0] sm:$0xff] %v1803_v59   ;;  %v2263_v7 = vpop.f32.mrf.mxu1 }
  0xe4   :  { %v1433_v36 = vadd.f32 %v1432_v31, %v1370_v29  ;;  %v1299_v37 = vadd.f32 %v1937_v15, %v1298_v30  ;;  %v1372_v41 = vmul.f32 %v564_v33, %v564_v33 }
  0xe5   :  { %v1941_v39 = vpop.f32.mrf.mxu0  ;;  %v2268_v15 = vpop.f32.mrf.mxu1 }
  0xe6   :  { %v1300_v40 = vadd.f32 %v1299_v37, %v564_v33  ;;  %v1434_v42 = vadd.f32 %v1433_v36, %v1371_v35  ;;  %v1738_v43 = vpack.c.bf16 %v1941_v39, %v1940_v27  ;;  %v1375_v61 = vmul.f32 %v1941_v39, %v1941_v39 }
  0xe7   :  { %v567_v45 = vpop.f32.mrf.mxu0  ;;  %v1818_v17 = vpack.c.bf16 %v2268_v15, %v2258_v0  ;;  %v2275_v22 = vpop.f32.mrf.mxu1 }
  0xe8   :  { %v1435_v46 = vadd.f32 %v1434_v42, %v1372_v41  ;;  %1866 = vst [vmem:[%s2479_s2 + $0x38] sm:$0xff] %v1738_v43   ;;  %v1733_v47 = vpack.c.bf16 %v567_v45, %v564_v33  ;;  %v1301_v48 = vadd.f32 %v1300_v40, %v567_v45  ;;  %v1373_v49 = vmul.f32 %v567_v45, %v567_v45 }
  0xe9   :  { %v1944_v51 = vpop.f32.mrf.mxu0  ;;  %1882 = vst [vmem:[%s2479_s2 + $0xb8] sm:$0xff] %v1818_v17   ;;  %v1813_v24 = vpack.c.bf16 %v2275_v22, %v2263_v7  ;;  %v2282_v29 = vpop.f32.mrf.mxu1 }
  0xea   :  { %1865 = vst [vmem:[%s2479_s2 + $0x30] sm:$0xff] %v1733_v47   ;;  %v1302_v55 = vadd.f32 %v1940_v27, %v1301_v48  ;;  %v1436_v56 = vadd.f32 %v1435_v46, %v1373_v49  ;;  %v1378_v18 = vmul.f32 %v1944_v51, %v1944_v51 }
  0xeb   :  { %v580_v58 = vpop.f32.mrf.mxu0  ;;  %1881 = vst [vmem:[%s2479_s2 + $0xb0] sm:$0xff] %v1813_v24   ;;  %v2287_v36 = vpop.f32.mrf.mxu1 }
  0xec   :  { %v1437_v62 = vadd.f32 %v1436_v56, %v1374_v53  ;;  %v1303_v63 = vadd.f32 %v1941_v39, %v1302_v55  ;;  %v1376_v4 = vmul.f32 %v580_v58, %v580_v58 }
  0xed   :  { %v1945_v1 = vpop.f32.mrf.mxu0  ;;  %v2292_v43 = vpop.f32.mrf.mxu1 }
  0xee   :  { %v1304_v3 = vadd.f32 %v1303_v63, %v580_v58  ;;  %v1438_v5 = vadd.f32 %v1437_v62, %v1375_v61  ;;  %v1748_v6 = vpack.c.bf16 %v1945_v1, %v1944_v51  ;;  %v1379_v25 = vmul.f32 %v1945_v1, %v1945_v1 }
  0xef   :  { %v583_v9 = vpop.f32.mrf.mxu0  ;;  %v1828_v46 = vpack.c.bf16 %v2292_v43, %v2282_v29 }
  0xf0   :  { %v1439_v10 = vadd.f32 %v1438_v5, %v1376_v4  ;;  %1868 = vst [vmem:[%s2479_s2 + $0x48] sm:$0xff] %v1748_v6   ;;  %v1743_v11 = vpack.c.bf16 %v583_v9, %v580_v58  ;;  %v1305_v12 = vadd.f32 %v1304_v3, %v583_v9  ;;  %v1377_v13 = vmul.f32 %v583_v9, %v583_v9 }
  0xf1   :  { %v1948_v16 = vpop.f32.mrf.mxu0  ;;  %1884 = vst [vmem:[%s2479_s2 + $0xc8] sm:$0xff] %v1828_v46  }
  0xf2   :  { %1867 = vst [vmem:[%s2479_s2 + $0x40] sm:$0xff] %v1743_v11   ;;  %v1306_v19 = vadd.f32 %v1944_v51, %v1305_v12  ;;  %v1440_v21 = vadd.f32 %v1439_v10, %v1377_v13  ;;  %v1382_v47 = vmul.f32 %v1948_v16, %v1948_v16  ;;  %v2299_v51 = vpop.f32.mrf.mxu1 }
  0xf3   :  { %v596_v23 = vpop.f32.mrf.mxu0  ;;  %v1823_v53 = vpack.c.bf16 %v2299_v51, %v2287_v36 }
  0xf4   :  { %v1441_v27 = vadd.f32 %v1440_v21, %v1378_v18  ;;  %v1307_v28 = vadd.f32 %v1945_v1, %v1306_v19  ;;  %v1380_v33 = vmul.f32 %v596_v23, %v596_v23  ;;  %v2306_v59 = vpop.f32.mrf.mxu1 }
  0xf5   :  { %v1949_v30 = vpop.f32.mrf.mxu0  ;;  %1883 = vst [vmem:[%s2479_s2 + $0xc0] sm:$0xff] %v1823_v53  }
  0xf6   :  { %v1308_v31 = vadd.f32 %v1307_v28, %v596_v23  ;;  %v1442_v34 = vadd.f32 %v1441_v27, %v1379_v25  ;;  %v1758_v35 = vpack.c.bf16 %v1949_v30, %v1948_v16  ;;  %v1383_v55 = vmul.f32 %v1949_v30, %v1949_v30  ;;  %v2311_v4 = vpop.f32.mrf.mxu1 }
  0xf7   :  { %v599_v37 = vpop.f32.mrf.mxu0 }
  0xf8   :  { %v1443_v39 = vadd.f32 %v1442_v34, %v1380_v33  ;;  %1870 = vst [vmem:[%s2479_s2 + $0x58] sm:$0xff] %v1758_v35   ;;  %v1753_v40 = vpack.c.bf16 %v599_v37, %v596_v23  ;;  %v1309_v41 = vadd.f32 %v1308_v31, %v599_v37  ;;  %v1381_v42 = vmul.f32 %v599_v37, %v599_v37  ;;  %v2316_v12 = vpop.f32.mrf.mxu1 }
  0xf9   :  { %v1952_v45 = vpop.f32.mrf.mxu0 }
  0xfa   :  { %1869 = vst [vmem:[%s2479_s2 + $0x50] sm:$0xff] %v1753_v40   ;;  %v1310_v48 = vadd.f32 %v1948_v16, %v1309_v41  ;;  %v1444_v49 = vadd.f32 %v1443_v39, %v1381_v42  ;;  %v1838_v16 = vpack.c.bf16 %v2316_v12, %v2306_v59  ;;  %v1386_v17 = vmul.f32 %v1952_v45, %v1952_v45  ;;  %v2323_v21 = vpop.f32.mrf.mxu1 }
  0xfb   :  { %v612_v52 = vpop.f32.mrf.mxu0  ;;  %v1833_v24 = vpack.c.bf16 %v2323_v21, %v2311_v4 }
  0xfc   :  { %v1445_v56 = vadd.f32 %v1444_v49, %v1382_v47  ;;  %v1311_v58 = vadd.f32 %v1949_v30, %v1310_v48  ;;  %v1384_v63 = vmul.f32 %v612_v52, %v612_v52  ;;  %1886 = vst [vmem:[%s2479_s2 + $0xd8] sm:$0xff] %v1838_v16   ;;  %v2330_v30 = vpop.f32.mrf.mxu1 }
  0xfd   :  { %v1953_v61 = vpop.f32.mrf.mxu0  ;;  %1885 = vst [vmem:[%s2479_s2 + $0xd0] sm:$0xff] %v1833_v24  }
  0xfe   :  { %v1312_v62 = vadd.f32 %v1311_v58, %v612_v52  ;;  %v1446_v1 = vadd.f32 %v1445_v56, %v1383_v55  ;;  %v1768_v3 = vpack.c.bf16 %v1953_v61, %v1952_v45  ;;  %v1387_v25 = vmul.f32 %v1953_v61, %v1953_v61  ;;  %v2335_v39 = vpop.f32.mrf.mxu1 }
  0xff   :  { %v615_v5 = vpop.f32.mrf.mxu0 }
 0x100   :  { %v1447_v6 = vadd.f32 %v1446_v1, %v1384_v63  ;;  %1872 = vst [vmem:[%s2479_s2 + $0x68] sm:$0xff] %v1768_v3   ;;  %v1763_v9 = vpack.c.bf16 %v615_v5, %v612_v52  ;;  %v1313_v10 = vadd.f32 %v1312_v62, %v615_v5  ;;  %v1385_v11 = vmul.f32 %v615_v5, %v615_v5  ;;  %v2340_v47 = vpop.f32.mrf.mxu1 }
 0x101   :  { %v1956_v13 = vpop.f32.mrf.mxu0  ;;  %v1848_v48 = vpack.c.bf16 %v2340_v47, %v2330_v30  ;;  %v1392_v1 = vmul.f32 %v2191_v60, %v2191_v60 }
 0x102   :  { %1871 = vst [vmem:[%s2479_s2 + $0x60] sm:$0xff] %v1763_v9   ;;  %v1314_v18 = vadd.f32 %v1952_v45, %v1313_v10  ;;  %v1448_v19 = vadd.f32 %v1447_v6, %v1385_v11  ;;  %v1390_v49 = vmul.f32 %v1956_v13, %v1956_v13  ;;  %v2347_v55 = vpop.f32.mrf.mxu1  ;;  %v1393_v10 = vmul.f32 %v2203_v8, %v2203_v8 }
 0x103   :  { %v628_v23 = vpop.f32.mrf.mxu0  ;;  %1888 = vst [vmem:[%s2479_s2 + $0xe8] sm:$0xff] %v1848_v48   ;;  %v1843_v56 = vpack.c.bf16 %v2347_v55, %v2335_v39 }
 0x104   :  { %v1449_v27 = vadd.f32 %v1448_v19, %v1386_v17  ;;  %v1315_v28 = vadd.f32 %v1953_v61, %v1314_v18  ;;  %v1388_v34 = vmul.f32 %v628_v23, %v628_v23  ;;  %v2354_v63 = vpop.f32.mrf.mxu1  ;;  %v1394_v17 = vmul.f32 %v2189_v54, %v2189_v54 }
 0x105   :  { %v1957_v31 = vpop.f32.mrf.mxu0  ;;  %1887 = vst [vmem:[%s2479_s2 + $0xe0] sm:$0xff] %v1843_v56  }
 0x106   :  { %v1316_v33 = vadd.f32 %v1315_v28, %v628_v23  ;;  %v1450_v35 = vadd.f32 %v1449_v27, %v1387_v25  ;;  %v1778_v37 = vpack.c.bf16 %v1957_v31, %v1956_v13  ;;  %v1391_v58 = vmul.f32 %v1957_v31, %v1957_v31  ;;  %v2362_v6 = vpop.f32.mrf.mxu1 }
 0x107   :  { %v631_v40 = vpop.f32.mrf.mxu0  ;;  %v1396_v27 = vmul.f32 %v2215_v20, %v2215_v20 }
 0x108   :  { %v1451_v41 = vadd.f32 %v1450_v35, %v1388_v34  ;;  %1874 = vst [vmem:[%s2479_s2 + $0x78] sm:$0xff] %v1778_v37   ;;  %v1773_v42 = vpack.c.bf16 %v631_v40, %v628_v23  ;;  %v1317_v45 = vadd.f32 %v1316_v33, %v631_v40  ;;  %v1389_v46 = vmul.f32 %v631_v40, %v631_v40 }
 0x109   :  { %v1395_v23 = vmul.f32 %v2196_v2, %v2196_v2  ;;  %v1397_v34 = vmul.f32 %v2227_v32, %v2227_v32  ;;  %v1398_v35 = vmul.f32 %v2210_v14, %v2210_v14  ;;  %v1399_v40 = vmul.f32 %v2220_v26, %v2220_v26 }
 0x10a   :  { %1873 = vst [vmem:[%s2479_s2 + $0x70] sm:$0xff] %v1773_v42   ;;  %v1318_v52 = vadd.f32 %v1956_v13, %v1317_v45  ;;  %v1452_v53 = vadd.f32 %v1451_v41, %v1389_v46  ;;  %v2367_v13 = vpop.f32.mrf.mxu1  ;;  %v1400_v45 = vmul.f32 %v2239_v44, %v2239_v44 }
 0x10b   :  { %v1858_v16 = vpack.c.bf16 %v2367_v13, %v2354_v63 }
 0x10c   :  { %v1319_v61 = vadd.f32 %v1957_v31, %v1318_v52  ;;  %v1453_v62 = vadd.f32 %v1452_v53, %v1390_v49  ;;  %v1401_v49 = vmul.f32 %v2251_v57, %v2251_v57 }
 0x10d   :  { %1890 = vst [vmem:[%s2479_s2 + $0xf8] sm:$0xff] %v1858_v16   ;;  %v1408_v16 = vmul.f32 %v2287_v36, %v2287_v36 }
 0x10e   :  { %v1454_v3 = vadd.f32 %v1453_v62, %v1391_v58  ;;  %v1320_v5 = vadd.f32 %v1319_v61, %v2191_v60  ;;  %v2374_v60 = vpop.f32.mrf.mxu1  ;;  %v1404_v61 = vmul.f32 %v2263_v7, %v2263_v7 }
 0x110   :  { %v1321_v9 = vadd.f32 %v1320_v5, %v2203_v8  ;;  %v1455_v11 = vadd.f32 %v1454_v3, %v1392_v1  ;;  %v1853_v8 = vpack.c.bf16 %v2374_v60, %v2362_v6  ;;  %v1405_v3 = vmul.f32 %v2275_v22, %v2275_v22 }
 0x112   :  { %v1322_v18 = vadd.f32 %v2189_v54, %v1321_v9  ;;  %v1456_v19 = vadd.f32 %v1455_v11, %v1393_v10  ;;  %1889 = vst [vmem:[%s2479_s2 + $0xf0] sm:$0xff] %v1853_v8  }
 0x114   :  { %v1457_v24 = vadd.f32 %v1456_v19, %v1394_v17  ;;  %v1323_v25 = vadd.f32 %v2196_v2, %v1322_v18  ;;  %v1409_v19 = vmul.f32 %v2299_v51, %v2299_v51 }
 0x116   :  { %v1324_v54 = vadd.f32 %v1323_v25, %v2215_v20  ;;  %v1458_v28 = vadd.f32 %v1457_v24, %v1395_v23 }
 0x118   :  { %v1459_v31 = vadd.f32 %v1458_v28, %v1396_v27  ;;  %v1325_v33 = vadd.f32 %v1324_v54, %v2227_v32  ;;  %v1412_v54 = vmul.f32 %v2311_v4, %v2311_v4 }
 0x11a   :  { %v1326_v2 = vadd.f32 %v2210_v14, %v1325_v33  ;;  %v1460_v37 = vadd.f32 %v1459_v31, %v1397_v34  ;;  %v1402_v14 = vmul.f32 %v2234_v38, %v2234_v38  ;;  %v1413_v31 = vmul.f32 %v2323_v21, %v2323_v21 }
 0x11c   :  { %v1461_v41 = vadd.f32 %v1460_v37, %v1398_v35  ;;  %v1327_v42 = vadd.f32 %v2220_v26, %v1326_v2  ;;  %v1403_v26 = vmul.f32 %v2244_v50, %v2244_v50  ;;  %v1416_v37 = vmul.f32 %v2335_v39, %v2335_v39 }
 0x11e   :  { %v1328_v20 = vadd.f32 %v1327_v42, %v2239_v44  ;;  %v1462_v46 = vadd.f32 %v1461_v41, %v1399_v40  ;;  %v1417_v42 = vmul.f32 %v2347_v55, %v2347_v55 }
 0x120   :  { %v1463_v48 = vadd.f32 %v1462_v46, %v1400_v45  ;;  %v1329_v32 = vadd.f32 %v1328_v20, %v2251_v57 }
 0x122   :  { %v1330_v52 = vadd.f32 %v2234_v38, %v1329_v32  ;;  %v1464_v53 = vadd.f32 %v1463_v48, %v1401_v49  ;;  %v1406_v38 = vmul.f32 %v2258_v0, %v2258_v0  ;;  %v1420_v32 = vmul.f32 %v2362_v6, %v2362_v6 }
 0x124   :  { %v1465_v56 = vadd.f32 %v1464_v53, %v1402_v14  ;;  %v1331_v58 = vadd.f32 %v2244_v50, %v1330_v52  ;;  %v1407_v50 = vmul.f32 %v2268_v15, %v2268_v15  ;;  %v1421_v52 = vmul.f32 %v2374_v60, %v2374_v60 }
 0x126   :  { %v1332_v44 = vadd.f32 %v1331_v58, %v2263_v7  ;;  %v1466_v62 = vadd.f32 %v1465_v56, %v1403_v26 }
 0x128   :  { %v1467_v1 = vadd.f32 %v1466_v62, %v1404_v61  ;;  %v1333_v57 = vadd.f32 %v1332_v44, %v2275_v22  ;;  %v1286_v61 = vlaneseq }
 0x12a   :  { %v1334_v5 = vadd.f32 %v2258_v0, %v1333_v57  ;;  %v1468_v9 = vadd.f32 %v1467_v1, %v1405_v3  ;;  %v1410_v0 = vmul.f32 %v2282_v29, %v2282_v29 }
 0x12c   :  { %v1469_v10 = vadd.f32 %v1468_v9, %v1406_v38  ;;  %v1335_v11 = vadd.f32 %v2268_v15, %v1334_v5  ;;  %v1411_v15 = vmul.f32 %v2292_v43, %v2292_v43 }
 0x12e   :  { %v1336_v7 = vadd.f32 %v1335_v11, %v2287_v36  ;;  %v1470_v17 = vadd.f32 %v1469_v10, %v1407_v50 }
 0x130   :  { %v1471_v18 = vadd.f32 %v1470_v17, %v1408_v16  ;;  %v1337_v22 = vadd.f32 %v1336_v7, %v2299_v51 }
 0x132   :  { %v1338_v8 = vadd.f32 %v2282_v29, %v1337_v22  ;;  %v1472_v23 = vadd.f32 %v1471_v18, %v1409_v19  ;;  %v1414_v29 = vmul.f32 %v2306_v59, %v2306_v59 }
 0x134   :  { %v1473_v24 = vadd.f32 %v1472_v23, %v1410_v0  ;;  %v1339_v25 = vadd.f32 %v2292_v43, %v1338_v8  ;;  %v1415_v43 = vmul.f32 %v2316_v12, %v2316_v12 }
 0x136   :  { %v1340_v36 = vadd.f32 %v1339_v25, %v2311_v4  ;;  %v1474_v27 = vadd.f32 %v1473_v24, %v1411_v15 }
 0x138   :  { %v1475_v28 = vadd.f32 %v1474_v27, %v1412_v54  ;;  %v1341_v51 = vadd.f32 %v1340_v36, %v2323_v21 }
 0x13a   :  { %v1342_v33 = vadd.f32 %v2306_v59, %v1341_v51  ;;  %v1476_v34 = vadd.f32 %v1475_v28, %v1413_v31  ;;  %v1418_v59 = vmul.f32 %v2330_v30, %v2330_v30 }
 0x13c   :  { %v1477_v35 = vadd.f32 %v1476_v34, %v1414_v29  ;;  %v1343_v2 = vadd.f32 %v2316_v12, %v1342_v33  ;;  %v1419_v12 = vmul.f32 %v2340_v47, %v2340_v47 }
 0x13e   :  { %v1344_v4 = vadd.f32 %v1343_v2, %v2335_v39  ;;  %v1478_v40 = vadd.f32 %v1477_v35, %v1415_v43 }
 0x140   :  { %v1479_v41 = vadd.f32 %v1478_v40, %v1416_v37  ;;  %v1345_v21 = vadd.f32 %v1344_v4, %v2347_v55 }
 0x142   :  { %v1346_v20 = vadd.f32 %v2330_v30, %v1345_v21  ;;  %v1480_v45 = vadd.f32 %v1479_v41, %v1417_v42  ;;  %v1422_v30 = vmul.f32 %v2354_v63, %v2354_v63 }
 0x144   :  { %v1481_v46 = vadd.f32 %v1480_v45, %v1418_v59  ;;  %v1347_v48 = vadd.f32 %v2340_v47, %v1346_v20  ;;  %v1423_v47 = vmul.f32 %v2367_v13, %v2367_v13 }
 0x146   :  { %v1348_v39 = vadd.f32 %v1347_v48, %v2362_v6  ;;  %v1482_v49 = vadd.f32 %v1481_v46, %v1419_v12 }
 0x148   :  { %v1483_v14 = vadd.f32 %v1482_v49, %v1420_v32  ;;  %v1349_v55 = vadd.f32 %v1348_v39, %v2374_v60  ;;  %v1287_v60 = vshrl.u32 %v1286_v61, 7 }
 0x14a   :  { %v1350_v53 = vadd.f32 %v2354_v63, %v1349_v55  ;;  %v1484_v26 = vadd.f32 %v1483_v14, %v1421_v52  ;;  %vm1288_vm3 = vcmp.eq.s32.totalorder %v1287_v60, 0 }
 0x14c   :  { %v1351_v56 = vadd.f32 %v2367_v13, %v1350_v53  ;;  %v1485_v58 = vadd.f32 %v1484_v26, %v1422_v30 }
 0x14e   :  { %v1352_v6 = vrot.slane %v1351_v56, 4  ;;  %v1486_v44 = vadd.f32 %v1485_v58, %v1423_v47 }
 0x150   :  { %v1353_v62 = vadd.f32 %v1352_v6, %v1351_v56  ;;  %v1487_v1 = vrot.slane %v1486_v44, 4 }
 0x152   :  { %v1354_v57 = vrot.slane %v1353_v62, 2  ;;  %v1488_v3 = vadd.f32 %v1487_v1, %v1486_v44 }
 0x154   :  { %v1355_v38 = vadd.f32 %v1354_v57, %v1353_v62  ;;  %v1489_v5 = vrot.slane %v1488_v3, 2 }
 0x156   :  { %v1356_v9 = vrot.slane %v1355_v38, 1  ;;  %v1490_v50 = vadd.f32 %v1489_v5, %v1488_v3 }
 0x158   :  { %v1357_v63 = vadd.f32 %v1356_v9, %v1355_v38  ;;  %v1491_v10 = vrot.slane %v1490_v50, 1 }
 0x15a   :  { %v1358_v11 = vsel %vm1288_vm3, %v1357_v63, 0.0  ;;  %v1492_v7 = vadd.f32 %v1491_v10, %v1490_v50 }
 0x15b   :  { %1359 = vst [vmem:[%s2480_s3] sm:$0xff] %v1358_v11 }
 0x15c   :  { %v1493_v13 = vsel %vm1288_vm3, %v1492_v7, 0.0 }
 0x15d   :  { %1494 = vst [vmem:[%s2481_s4] sm:$0xff] %v1493_v13 }

// kernel: unet_forward.27
= control target key start
LH: loop header
LB: loop body
LE: loop exit
PB: predicated region body
PF: predicated region fallthrough
CT: control target
= control target key end

     0   :  { %vm504_vm0 = vcmask 1043456   ;;  %vm407_vm1 = vcmask 588800   ;;  %s2543_s1 = inlined_call_operand.vmem [shape: bf16[72,128], index: 1, kind: input, shape index: {}]   ;;  %s2544_s0 = inlined_call_operand.vmem [shape: bf16[512,72], index: 0, kind: input, shape index: {}]   ;;  %s2545_s2 = inlined_call_operand.vmem [shape: bf16[512,128], index: 2, kind: output, shape index: {0}]   ;;  %s2546_s3 = inlined_call_operand.vmem [shape: f32[1,8,128], index: 3, kind: output, shape index: {1}]   ;;  %s2547_s4 = inlined_call_operand.vmem [shape: f32[1,8,128], index: 4, kind: output, shape index: {2}]  }
   0x1   :  { %v2044_v0 = vld [vmem:[%s2543_s1 + $0x20] ss:$0 sps:$4 sm:$0xff]   ;;  %v2045_v1 = vld [vmem:[%s2543_s1 + $0x18] sm:$0xff]   ;;  %v2046_v3 = vld [vmem:[%s2543_s1 + $0x10] sm:$0xff]  }
   0x2   :  { %2042 = vmatprep.subr.msk.bf16.mxu0 %vm504_vm0, %v2044_v0  ;;  %v506_v2 = vsel %vm504_vm0, %v2044_v0, 0  ;;  %2043 = vmatprep.subr.msk.bf16.mxu1 %vm504_vm0, %v2044_v0  ;;  %v2049_v4 = vld [vmem:[%s2544_s0] sm:$0xff]   ;;  %v2047_v5 = vld [vmem:[%s2543_s1 + $0x8] sm:$0xff]   ;;  %v2051_v8 = vld [vmem:[%s2544_s0 + $0x10] sm:$0xff]  }
   0x3   :  { %1959 = vmatpush3.bf16.msra.mxu0 %v506_v2  ;;  %2037 = vmatpush3.bf16.msra.mxu1 %v506_v2  ;;  %v2048_v6 = vld [vmem:[%s2543_s1] sm:$0xff]   ;;  %v2050_v7 = vld [vmem:[%s2544_s0 + $0x8] sm:$0xff]   ;;  %v2067_v11 = vld [vmem:[%s2544_s0 + $0x90] sm:$0xff]  }
   0x4   :  { %1960 = vmatprep.subr.bf16.mxu0 %v2045_v1  ;;  %2033 = vmatprep.subr.bf16.mxu1 %v2045_v1  ;;  %v2065_v9 = vld [vmem:[%s2544_s0 + $0x80] sm:$0xff]   ;;  %v2066_v10 = vld [vmem:[%s2544_s0 + $0x88] sm:$0xff]   ;;  %v2052_v12 = vld [vmem:[%s2544_s0 + $0x18] sm:$0xff]  }
   0x5   :  { %1968 = vmatprep.mubr.msk.bf16.mxu0 %vm407_vm1, %v2049_v4  ;;  %2000 = vmatprep.mubr.msk.bf16.mxu1 %vm407_vm1, %v2065_v9  ;;  %v2053_v13 = vld [vmem:[%s2544_s0 + $0x20] sm:$0xff]   ;;  %v2068_v14 = vld [vmem:[%s2544_s0 + $0x98] sm:$0xff]   ;;  %v2054_v16 = vld [vmem:[%s2544_s0 + $0x28] sm:$0xff]  }
   0x6   :  { %v2069_v15 = vld [vmem:[%s2544_s0 + $0xa0] sm:$0xff]   ;;  %v2055_v17 = vld [vmem:[%s2544_s0 + $0x30] sm:$0xff]   ;;  %v2070_v18 = vld [vmem:[%s2544_s0 + $0xa8] sm:$0xff]  }
   0x7   :  { %1961 = vmatpush3.bf16.msra.mxu0 %v2045_v1  ;;  %2038 = vmatpush3.bf16.msra.mxu1 %v2045_v1  ;;  %v2071_v19 = vld [vmem:[%s2544_s0 + $0xb0] sm:$0xff]   ;;  %v2056_v20 = vld [vmem:[%s2544_s0 + $0x38] sm:$0xff]   ;;  %v2057_v21 = vld [vmem:[%s2544_s0 + $0x40] sm:$0xff]  }
   0x8   :  { %1962 = vmatprep.subr.bf16.mxu0 %v2046_v3  ;;  %2034 = vmatprep.subr.bf16.mxu1 %v2046_v3  ;;  %v2072_v22 = vld [vmem:[%s2544_s0 + $0xb8] sm:$0xff]   ;;  %v2073_v23 = vld [vmem:[%s2544_s0 + $0xc0] sm:$0xff]   ;;  %v2058_v24 = vld [vmem:[%s2544_s0 + $0x48] sm:$0xff]  }
   0x9   :  { %v2059_v25 = vld [vmem:[%s2544_s0 + $0x50] sm:$0xff]   ;;  %v2074_v26 = vld [vmem:[%s2544_s0 + $0xc8] sm:$0xff]   ;;  %v2060_v28 = vld [vmem:[%s2544_s0 + $0x58] sm:$0xff]  }
   0xa   :  { %v2075_v27 = vld [vmem:[%s2544_s0 + $0xd0] sm:$0xff]   ;;  %v2061_v29 = vld [vmem:[%s2544_s0 + $0x60] sm:$0xff]   ;;  %v2076_v30 = vld [vmem:[%s2544_s0 + $0xd8] sm:$0xff]  }
   0xb   :  { %1963 = vmatpush3.bf16.msra.mxu0 %v2046_v3  ;;  %2039 = vmatpush3.bf16.msra.mxu1 %v2046_v3  ;;  %v2077_v31 = vld [vmem:[%s2544_s0 + $0xe0] sm:$0xff]   ;;  %v2062_v32 = vld [vmem:[%s2544_s0 + $0x68] sm:$0xff]   ;;  %v2063_v33 = vld [vmem:[%s2544_s0 + $0x70] sm:$0xff]  }
   0xc   :  { %1964 = vmatprep.subr.bf16.mxu0 %v2047_v5  ;;  %2035 = vmatprep.subr.bf16.mxu1 %v2047_v5  ;;  %v2078_v34 = vld [vmem:[%s2544_s0 + $0xe8] sm:$0xff]   ;;  %v2079_v35 = vld [vmem:[%s2544_s0 + $0xf0] sm:$0xff]   ;;  %v2064_v36 = vld [vmem:[%s2544_s0 + $0x78] sm:$0xff]  }
   0xd   :  { %v2080_v37 = vld [vmem:[%s2544_s0 + $0xf8] sm:$0xff]  }
   0xf   :  { %1965 = vmatpush3.bf16.msra.mxu0 %v2047_v5  ;;  %2040 = vmatpush3.bf16.msra.mxu1 %v2047_v5 }
  0x10   :  { %1966 = vmatprep.subr.bf16.mxu0 %v2048_v6  ;;  %2036 = vmatprep.subr.bf16.mxu1 %v2048_v6 }
  0x13   :  { %1967 = vmatpush3.bf16.msra.mxu0 %v2048_v6  ;;  %2041 = vmatpush3.bf16.msra.mxu1 %v2048_v6 }
  0x16   :  { %1969 = vmatmul.mubr.msk.bf16.vlgmr.msra.gmra.mxu0 %vm407_vm1, %v2050_v7  ;;  %2001 = vmatmul.mubr.msk.bf16.vlgmr.msra.gmra.mxu1 %vm407_vm1, %v2066_v10 }
  0x17   :  { %1972 = vmatprep.mubr.msk.bf16.mxu0 %vm407_vm1, %v2051_v8  ;;  %2004 = vmatprep.mubr.msk.bf16.mxu1 %vm407_vm1, %v2067_v11 }
  0x1e   :  { %1973 = vmatmul.mubr.msk.bf16.gmra.mxu0 %vm407_vm1, %v2052_v12  ;;  %2005 = vmatmul.mubr.msk.bf16.gmra.mxu1 %vm407_vm1, %v2068_v14 }
  0x1f   :  { %1976 = vmatprep.mubr.msk.bf16.mxu0 %vm407_vm1, %v2053_v13  ;;  %2008 = vmatprep.mubr.msk.bf16.mxu1 %vm407_vm1, %v2069_v15 }
  0x26   :  { %1977 = vmatmul.mubr.msk.bf16.gmra.mxu0 %vm407_vm1, %v2054_v16  ;;  %2009 = vmatmul.mubr.msk.bf16.gmra.mxu1 %vm407_vm1, %v2070_v18 }
  0x27   :  { %1980 = vmatprep.mubr.msk.bf16.mxu0 %vm407_vm1, %v2055_v17  ;;  %2012 = vmatprep.mubr.msk.bf16.mxu1 %vm407_vm1, %v2071_v19 }
  0x2e   :  { %1981 = vmatmul.mubr.msk.bf16.gmra.mxu0 %vm407_vm1, %v2056_v20  ;;  %2013 = vmatmul.mubr.msk.bf16.gmra.mxu1 %vm407_vm1, %v2072_v22 }
  0x2f   :  { %1984 = vmatprep.mubr.msk.bf16.mxu0 %vm407_vm1, %v2057_v21  ;;  %2016 = vmatprep.mubr.msk.bf16.mxu1 %vm407_vm1, %v2073_v23 }
  0x36   :  { %1985 = vmatmul.mubr.msk.bf16.gmra.mxu0 %vm407_vm1, %v2058_v24  ;;  %2017 = vmatmul.mubr.msk.bf16.gmra.mxu1 %vm407_vm1, %v2074_v26 }
  0x37   :  { %1988 = vmatprep.mubr.msk.bf16.mxu0 %vm407_vm1, %v2059_v25  ;;  %2020 = vmatprep.mubr.msk.bf16.mxu1 %vm407_vm1, %v2075_v27 }
  0x3e   :  { %1989 = vmatmul.mubr.msk.bf16.gmra.mxu0 %vm407_vm1, %v2060_v28  ;;  %2021 = vmatmul.mubr.msk.bf16.gmra.mxu1 %vm407_vm1, %v2076_v30 }
  0x3f   :  { %1992 = vmatprep.mubr.msk.bf16.mxu0 %vm407_vm1, %v2061_v29  ;;  %2024 = vmatprep.mubr.msk.bf16.mxu1 %vm407_vm1, %v2077_v31 }
  0x46   :  { %1993 = vmatmul.mubr.msk.bf16.gmra.mxu0 %vm407_vm1, %v2062_v32  ;;  %2025 = vmatmul.mubr.msk.bf16.gmra.mxu1 %vm407_vm1, %v2078_v34 }
  0x47   :  { %1996 = vmatprep.mubr.msk.bf16.mxu0 %vm407_vm1, %v2063_v33  ;;  %2028 = vmatprep.mubr.msk.bf16.mxu1 %vm407_vm1, %v2079_v35 }
  0x4e   :  { %1997 = vmatmul.mubr.msk.bf16.gmra.mxu0 %vm407_vm1, %v2064_v36  ;;  %2029 = vmatmul.mubr.msk.bf16.gmra.mxu1 %vm407_vm1, %v2080_v37 }
  0xd6   :  { %v1970_v38 = vpop.f32.mrf.mxu0  ;;  %v2249_v40 = vpop.f32.mrf.mxu1 }
  0xd7   :  { %v1388_v53 = vmul.f32 %v1970_v38, %v1970_v38 }
  0xd8   :  { %v542_v39 = vpop.f32.mrf.mxu0  ;;  %v2251_v42 = vpop.f32.mrf.mxu1 }
  0xd9   :  { %v1386_v44 = vmul.f32 %v542_v39, %v542_v39 }
  0xda   :  { %v1971_v41 = vpop.f32.mrf.mxu0  ;;  %v2253_v46 = vpop.f32.mrf.mxu1 }
  0xdb   :  { %v1738_v43 = vpack.c.bf16 %v1971_v41, %v1970_v38  ;;  %v1818_v50 = vpack.c.bf16 %v2253_v46, %v2249_v40  ;;  %v1389_v59 = vmul.f32 %v1971_v41, %v1971_v41 }
  0xdc   :  { %v545_v45 = vpop.f32.mrf.mxu0  ;;  %v2260_v52 = vpop.f32.mrf.mxu1 }
  0xdd   :  { %1890 = vst [vmem:[%s2545_s2 + $0x8] sm:$0xff] %v1738_v43   ;;  %v1733_v47 = vpack.c.bf16 %v545_v45, %v542_v39  ;;  %v1315_v48 = vadd.f32 %v545_v45, %v542_v39  ;;  %v1387_v49 = vmul.f32 %v545_v45, %v545_v45  ;;  %1906 = vst [vmem:[%s2545_s2 + $0x88] sm:$0xff] %v1818_v50  }
  0xde   :  { %v1974_v51 = vpop.f32.mrf.mxu0  ;;  %v1813_v56 = vpack.c.bf16 %v2260_v52, %v2251_v42  ;;  %v2270_v58 = vpop.f32.mrf.mxu1 }
  0xdf   :  { %1734 = vst [vmem:[%s2545_s2] sm:$0xff] %v1733_v47   ;;  %v1316_v54 = vadd.f32 %v1970_v38, %v1315_v48  ;;  %v1450_v55 = vadd.f32 %v1387_v49, %v1386_v44  ;;  %v1392_v13 = vmul.f32 %v1974_v51, %v1974_v51 }
  0xe0   :  { %v558_v57 = vpop.f32.mrf.mxu0  ;;  %1905 = vst [vmem:[%s2545_s2 + $0x80] sm:$0xff] %v1813_v56   ;;  %v2275_v63 = vpop.f32.mrf.mxu1 }
  0xe1   :  { %v1451_v60 = vadd.f32 %v1450_v55, %v1388_v53  ;;  %v1317_v61 = vadd.f32 %v1971_v41, %v1316_v54  ;;  %v1390_v1 = vmul.f32 %v558_v57, %v558_v57 }
  0xe2   :  { %v1975_v62 = vpop.f32.mrf.mxu0  ;;  %v2277_v5 = vpop.f32.mrf.mxu1 }
  0xe3   :  { %v1318_v0 = vadd.f32 %v1317_v61, %v558_v57  ;;  %v1452_v2 = vadd.f32 %v1451_v60, %v1389_v59  ;;  %v1748_v3 = vpack.c.bf16 %v1975_v62, %v1974_v51  ;;  %v1828_v11 = vpack.c.bf16 %v2277_v5, %v2270_v58 }
  0xe4   :  { %v561_v4 = vpop.f32.mrf.mxu0  ;;  %v2284_v12 = vpop.f32.mrf.mxu1  ;;  %v1393_v19 = vmul.f32 %v1975_v62, %v1975_v62 }
  0xe5   :  { %v1453_v6 = vadd.f32 %v1452_v2, %v1390_v1  ;;  %1892 = vst [vmem:[%s2545_s2 + $0x18] sm:$0xff] %v1748_v3   ;;  %v1743_v7 = vpack.c.bf16 %v561_v4, %v558_v57  ;;  %v1319_v8 = vadd.f32 %v1318_v0, %v561_v4  ;;  %v1391_v9 = vmul.f32 %v561_v4, %v561_v4 }
  0xe6   :  { %v1978_v10 = vpop.f32.mrf.mxu0  ;;  %v1823_v16 = vpack.c.bf16 %v2284_v12, %v2275_v63  ;;  %1908 = vst [vmem:[%s2545_s2 + $0x98] sm:$0xff] %v1828_v11   ;;  %v2294_v18 = vpop.f32.mrf.mxu1 }
  0xe7   :  { %1891 = vst [vmem:[%s2545_s2 + $0x10] sm:$0xff] %v1743_v7   ;;  %v1320_v14 = vadd.f32 %v1974_v51, %v1319_v8  ;;  %v1454_v15 = vadd.f32 %v1453_v6, %v1391_v9  ;;  %v1396_v37 = vmul.f32 %v1978_v10, %v1978_v10 }
  0xe8   :  { %v574_v17 = vpop.f32.mrf.mxu0  ;;  %1907 = vst [vmem:[%s2545_s2 + $0x90] sm:$0xff] %v1823_v16   ;;  %v2299_v23 = vpop.f32.mrf.mxu1 }
  0xe9   :  { %v1455_v20 = vadd.f32 %v1454_v15, %v1392_v13  ;;  %v1321_v21 = vadd.f32 %v1975_v62, %v1320_v14  ;;  %v1394_v25 = vmul.f32 %v574_v17, %v574_v17 }
  0xea   :  { %v1979_v22 = vpop.f32.mrf.mxu0  ;;  %v2301_v29 = vpop.f32.mrf.mxu1 }
  0xeb   :  { %v1322_v24 = vadd.f32 %v1321_v21, %v574_v17  ;;  %v1456_v26 = vadd.f32 %v1455_v20, %v1393_v19  ;;  %v1758_v27 = vpack.c.bf16 %v1979_v22, %v1978_v10  ;;  %v1838_v35 = vpack.c.bf16 %v2301_v29, %v2294_v18 }
  0xec   :  { %v577_v28 = vpop.f32.mrf.mxu0  ;;  %v2308_v36 = vpop.f32.mrf.mxu1  ;;  %v1397_v45 = vmul.f32 %v1979_v22, %v1979_v22 }
  0xed   :  { %v1457_v30 = vadd.f32 %v1456_v26, %v1394_v25  ;;  %1894 = vst [vmem:[%s2545_s2 + $0x28] sm:$0xff] %v1758_v27   ;;  %v1753_v31 = vpack.c.bf16 %v577_v28, %v574_v17  ;;  %v1323_v32 = vadd.f32 %v1322_v24, %v577_v28  ;;  %v1395_v33 = vmul.f32 %v577_v28, %v577_v28 }
  0xee   :  { %v1982_v34 = vpop.f32.mrf.mxu0  ;;  %v1833_v41 = vpack.c.bf16 %v2308_v36, %v2299_v23  ;;  %1910 = vst [vmem:[%s2545_s2 + $0xa8] sm:$0xff] %v1838_v35   ;;  %v2318_v44 = vpop.f32.mrf.mxu1 }
  0xef   :  { %1893 = vst [vmem:[%s2545_s2 + $0x20] sm:$0xff] %v1753_v31   ;;  %v1324_v38 = vadd.f32 %v1978_v10, %v1323_v32  ;;  %v1458_v39 = vadd.f32 %v1457_v30, %v1395_v33  ;;  %v1400_v3 = vmul.f32 %v1982_v34, %v1982_v34 }
  0xf0   :  { %v590_v43 = vpop.f32.mrf.mxu0  ;;  %1909 = vst [vmem:[%s2545_s2 + $0xa0] sm:$0xff] %v1833_v41   ;;  %v2323_v50 = vpop.f32.mrf.mxu1 }
  0xf1   :  { %v1459_v47 = vadd.f32 %v1458_v39, %v1396_v37  ;;  %v1325_v48 = vadd.f32 %v1979_v22, %v1324_v38  ;;  %v1398_v53 = vmul.f32 %v590_v43, %v590_v43 }
  0xf2   :  { %v1983_v49 = vpop.f32.mrf.mxu0  ;;  %v2325_v57 = vpop.f32.mrf.mxu1 }
  0xf3   :  { %v1326_v51 = vadd.f32 %v1325_v48, %v590_v43  ;;  %v1460_v54 = vadd.f32 %v1459_v47, %v1397_v45  ;;  %v1768_v55 = vpack.c.bf16 %v1983_v49, %v1982_v34  ;;  %v1848_v1 = vpack.c.bf16 %v2325_v57, %v2318_v44 }
  0xf4   :  { %v593_v56 = vpop.f32.mrf.mxu0  ;;  %v2332_v2 = vpop.f32.mrf.mxu1  ;;  %v1401_v10 = vmul.f32 %v1983_v49, %v1983_v49 }
  0xf5   :  { %v1461_v59 = vadd.f32 %v1460_v54, %v1398_v53  ;;  %1896 = vst [vmem:[%s2545_s2 + $0x38] sm:$0xff] %v1768_v55   ;;  %v1763_v60 = vpack.c.bf16 %v593_v56, %v590_v43  ;;  %v1327_v61 = vadd.f32 %v1326_v51, %v593_v56  ;;  %v1399_v62 = vmul.f32 %v593_v56, %v593_v56 }
  0xf6   :  { %v1986_v0 = vpop.f32.mrf.mxu0  ;;  %v1843_v7 = vpack.c.bf16 %v2332_v2, %v2323_v50  ;;  %1912 = vst [vmem:[%s2545_s2 + $0xb8] sm:$0xff] %v1848_v1   ;;  %v2342_v9 = vpop.f32.mrf.mxu1 }
  0xf7   :  { %1895 = vst [vmem:[%s2545_s2 + $0x30] sm:$0xff] %v1763_v60   ;;  %v1328_v4 = vadd.f32 %v1982_v34, %v1327_v61  ;;  %v1462_v6 = vadd.f32 %v1461_v59, %v1399_v62  ;;  %v1404_v32 = vmul.f32 %v1986_v0, %v1986_v0 }
  0xf8   :  { %v606_v8 = vpop.f32.mrf.mxu0  ;;  %1911 = vst [vmem:[%s2545_s2 + $0xb0] sm:$0xff] %v1843_v7   ;;  %v2347_v15 = vpop.f32.mrf.mxu1 }
  0xf9   :  { %v1463_v11 = vadd.f32 %v1462_v6, %v1400_v3  ;;  %v1329_v13 = vadd.f32 %v1983_v49, %v1328_v4  ;;  %v1402_v17 = vmul.f32 %v606_v8, %v606_v8 }
  0xfa   :  { %v1987_v14 = vpop.f32.mrf.mxu0  ;;  %v2349_v22 = vpop.f32.mrf.mxu1 }
  0xfb   :  { %v1330_v16 = vadd.f32 %v1329_v13, %v606_v8  ;;  %v1464_v19 = vadd.f32 %v1463_v11, %v1401_v10  ;;  %v1778_v20 = vpack.c.bf16 %v1987_v14, %v1986_v0  ;;  %v1858_v30 = vpack.c.bf16 %v2349_v22, %v2342_v9 }
  0xfc   :  { %v609_v21 = vpop.f32.mrf.mxu0  ;;  %v2356_v31 = vpop.f32.mrf.mxu1  ;;  %v1405_v39 = vmul.f32 %v1987_v14, %v1987_v14 }
  0xfd   :  { %v1465_v24 = vadd.f32 %v1464_v19, %v1402_v17  ;;  %1898 = vst [vmem:[%s2545_s2 + $0x48] sm:$0xff] %v1778_v20   ;;  %v1773_v25 = vpack.c.bf16 %v609_v21, %v606_v8  ;;  %v1331_v26 = vadd.f32 %v1330_v16, %v609_v21  ;;  %v1403_v27 = vmul.f32 %v609_v21, %v609_v21 }
  0xfe   :  { %v1990_v28 = vpop.f32.mrf.mxu0  ;;  %v1853_v35 = vpack.c.bf16 %v2356_v31, %v2347_v15  ;;  %1914 = vst [vmem:[%s2545_s2 + $0xc8] sm:$0xff] %v1858_v30   ;;  %v2366_v38 = vpop.f32.mrf.mxu1 }
  0xff   :  { %1897 = vst [vmem:[%s2545_s2 + $0x40] sm:$0xff] %v1773_v25   ;;  %v1332_v33 = vadd.f32 %v1986_v0, %v1331_v26  ;;  %v1466_v34 = vadd.f32 %v1465_v24, %v1403_v27  ;;  %v1408_v3 = vmul.f32 %v1990_v28, %v1990_v28 }
 0x100   :  { %v622_v37 = vpop.f32.mrf.mxu0  ;;  %1913 = vst [vmem:[%s2545_s2 + $0xc0] sm:$0xff] %v1853_v35   ;;  %v2371_v47 = vpop.f32.mrf.mxu1 }
 0x101   :  { %v1467_v41 = vadd.f32 %v1466_v34, %v1404_v32  ;;  %v1333_v43 = vadd.f32 %v1987_v14, %v1332_v33  ;;  %v1406_v49 = vmul.f32 %v622_v37, %v622_v37 }
 0x102   :  { %v1991_v45 = vpop.f32.mrf.mxu0  ;;  %v2373_v55 = vpop.f32.mrf.mxu1 }
 0x103   :  { %v1334_v48 = vadd.f32 %v1333_v43, %v622_v37  ;;  %v1468_v51 = vadd.f32 %v1467_v41, %v1405_v39  ;;  %v1788_v53 = vpack.c.bf16 %v1991_v45, %v1990_v28  ;;  %v1868_v0 = vpack.c.bf16 %v2373_v55, %v2366_v38 }
 0x104   :  { %v625_v54 = vpop.f32.mrf.mxu0  ;;  %v2380_v1 = vpop.f32.mrf.mxu1  ;;  %v1409_v11 = vmul.f32 %v1991_v45, %v1991_v45 }
 0x105   :  { %v1469_v56 = vadd.f32 %v1468_v51, %v1406_v49  ;;  %1900 = vst [vmem:[%s2545_s2 + $0x58] sm:$0xff] %v1788_v53   ;;  %v1783_v59 = vpack.c.bf16 %v625_v54, %v622_v37  ;;  %v1335_v60 = vadd.f32 %v1334_v48, %v625_v54  ;;  %v1407_v61 = vmul.f32 %v625_v54, %v625_v54 }
 0x106   :  { %v1994_v62 = vpop.f32.mrf.mxu0  ;;  %v1863_v7 = vpack.c.bf16 %v2380_v1, %v2371_v47  ;;  %1916 = vst [vmem:[%s2545_s2 + $0xd8] sm:$0xff] %v1868_v0   ;;  %v2390_v10 = vpop.f32.mrf.mxu1 }
 0x107   :  { %1899 = vst [vmem:[%s2545_s2 + $0x50] sm:$0xff] %v1783_v59   ;;  %v1336_v4 = vadd.f32 %v1990_v28, %v1335_v60  ;;  %v1470_v6 = vadd.f32 %v1469_v56, %v1407_v61  ;;  %v1412_v37 = vmul.f32 %v1994_v62, %v1994_v62 }
 0x108   :  { %v638_v8 = vpop.f32.mrf.mxu0  ;;  %1915 = vst [vmem:[%s2545_s2 + $0xd0] sm:$0xff] %v1863_v7   ;;  %v2395_v17 = vpop.f32.mrf.mxu1 }
 0x109   :  { %v1471_v13 = vadd.f32 %v1470_v6, %v1408_v3  ;;  %v1337_v14 = vadd.f32 %v1991_v45, %v1336_v4  ;;  %v1410_v20 = vmul.f32 %v638_v8, %v638_v8 }
 0x10a   :  { %v1995_v16 = vpop.f32.mrf.mxu0  ;;  %v2397_v26 = vpop.f32.mrf.mxu1 }
 0x10b   :  { %v1338_v19 = vadd.f32 %v1337_v14, %v638_v8  ;;  %v1472_v21 = vadd.f32 %v1471_v13, %v1409_v11  ;;  %v1798_v24 = vpack.c.bf16 %v1995_v16, %v1994_v62  ;;  %v1878_v34 = vpack.c.bf16 %v2397_v26, %v2390_v10 }
 0x10c   :  { %v641_v25 = vpop.f32.mrf.mxu0  ;;  %v2404_v35 = vpop.f32.mrf.mxu1  ;;  %v1413_v49 = vmul.f32 %v1995_v16, %v1995_v16 }
 0x10d   :  { %v1473_v27 = vadd.f32 %v1472_v21, %v1410_v20  ;;  %1902 = vst [vmem:[%s2545_s2 + $0x68] sm:$0xff] %v1798_v24   ;;  %v1793_v28 = vpack.c.bf16 %v641_v25, %v638_v8  ;;  %v1339_v30 = vadd.f32 %v1338_v19, %v641_v25  ;;  %v1411_v32 = vmul.f32 %v641_v25, %v641_v25 }
 0x10e   :  { %v1998_v33 = vpop.f32.mrf.mxu0  ;;  %v1873_v43 = vpack.c.bf16 %v2404_v35, %v2395_v17  ;;  %1918 = vst [vmem:[%s2545_s2 + $0xe8] sm:$0xff] %v1878_v34   ;;  %v2414_v48 = vpop.f32.mrf.mxu1 }
 0x10f   :  { %1901 = vst [vmem:[%s2545_s2 + $0x60] sm:$0xff] %v1793_v28   ;;  %v1340_v39 = vadd.f32 %v1994_v62, %v1339_v30  ;;  %v1474_v41 = vadd.f32 %v1473_v27, %v1411_v32  ;;  %v1416_v14 = vmul.f32 %v1998_v33, %v1998_v33  ;;  %v1418_v27 = vmul.f32 %v2251_v42, %v2251_v42 }
 0x110   :  { %v654_v45 = vpop.f32.mrf.mxu0  ;;  %1917 = vst [vmem:[%s2545_s2 + $0xe0] sm:$0xff] %v1873_v43   ;;  %v2419_v56 = vpop.f32.mrf.mxu1  ;;  %v1421_v43 = vmul.f32 %v2253_v46, %v2253_v46 }
 0x111   :  { %v1475_v51 = vadd.f32 %v1474_v41, %v1412_v37  ;;  %v1341_v53 = vadd.f32 %v1995_v16, %v1340_v39  ;;  %v1414_v60 = vmul.f32 %v654_v45, %v654_v45  ;;  %v1420_v37 = vmul.f32 %v2249_v40, %v2249_v40 }
 0x112   :  { %v1999_v54 = vpop.f32.mrf.mxu0  ;;  %v2421_v3 = vpop.f32.mrf.mxu1 }
 0x113   :  { %v1342_v59 = vadd.f32 %v1341_v53, %v654_v45  ;;  %v1476_v61 = vadd.f32 %v1475_v51, %v1413_v49  ;;  %v1808_v62 = vpack.c.bf16 %v1999_v54, %v1998_v33  ;;  %v1888_v11 = vpack.c.bf16 %v2421_v3, %v2414_v48 }
 0x114   :  { %v657_v0 = vpop.f32.mrf.mxu0  ;;  %v2428_v13 = vpop.f32.mrf.mxu1  ;;  %v1417_v21 = vmul.f32 %v1999_v54, %v1999_v54  ;;  %v1422_v51 = vmul.f32 %v2275_v63, %v2275_v63 }
 0x115   :  { %v1477_v4 = vadd.f32 %v1476_v61, %v1414_v60  ;;  %1904 = vst [vmem:[%s2545_s2 + $0x78] sm:$0xff] %v1808_v62   ;;  %v1803_v6 = vpack.c.bf16 %v657_v0, %v654_v45  ;;  %v1343_v7 = vadd.f32 %v1342_v59, %v657_v0  ;;  %v1415_v8 = vmul.f32 %v657_v0, %v657_v0 }
 0x116   :  { %v1883_v20 = vpack.c.bf16 %v2428_v13, %v2419_v56  ;;  %1920 = vst [vmem:[%s2545_s2 + $0xf8] sm:$0xff] %v1888_v11   ;;  %v1423_v59 = vmul.f32 %v2284_v12, %v2284_v12 }
 0x117   :  { %1903 = vst [vmem:[%s2545_s2 + $0x70] sm:$0xff] %v1803_v6   ;;  %v1344_v16 = vadd.f32 %v1998_v33, %v1343_v7  ;;  %v1478_v19 = vadd.f32 %v1477_v4, %v1415_v8  ;;  %v1419_v33 = vmul.f32 %v2260_v52, %v2260_v52  ;;  %v1426_v4 = vmul.f32 %v2299_v23, %v2299_v23 }
 0x118   :  { %1919 = vst [vmem:[%s2545_s2 + $0xf0] sm:$0xff] %v1883_v20   ;;  %v1427_v8 = vmul.f32 %v2308_v36, %v2308_v36  ;;  %v1430_v20 = vmul.f32 %v2323_v50, %v2323_v50 }
 0x119   :  { %v1345_v24 = vadd.f32 %v1999_v54, %v1344_v16  ;;  %v1479_v25 = vadd.f32 %v1478_v19, %v1416_v14 }
 0x11b   :  { %v1480_v28 = vadd.f32 %v1479_v25, %v1417_v21  ;;  %v1346_v30 = vadd.f32 %v1345_v24, %v2251_v42  ;;  %v1431_v25 = vmul.f32 %v2332_v2, %v2332_v2 }
 0x11d   :  { %v1347_v32 = vadd.f32 %v1346_v30, %v2260_v52  ;;  %v1481_v34 = vadd.f32 %v1480_v28, %v1418_v27 }
 0x11f   :  { %v1348_v39 = vadd.f32 %v2249_v40, %v1347_v32  ;;  %v1482_v41 = vadd.f32 %v1481_v34, %v1419_v33  ;;  %v1424_v40 = vmul.f32 %v2270_v58, %v2270_v58  ;;  %v1434_v33 = vmul.f32 %v2347_v15, %v2347_v15 }
 0x121   :  { %v1483_v45 = vadd.f32 %v1482_v41, %v1420_v37  ;;  %v1349_v49 = vadd.f32 %v2253_v46, %v1348_v39  ;;  %v1425_v46 = vmul.f32 %v2277_v5, %v2277_v5  ;;  %v1435_v39 = vmul.f32 %v2356_v31, %v2356_v31 }
 0x123   :  { %v1350_v42 = vadd.f32 %v1349_v49, %v2275_v63  ;;  %v1484_v53 = vadd.f32 %v1483_v45, %v1421_v43 }
 0x125   :  { %v1485_v52 = vadd.f32 %v1484_v53, %v1422_v51  ;;  %v1351_v54 = vadd.f32 %v1350_v42, %v2284_v12  ;;  %v1438_v42 = vmul.f32 %v2371_v47, %v2371_v47 }
 0x127   :  { %v1352_v60 = vadd.f32 %v2270_v58, %v1351_v54  ;;  %v1486_v61 = vadd.f32 %v1485_v52, %v1423_v59  ;;  %v1428_v58 = vmul.f32 %v2294_v18, %v2294_v18  ;;  %v1439_v52 = vmul.f32 %v2380_v1, %v2380_v1 }
 0x129   :  { %v1487_v62 = vadd.f32 %v1486_v61, %v1424_v40  ;;  %v1353_v0 = vadd.f32 %v2277_v5, %v1352_v60  ;;  %v1429_v5 = vmul.f32 %v2301_v29, %v2301_v29  ;;  %v1442_v61 = vmul.f32 %v2395_v17, %v2395_v17 }
 0x12b   :  { %v1354_v63 = vadd.f32 %v1353_v0, %v2299_v23  ;;  %v1488_v6 = vadd.f32 %v1487_v62, %v1425_v46  ;;  %v1443_v0 = vmul.f32 %v2404_v35, %v2404_v35 }
 0x12d   :  { %v1489_v7 = vadd.f32 %v1488_v6, %v1426_v4  ;;  %v1355_v12 = vadd.f32 %v1354_v63, %v2308_v36 }
 0x12f   :  { %v1356_v11 = vadd.f32 %v2294_v18, %v1355_v12  ;;  %v1490_v14 = vadd.f32 %v1489_v7, %v1427_v8  ;;  %v1432_v18 = vmul.f32 %v2318_v44, %v2318_v44  ;;  %v1446_v12 = vmul.f32 %v2419_v56, %v2419_v56 }
 0x131   :  { %v1491_v16 = vadd.f32 %v1490_v14, %v1428_v58  ;;  %v1357_v19 = vadd.f32 %v2301_v29, %v1356_v11  ;;  %v1433_v29 = vmul.f32 %v2325_v57, %v2325_v57  ;;  %v1447_v11 = vmul.f32 %v2428_v13, %v2428_v13 }
 0x133   :  { %v1358_v23 = vadd.f32 %v1357_v19, %v2323_v50  ;;  %v1492_v21 = vadd.f32 %v1491_v16, %v1429_v5 }
 0x135   :  { %v1493_v24 = vadd.f32 %v1492_v21, %v1430_v20  ;;  %v1359_v36 = vadd.f32 %v1358_v23, %v2332_v2  ;;  %v1312_v20 = vlaneseq }
 0x137   :  { %v1360_v27 = vadd.f32 %v2318_v44, %v1359_v36  ;;  %v1494_v28 = vadd.f32 %v1493_v24, %v1431_v25  ;;  %v1436_v44 = vmul.f32 %v2342_v9, %v2342_v9 }
 0x139   :  { %v1495_v30 = vadd.f32 %v1494_v28, %v1432_v18  ;;  %v1361_v32 = vadd.f32 %v2325_v57, %v1360_v27  ;;  %v1437_v57 = vmul.f32 %v2349_v22, %v2349_v22 }
 0x13b   :  { %v1362_v50 = vadd.f32 %v1361_v32, %v2347_v15  ;;  %v1496_v34 = vadd.f32 %v1495_v30, %v1433_v29 }
 0x13d   :  { %v1497_v37 = vadd.f32 %v1496_v34, %v1434_v33  ;;  %v1363_v2 = vadd.f32 %v1362_v50, %v2356_v31 }
 0x13f   :  { %v1364_v41 = vadd.f32 %v2342_v9, %v1363_v2  ;;  %v1498_v43 = vadd.f32 %v1497_v37, %v1435_v39  ;;  %v1440_v9 = vmul.f32 %v2366_v38, %v2366_v38 }
 0x141   :  { %v1499_v45 = vadd.f32 %v1498_v43, %v1436_v44  ;;  %v1365_v49 = vadd.f32 %v2349_v22, %v1364_v41  ;;  %v1441_v22 = vmul.f32 %v2373_v55, %v2373_v55 }
 0x143   :  { %v1366_v15 = vadd.f32 %v1365_v49, %v2371_v47  ;;  %v1500_v51 = vadd.f32 %v1499_v45, %v1437_v57 }
 0x145   :  { %v1501_v53 = vadd.f32 %v1500_v51, %v1438_v42  ;;  %v1367_v31 = vadd.f32 %v1366_v15, %v2380_v1 }
 0x147   :  { %v1368_v54 = vadd.f32 %v2366_v38, %v1367_v31  ;;  %v1502_v59 = vadd.f32 %v1501_v53, %v1439_v52  ;;  %v1444_v38 = vmul.f32 %v2390_v10, %v2390_v10 }
 0x149   :  { %v1503_v40 = vadd.f32 %v1502_v59, %v1440_v9  ;;  %v1369_v60 = vadd.f32 %v2373_v55, %v1368_v54  ;;  %v1445_v55 = vmul.f32 %v2397_v26, %v2397_v26 }
 0x14b   :  { %v1370_v47 = vadd.f32 %v1369_v60, %v2395_v17  ;;  %v1504_v46 = vadd.f32 %v1503_v40, %v1441_v22 }
 0x14d   :  { %v1505_v62 = vadd.f32 %v1504_v46, %v1442_v61  ;;  %v1371_v1 = vadd.f32 %v1370_v47, %v2404_v35 }
 0x14f   :  { %v1372_v63 = vadd.f32 %v2390_v10, %v1371_v1  ;;  %v1506_v4 = vadd.f32 %v1505_v62, %v1443_v0  ;;  %v1448_v10 = vmul.f32 %v2414_v48, %v2414_v48 }
 0x151   :  { %v1507_v6 = vadd.f32 %v1506_v4, %v1444_v38  ;;  %v1373_v7 = vadd.f32 %v2397_v26, %v1372_v63  ;;  %v1449_v26 = vmul.f32 %v2421_v3, %v2421_v3 }
 0x153   :  { %v1374_v17 = vadd.f32 %v1373_v7, %v2419_v56  ;;  %v1508_v8 = vadd.f32 %v1507_v6, %v1445_v55 }
 0x155   :  { %v1509_v58 = vadd.f32 %v1508_v8, %v1446_v12  ;;  %v1375_v35 = vadd.f32 %v1374_v17, %v2428_v13  ;;  %v1313_v13 = vshrl.u32 %v1312_v20, 7 }
 0x157   :  { %v1376_v14 = vadd.f32 %v2414_v48, %v1375_v35  ;;  %v1510_v5 = vadd.f32 %v1509_v58, %v1447_v11  ;;  %vm1314_vm2 = vcmp.eq.s32.totalorder %v1313_v13, 0 }
 0x159   :  { %v1377_v16 = vadd.f32 %v2421_v3, %v1376_v14  ;;  %v1511_v19 = vadd.f32 %v1510_v5, %v1448_v10 }
 0x15b   :  { %v1378_v56 = vrot.slane %v1377_v16, 4  ;;  %v1512_v23 = vadd.f32 %v1511_v19, %v1449_v26 }
 0x15d   :  { %v1379_v21 = vadd.f32 %v1378_v56, %v1377_v16  ;;  %v1513_v24 = vrot.slane %v1512_v23, 4 }
 0x15f   :  { %v1380_v36 = vrot.slane %v1379_v21, 2  ;;  %v1514_v25 = vadd.f32 %v1513_v24, %v1512_v23 }
 0x161   :  { %v1381_v18 = vadd.f32 %v1380_v36, %v1379_v21  ;;  %v1515_v27 = vrot.slane %v1514_v25, 2 }
 0x163   :  { %v1382_v28 = vrot.slane %v1381_v18, 1  ;;  %v1516_v29 = vadd.f32 %v1515_v27, %v1514_v25 }
 0x165   :  { %v1383_v48 = vadd.f32 %v1382_v28, %v1381_v18  ;;  %v1517_v30 = vrot.slane %v1516_v29, 1 }
 0x167   :  { %v1384_v32 = vsel %vm1314_vm2, %v1383_v48, 0.0  ;;  %v1518_v50 = vadd.f32 %v1517_v30, %v1516_v29 }
 0x168   :  { %1385 = vst [vmem:[%s2546_s3] sm:$0xff] %v1384_v32 }
 0x169   :  { %v1519_v3 = vsel %vm1314_vm2, %v1518_v50, 0.0 }
 0x16a   :  { %1520 = vst [vmem:[%s2547_s4] sm:$0xff] %v1519_v3 }

// kernel: unet_forward.29
= control target key start
LH: loop header
LB: loop body
LE: loop exit
PB: predicated region body
PF: predicated region fallthrough
CT: control target
= control target key end

     0   :  { %vm393_vm0 = vcmask 57344   ;;  %vm2060_vm1 = vsmask.f32 256  ;;  %s4386_s0 = inlined_call_operand.vmem [shape: bf16[16,2,8,2,8], index: 0, kind: input, shape index: {}]   ;;  %s4387_s1 = inlined_call_operand.vmem [shape: bf16[16,8,1,8], index: 1, kind: output, shape index: {}]  }
   0x1   :  { %v9_v0 = vld [vmem:[%s4386_s0] sm:$0x1]  ;;  %v17_v1 = vld [vmem:[%s4386_s0 + $0x8] sm:$0x1]  ;;  %v10_v3 = vld [vmem:[%s4386_s0 + $0x1] sm:$0x1] }
   0x2   :  { %v265_v2 = vmax.bf16 %v17_v1, %v9_v0  ;;  %v18_v4 = vld [vmem:[%s4386_s0 + $0x9] sm:$0x1]  ;;  %v11_v6 = vld [vmem:[%s4386_s0 + $0x2] sm:$0x1]  ;;  %v19_v7 = vld [vmem:[%s4386_s0 + $0xa] sm:$0x1] }
   0x3   :  { %v266_v5 = vmax.bf16 %v18_v4, %v10_v3  ;;  %v267_v9 = vmax.bf16 %v19_v7, %v11_v6  ;;  %v12_v10 = vld [vmem:[%s4386_s0 + $0x3] sm:$0x1]  ;;  %v20_v14 = vld [vmem:[%s4386_s0 + $0xb] sm:$0x1]  ;;  %v13_v19 = vld [vmem:[%s4386_s0 + $0x4] sm:$0x1] }
   0x4   :  { %v396_v8 = vsel %vm393_vm0, %v265_v2, 4286644096  ;;  %v268_v18 = vmax.bf16 %v20_v14, %v12_v10  ;;  %v21_v20 = vld [vmem:[%s4386_s0 + $0xc] sm:$0x1]  ;;  %v14_v25 = vld [vmem:[%s4386_s0 + $0x5] sm:$0x1]  ;;  %vm2518_vm2 = vmand %vm393_vm0, %vm2060_vm1 }
   0x5   :  { %v398_v11 = vunpack.i.l.bf16 %v396_v8  ;;  %v399_v12 = vunpack.i.h.bf16 %v396_v8  ;;  %v409_v13 = vsel %vm393_vm0, %v266_v5, 4286644096  ;;  %v422_v17 = vsel %vm393_vm0, %v267_v9, 4286644096  ;;  %v22_v26 = vld [vmem:[%s4386_s0 + $0xd] sm:$0x1] }
   0x6   :  { %v411_v15 = vunpack.i.l.bf16 %v409_v13  ;;  %v412_v16 = vunpack.i.h.bf16 %v409_v13  ;;  %v424_v22 = vunpack.i.l.bf16 %v422_v17  ;;  %v425_v23 = vunpack.i.h.bf16 %v422_v17  ;;  %v15_v30 = vld [vmem:[%s4386_s0 + $0x6] sm:$0x1]  ;;  %v23_v35 = vld [vmem:[%s4386_s0 + $0xe] sm:$0x1]  ;;  %v16_v48 = vld [vmem:[%s4386_s0 + $0x7] sm:$0x1] }
   0x7   :  { %v400_v21 = vmax.f32 %v398_v11, %v399_v12  ;;  %v269_v24 = vmax.bf16 %v21_v20, %v13_v19  ;;  %v435_v28 = vsel %vm393_vm0, %v268_v18, 4286644096  ;;  %v270_v29 = vmax.bf16 %v22_v26, %v14_v25  ;;  %v24_v53 = vld [vmem:[%s4386_s0 + $0xf] sm:$0x1] }
   0x8   :  { %v413_v27 = vmax.f32 %v411_v15, %v412_v16  ;;  %v426_v32 = vmax.f32 %v424_v22, %v425_v23  ;;  %v437_v33 = vunpack.i.l.bf16 %v435_v28  ;;  %v438_v34 = vunpack.i.h.bf16 %v435_v28  ;;  %v2062_v15 = vld [vmem:[%s4387_s1] sm:$0x1]  ;;  %v2068_v23 = vld [vmem:[%s4387_s1 + $0x2] sm:$0x1] }
   0x9   :  { %v401_v31 = vrot.slane %v400_v21, 4  ;;  %v448_v37 = vsel %vm393_vm0, %v269_v24, 4286644096  ;;  %v461_v38 = vsel %vm393_vm0, %v270_v29, 4286644096  ;;  %v271_v39 = vmax.bf16 %v23_v35, %v15_v30 }
   0xa   :  { %v414_v36 = vrot.slane %v413_v27, 4  ;;  %v427_v41 = vrot.slane %v426_v32, 4  ;;  %v439_v42 = vmax.f32 %v437_v33, %v438_v34  ;;  %v450_v43 = vunpack.i.l.bf16 %v448_v37 }
   0xb   :  { %v402_v40 = vmax.f32 %v400_v21, %v401_v31  ;;  %v451_v45 = vunpack.i.h.bf16 %v448_v37  ;;  %v463_v46 = vunpack.i.l.bf16 %v461_v38  ;;  %v464_v47 = vunpack.i.h.bf16 %v461_v38  ;;  %v2065_v21 = vld [vmem:[%s4387_s1 + $0x1] sm:$0x1]  ;;  %v25_v31 = vld [vmem:[%s4386_s0 + $0x10] sm:$0x1]  ;;  %v26_v37 = vld [vmem:[%s4386_s0 + $0x11] sm:$0x1] }
   0xc   :  { %v415_v44 = vmax.f32 %v413_v27, %v414_v36  ;;  %v428_v50 = vmax.f32 %v426_v32, %v427_v41  ;;  %v440_v51 = vrot.slane %v439_v42, 4  ;;  %v474_v52 = vsel %vm393_vm0, %v271_v39, 4286644096  ;;  %v2071_v27 = vld [vmem:[%s4387_s1 + $0x3] sm:$0x1] }
   0xd   :  { %v403_v49 = vrot.slane %v402_v40, 2  ;;  %v452_v55 = vmax.f32 %v450_v43, %v451_v45  ;;  %v465_v56 = vmax.f32 %v463_v46, %v464_v47  ;;  %v476_v57 = vunpack.i.l.bf16 %v474_v52  ;;  %v33_v32 = vld [vmem:[%s4386_s0 + $0x18] sm:$0x1]  ;;  %v34_v38 = vld [vmem:[%s4386_s0 + $0x19] sm:$0x1] }
   0xe   :  { %v416_v54 = vrot.slane %v415_v44, 2  ;;  %v429_v59 = vrot.slane %v428_v50, 2  ;;  %v441_v60 = vmax.f32 %v439_v42, %v440_v51  ;;  %v477_v61 = vunpack.i.h.bf16 %v474_v52  ;;  %v27_v43 = vld [vmem:[%s4386_s0 + $0x12] sm:$0x1] }
   0xf   :  { %v404_v58 = vmax.f32 %v402_v40, %v403_v49  ;;  %v453_v63 = vrot.slane %v452_v55, 4  ;;  %v466_v0 = vrot.slane %v465_v56, 4  ;;  %v272_v1 = vmax.bf16 %v24_v53, %v16_v48 }
  0x10   :  { %v417_v62 = vmax.f32 %v415_v44, %v416_v54  ;;  %v430_v3 = vmax.f32 %v428_v50, %v429_v59  ;;  %v442_v4 = vrot.slane %v441_v60, 2  ;;  %v478_v5 = vmax.f32 %v476_v57, %v477_v61  ;;  %v35_v44 = vld [vmem:[%s4386_s0 + $0x1a] sm:$0x1]  ;;  %v2074_v50 = vld [vmem:[%s4387_s1 + $0x4] sm:$0x1] }
  0x11   :  { %v405_v2 = vrot.slane %v404_v58, 1  ;;  %v454_v7 = vmax.f32 %v452_v55, %v453_v63  ;;  %v467_v8 = vmax.f32 %v465_v56, %v466_v0  ;;  %v487_v9 = vsel %vm393_vm0, %v272_v1, 4286644096  ;;  %v2077_v55 = vld [vmem:[%s4387_s1 + $0x5] sm:$0x1] }
  0x12   :  { %v418_v6 = vrot.slane %v417_v62, 1  ;;  %v431_v11 = vrot.slane %v430_v3, 1  ;;  %v443_v12 = vmax.f32 %v441_v60, %v442_v4  ;;  %v479_v13 = vrot.slane %v478_v5, 4  ;;  %v2080_v61 = vld [vmem:[%s4387_s1 + $0x6] sm:$0x1] }
  0x13   :  { %v406_v10 = vmax.f32 %v404_v58, %v405_v2  ;;  %v455_v17 = vrot.slane %v454_v7, 2  ;;  %v468_v18 = vrot.slane %v467_v8, 2  ;;  %v489_v19 = vunpack.i.l.bf16 %v487_v9  ;;  %v28_v0 = vld [vmem:[%s4386_s0 + $0x13] sm:$0x1]  ;;  %v36_v1 = vld [vmem:[%s4386_s0 + $0x1b] sm:$0x1] }
  0x14   :  { %v419_v16 = vmax.f32 %v417_v62, %v418_v6  ;;  %v432_v22 = vmax.f32 %v430_v3, %v431_v11  ;;  %v444_v24 = vrot.slane %v443_v12, 1  ;;  %v480_v25 = vmax.f32 %v478_v5, %v479_v13  ;;  %v29_v2 = vld [vmem:[%s4386_s0 + $0x14] sm:$0x1]  ;;  %v38_v13 = vld [vmem:[%s4386_s0 + $0x1d] sm:$0x1] }
  0x15   :  { %v407_v20 = vpack.i.bf16 %v406_v10, %v406_v10  ;;  %v456_v28 = vmax.f32 %v454_v7, %v455_v17  ;;  %v469_v29 = vmax.f32 %v467_v8, %v468_v18  ;;  %v490_v30 = vunpack.i.h.bf16 %v487_v9  ;;  %v37_v7 = vld [vmem:[%s4386_s0 + $0x1c] sm:$0x1] }
  0x16   :  { %v420_v26 = vpack.i.bf16 %v419_v16, %v419_v16  ;;  %v433_v34 = vpack.i.bf16 %v432_v22, %v432_v22  ;;  %v445_v35 = vmax.f32 %v443_v12, %v444_v24  ;;  %v481_v36 = vrot.slane %v480_v25, 2  ;;  %v30_v12 = vld [vmem:[%s4386_s0 + $0x15] sm:$0x1] }
  0x17   :  { %v2063_v33 = vsel %vm2518_vm2, %v407_v20, %v2062_v15  ;;  %v457_v40 = vrot.slane %v456_v28, 1  ;;  %v470_v41 = vrot.slane %v469_v29, 1  ;;  %v491_v42 = vmax.f32 %v489_v19, %v490_v30 }
  0x18   :  { %2064 = vst [vmem:[%s4387_s1] sm:$0x1] %v2063_v33  ;;  %v2066_v39 = vsel %vm2518_vm2, %v420_v26, %v2065_v21  ;;  %v2069_v45 = vsel %vm2518_vm2, %v433_v34, %v2068_v23  ;;  %v446_v46 = vpack.i.bf16 %v445_v35, %v445_v35  ;;  %v482_v47 = vmax.f32 %v480_v25, %v481_v36  ;;  %v2083_v36 = vld [vmem:[%s4387_s1 + $0x7] sm:$0x1] }
  0x19   :  { %2067 = vst [vmem:[%s4387_s1 + $0x1] sm:$0x1] %v2066_v39  ;;  %v273_v48 = vmax.bf16 %v33_v32, %v25_v31  ;;  %2070 = vst [vmem:[%s4387_s1 + $0x2] sm:$0x1] %v2069_v45  ;;  %v458_v49 = vmax.f32 %v456_v28, %v457_v40  ;;  %v471_v51 = vmax.f32 %v469_v29, %v470_v41  ;;  %v492_v52 = vrot.slane %v491_v42, 4 }
  0x1a   :  { %v274_v53 = vmax.bf16 %v34_v38, %v26_v37  ;;  %v2072_v54 = vsel %vm2518_vm2, %v446_v46, %v2071_v27  ;;  %v483_v56 = vrot.slane %v482_v47, 1  ;;  %v275_v58 = vmax.bf16 %v35_v44, %v27_v43  ;;  %v31_v40 = vld [vmem:[%s4386_s0 + $0x16] sm:$0x1]  ;;  %v39_v45 = vld [vmem:[%s4386_s0 + $0x1e] sm:$0x1] }
  0x1b   :  { %v500_v57 = vsel %vm393_vm0, %v273_v48, 4286644096  ;;  %2073 = vst [vmem:[%s4387_s1 + $0x3] sm:$0x1] %v2072_v54  ;;  %v459_v59 = vpack.i.bf16 %v458_v49, %v458_v49  ;;  %v472_v60 = vpack.i.bf16 %v471_v51, %v471_v51  ;;  %v493_v62 = vmax.f32 %v491_v42, %v492_v52  ;;  %v32_v54 = vld [vmem:[%s4386_s0 + $0x17] sm:$0x1] }
  0x1c   :  { %v502_v63 = vunpack.i.l.bf16 %v500_v57  ;;  %v484_v3 = vmax.f32 %v482_v47, %v483_v56  ;;  %v503_v4 = vunpack.i.h.bf16 %v500_v57  ;;  %v513_v5 = vsel %vm393_vm0, %v274_v53, 4286644096 }
  0x1d   :  { %v526_v6 = vsel %vm393_vm0, %v275_v58, 4286644096  ;;  %v2075_v8 = vsel %vm2518_vm2, %v459_v59, %v2074_v50  ;;  %v2078_v9 = vsel %vm2518_vm2, %v472_v60, %v2077_v55  ;;  %v494_v10 = vrot.slane %v493_v62, 2  ;;  %v40_v55 = vld [vmem:[%s4386_s0 + $0x1f] sm:$0x1] }
  0x1e   :  { %v515_v11 = vunpack.i.l.bf16 %v513_v5  ;;  %2076 = vst [vmem:[%s4387_s1 + $0x4] sm:$0x1] %v2075_v8  ;;  %2079 = vst [vmem:[%s4387_s1 + $0x5] sm:$0x1] %v2078_v9  ;;  %v485_v15 = vpack.i.bf16 %v484_v3, %v484_v3  ;;  %v504_v16 = vmax.f32 %v502_v63, %v503_v4  ;;  %v516_v17 = vunpack.i.h.bf16 %v513_v5  ;;  %v2086_v8 = vld [vmem:[%s4387_s1 + $0x8] sm:$0x1] }
  0x1f   :  { %v528_v18 = vunpack.i.l.bf16 %v526_v6  ;;  %v495_v19 = vmax.f32 %v493_v62, %v494_v10  ;;  %v529_v20 = vunpack.i.h.bf16 %v526_v6  ;;  %v276_v21 = vmax.bf16 %v36_v1, %v28_v0 }
  0x20   :  { %v277_v22 = vmax.bf16 %v37_v7, %v29_v2  ;;  %v2081_v23 = vsel %vm2518_vm2, %v485_v15, %v2080_v61  ;;  %v505_v24 = vrot.slane %v504_v16, 4  ;;  %v517_v25 = vmax.f32 %v515_v11, %v516_v17 }
  0x21   :  { %v278_v26 = vmax.bf16 %v38_v13, %v30_v12  ;;  %2082 = vst [vmem:[%s4387_s1 + $0x6] sm:$0x1] %v2081_v23  ;;  %v496_v27 = vrot.slane %v495_v19, 1  ;;  %v530_v28 = vmax.f32 %v528_v18, %v529_v20  ;;  %v539_v29 = vsel %vm393_vm0, %v276_v21, 4286644096 }
  0x22   :  { %v552_v30 = vsel %vm393_vm0, %v277_v22, 4286644096  ;;  %v506_v31 = vmax.f32 %v504_v16, %v505_v24  ;;  %v518_v32 = vrot.slane %v517_v25, 4  ;;  %v541_v33 = vunpack.i.l.bf16 %v539_v29  ;;  %v2089_v18 = vld [vmem:[%s4387_s1 + $0x9] sm:$0x1] }
  0x23   :  { %v542_v34 = vunpack.i.h.bf16 %v539_v29  ;;  %v497_v35 = vmax.f32 %v495_v19, %v496_v27  ;;  %v531_v37 = vrot.slane %v530_v28, 4  ;;  %v554_v38 = vunpack.i.l.bf16 %v552_v30  ;;  %v2092_v20 = vld [vmem:[%s4387_s1 + $0xa] sm:$0x1]  ;;  %v49_v29 = vld [vmem:[%s4386_s0 + $0x28] sm:$0x1] }
  0x24   :  { %v555_v39 = vunpack.i.h.bf16 %v552_v30  ;;  %v507_v41 = vrot.slane %v506_v31, 2  ;;  %v519_v42 = vmax.f32 %v517_v25, %v518_v32  ;;  %v565_v44 = vsel %vm393_vm0, %v278_v26, 4286644096 }
  0x25   :  { %v543_v43 = vmax.f32 %v541_v33, %v542_v34  ;;  %v498_v46 = vpack.i.bf16 %v497_v35, %v497_v35  ;;  %v532_v47 = vmax.f32 %v530_v28, %v531_v37  ;;  %v567_v49 = vunpack.i.l.bf16 %v565_v44  ;;  %v41_v28 = vld [vmem:[%s4386_s0 + $0x20] sm:$0x1]  ;;  %v42_v34 = vld [vmem:[%s4386_s0 + $0x21] sm:$0x1]  ;;  %v50_v35 = vld [vmem:[%s4386_s0 + $0x29] sm:$0x1] }
  0x26   :  { %v556_v48 = vmax.f32 %v554_v38, %v555_v39  ;;  %v508_v50 = vmax.f32 %v506_v31, %v507_v41  ;;  %v520_v51 = vrot.slane %v519_v42, 2  ;;  %v568_v53 = vunpack.i.h.bf16 %v565_v44  ;;  %v51_v41 = vld [vmem:[%s4386_s0 + $0x2a] sm:$0x1] }
  0x27   :  { %v544_v52 = vrot.slane %v543_v43, 4  ;;  %v2084_v56 = vsel %vm2518_vm2, %v498_v46, %v2083_v36  ;;  %v533_v57 = vrot.slane %v532_v47, 2  ;;  %v279_v59 = vmax.bf16 %v39_v45, %v31_v40  ;;  %v43_v40 = vld [vmem:[%s4386_s0 + $0x22] sm:$0x1] }
  0x28   :  { %v557_v58 = vrot.slane %v556_v48, 4  ;;  %2085 = vst [vmem:[%s4387_s1 + $0x7] sm:$0x1] %v2084_v56  ;;  %v509_v60 = vrot.slane %v508_v50, 1  ;;  %v521_v61 = vmax.f32 %v519_v42, %v520_v51  ;;  %v569_v63 = vmax.f32 %v567_v49, %v568_v53 }
  0x29   :  { %v545_v62 = vmax.f32 %v543_v43, %v544_v52  ;;  %v534_v0 = vmax.f32 %v532_v47, %v533_v57  ;;  %v578_v2 = vsel %vm393_vm0, %v279_v59, 4286644096  ;;  %v280_v3 = vmax.bf16 %v40_v55, %v32_v54  ;;  %v2095_v43 = vld [vmem:[%s4387_s1 + $0xb] sm:$0x1] }
  0x2a   :  { %v558_v1 = vmax.f32 %v556_v48, %v557_v58  ;;  %v510_v4 = vmax.f32 %v508_v50, %v509_v60  ;;  %v522_v5 = vrot.slane %v521_v61, 1  ;;  %v570_v7 = vrot.slane %v569_v63, 4  ;;  %v2098_v48 = vld [vmem:[%s4387_s1 + $0xc] sm:$0x1]  ;;  %v44_v60 = vld [vmem:[%s4386_s0 + $0x23] sm:$0x1] }
  0x2b   :  { %v546_v6 = vrot.slane %v545_v62, 2  ;;  %v535_v9 = vrot.slane %v534_v0, 1  ;;  %v580_v11 = vunpack.i.l.bf16 %v578_v2  ;;  %v581_v12 = vunpack.i.h.bf16 %v578_v2 }
  0x2c   :  { %v559_v10 = vrot.slane %v558_v1, 2  ;;  %v511_v13 = vpack.i.bf16 %v510_v4, %v510_v4  ;;  %v523_v15 = vmax.f32 %v521_v61, %v522_v5  ;;  %v571_v17 = vmax.f32 %v569_v63, %v570_v7  ;;  %v52_v61 = vld [vmem:[%s4386_s0 + $0x2b] sm:$0x1]  ;;  %v2101_v63 = vld [vmem:[%s4387_s1 + $0xd] sm:$0x1] }
  0x2d   :  { %v547_v16 = vmax.f32 %v545_v62, %v546_v6  ;;  %v536_v19 = vmax.f32 %v534_v0, %v535_v9  ;;  %v582_v22 = vmax.f32 %v580_v11, %v581_v12  ;;  %v591_v23 = vsel %vm393_vm0, %v280_v3, 4286644096  ;;  %v45_v11 = vld [vmem:[%s4386_s0 + $0x24] sm:$0x1] }
  0x2e   :  { %v560_v21 = vmax.f32 %v558_v1, %v559_v10  ;;  %v2087_v24 = vsel %vm2518_vm2, %v511_v13, %v2086_v8  ;;  %v524_v25 = vpack.i.bf16 %v523_v15, %v523_v15  ;;  %v572_v27 = vrot.slane %v571_v17, 2 }
  0x2f   :  { %v548_v26 = vrot.slane %v547_v16, 1  ;;  %2088 = vst [vmem:[%s4387_s1 + $0x8] sm:$0x1] %v2087_v24  ;;  %v537_v30 = vpack.i.bf16 %v536_v19, %v536_v19  ;;  %v583_v32 = vrot.slane %v582_v22, 4  ;;  %v593_v33 = vunpack.i.l.bf16 %v591_v23  ;;  %v2104_v24 = vld [vmem:[%s4387_s1 + $0xe] sm:$0x1] }
  0x30   :  { %v561_v31 = vrot.slane %v560_v21, 1  ;;  %v2090_v36 = vsel %vm2518_vm2, %v524_v25, %v2089_v18  ;;  %v573_v38 = vmax.f32 %v571_v17, %v572_v27  ;;  %v594_v39 = vunpack.i.h.bf16 %v591_v23  ;;  %v53_v17 = vld [vmem:[%s4386_s0 + $0x2c] sm:$0x1]  ;;  %v46_v18 = vld [vmem:[%s4386_s0 + $0x25] sm:$0x1] }
  0x31   :  { %v549_v37 = vmax.f32 %v547_v16, %v548_v26  ;;  %2091 = vst [vmem:[%s4387_s1 + $0x9] sm:$0x1] %v2090_v36  ;;  %v2093_v42 = vsel %vm2518_vm2, %v537_v30, %v2092_v20  ;;  %v584_v45 = vmax.f32 %v582_v22, %v583_v32  ;;  %v281_v46 = vmax.bf16 %v49_v29, %v41_v28  ;;  %v54_v23 = vld [vmem:[%s4386_s0 + $0x2d] sm:$0x1] }
  0x32   :  { %v562_v44 = vmax.f32 %v560_v21, %v561_v31  ;;  %2094 = vst [vmem:[%s4387_s1 + $0xa] sm:$0x1] %v2093_v42  ;;  %v574_v49 = vrot.slane %v573_v38, 1  ;;  %v595_v50 = vmax.f32 %v593_v33, %v594_v39  ;;  %v282_v51 = vmax.bf16 %v50_v35, %v42_v34  ;;  %v2107_v42 = vld [vmem:[%s4387_s1 + $0xf] sm:$0x1] }
  0x33   :  { %v550_v47 = vpack.i.bf16 %v549_v37, %v549_v37  ;;  %v585_v53 = vrot.slane %v584_v45, 2  ;;  %v604_v54 = vsel %vm393_vm0, %v281_v46, 4286644096  ;;  %v283_v55 = vmax.bf16 %v51_v41, %v43_v40 }
  0x34   :  { %v563_v52 = vpack.i.bf16 %v562_v44, %v562_v44  ;;  %v575_v57 = vmax.f32 %v573_v38, %v574_v49  ;;  %v596_v58 = vrot.slane %v595_v50, 4  ;;  %v606_v59 = vunpack.i.l.bf16 %v604_v54 }
  0x35   :  { %v2096_v56 = vsel %vm2518_vm2, %v550_v47, %v2095_v43  ;;  %v586_v0 = vmax.f32 %v584_v45, %v585_v53  ;;  %v607_v1 = vunpack.i.h.bf16 %v604_v54  ;;  %v617_v2 = vsel %vm393_vm0, %v282_v51, 4286644096  ;;  %v55_v51 = vld [vmem:[%s4386_s0 + $0x2e] sm:$0x1] }
  0x36   :  { %2097 = vst [vmem:[%s4387_s1 + $0xb] sm:$0x1] %v2096_v56  ;;  %v2099_v62 = vsel %vm2518_vm2, %v563_v52, %v2098_v48  ;;  %v576_v3 = vpack.i.bf16 %v575_v57, %v575_v57  ;;  %v597_v4 = vmax.f32 %v595_v50, %v596_v58  ;;  %v619_v5 = vunpack.i.l.bf16 %v617_v2  ;;  %v47_v50 = vld [vmem:[%s4386_s0 + $0x26] sm:$0x1] }
  0x37   :  { %2100 = vst [vmem:[%s4387_s1 + $0xc] sm:$0x1] %v2099_v62  ;;  %v620_v6 = vunpack.i.h.bf16 %v617_v2  ;;  %v587_v7 = vrot.slane %v586_v0, 1  ;;  %v608_v8 = vmax.f32 %v606_v59, %v607_v1  ;;  %v630_v9 = vsel %vm393_vm0, %v283_v55, 4286644096 }
  0x38   :  { %v284_v10 = vmax.bf16 %v52_v61, %v44_v60  ;;  %v2102_v12 = vsel %vm2518_vm2, %v576_v3, %v2101_v63  ;;  %v598_v13 = vrot.slane %v597_v4, 2  ;;  %v632_v16 = vunpack.i.l.bf16 %v630_v9  ;;  %v48_v60 = vld [vmem:[%s4386_s0 + $0x27] sm:$0x1]  ;;  %v56_v61 = vld [vmem:[%s4386_s0 + $0x2f] sm:$0x1] }
  0x39   :  { %v621_v15 = vmax.f32 %v619_v5, %v620_v6  ;;  %2103 = vst [vmem:[%s4387_s1 + $0xd] sm:$0x1] %v2102_v12  ;;  %v588_v19 = vmax.f32 %v586_v0, %v587_v7  ;;  %v609_v20 = vrot.slane %v608_v8, 4  ;;  %v633_v21 = vunpack.i.h.bf16 %v630_v9  ;;  %v2110_v6 = vld [vmem:[%s4387_s1 + $0x10] sm:$0x1] }
  0x3a   :  { %v643_v22 = vsel %vm393_vm0, %v284_v10, 4286644096  ;;  %v599_v25 = vmax.f32 %v597_v4, %v598_v13  ;;  %v285_v32 = vmax.bf16 %v53_v17, %v45_v11  ;;  %v286_v36 = vmax.bf16 %v54_v23, %v46_v18  ;;  %v2113_v12 = vld [vmem:[%s4387_s1 + $0x11] sm:$0x1]  ;;  %v2116_v18 = vld [vmem:[%s4387_s1 + $0x12] sm:$0x1] }
  0x3b   :  { %v622_v26 = vrot.slane %v621_v15, 4  ;;  %v645_v27 = vunpack.i.l.bf16 %v643_v22  ;;  %v646_v28 = vunpack.i.h.bf16 %v643_v22  ;;  %v589_v29 = vpack.i.bf16 %v588_v19, %v588_v19 }
  0x3c   :  { %v610_v30 = vmax.f32 %v608_v8, %v609_v20  ;;  %v634_v31 = vmax.f32 %v632_v16, %v633_v21  ;;  %v600_v33 = vrot.slane %v599_v25, 1  ;;  %v656_v40 = vsel %vm393_vm0, %v285_v32, 4286644096  ;;  %v58_v32 = vld [vmem:[%s4386_s0 + $0x31] sm:$0x1] }
  0x3d   :  { %v623_v34 = vmax.f32 %v621_v15, %v622_v26  ;;  %v647_v35 = vmax.f32 %v645_v27, %v646_v28  ;;  %v2105_v37 = vsel %vm2518_vm2, %v589_v29, %v2104_v24  ;;  %v658_v45 = vunpack.i.l.bf16 %v656_v40  ;;  %v57_v26 = vld [vmem:[%s4386_s0 + $0x30] sm:$0x1]  ;;  %v65_v27 = vld [vmem:[%s4386_s0 + $0x38] sm:$0x1] }
  0x3e   :  { %v611_v38 = vrot.slane %v610_v30, 2  ;;  %v635_v39 = vrot.slane %v634_v31, 4  ;;  %2106 = vst [vmem:[%s4387_s1 + $0xe] sm:$0x1] %v2105_v37  ;;  %v601_v41 = vmax.f32 %v599_v25, %v600_v33  ;;  %v659_v48 = vunpack.i.h.bf16 %v656_v40  ;;  %v66_v33 = vld [vmem:[%s4386_s0 + $0x39] sm:$0x1] }
  0x3f   :  { %v624_v43 = vrot.slane %v623_v34, 2  ;;  %v648_v44 = vrot.slane %v647_v35, 4  ;;  %v669_v49 = vsel %vm393_vm0, %v286_v36, 4286644096  ;;  %v287_v1 = vmax.bf16 %v55_v51, %v47_v50 }
  0x40   :  { %v612_v46 = vmax.f32 %v610_v30, %v611_v38  ;;  %v636_v47 = vmax.f32 %v634_v31, %v635_v39  ;;  %v602_v52 = vpack.i.bf16 %v601_v41, %v601_v41  ;;  %v671_v55 = vunpack.i.l.bf16 %v669_v49 }
  0x41   :  { %v625_v53 = vmax.f32 %v623_v34, %v624_v43  ;;  %v649_v54 = vmax.f32 %v647_v35, %v648_v44  ;;  %v660_v58 = vmax.f32 %v658_v45, %v659_v48  ;;  %v672_v59 = vunpack.i.h.bf16 %v669_v49  ;;  %v2119_v35 = vld [vmem:[%s4387_s1 + $0x13] sm:$0x1]  ;;  %v67_v48 = vld [vmem:[%s4386_s0 + $0x3a] sm:$0x1] }
  0x42   :  { %v613_v56 = vrot.slane %v612_v46, 1  ;;  %v637_v57 = vrot.slane %v636_v47, 2  ;;  %v2108_v62 = vsel %vm2518_vm2, %v602_v52, %v2107_v42  ;;  %v682_v9 = vsel %vm393_vm0, %v287_v1, 4286644096 }
  0x43   :  { %v626_v63 = vrot.slane %v625_v53, 1  ;;  %v650_v0 = vrot.slane %v649_v54, 2  ;;  %2109 = vst [vmem:[%s4387_s1 + $0xf] sm:$0x1] %v2108_v62  ;;  %v661_v4 = vrot.slane %v660_v58, 4  ;;  %v673_v5 = vmax.f32 %v671_v55, %v672_v59 }
  0x44   :  { %v614_v2 = vmax.f32 %v612_v46, %v613_v56  ;;  %v638_v3 = vmax.f32 %v636_v47, %v637_v57  ;;  %v288_v10 = vmax.bf16 %v56_v61, %v48_v60  ;;  %v684_v20 = vunpack.i.l.bf16 %v682_v9  ;;  %v59_v47 = vld [vmem:[%s4386_s0 + $0x32] sm:$0x1]  ;;  %v2122_v57 = vld [vmem:[%s4387_s1 + $0x14] sm:$0x1] }
  0x45   :  { %v627_v7 = vmax.f32 %v625_v53, %v626_v63  ;;  %v651_v8 = vmax.f32 %v649_v54, %v650_v0  ;;  %v662_v15 = vmax.f32 %v660_v58, %v661_v4  ;;  %v674_v16 = vrot.slane %v673_v5, 4  ;;  %v2125_v0 = vld [vmem:[%s4387_s1 + $0x15] sm:$0x1]  ;;  %v68_v4 = vld [vmem:[%s4386_s0 + $0x3b] sm:$0x1] }
  0x46   :  { %v615_v11 = vpack.i.bf16 %v614_v2, %v614_v2  ;;  %v639_v13 = vrot.slane %v638_v3, 1  ;;  %v685_v21 = vunpack.i.h.bf16 %v682_v9  ;;  %v695_v31 = vsel %vm393_vm0, %v288_v10, 4286644096  ;;  %v61_v9 = vld [vmem:[%s4386_s0 + $0x34] sm:$0x1] }
  0x47   :  { %v628_v17 = vpack.i.bf16 %v627_v7, %v627_v7  ;;  %v652_v19 = vrot.slane %v651_v8, 1  ;;  %v663_v24 = vrot.slane %v662_v15, 2  ;;  %v675_v25 = vmax.f32 %v673_v5, %v674_v16  ;;  %v69_v10 = vld [vmem:[%s4386_s0 + $0x3c] sm:$0x1] }
  0x48   :  { %v2111_v22 = vsel %vm2518_vm2, %v615_v11, %v2110_v6  ;;  %v640_v23 = vmax.f32 %v638_v3, %v639_v13  ;;  %v686_v30 = vmax.f32 %v684_v20, %v685_v21  ;;  %v697_v38 = vunpack.i.l.bf16 %v695_v31  ;;  %v60_v3 = vld [vmem:[%s4386_s0 + $0x33] sm:$0x1]  ;;  %v62_v20 = vld [vmem:[%s4386_s0 + $0x35] sm:$0x1]  ;;  %v70_v21 = vld [vmem:[%s4386_s0 + $0x3d] sm:$0x1] }
  0x49   :  { %2112 = vst [vmem:[%s4387_s1 + $0x10] sm:$0x1] %v2111_v22  ;;  %v2114_v28 = vsel %vm2518_vm2, %v628_v17, %v2113_v12  ;;  %v653_v29 = vmax.f32 %v651_v8, %v652_v19  ;;  %v664_v36 = vmax.f32 %v662_v15, %v663_v24  ;;  %v676_v37 = vrot.slane %v675_v25, 2 }
  0x4a   :  { %2115 = vst [vmem:[%s4387_s1 + $0x11] sm:$0x1] %v2114_v28  ;;  %v641_v34 = vpack.i.bf16 %v640_v23, %v640_v23  ;;  %v687_v40 = vrot.slane %v686_v30, 4  ;;  %v698_v41 = vunpack.i.h.bf16 %v695_v31  ;;  %v289_v42 = vmax.bf16 %v65_v27, %v57_v26  ;;  %v2128_v27 = vld [vmem:[%s4387_s1 + $0x16] sm:$0x1] }
  0x4b   :  { %v654_v39 = vpack.i.bf16 %v653_v29, %v653_v29  ;;  %v665_v44 = vrot.slane %v664_v36, 1  ;;  %v677_v45 = vmax.f32 %v675_v25, %v676_v37  ;;  %v290_v46 = vmax.bf16 %v66_v33, %v58_v32 }
  0x4c   :  { %v2117_v43 = vsel %vm2518_vm2, %v641_v34, %v2116_v18  ;;  %v688_v50 = vmax.f32 %v686_v30, %v687_v40  ;;  %v699_v51 = vmax.f32 %v697_v38, %v698_v41  ;;  %v708_v52 = vsel %vm393_vm0, %v289_v42, 4286644096 }
  0x4d   :  { %2118 = vst [vmem:[%s4387_s1 + $0x12] sm:$0x1] %v2117_v43  ;;  %v2120_v49 = vsel %vm2518_vm2, %v654_v39, %v2119_v35  ;;  %v666_v53 = vmax.f32 %v664_v36, %v665_v44  ;;  %v678_v54 = vrot.slane %v677_v45, 1  ;;  %v710_v55 = vunpack.i.l.bf16 %v708_v52 }
  0x4e   :  { %2121 = vst [vmem:[%s4387_s1 + $0x13] sm:$0x1] %v2120_v49  ;;  %v711_v56 = vunpack.i.h.bf16 %v708_v52  ;;  %v689_v58 = vrot.slane %v688_v50, 2  ;;  %v700_v59 = vrot.slane %v699_v51, 4  ;;  %v721_v60 = vsel %vm393_vm0, %v290_v46, 4286644096 }
  0x4f   :  { %v291_v61 = vmax.bf16 %v67_v48, %v59_v47  ;;  %v667_v62 = vpack.i.bf16 %v666_v53, %v666_v53  ;;  %v679_v63 = vmax.f32 %v677_v45, %v678_v54  ;;  %v723_v2 = vunpack.i.l.bf16 %v721_v60  ;;  %v2131_v45 = vld [vmem:[%s4387_s1 + $0x17] sm:$0x1]  ;;  %v63_v48 = vld [vmem:[%s4386_s0 + $0x36] sm:$0x1]  ;;  %v71_v53 = vld [vmem:[%s4386_s0 + $0x3e] sm:$0x1] }
  0x50   :  { %v712_v1 = vmax.f32 %v710_v55, %v711_v56  ;;  %v690_v5 = vmax.f32 %v688_v50, %v689_v58  ;;  %v701_v6 = vmax.f32 %v699_v51, %v700_v59  ;;  %v724_v7 = vunpack.i.h.bf16 %v721_v60 }
  0x51   :  { %v734_v8 = vsel %vm393_vm0, %v291_v61, 4286644096  ;;  %v2123_v11 = vsel %vm2518_vm2, %v667_v62, %v2122_v57  ;;  %v680_v12 = vpack.i.bf16 %v679_v63, %v679_v63  ;;  %v292_v24 = vmax.bf16 %v68_v4, %v60_v3  ;;  %v64_v62 = vld [vmem:[%s4386_s0 + $0x37] sm:$0x1]  ;;  %v72_v63 = vld [vmem:[%s4386_s0 + $0x3f] sm:$0x1] }
  0x52   :  { %v713_v13 = vrot.slane %v712_v1, 4  ;;  %v736_v15 = vunpack.i.l.bf16 %v734_v8  ;;  %2124 = vst [vmem:[%s4387_s1 + $0x14] sm:$0x1] %v2123_v11  ;;  %v691_v16 = vrot.slane %v690_v5, 1  ;;  %v702_v17 = vrot.slane %v701_v6, 2 }
  0x53   :  { %v725_v18 = vmax.f32 %v723_v2, %v724_v7  ;;  %v737_v19 = vunpack.i.h.bf16 %v734_v8  ;;  %v2126_v22 = vsel %vm2518_vm2, %v680_v12, %v2125_v0  ;;  %v293_v25 = vmax.bf16 %v69_v10, %v61_v9 }
  0x54   :  { %v714_v23 = vmax.f32 %v712_v1, %v713_v13  ;;  %2127 = vst [vmem:[%s4387_s1 + $0x15] sm:$0x1] %v2126_v22  ;;  %v692_v26 = vmax.f32 %v690_v5, %v691_v16  ;;  %v703_v28 = vmax.f32 %v701_v6, %v702_v17  ;;  %v747_v32 = vsel %vm393_vm0, %v292_v24, 4286644096  ;;  %v2134_v1 = vld [vmem:[%s4387_s1 + $0x18] sm:$0x1] }
  0x55   :  { %v726_v29 = vrot.slane %v725_v18, 4  ;;  %v738_v30 = vmax.f32 %v736_v15, %v737_v19  ;;  %v760_v33 = vsel %vm393_vm0, %v293_v25, 4286644096  ;;  %v294_v34 = vmax.bf16 %v70_v21, %v62_v20  ;;  %v2137_v15 = vld [vmem:[%s4387_s1 + $0x19] sm:$0x1] }
  0x56   :  { %v715_v31 = vrot.slane %v714_v23, 2  ;;  %v693_v35 = vpack.i.bf16 %v692_v26, %v692_v26  ;;  %v704_v36 = vrot.slane %v703_v28, 1  ;;  %v749_v40 = vunpack.i.l.bf16 %v747_v32  ;;  %v2140_v16 = vld [vmem:[%s4387_s1 + $0x1a] sm:$0x1]  ;;  %v73_v24 = vld [vmem:[%s4386_s0 + $0x40] sm:$0x1] }
  0x57   :  { %v727_v37 = vmax.f32 %v725_v18, %v726_v29  ;;  %v739_v38 = vrot.slane %v738_v30, 4  ;;  %v750_v41 = vunpack.i.h.bf16 %v747_v32  ;;  %v762_v42 = vunpack.i.l.bf16 %v760_v33  ;;  %v81_v25 = vld [vmem:[%s4386_s0 + $0x48] sm:$0x1]  ;;  %v74_v26 = vld [vmem:[%s4386_s0 + $0x41] sm:$0x1] }
  0x58   :  { %v716_v39 = vmax.f32 %v714_v23, %v715_v31  ;;  %v2129_v43 = vsel %vm2518_vm2, %v693_v35, %v2128_v27  ;;  %v705_v44 = vmax.f32 %v703_v28, %v704_v36  ;;  %v763_v51 = vunpack.i.h.bf16 %v760_v33  ;;  %v82_v31 = vld [vmem:[%s4386_s0 + $0x49] sm:$0x1] }
  0x59   :  { %v728_v46 = vrot.slane %v727_v37, 2  ;;  %v740_v47 = vmax.f32 %v738_v30, %v739_v38  ;;  %2130 = vst [vmem:[%s4387_s1 + $0x16] sm:$0x1] %v2129_v43  ;;  %v751_v50 = vmax.f32 %v749_v40, %v750_v41  ;;  %v773_v52 = vsel %vm393_vm0, %v294_v34, 4286644096 }
  0x5a   :  { %v717_v49 = vrot.slane %v716_v39, 1  ;;  %v706_v54 = vpack.i.bf16 %v705_v44, %v705_v44  ;;  %v775_v57 = vunpack.i.l.bf16 %v773_v52  ;;  %v764_v60 = vmax.f32 %v762_v42, %v763_v51  ;;  %v75_v40 = vld [vmem:[%s4386_s0 + $0x42] sm:$0x1]  ;;  %v83_v41 = vld [vmem:[%s4386_s0 + $0x4a] sm:$0x1] }
  0x5b   :  { %v729_v55 = vmax.f32 %v727_v37, %v728_v46  ;;  %v741_v56 = vrot.slane %v740_v47, 2  ;;  %v752_v59 = vrot.slane %v751_v50, 4  ;;  %v776_v61 = vunpack.i.h.bf16 %v773_v52 }
  0x5c   :  { %v718_v58 = vmax.f32 %v716_v39, %v717_v49  ;;  %v2132_v0 = vsel %vm2518_vm2, %v706_v54, %v2131_v45  ;;  %v295_v4 = vmax.bf16 %v71_v53, %v63_v48  ;;  %v765_v7 = vrot.slane %v764_v60, 4 }
  0x5d   :  { %v730_v2 = vrot.slane %v729_v55, 1  ;;  %v742_v3 = vmax.f32 %v740_v47, %v741_v56  ;;  %2133 = vst [vmem:[%s4387_s1 + $0x17] sm:$0x1] %v2132_v0  ;;  %v753_v6 = vmax.f32 %v751_v50, %v752_v59  ;;  %v777_v8 = vmax.f32 %v775_v57, %v776_v61  ;;  %v2143_v50 = vld [vmem:[%s4387_s1 + $0x1b] sm:$0x1] }
  0x5e   :  { %v719_v5 = vpack.i.bf16 %v718_v58, %v718_v58  ;;  %v786_v11 = vsel %vm393_vm0, %v295_v4, 4286644096  ;;  %v296_v12 = vmax.bf16 %v72_v63, %v64_v62  ;;  %v766_v18 = vmax.f32 %v764_v60, %v765_v7  ;;  %v2146_v59 = vld [vmem:[%s4387_s1 + $0x1c] sm:$0x1] }
  0x5f   :  { %v731_v9 = vmax.f32 %v729_v55, %v730_v2  ;;  %v743_v10 = vrot.slane %v742_v3, 1  ;;  %v754_v17 = vrot.slane %v753_v6, 2  ;;  %v778_v19 = vrot.slane %v777_v8, 4 }
  0x60   :  { %v2135_v13 = vsel %vm2518_vm2, %v719_v5, %v2134_v1  ;;  %v788_v22 = vunpack.i.l.bf16 %v786_v11  ;;  %v789_v23 = vunpack.i.h.bf16 %v786_v11  ;;  %v767_v28 = vrot.slane %v766_v18, 2  ;;  %v76_v5 = vld [vmem:[%s4386_s0 + $0x43] sm:$0x1]  ;;  %v77_v11 = vld [vmem:[%s4386_s0 + $0x44] sm:$0x1] }
  0x61   :  { %2136 = vst [vmem:[%s4387_s1 + $0x18] sm:$0x1] %v2135_v13  ;;  %v732_v20 = vpack.i.bf16 %v731_v9, %v731_v9  ;;  %v744_v21 = vmax.f32 %v742_v3, %v743_v10  ;;  %v755_v27 = vmax.f32 %v753_v6, %v754_v17  ;;  %v779_v29 = vmax.f32 %v777_v8, %v778_v19  ;;  %v2149_v3 = vld [vmem:[%s4387_s1 + $0x1d] sm:$0x1]  ;;  %v84_v6 = vld [vmem:[%s4386_s0 + $0x4b] sm:$0x1] }
  0x62   :  { %v799_v30 = vsel %vm393_vm0, %v296_v12, 4286644096  ;;  %v790_v34 = vmax.f32 %v788_v22, %v789_v23  ;;  %v768_v37 = vmax.f32 %v766_v18, %v767_v28  ;;  %v297_v44 = vmax.bf16 %v81_v25, %v73_v24  ;;  %v85_v12 = vld [vmem:[%s4386_s0 + $0x4c] sm:$0x1]  ;;  %v78_v22 = vld [vmem:[%s4386_s0 + $0x45] sm:$0x1] }
  0x63   :  { %v2138_v32 = vsel %vm2518_vm2, %v732_v20, %v2137_v15  ;;  %v745_v33 = vpack.i.bf16 %v744_v21, %v744_v21  ;;  %v801_v35 = vunpack.i.l.bf16 %v799_v30  ;;  %v756_v36 = vrot.slane %v755_v27, 1  ;;  %v86_v23 = vld [vmem:[%s4386_s0 + $0x4d] sm:$0x1] }
  0x64   :  { %2139 = vst [vmem:[%s4387_s1 + $0x19] sm:$0x1] %v2138_v32  ;;  %v780_v38 = vrot.slane %v779_v29, 2  ;;  %v802_v39 = vunpack.i.h.bf16 %v799_v30  ;;  %v791_v43 = vrot.slane %v790_v34, 4  ;;  %v298_v45 = vmax.bf16 %v82_v31, %v74_v26 }
  0x65   :  { %v2141_v42 = vsel %vm2518_vm2, %v745_v33, %v2140_v16  ;;  %v757_v46 = vmax.f32 %v755_v27, %v756_v36  ;;  %v769_v47 = vrot.slane %v768_v37, 1  ;;  %v812_v52 = vsel %vm393_vm0, %v297_v44, 4286644096 }
  0x66   :  { %2142 = vst [vmem:[%s4387_s1 + $0x1a] sm:$0x1] %v2141_v42  ;;  %v781_v48 = vmax.f32 %v779_v29, %v780_v38  ;;  %v803_v49 = vmax.f32 %v801_v35, %v802_v39  ;;  %v792_v51 = vmax.f32 %v790_v34, %v791_v43  ;;  %v825_v53 = vsel %vm393_vm0, %v298_v45, 4286644096  ;;  %v2152_v29 = vld [vmem:[%s4387_s1 + $0x1e] sm:$0x1] }
  0x67   :  { %v299_v54 = vmax.bf16 %v83_v41, %v75_v40  ;;  %v758_v55 = vpack.i.bf16 %v757_v46, %v757_v46  ;;  %v770_v56 = vmax.f32 %v768_v37, %v769_v47  ;;  %v814_v61 = vunpack.i.l.bf16 %v812_v52  ;;  %v2155_v46 = vld [vmem:[%s4387_s1 + $0x1f] sm:$0x1] }
  0x68   :  { %v782_v57 = vrot.slane %v781_v48, 1  ;;  %v804_v58 = vrot.slane %v803_v49, 4  ;;  %v793_v60 = vrot.slane %v792_v51, 2  ;;  %v815_v62 = vunpack.i.h.bf16 %v812_v52 }
  0x69   :  { %v827_v63 = vunpack.i.l.bf16 %v825_v53  ;;  %v2144_v0 = vsel %vm2518_vm2, %v758_v55, %v2143_v50  ;;  %v771_v1 = vpack.i.bf16 %v770_v56, %v770_v56  ;;  %v828_v9 = vunpack.i.h.bf16 %v825_v53  ;;  %v87_v55 = vld [vmem:[%s4386_s0 + $0x4e] sm:$0x1] }
  0x6a   :  { %v783_v2 = vmax.f32 %v781_v48, %v782_v57  ;;  %v805_v4 = vmax.f32 %v803_v49, %v804_v58  ;;  %2145 = vst [vmem:[%s4387_s1 + $0x1b] sm:$0x1] %v2144_v0  ;;  %v794_v7 = vmax.f32 %v792_v51, %v793_v60  ;;  %v816_v8 = vmax.f32 %v814_v61, %v815_v62  ;;  %v80_v60 = vld [vmem:[%s4386_s0 + $0x47] sm:$0x1]  ;;  %v88_v61 = vld [vmem:[%s4386_s0 + $0x4f] sm:$0x1] }
  0x6b   :  { %v838_v10 = vsel %vm393_vm0, %v299_v54, 4286644096  ;;  %v2147_v13 = vsel %vm2518_vm2, %v771_v1, %v2146_v59  ;;  %v829_v20 = vmax.f32 %v827_v63, %v828_v9  ;;  %v300_v26 = vmax.bf16 %v84_v6, %v76_v5  ;;  %v79_v54 = vld [vmem:[%s4386_s0 + $0x46] sm:$0x1]  ;;  %v2158_v6 = vld [vmem:[%s4387_s1 + $0x20] sm:$0x1] }
  0x6c   :  { %v784_v15 = vpack.i.bf16 %v783_v2, %v783_v2  ;;  %v806_v16 = vrot.slane %v805_v4, 2  ;;  %v840_v17 = vunpack.i.l.bf16 %v838_v10  ;;  %2148 = vst [vmem:[%s4387_s1 + $0x1c] sm:$0x1] %v2147_v13  ;;  %v795_v18 = vrot.slane %v794_v7, 1 }
  0x6d   :  { %v817_v19 = vrot.slane %v816_v8, 4  ;;  %v841_v21 = vunpack.i.h.bf16 %v838_v10  ;;  %v301_v27 = vmax.bf16 %v85_v12, %v77_v11  ;;  %v830_v31 = vrot.slane %v829_v20, 4 }
  0x6e   :  { %v2150_v24 = vsel %vm2518_vm2, %v784_v15, %v2149_v3  ;;  %v807_v25 = vmax.f32 %v805_v4, %v806_v16  ;;  %v796_v28 = vmax.f32 %v794_v7, %v795_v18  ;;  %v851_v34 = vsel %vm393_vm0, %v300_v26, 4286644096  ;;  %v2161_v16 = vld [vmem:[%s4387_s1 + $0x21] sm:$0x1]  ;;  %v89_v26 = vld [vmem:[%s4386_s0 + $0x50] sm:$0x1] }
  0x6f   :  { %2151 = vst [vmem:[%s4387_s1 + $0x1d] sm:$0x1] %v2150_v24  ;;  %v818_v30 = vmax.f32 %v816_v8, %v817_v19  ;;  %v842_v32 = vmax.f32 %v840_v17, %v841_v21  ;;  %v864_v35 = vsel %vm393_vm0, %v301_v27, 4286644096  ;;  %v302_v36 = vmax.bf16 %v86_v23, %v78_v22  ;;  %v2164_v17 = vld [vmem:[%s4387_s1 + $0x22] sm:$0x1] }
  0x70   :  { %v808_v33 = vrot.slane %v807_v25, 1  ;;  %v797_v37 = vpack.i.bf16 %v796_v28, %v796_v28  ;;  %v831_v39 = vmax.f32 %v829_v20, %v830_v31  ;;  %v853_v42 = vunpack.i.l.bf16 %v851_v34  ;;  %v97_v27 = vld [vmem:[%s4386_s0 + $0x58] sm:$0x1]  ;;  %v90_v28 = vld [vmem:[%s4386_s0 + $0x51] sm:$0x1] }
  0x71   :  { %v819_v38 = vrot.slane %v818_v30, 2  ;;  %v843_v40 = vrot.slane %v842_v32, 4  ;;  %v854_v43 = vunpack.i.h.bf16 %v851_v34  ;;  %v866_v44 = vunpack.i.l.bf16 %v864_v35 }
  0x72   :  { %v809_v41 = vmax.f32 %v807_v25, %v808_v33  ;;  %v2153_v45 = vsel %vm2518_vm2, %v797_v37, %v2152_v29  ;;  %v832_v48 = vrot.slane %v831_v39, 2  ;;  %v867_v52 = vunpack.i.h.bf16 %v864_v35  ;;  %v98_v33 = vld [vmem:[%s4386_s0 + $0x59] sm:$0x1] }
  0x73   :  { %v820_v47 = vmax.f32 %v818_v30, %v819_v38  ;;  %v844_v49 = vmax.f32 %v842_v32, %v843_v40  ;;  %2154 = vst [vmem:[%s4387_s1 + $0x1e] sm:$0x1] %v2153_v45  ;;  %v855_v51 = vmax.f32 %v853_v42, %v854_v43  ;;  %v877_v53 = vsel %vm393_vm0, %v302_v36, 4286644096  ;;  %v91_v42 = vld [vmem:[%s4386_s0 + $0x52] sm:$0x1] }
  0x74   :  { %v810_v50 = vpack.i.bf16 %v809_v41, %v809_v41  ;;  %v833_v57 = vmax.f32 %v831_v39, %v832_v48  ;;  %v879_v59 = vunpack.i.l.bf16 %v877_v53  ;;  %v868_v0 = vmax.f32 %v866_v44, %v867_v52  ;;  %v99_v43 = vld [vmem:[%s4386_s0 + $0x5a] sm:$0x1]  ;;  %v2167_v52 = vld [vmem:[%s4387_s1 + $0x23] sm:$0x1] }
  0x75   :  { %v821_v56 = vrot.slane %v820_v47, 1  ;;  %v845_v58 = vrot.slane %v844_v49, 2  ;;  %v856_v63 = vrot.slane %v855_v51, 4  ;;  %v880_v1 = vunpack.i.h.bf16 %v877_v53 }
  0x76   :  { %v2156_v62 = vsel %vm2518_vm2, %v810_v50, %v2155_v46  ;;  %v834_v3 = vrot.slane %v833_v57, 1  ;;  %v303_v5 = vmax.bf16 %v87_v55, %v79_v54  ;;  %v869_v8 = vrot.slane %v868_v0, 4 }
  0x77   :  { %2157 = vst [vmem:[%s4387_s1 + $0x1f] sm:$0x1] %v2156_v62  ;;  %v822_v2 = vmax.f32 %v820_v47, %v821_v56  ;;  %v846_v4 = vmax.f32 %v844_v49, %v845_v58  ;;  %v857_v7 = vmax.f32 %v855_v51, %v856_v63  ;;  %v881_v9 = vmax.f32 %v879_v59, %v880_v1 }
  0x78   :  { %v304_v10 = vmax.bf16 %v88_v61, %v80_v60  ;;  %v835_v12 = vmax.f32 %v833_v57, %v834_v3  ;;  %v890_v15 = vsel %vm393_vm0, %v303_v5, 4286644096  ;;  %v870_v19 = vmax.f32 %v868_v0, %v869_v8  ;;  %v2170_v61 = vld [vmem:[%s4387_s1 + $0x24] sm:$0x1]  ;;  %v2173_v5 = vld [vmem:[%s4387_s1 + $0x25] sm:$0x1] }
  0x79   :  { %v823_v11 = vpack.i.bf16 %v822_v2, %v822_v2  ;;  %v847_v13 = vrot.slane %v846_v4, 1  ;;  %v858_v18 = vrot.slane %v857_v7, 2  ;;  %v882_v20 = vrot.slane %v881_v9, 4  ;;  %v100_v8 = vld [vmem:[%s4386_s0 + $0x5b] sm:$0x1] }
  0x7a   :  { %v892_v21 = vunpack.i.l.bf16 %v890_v15  ;;  %v836_v23 = vpack.i.bf16 %v835_v12, %v835_v12  ;;  %v893_v25 = vunpack.i.h.bf16 %v890_v15  ;;  %v871_v30 = vrot.slane %v870_v19, 2  ;;  %v101_v15 = vld [vmem:[%s4386_s0 + $0x5c] sm:$0x1] }
  0x7b   :  { %v2159_v22 = vsel %vm2518_vm2, %v823_v11, %v2158_v6  ;;  %v848_v24 = vmax.f32 %v846_v4, %v847_v13  ;;  %v859_v29 = vmax.f32 %v857_v7, %v858_v18  ;;  %v883_v31 = vmax.f32 %v881_v9, %v882_v20  ;;  %v92_v7 = vld [vmem:[%s4386_s0 + $0x53] sm:$0x1]  ;;  %v93_v13 = vld [vmem:[%s4386_s0 + $0x54] sm:$0x1] }
  0x7c   :  { %2160 = vst [vmem:[%s4387_s1 + $0x20] sm:$0x1] %v2159_v22  ;;  %v903_v32 = vsel %vm393_vm0, %v304_v10, 4286644096  ;;  %v2162_v34 = vsel %vm2518_vm2, %v836_v23, %v2161_v16  ;;  %v894_v36 = vmax.f32 %v892_v21, %v893_v25  ;;  %v872_v39 = vmax.f32 %v870_v19, %v871_v30  ;;  %v102_v25 = vld [vmem:[%s4386_s0 + $0x5d] sm:$0x1] }
  0x7d   :  { %v849_v35 = vpack.i.bf16 %v848_v24, %v848_v24  ;;  %v905_v37 = vunpack.i.l.bf16 %v903_v32  ;;  %2163 = vst [vmem:[%s4387_s1 + $0x21] sm:$0x1] %v2162_v34  ;;  %v860_v38 = vrot.slane %v859_v29, 1  ;;  %v884_v40 = vrot.slane %v883_v31, 2  ;;  %v94_v24 = vld [vmem:[%s4386_s0 + $0x55] sm:$0x1] }
  0x7e   :  { %v906_v41 = vunpack.i.h.bf16 %v903_v32  ;;  %v895_v45 = vrot.slane %v894_v36, 4  ;;  %v305_v46 = vmax.bf16 %v97_v27, %v89_v26  ;;  %v306_v47 = vmax.bf16 %v98_v33, %v90_v28 }
  0x7f   :  { %v2165_v44 = vsel %vm2518_vm2, %v849_v35, %v2164_v17  ;;  %v861_v48 = vmax.f32 %v859_v29, %v860_v38  ;;  %v873_v49 = vrot.slane %v872_v39, 1  ;;  %v885_v50 = vmax.f32 %v883_v31, %v884_v40  ;;  %v2176_v31 = vld [vmem:[%s4387_s1 + $0x26] sm:$0x1] }
  0x80   :  { %2166 = vst [vmem:[%s4387_s1 + $0x22] sm:$0x1] %v2165_v44  ;;  %v907_v51 = vmax.f32 %v905_v37, %v906_v41  ;;  %v896_v53 = vmax.f32 %v894_v36, %v895_v45  ;;  %v916_v54 = vsel %vm393_vm0, %v305_v46, 4286644096  ;;  %v929_v55 = vsel %vm393_vm0, %v306_v47, 4286644096 }
  0x81   :  { %v307_v56 = vmax.bf16 %v99_v43, %v91_v42  ;;  %v862_v57 = vpack.i.bf16 %v861_v48, %v861_v48  ;;  %v874_v58 = vmax.f32 %v872_v39, %v873_v49  ;;  %v886_v59 = vrot.slane %v885_v50, 1  ;;  %v2179_v48 = vld [vmem:[%s4387_s1 + $0x27] sm:$0x1] }
  0x82   :  { %v908_v60 = vrot.slane %v907_v51, 4  ;;  %v897_v62 = vrot.slane %v896_v53, 2  ;;  %v918_v63 = vunpack.i.l.bf16 %v916_v54  ;;  %v919_v0 = vunpack.i.h.bf16 %v916_v54 }
  0x83   :  { %v931_v1 = vunpack.i.l.bf16 %v929_v55  ;;  %v2168_v2 = vsel %vm2518_vm2, %v862_v57, %v2167_v52  ;;  %v875_v3 = vpack.i.bf16 %v874_v58, %v874_v58  ;;  %v887_v4 = vmax.f32 %v885_v50, %v886_v59  ;;  %v103_v57 = vld [vmem:[%s4386_s0 + $0x5e] sm:$0x1] }
  0x84   :  { %v909_v6 = vmax.f32 %v907_v51, %v908_v60  ;;  %2169 = vst [vmem:[%s4387_s1 + $0x23] sm:$0x1] %v2168_v2  ;;  %v898_v9 = vmax.f32 %v896_v53, %v897_v62  ;;  %v920_v10 = vmax.f32 %v918_v63, %v919_v0  ;;  %v932_v11 = vunpack.i.h.bf16 %v929_v55  ;;  %v96_v62 = vld [vmem:[%s4386_s0 + $0x57] sm:$0x1]  ;;  %v104_v63 = vld [vmem:[%s4386_s0 + $0x5f] sm:$0x1] }
  0x85   :  { %v942_v12 = vsel %vm393_vm0, %v307_v56, 4286644096  ;;  %v2171_v16 = vsel %vm2518_vm2, %v875_v3, %v2170_v61  ;;  %v888_v17 = vpack.i.bf16 %v887_v4, %v887_v4  ;;  %v308_v28 = vmax.bf16 %v100_v8, %v92_v7  ;;  %v95_v56 = vld [vmem:[%s4386_s0 + $0x56] sm:$0x1]  ;;  %v2182_v8 = vld [vmem:[%s4387_s1 + $0x28] sm:$0x1] }
  0x86   :  { %v910_v18 = vrot.slane %v909_v6, 2  ;;  %v944_v19 = vunpack.i.l.bf16 %v942_v12  ;;  %2172 = vst [vmem:[%s4387_s1 + $0x24] sm:$0x1] %v2171_v16  ;;  %v899_v20 = vrot.slane %v898_v9, 1  ;;  %v921_v21 = vrot.slane %v920_v10, 4 }
  0x87   :  { %v933_v22 = vmax.f32 %v931_v1, %v932_v11  ;;  %v945_v23 = vunpack.i.h.bf16 %v942_v12  ;;  %v2174_v26 = vsel %vm2518_vm2, %v888_v17, %v2173_v5  ;;  %v309_v29 = vmax.bf16 %v101_v15, %v93_v13 }
  0x88   :  { %v911_v27 = vmax.f32 %v909_v6, %v910_v18  ;;  %2175 = vst [vmem:[%s4387_s1 + $0x25] sm:$0x1] %v2174_v26  ;;  %v900_v30 = vmax.f32 %v898_v9, %v899_v20  ;;  %v922_v32 = vmax.f32 %v920_v10, %v921_v21  ;;  %v955_v36 = vsel %vm393_vm0, %v308_v28, 4286644096  ;;  %v2185_v18 = vld [vmem:[%s4387_s1 + $0x29] sm:$0x1] }
  0x89   :  { %v934_v33 = vrot.slane %v933_v22, 4  ;;  %v946_v34 = vmax.f32 %v944_v19, %v945_v23  ;;  %v968_v37 = vsel %vm393_vm0, %v309_v29, 4286644096  ;;  %v310_v38 = vmax.bf16 %v102_v25, %v94_v24  ;;  %v2188_v19 = vld [vmem:[%s4387_s1 + $0x2a] sm:$0x1] }
  0x8a   :  { %v912_v35 = vrot.slane %v911_v27, 1  ;;  %v901_v39 = vpack.i.bf16 %v900_v30, %v900_v30  ;;  %v923_v40 = vrot.slane %v922_v32, 2  ;;  %v957_v44 = vunpack.i.l.bf16 %v955_v36  ;;  %v105_v28 = vld [vmem:[%s4386_s0 + $0x60] sm:$0x1]  ;;  %v113_v29 = vld [vmem:[%s4386_s0 + $0x68] sm:$0x1] }
  0x8b   :  { %v935_v41 = vmax.f32 %v933_v22, %v934_v33  ;;  %v947_v42 = vrot.slane %v946_v34, 4  ;;  %v958_v45 = vunpack.i.h.bf16 %v955_v36  ;;  %v970_v46 = vunpack.i.l.bf16 %v968_v37  ;;  %v106_v30 = vld [vmem:[%s4386_s0 + $0x61] sm:$0x1] }
  0x8c   :  { %v913_v43 = vmax.f32 %v911_v27, %v912_v35  ;;  %v2177_v47 = vsel %vm2518_vm2, %v901_v39, %v2176_v31  ;;  %v924_v49 = vmax.f32 %v922_v32, %v923_v40  ;;  %v971_v54 = vunpack.i.h.bf16 %v968_v37  ;;  %v114_v35 = vld [vmem:[%s4386_s0 + $0x69] sm:$0x1] }
  0x8d   :  { %v936_v50 = vrot.slane %v935_v41, 2  ;;  %v948_v51 = vmax.f32 %v946_v34, %v947_v42  ;;  %2178 = vst [vmem:[%s4387_s1 + $0x26] sm:$0x1] %v2177_v47  ;;  %v959_v53 = vmax.f32 %v957_v44, %v958_v45  ;;  %v981_v55 = vsel %vm393_vm0, %v310_v38, 4286644096 }
  0x8e   :  { %v914_v52 = vpack.i.bf16 %v913_v43, %v913_v43  ;;  %v925_v58 = vrot.slane %v924_v49, 1  ;;  %v983_v61 = vunpack.i.l.bf16 %v981_v55  ;;  %v972_v2 = vmax.f32 %v970_v46, %v971_v54  ;;  %v107_v44 = vld [vmem:[%s4386_s0 + $0x62] sm:$0x1]  ;;  %v115_v45 = vld [vmem:[%s4386_s0 + $0x6a] sm:$0x1] }
  0x8f   :  { %v937_v59 = vmax.f32 %v935_v41, %v936_v50  ;;  %v949_v60 = vrot.slane %v948_v51, 2  ;;  %v960_v1 = vrot.slane %v959_v53, 4  ;;  %v984_v3 = vunpack.i.h.bf16 %v981_v55  ;;  %v2191_v54 = vld [vmem:[%s4387_s1 + $0x2b] sm:$0x1] }
  0x90   :  { %v2180_v0 = vsel %vm2518_vm2, %v914_v52, %v2179_v48  ;;  %v926_v4 = vmax.f32 %v924_v49, %v925_v58  ;;  %v311_v7 = vmax.bf16 %v103_v57, %v95_v56  ;;  %v973_v10 = vrot.slane %v972_v2, 4 }
  0x91   :  { %2181 = vst [vmem:[%s4387_s1 + $0x27] sm:$0x1] %v2180_v0  ;;  %v938_v5 = vrot.slane %v937_v59, 1  ;;  %v950_v6 = vmax.f32 %v948_v51, %v949_v60  ;;  %v961_v9 = vmax.f32 %v959_v53, %v960_v1  ;;  %v985_v11 = vmax.f32 %v983_v61, %v984_v3 }
  0x92   :  { %v312_v12 = vmax.bf16 %v104_v63, %v96_v62  ;;  %v927_v13 = vpack.i.bf16 %v926_v4, %v926_v4  ;;  %v994_v17 = vsel %vm393_vm0, %v311_v7, 4286644096  ;;  %v974_v21 = vmax.f32 %v972_v2, %v973_v10  ;;  %v2194_v63 = vld [vmem:[%s4387_s1 + $0x2c] sm:$0x1]  ;;  %v2197_v7 = vld [vmem:[%s4387_s1 + $0x2d] sm:$0x1] }
  0x93   :  { %v939_v15 = vmax.f32 %v937_v59, %v938_v5  ;;  %v951_v16 = vrot.slane %v950_v6, 1  ;;  %v962_v20 = vrot.slane %v961_v9, 2  ;;  %v986_v22 = vrot.slane %v985_v11, 4  ;;  %v116_v10 = vld [vmem:[%s4386_s0 + $0x6b] sm:$0x1] }
  0x94   :  { %v996_v23 = vunpack.i.l.bf16 %v994_v17  ;;  %v2183_v24 = vsel %vm2518_vm2, %v927_v13, %v2182_v8  ;;  %v997_v27 = vunpack.i.h.bf16 %v994_v17  ;;  %v975_v32 = vrot.slane %v974_v21, 2  ;;  %v117_v17 = vld [vmem:[%s4386_s0 + $0x6c] sm:$0x1] }
  0x95   :  { %v940_v25 = vpack.i.bf16 %v939_v15, %v939_v15  ;;  %v952_v26 = vmax.f32 %v950_v6, %v951_v16  ;;  %2184 = vst [vmem:[%s4387_s1 + $0x28] sm:$0x1] %v2183_v24  ;;  %v963_v31 = vmax.f32 %v961_v9, %v962_v20  ;;  %v987_v33 = vmax.f32 %v985_v11, %v986_v22  ;;  %v108_v9 = vld [vmem:[%s4386_s0 + $0x63] sm:$0x1]  ;;  %v109_v16 = vld [vmem:[%s4386_s0 + $0x64] sm:$0x1] }
  0x96   :  { %v1007_v34 = vsel %vm393_vm0, %v312_v12, 4286644096  ;;  %v998_v38 = vmax.f32 %v996_v23, %v997_v27  ;;  %v976_v41 = vmax.f32 %v974_v21, %v975_v32  ;;  %v313_v48 = vmax.bf16 %v113_v29, %v105_v28  ;;  %v118_v27 = vld [vmem:[%s4386_s0 + $0x6d] sm:$0x1] }
  0x97   :  { %v2186_v36 = vsel %vm2518_vm2, %v940_v25, %v2185_v18  ;;  %v953_v37 = vpack.i.bf16 %v952_v26, %v952_v26  ;;  %v1009_v39 = vunpack.i.l.bf16 %v1007_v34  ;;  %v964_v40 = vrot.slane %v963_v31, 1  ;;  %v110_v26 = vld [vmem:[%s4386_s0 + $0x65] sm:$0x1] }
  0x98   :  { %2187 = vst [vmem:[%s4387_s1 + $0x29] sm:$0x1] %v2186_v36  ;;  %v988_v42 = vrot.slane %v987_v33, 2  ;;  %v1010_v43 = vunpack.i.h.bf16 %v1007_v34  ;;  %v999_v47 = vrot.slane %v998_v38, 4  ;;  %v314_v49 = vmax.bf16 %v114_v35, %v106_v30 }
  0x99   :  { %v2189_v46 = vsel %vm2518_vm2, %v953_v37, %v2188_v19  ;;  %v965_v50 = vmax.f32 %v963_v31, %v964_v40  ;;  %v977_v51 = vrot.slane %v976_v41, 1  ;;  %v1020_v56 = vsel %vm393_vm0, %v313_v48, 4286644096 }
  0x9a   :  { %2190 = vst [vmem:[%s4387_s1 + $0x2a] sm:$0x1] %v2189_v46  ;;  %v989_v52 = vmax.f32 %v987_v33, %v988_v42  ;;  %v1011_v53 = vmax.f32 %v1009_v39, %v1010_v43  ;;  %v1000_v55 = vmax.f32 %v998_v38, %v999_v47  ;;  %v1033_v57 = vsel %vm393_vm0, %v314_v49, 4286644096  ;;  %v2200_v33 = vld [vmem:[%s4387_s1 + $0x2e] sm:$0x1] }
  0x9b   :  { %v315_v58 = vmax.bf16 %v115_v45, %v107_v44  ;;  %v966_v59 = vpack.i.bf16 %v965_v50, %v965_v50  ;;  %v978_v60 = vmax.f32 %v976_v41, %v977_v51  ;;  %v1022_v1 = vunpack.i.l.bf16 %v1020_v56  ;;  %v2203_v50 = vld [vmem:[%s4387_s1 + $0x2f] sm:$0x1] }
  0x9c   :  { %v990_v61 = vrot.slane %v989_v52, 1  ;;  %v1012_v62 = vrot.slane %v1011_v53, 4  ;;  %v1001_v0 = vrot.slane %v1000_v55, 2  ;;  %v1023_v2 = vunpack.i.h.bf16 %v1020_v56 }
  0x9d   :  { %v1035_v3 = vunpack.i.l.bf16 %v1033_v57  ;;  %v2192_v4 = vsel %vm2518_vm2, %v966_v59, %v2191_v54  ;;  %v979_v5 = vpack.i.bf16 %v978_v60, %v978_v60  ;;  %v1036_v13 = vunpack.i.h.bf16 %v1033_v57  ;;  %v119_v59 = vld [vmem:[%s4386_s0 + $0x6e] sm:$0x1] }
  0x9e   :  { %v991_v6 = vmax.f32 %v989_v52, %v990_v61  ;;  %v1013_v8 = vmax.f32 %v1011_v53, %v1012_v62  ;;  %2193 = vst [vmem:[%s4387_s1 + $0x2b] sm:$0x1] %v2192_v4  ;;  %v1002_v11 = vmax.f32 %v1000_v55, %v1001_v0  ;;  %v1024_v12 = vmax.f32 %v1022_v1, %v1023_v2  ;;  %v112_v0 = vld [vmem:[%s4386_s0 + $0x67] sm:$0x1]  ;;  %v120_v1 = vld [vmem:[%s4386_s0 + $0x6f] sm:$0x1] }
  0x9f   :  { %v1046_v15 = vsel %vm393_vm0, %v315_v58, 4286644096  ;;  %v2195_v18 = vsel %vm2518_vm2, %v979_v5, %v2194_v63  ;;  %v1037_v24 = vmax.f32 %v1035_v3, %v1036_v13  ;;  %v316_v30 = vmax.bf16 %v116_v10, %v108_v9  ;;  %v111_v58 = vld [vmem:[%s4386_s0 + $0x66] sm:$0x1]  ;;  %v2206_v10 = vld [vmem:[%s4387_s1 + $0x30] sm:$0x1] }
  0xa0   :  { %v992_v19 = vpack.i.bf16 %v991_v6, %v991_v6  ;;  %v1014_v20 = vrot.slane %v1013_v8, 2  ;;  %v1048_v21 = vunpack.i.l.bf16 %v1046_v15  ;;  %2196 = vst [vmem:[%s4387_s1 + $0x2c] sm:$0x1] %v2195_v18  ;;  %v1003_v22 = vrot.slane %v1002_v11, 1 }
  0xa1   :  { %v1025_v23 = vrot.slane %v1024_v12, 4  ;;  %v1049_v25 = vunpack.i.h.bf16 %v1046_v15  ;;  %v317_v31 = vmax.bf16 %v117_v17, %v109_v16  ;;  %v1038_v35 = vrot.slane %v1037_v24, 4 }
  0xa2   :  { %v2198_v28 = vsel %vm2518_vm2, %v992_v19, %v2197_v7  ;;  %v1015_v29 = vmax.f32 %v1013_v8, %v1014_v20  ;;  %v1004_v32 = vmax.f32 %v1002_v11, %v1003_v22  ;;  %v1059_v38 = vsel %vm393_vm0, %v316_v30, 4286644096  ;;  %v2209_v20 = vld [vmem:[%s4387_s1 + $0x31] sm:$0x1]  ;;  %v121_v30 = vld [vmem:[%s4386_s0 + $0x70] sm:$0x1] }
  0xa3   :  { %2199 = vst [vmem:[%s4387_s1 + $0x2d] sm:$0x1] %v2198_v28  ;;  %v1026_v34 = vmax.f32 %v1024_v12, %v1025_v23  ;;  %v1050_v36 = vmax.f32 %v1048_v21, %v1049_v25  ;;  %v1072_v39 = vsel %vm393_vm0, %v317_v31, 4286644096  ;;  %v318_v40 = vmax.bf16 %v118_v27, %v110_v26  ;;  %v2212_v21 = vld [vmem:[%s4387_s1 + $0x32] sm:$0x1] }
  0xa4   :  { %v1016_v37 = vrot.slane %v1015_v29, 1  ;;  %v1005_v41 = vpack.i.bf16 %v1004_v32, %v1004_v32  ;;  %v1039_v43 = vmax.f32 %v1037_v24, %v1038_v35  ;;  %v1061_v46 = vunpack.i.l.bf16 %v1059_v38  ;;  %v129_v31 = vld [vmem:[%s4386_s0 + $0x78] sm:$0x1]  ;;  %v122_v32 = vld [vmem:[%s4386_s0 + $0x71] sm:$0x1] }
  0xa5   :  { %v1027_v42 = vrot.slane %v1026_v34, 2  ;;  %v1051_v44 = vrot.slane %v1050_v36, 4  ;;  %v1062_v47 = vunpack.i.h.bf16 %v1059_v38  ;;  %v1074_v48 = vunpack.i.l.bf16 %v1072_v39 }
  0xa6   :  { %v1017_v45 = vmax.f32 %v1015_v29, %v1016_v37  ;;  %v2201_v49 = vsel %vm2518_vm2, %v1005_v41, %v2200_v33  ;;  %v1040_v52 = vrot.slane %v1039_v43, 2  ;;  %v1075_v56 = vunpack.i.h.bf16 %v1072_v39  ;;  %v130_v37 = vld [vmem:[%s4386_s0 + $0x79] sm:$0x1] }
  0xa7   :  { %v1028_v51 = vmax.f32 %v1026_v34, %v1027_v42  ;;  %v1052_v53 = vmax.f32 %v1050_v36, %v1051_v44  ;;  %2202 = vst [vmem:[%s4387_s1 + $0x2e] sm:$0x1] %v2201_v49  ;;  %v1063_v55 = vmax.f32 %v1061_v46, %v1062_v47  ;;  %v1085_v57 = vsel %vm393_vm0, %v318_v40, 4286644096  ;;  %v123_v46 = vld [vmem:[%s4386_s0 + $0x72] sm:$0x1] }
  0xa8   :  { %v1018_v54 = vpack.i.bf16 %v1017_v45, %v1017_v45  ;;  %v1041_v61 = vmax.f32 %v1039_v43, %v1040_v52  ;;  %v1087_v63 = vunpack.i.l.bf16 %v1085_v57  ;;  %v1076_v4 = vmax.f32 %v1074_v48, %v1075_v56  ;;  %v131_v47 = vld [vmem:[%s4386_s0 + $0x7a] sm:$0x1]  ;;  %v2215_v56 = vld [vmem:[%s4387_s1 + $0x33] sm:$0x1] }
  0xa9   :  { %v1029_v60 = vrot.slane %v1028_v51, 1  ;;  %v1053_v62 = vrot.slane %v1052_v53, 2  ;;  %v1064_v3 = vrot.slane %v1063_v55, 4  ;;  %v1088_v5 = vunpack.i.h.bf16 %v1085_v57 }
  0xaa   :  { %v2204_v2 = vsel %vm2518_vm2, %v1018_v54, %v2203_v50  ;;  %v1042_v7 = vrot.slane %v1041_v61, 1  ;;  %v319_v9 = vmax.bf16 %v119_v59, %v111_v58  ;;  %v1077_v12 = vrot.slane %v1076_v4, 4 }
  0xab   :  { %2205 = vst [vmem:[%s4387_s1 + $0x2f] sm:$0x1] %v2204_v2  ;;  %v1030_v6 = vmax.f32 %v1028_v51, %v1029_v60  ;;  %v1054_v8 = vmax.f32 %v1052_v53, %v1053_v62  ;;  %v1065_v11 = vmax.f32 %v1063_v55, %v1064_v3  ;;  %v1089_v13 = vmax.f32 %v1087_v63, %v1088_v5 }
  0xac   :  { %v320_v15 = vmax.bf16 %v120_v1, %v112_v0  ;;  %v1043_v17 = vmax.f32 %v1041_v61, %v1042_v7  ;;  %v1098_v19 = vsel %vm393_vm0, %v319_v9, 4286644096  ;;  %v1078_v23 = vmax.f32 %v1076_v4, %v1077_v12  ;;  %v2218_v1 = vld [vmem:[%s4387_s1 + $0x34] sm:$0x1]  ;;  %v2221_v9 = vld [vmem:[%s4387_s1 + $0x35] sm:$0x1] }
  0xad   :  { %v1031_v16 = vpack.i.bf16 %v1030_v6, %v1030_v6  ;;  %v1055_v18 = vrot.slane %v1054_v8, 1  ;;  %v1066_v22 = vrot.slane %v1065_v11, 2  ;;  %v1090_v24 = vrot.slane %v1089_v13, 4  ;;  %v132_v12 = vld [vmem:[%s4386_s0 + $0x7b] sm:$0x1] }
  0xae   :  { %v1100_v25 = vunpack.i.l.bf16 %v1098_v19  ;;  %v1044_v27 = vpack.i.bf16 %v1043_v17, %v1043_v17  ;;  %v1101_v29 = vunpack.i.h.bf16 %v1098_v19  ;;  %v1079_v34 = vrot.slane %v1078_v23, 2  ;;  %v133_v19 = vld [vmem:[%s4386_s0 + $0x7c] sm:$0x1] }
  0xaf   :  { %v2207_v26 = vsel %vm2518_vm2, %v1031_v16, %v2206_v10  ;;  %v1056_v28 = vmax.f32 %v1054_v8, %v1055_v18  ;;  %v1067_v33 = vmax.f32 %v1065_v11, %v1066_v22  ;;  %v1091_v35 = vmax.f32 %v1089_v13, %v1090_v24  ;;  %v124_v11 = vld [vmem:[%s4386_s0 + $0x73] sm:$0x1]  ;;  %v125_v18 = vld [vmem:[%s4386_s0 + $0x74] sm:$0x1] }
  0xb0   :  { %2208 = vst [vmem:[%s4387_s1 + $0x30] sm:$0x1] %v2207_v26  ;;  %v1111_v36 = vsel %vm393_vm0, %v320_v15, 4286644096  ;;  %v2210_v38 = vsel %vm2518_vm2, %v1044_v27, %v2209_v20  ;;  %v1102_v40 = vmax.f32 %v1100_v25, %v1101_v29  ;;  %v1080_v43 = vmax.f32 %v1078_v23, %v1079_v34  ;;  %v134_v29 = vld [vmem:[%s4386_s0 + $0x7d] sm:$0x1] }
  0xb1   :  { %v1057_v39 = vpack.i.bf16 %v1056_v28, %v1056_v28  ;;  %v1113_v41 = vunpack.i.l.bf16 %v1111_v36  ;;  %2211 = vst [vmem:[%s4387_s1 + $0x31] sm:$0x1] %v2210_v38  ;;  %v1068_v42 = vrot.slane %v1067_v33, 1  ;;  %v1092_v44 = vrot.slane %v1091_v35, 2  ;;  %v126_v28 = vld [vmem:[%s4386_s0 + $0x75] sm:$0x1] }
  0xb2   :  { %v1114_v45 = vunpack.i.h.bf16 %v1111_v36  ;;  %v1103_v49 = vrot.slane %v1102_v40, 4  ;;  %v321_v50 = vmax.bf16 %v129_v31, %v121_v30  ;;  %v322_v51 = vmax.bf16 %v130_v37, %v122_v32 }
  0xb3   :  { %v2213_v48 = vsel %vm2518_vm2, %v1057_v39, %v2212_v21  ;;  %v1069_v52 = vmax.f32 %v1067_v33, %v1068_v42  ;;  %v1081_v53 = vrot.slane %v1080_v43, 1  ;;  %v1093_v54 = vmax.f32 %v1091_v35, %v1092_v44  ;;  %v2224_v35 = vld [vmem:[%s4387_s1 + $0x36] sm:$0x1] }
  0xb4   :  { %2214 = vst [vmem:[%s4387_s1 + $0x32] sm:$0x1] %v2213_v48  ;;  %v1115_v55 = vmax.f32 %v1113_v41, %v1114_v45  ;;  %v1104_v57 = vmax.f32 %v1102_v40, %v1103_v49  ;;  %v1124_v58 = vsel %vm393_vm0, %v321_v50, 4286644096  ;;  %v1137_v59 = vsel %vm393_vm0, %v322_v51, 4286644096 }
  0xb5   :  { %v323_v60 = vmax.bf16 %v131_v47, %v123_v46  ;;  %v1070_v61 = vpack.i.bf16 %v1069_v52, %v1069_v52  ;;  %v1082_v62 = vmax.f32 %v1080_v43, %v1081_v53  ;;  %v1094_v63 = vrot.slane %v1093_v54, 1  ;;  %v2227_v52 = vld [vmem:[%s4387_s1 + $0x37] sm:$0x1] }
  0xb6   :  { %v1116_v0 = vrot.slane %v1115_v55, 4  ;;  %v1105_v2 = vrot.slane %v1104_v57, 2  ;;  %v1126_v3 = vunpack.i.l.bf16 %v1124_v58  ;;  %v1127_v4 = vunpack.i.h.bf16 %v1124_v58 }
  0xb7   :  { %v1139_v5 = vunpack.i.l.bf16 %v1137_v59  ;;  %v2216_v6 = vsel %vm2518_vm2, %v1070_v61, %v2215_v56  ;;  %v1083_v7 = vpack.i.bf16 %v1082_v62, %v1082_v62  ;;  %v1095_v8 = vmax.f32 %v1093_v54, %v1094_v63  ;;  %v135_v61 = vld [vmem:[%s4386_s0 + $0x7e] sm:$0x1] }
  0xb8   :  { %v1117_v10 = vmax.f32 %v1115_v55, %v1116_v0  ;;  %2217 = vst [vmem:[%s4387_s1 + $0x33] sm:$0x1] %v2216_v6  ;;  %v1106_v13 = vmax.f32 %v1104_v57, %v1105_v2  ;;  %v1128_v15 = vmax.f32 %v1126_v3, %v1127_v4  ;;  %v1140_v16 = vunpack.i.h.bf16 %v1137_v59  ;;  %v128_v2 = vld [vmem:[%s4386_s0 + $0x77] sm:$0x1]  ;;  %v136_v3 = vld [vmem:[%s4386_s0 + $0x7f] sm:$0x1] }
  0xb9   :  { %v1150_v17 = vsel %vm393_vm0, %v323_v60, 4286644096  ;;  %v2219_v20 = vsel %vm2518_vm2, %v1083_v7, %v2218_v1  ;;  %v1096_v21 = vpack.i.bf16 %v1095_v8, %v1095_v8  ;;  %v324_v32 = vmax.bf16 %v132_v12, %v124_v11  ;;  %v127_v60 = vld [vmem:[%s4386_s0 + $0x76] sm:$0x1]  ;;  %v2230_v12 = vld [vmem:[%s4387_s1 + $0x38] sm:$0x1] }
  0xba   :  { %v1118_v22 = vrot.slane %v1117_v10, 2  ;;  %v1152_v23 = vunpack.i.l.bf16 %v1150_v17  ;;  %2220 = vst [vmem:[%s4387_s1 + $0x34] sm:$0x1] %v2219_v20  ;;  %v1107_v24 = vrot.slane %v1106_v13, 1  ;;  %v1129_v25 = vrot.slane %v1128_v15, 4 }
  0xbb   :  { %v1141_v26 = vmax.f32 %v1139_v5, %v1140_v16  ;;  %v1153_v27 = vunpack.i.h.bf16 %v1150_v17  ;;  %v2222_v30 = vsel %vm2518_vm2, %v1096_v21, %v2221_v9  ;;  %v325_v33 = vmax.bf16 %v133_v19, %v125_v18 }
  0xbc   :  { %v1119_v31 = vmax.f32 %v1117_v10, %v1118_v22  ;;  %2223 = vst [vmem:[%s4387_s1 + $0x35] sm:$0x1] %v2222_v30  ;;  %v1108_v34 = vmax.f32 %v1106_v13, %v1107_v24  ;;  %v1130_v36 = vmax.f32 %v1128_v15, %v1129_v25  ;;  %v1163_v40 = vsel %vm393_vm0, %v324_v32, 4286644096  ;;  %v2233_v22 = vld [vmem:[%s4387_s1 + $0x39] sm:$0x1] }
  0xbd   :  { %v1142_v37 = vrot.slane %v1141_v26, 4  ;;  %v1154_v38 = vmax.f32 %v1152_v23, %v1153_v27  ;;  %v1176_v41 = vsel %vm393_vm0, %v325_v33, 4286644096  ;;  %v326_v42 = vmax.bf16 %v134_v29, %v126_v28  ;;  %v2236_v23 = vld [vmem:[%s4387_s1 + $0x3a] sm:$0x1] }
  0xbe   :  { %v1120_v39 = vrot.slane %v1119_v31, 1  ;;  %v1109_v43 = vpack.i.bf16 %v1108_v34, %v1108_v34  ;;  %v1131_v44 = vrot.slane %v1130_v36, 2  ;;  %v1165_v48 = vunpack.i.l.bf16 %v1163_v40  ;;  %v137_v32 = vld [vmem:[%s4386_s0 + $0x80] sm:$0x1]  ;;  %v145_v33 = vld [vmem:[%s4386_s0 + $0x88] sm:$0x1] }
  0xbf   :  { %v1143_v45 = vmax.f32 %v1141_v26, %v1142_v37  ;;  %v1155_v46 = vrot.slane %v1154_v38, 4  ;;  %v1166_v49 = vunpack.i.h.bf16 %v1163_v40  ;;  %v1178_v50 = vunpack.i.l.bf16 %v1176_v41  ;;  %v138_v34 = vld [vmem:[%s4386_s0 + $0x81] sm:$0x1] }
  0xc0   :  { %v1121_v47 = vmax.f32 %v1119_v31, %v1120_v39  ;;  %v2225_v51 = vsel %vm2518_vm2, %v1109_v43, %v2224_v35  ;;  %v1132_v53 = vmax.f32 %v1130_v36, %v1131_v44  ;;  %v1179_v58 = vunpack.i.h.bf16 %v1176_v41  ;;  %v146_v39 = vld [vmem:[%s4386_s0 + $0x89] sm:$0x1] }
  0xc1   :  { %v1144_v54 = vrot.slane %v1143_v45, 2  ;;  %v1156_v55 = vmax.f32 %v1154_v38, %v1155_v46  ;;  %2226 = vst [vmem:[%s4387_s1 + $0x36] sm:$0x1] %v2225_v51  ;;  %v1167_v57 = vmax.f32 %v1165_v48, %v1166_v49  ;;  %v1189_v59 = vsel %vm393_vm0, %v326_v42, 4286644096 }
  0xc2   :  { %v1122_v56 = vpack.i.bf16 %v1121_v47, %v1121_v47  ;;  %v1133_v62 = vrot.slane %v1132_v53, 1  ;;  %v1191_v1 = vunpack.i.l.bf16 %v1189_v59  ;;  %v1180_v6 = vmax.f32 %v1178_v50, %v1179_v58  ;;  %v139_v48 = vld [vmem:[%s4386_s0 + $0x82] sm:$0x1]  ;;  %v147_v49 = vld [vmem:[%s4386_s0 + $0x8a] sm:$0x1] }
  0xc3   :  { %v1145_v63 = vmax.f32 %v1143_v45, %v1144_v54  ;;  %v1157_v0 = vrot.slane %v1156_v55, 2  ;;  %v1168_v5 = vrot.slane %v1167_v57, 4  ;;  %v1192_v7 = vunpack.i.h.bf16 %v1189_v59  ;;  %v2239_v58 = vld [vmem:[%s4387_s1 + $0x3b] sm:$0x1] }
  0xc4   :  { %v2228_v4 = vsel %vm2518_vm2, %v1122_v56, %v2227_v52  ;;  %v1134_v8 = vmax.f32 %v1132_v53, %v1133_v62  ;;  %v327_v11 = vmax.bf16 %v135_v61, %v127_v60  ;;  %v1181_v15 = vrot.slane %v1180_v6, 4 }
  0xc5   :  { %2229 = vst [vmem:[%s4387_s1 + $0x37] sm:$0x1] %v2228_v4  ;;  %v1146_v9 = vrot.slane %v1145_v63, 1  ;;  %v1158_v10 = vmax.f32 %v1156_v55, %v1157_v0  ;;  %v1169_v13 = vmax.f32 %v1167_v57, %v1168_v5  ;;  %v1193_v16 = vmax.f32 %v1191_v1, %v1192_v7 }
  0xc6   :  { %v328_v17 = vmax.bf16 %v136_v3, %v128_v2  ;;  %v1135_v18 = vpack.i.bf16 %v1134_v8, %v1134_v8  ;;  %v1202_v21 = vsel %vm393_vm0, %v327_v11, 4286644096  ;;  %v1182_v25 = vmax.f32 %v1180_v6, %v1181_v15  ;;  %v2242_v3 = vld [vmem:[%s4387_s1 + $0x3c] sm:$0x1]  ;;  %v2245_v11 = vld [vmem:[%s4387_s1 + $0x3d] sm:$0x1] }
  0xc7   :  { %v1147_v19 = vmax.f32 %v1145_v63, %v1146_v9  ;;  %v1159_v20 = vrot.slane %v1158_v10, 1  ;;  %v1170_v24 = vrot.slane %v1169_v13, 2  ;;  %v1194_v26 = vrot.slane %v1193_v16, 4  ;;  %v148_v15 = vld [vmem:[%s4386_s0 + $0x8b] sm:$0x1] }
  0xc8   :  { %v1204_v27 = vunpack.i.l.bf16 %v1202_v21  ;;  %v2231_v28 = vsel %vm2518_vm2, %v1135_v18, %v2230_v12  ;;  %v1205_v31 = vunpack.i.h.bf16 %v1202_v21  ;;  %v1183_v36 = vrot.slane %v1182_v25, 2  ;;  %v149_v21 = vld [vmem:[%s4386_s0 + $0x8c] sm:$0x1] }
  0xc9   :  { %v1148_v29 = vpack.i.bf16 %v1147_v19, %v1147_v19  ;;  %v1160_v30 = vmax.f32 %v1158_v10, %v1159_v20  ;;  %2232 = vst [vmem:[%s4387_s1 + $0x38] sm:$0x1] %v2231_v28  ;;  %v1171_v35 = vmax.f32 %v1169_v13, %v1170_v24  ;;  %v1195_v37 = vmax.f32 %v1193_v16, %v1194_v26  ;;  %v140_v13 = vld [vmem:[%s4386_s0 + $0x83] sm:$0x1]  ;;  %v141_v20 = vld [vmem:[%s4386_s0 + $0x84] sm:$0x1] }
  0xca   :  { %v1215_v38 = vsel %vm393_vm0, %v328_v17, 4286644096  ;;  %v1206_v42 = vmax.f32 %v1204_v27, %v1205_v31  ;;  %v1184_v45 = vmax.f32 %v1182_v25, %v1183_v36  ;;  %v329_v52 = vmax.bf16 %v145_v33, %v137_v32  ;;  %v150_v31 = vld [vmem:[%s4386_s0 + $0x8d] sm:$0x1] }
  0xcb   :  { %v2234_v40 = vsel %vm2518_vm2, %v1148_v29, %v2233_v22  ;;  %v1161_v41 = vpack.i.bf16 %v1160_v30, %v1160_v30  ;;  %v1217_v43 = vunpack.i.l.bf16 %v1215_v38  ;;  %v1172_v44 = vrot.slane %v1171_v35, 1  ;;  %v142_v30 = vld [vmem:[%s4386_s0 + $0x85] sm:$0x1] }
  0xcc   :  { %2235 = vst [vmem:[%s4387_s1 + $0x39] sm:$0x1] %v2234_v40  ;;  %v1196_v46 = vrot.slane %v1195_v37, 2  ;;  %v1218_v47 = vunpack.i.h.bf16 %v1215_v38  ;;  %v1207_v51 = vrot.slane %v1206_v42, 4  ;;  %v330_v53 = vmax.bf16 %v146_v39, %v138_v34 }
  0xcd   :  { %v2237_v50 = vsel %vm2518_vm2, %v1161_v41, %v2236_v23  ;;  %v1173_v54 = vmax.f32 %v1171_v35, %v1172_v44  ;;  %v1185_v55 = vrot.slane %v1184_v45, 1  ;;  %v1228_v60 = vsel %vm393_vm0, %v329_v52, 4286644096 }
  0xce   :  { %2238 = vst [vmem:[%s4387_s1 + $0x3a] sm:$0x1] %v2237_v50  ;;  %v1197_v56 = vmax.f32 %v1195_v37, %v1196_v46  ;;  %v1219_v57 = vmax.f32 %v1217_v43, %v1218_v47  ;;  %v1208_v59 = vmax.f32 %v1206_v42, %v1207_v51  ;;  %v1241_v61 = vsel %vm393_vm0, %v330_v53, 4286644096  ;;  %v2248_v37 = vld [vmem:[%s4387_s1 + $0x3e] sm:$0x1] }
  0xcf   :  { %v331_v62 = vmax.bf16 %v147_v49, %v139_v48  ;;  %v1174_v63 = vpack.i.bf16 %v1173_v54, %v1173_v54  ;;  %v1186_v0 = vmax.f32 %v1184_v45, %v1185_v55  ;;  %v1230_v5 = vunpack.i.l.bf16 %v1228_v60  ;;  %v2251_v54 = vld [vmem:[%s4387_s1 + $0x3f] sm:$0x1] }
  0xd0   :  { %v1198_v1 = vrot.slane %v1197_v56, 1  ;;  %v1220_v2 = vrot.slane %v1219_v57, 4  ;;  %v1209_v4 = vrot.slane %v1208_v59, 2  ;;  %v1231_v6 = vunpack.i.h.bf16 %v1228_v60 }
  0xd1   :  { %v1243_v7 = vunpack.i.l.bf16 %v1241_v61  ;;  %v2240_v8 = vsel %vm2518_vm2, %v1174_v63, %v2239_v58  ;;  %v1187_v9 = vpack.i.bf16 %v1186_v0, %v1186_v0  ;;  %v1244_v18 = vunpack.i.h.bf16 %v1241_v61  ;;  %v151_v63 = vld [vmem:[%s4386_s0 + $0x8e] sm:$0x1] }
  0xd2   :  { %v1199_v10 = vmax.f32 %v1197_v56, %v1198_v1  ;;  %v1221_v12 = vmax.f32 %v1219_v57, %v1220_v2  ;;  %2241 = vst [vmem:[%s4387_s1 + $0x3b] sm:$0x1] %v2240_v8  ;;  %v1210_v16 = vmax.f32 %v1208_v59, %v1209_v4  ;;  %v1232_v17 = vmax.f32 %v1230_v5, %v1231_v6  ;;  %v144_v4 = vld [vmem:[%s4386_s0 + $0x87] sm:$0x1]  ;;  %v152_v5 = vld [vmem:[%s4386_s0 + $0x8f] sm:$0x1] }
  0xd3   :  { %v1254_v19 = vsel %vm393_vm0, %v331_v62, 4286644096  ;;  %v2243_v22 = vsel %vm2518_vm2, %v1187_v9, %v2242_v3  ;;  %v1245_v28 = vmax.f32 %v1243_v7, %v1244_v18  ;;  %v332_v34 = vmax.bf16 %v148_v15, %v140_v13  ;;  %v143_v62 = vld [vmem:[%s4386_s0 + $0x86] sm:$0x1]  ;;  %v2254_v15 = vld [vmem:[%s4387_s1 + $0x40] sm:$0x1] }
  0xd4   :  { %v1200_v23 = vpack.i.bf16 %v1199_v10, %v1199_v10  ;;  %v1222_v24 = vrot.slane %v1221_v12, 2  ;;  %v1256_v25 = vunpack.i.l.bf16 %v1254_v19  ;;  %2244 = vst [vmem:[%s4387_s1 + $0x3c] sm:$0x1] %v2243_v22  ;;  %v1211_v26 = vrot.slane %v1210_v16, 1 }
  0xd5   :  { %v1233_v27 = vrot.slane %v1232_v17, 4  ;;  %v1257_v29 = vunpack.i.h.bf16 %v1254_v19  ;;  %v333_v35 = vmax.bf16 %v149_v21, %v141_v20  ;;  %v1246_v39 = vrot.slane %v1245_v28, 4 }
  0xd6   :  { %v2246_v32 = vsel %vm2518_vm2, %v1200_v23, %v2245_v11  ;;  %v1223_v33 = vmax.f32 %v1221_v12, %v1222_v24  ;;  %v1212_v36 = vmax.f32 %v1210_v16, %v1211_v26  ;;  %v1267_v42 = vsel %vm393_vm0, %v332_v34, 4286644096  ;;  %v2257_v24 = vld [vmem:[%s4387_s1 + $0x41] sm:$0x1]  ;;  %v153_v34 = vld [vmem:[%s4386_s0 + $0x90] sm:$0x1] }
  0xd7   :  { %2247 = vst [vmem:[%s4387_s1 + $0x3d] sm:$0x1] %v2246_v32  ;;  %v1234_v38 = vmax.f32 %v1232_v17, %v1233_v27  ;;  %v1258_v40 = vmax.f32 %v1256_v25, %v1257_v29  ;;  %v1280_v43 = vsel %vm393_vm0, %v333_v35, 4286644096  ;;  %v334_v44 = vmax.bf16 %v150_v31, %v142_v30  ;;  %v2260_v25 = vld [vmem:[%s4387_s1 + $0x42] sm:$0x1] }
  0xd8   :  { %v1224_v41 = vrot.slane %v1223_v33, 1  ;;  %v1213_v45 = vpack.i.bf16 %v1212_v36, %v1212_v36  ;;  %v1247_v47 = vmax.f32 %v1245_v28, %v1246_v39  ;;  %v1269_v50 = vunpack.i.l.bf16 %v1267_v42  ;;  %v161_v35 = vld [vmem:[%s4386_s0 + $0x98] sm:$0x1]  ;;  %v154_v36 = vld [vmem:[%s4386_s0 + $0x91] sm:$0x1] }
  0xd9   :  { %v1235_v46 = vrot.slane %v1234_v38, 2  ;;  %v1259_v48 = vrot.slane %v1258_v40, 4  ;;  %v1270_v51 = vunpack.i.h.bf16 %v1267_v42  ;;  %v1282_v52 = vunpack.i.l.bf16 %v1280_v43 }
  0xda   :  { %v1225_v49 = vmax.f32 %v1223_v33, %v1224_v41  ;;  %v2249_v53 = vsel %vm2518_vm2, %v1213_v45, %v2248_v37  ;;  %v1248_v56 = vrot.slane %v1247_v47, 2  ;;  %v1283_v60 = vunpack.i.h.bf16 %v1280_v43  ;;  %v162_v41 = vld [vmem:[%s4386_s0 + $0x99] sm:$0x1] }
  0xdb   :  { %v1236_v55 = vmax.f32 %v1234_v38, %v1235_v46  ;;  %v1260_v57 = vmax.f32 %v1258_v40, %v1259_v48  ;;  %2250 = vst [vmem:[%s4387_s1 + $0x3e] sm:$0x1] %v2249_v53  ;;  %v1271_v59 = vmax.f32 %v1269_v50, %v1270_v51  ;;  %v1293_v61 = vsel %vm393_vm0, %v334_v44, 4286644096  ;;  %v155_v50 = vld [vmem:[%s4386_s0 + $0x92] sm:$0x1] }
  0xdc   :  { %v1226_v58 = vpack.i.bf16 %v1225_v49, %v1225_v49  ;;  %v1249_v1 = vmax.f32 %v1247_v47, %v1248_v56  ;;  %v1295_v3 = vunpack.i.l.bf16 %v1293_v61  ;;  %v1284_v8 = vmax.f32 %v1282_v52, %v1283_v60  ;;  %v163_v51 = vld [vmem:[%s4386_s0 + $0x9a] sm:$0x1]  ;;  %v2263_v60 = vld [vmem:[%s4387_s1 + $0x43] sm:$0x1] }
  0xdd   :  { %v1237_v0 = vrot.slane %v1236_v55, 1  ;;  %v1261_v2 = vrot.slane %v1260_v57, 2  ;;  %v1272_v7 = vrot.slane %v1271_v59, 4  ;;  %v1296_v9 = vunpack.i.h.bf16 %v1293_v61 }
  0xde   :  { %v2252_v6 = vsel %vm2518_vm2, %v1226_v58, %v2251_v54  ;;  %v1250_v11 = vrot.slane %v1249_v1, 1  ;;  %v335_v13 = vmax.bf16 %v151_v63, %v143_v62  ;;  %v1285_v17 = vrot.slane %v1284_v8, 4 }
  0xdf   :  { %2253 = vst [vmem:[%s4387_s1 + $0x3f] sm:$0x1] %v2252_v6  ;;  %v1238_v10 = vmax.f32 %v1236_v55, %v1237_v0  ;;  %v1262_v12 = vmax.f32 %v1260_v57, %v1261_v2  ;;  %v1273_v16 = vmax.f32 %v1271_v59, %v1272_v7  ;;  %v1297_v18 = vmax.f32 %v1295_v3, %v1296_v9 }
  0xe0   :  { %v336_v19 = vmax.bf16 %v152_v5, %v144_v4  ;;  %v1251_v21 = vmax.f32 %v1249_v1, %v1250_v11  ;;  %v1306_v23 = vsel %vm393_vm0, %v335_v13, 4286644096  ;;  %v1286_v27 = vmax.f32 %v1284_v8, %v1285_v17  ;;  %v2266_v5 = vld [vmem:[%s4387_s1 + $0x44] sm:$0x1]  ;;  %v2269_v13 = vld [vmem:[%s4387_s1 + $0x45] sm:$0x1] }
  0xe1   :  { %v1239_v20 = vpack.i.bf16 %v1238_v10, %v1238_v10  ;;  %v1263_v22 = vrot.slane %v1262_v12, 1  ;;  %v1274_v26 = vrot.slane %v1273_v16, 2  ;;  %v1298_v28 = vrot.slane %v1297_v18, 4  ;;  %v164_v17 = vld [vmem:[%s4386_s0 + $0x9b] sm:$0x1] }
  0xe2   :  { %v1308_v29 = vunpack.i.l.bf16 %v1306_v23  ;;  %v1252_v31 = vpack.i.bf16 %v1251_v21, %v1251_v21  ;;  %v1309_v33 = vunpack.i.h.bf16 %v1306_v23  ;;  %v1287_v38 = vrot.slane %v1286_v27, 2  ;;  %v165_v23 = vld [vmem:[%s4386_s0 + $0x9c] sm:$0x1] }
  0xe3   :  { %v2255_v30 = vsel %vm2518_vm2, %v1239_v20, %v2254_v15  ;;  %v1264_v32 = vmax.f32 %v1262_v12, %v1263_v22  ;;  %v1275_v37 = vmax.f32 %v1273_v16, %v1274_v26  ;;  %v1299_v39 = vmax.f32 %v1297_v18, %v1298_v28  ;;  %v156_v16 = vld [vmem:[%s4386_s0 + $0x93] sm:$0x1]  ;;  %v157_v22 = vld [vmem:[%s4386_s0 + $0x94] sm:$0x1] }
  0xe4   :  { %2256 = vst [vmem:[%s4387_s1 + $0x40] sm:$0x1] %v2255_v30  ;;  %v1319_v40 = vsel %vm393_vm0, %v336_v19, 4286644096  ;;  %v2258_v42 = vsel %vm2518_vm2, %v1252_v31, %v2257_v24  ;;  %v1310_v44 = vmax.f32 %v1308_v29, %v1309_v33  ;;  %v1288_v47 = vmax.f32 %v1286_v27, %v1287_v38  ;;  %v166_v33 = vld [vmem:[%s4386_s0 + $0x9d] sm:$0x1] }
  0xe5   :  { %v1265_v43 = vpack.i.bf16 %v1264_v32, %v1264_v32  ;;  %v1321_v45 = vunpack.i.l.bf16 %v1319_v40  ;;  %2259 = vst [vmem:[%s4387_s1 + $0x41] sm:$0x1] %v2258_v42  ;;  %v1276_v46 = vrot.slane %v1275_v37, 1  ;;  %v1300_v48 = vrot.slane %v1299_v39, 2  ;;  %v158_v32 = vld [vmem:[%s4386_s0 + $0x95] sm:$0x1] }
  0xe6   :  { %v1322_v49 = vunpack.i.h.bf16 %v1319_v40  ;;  %v1311_v53 = vrot.slane %v1310_v44, 4  ;;  %v337_v54 = vmax.bf16 %v161_v35, %v153_v34  ;;  %v338_v55 = vmax.bf16 %v162_v41, %v154_v36 }
  0xe7   :  { %v2261_v52 = vsel %vm2518_vm2, %v1265_v43, %v2260_v25  ;;  %v1277_v56 = vmax.f32 %v1275_v37, %v1276_v46  ;;  %v1289_v57 = vrot.slane %v1288_v47, 1  ;;  %v1301_v58 = vmax.f32 %v1299_v39, %v1300_v48  ;;  %v2272_v39 = vld [vmem:[%s4387_s1 + $0x46] sm:$0x1] }
  0xe8   :  { %2262 = vst [vmem:[%s4387_s1 + $0x42] sm:$0x1] %v2261_v52  ;;  %v1323_v59 = vmax.f32 %v1321_v45, %v1322_v49  ;;  %v1312_v61 = vmax.f32 %v1310_v44, %v1311_v53  ;;  %v1332_v62 = vsel %vm393_vm0, %v337_v54, 4286644096  ;;  %v1345_v63 = vsel %vm393_vm0, %v338_v55, 4286644096 }
  0xe9   :  { %v339_v0 = vmax.bf16 %v163_v51, %v155_v50  ;;  %v1278_v1 = vpack.i.bf16 %v1277_v56, %v1277_v56  ;;  %v1290_v2 = vmax.f32 %v1288_v47, %v1289_v57  ;;  %v1302_v3 = vrot.slane %v1301_v58, 1  ;;  %v2275_v56 = vld [vmem:[%s4387_s1 + $0x47] sm:$0x1] }
  0xea   :  { %v1324_v4 = vrot.slane %v1323_v59, 4  ;;  %v1313_v6 = vrot.slane %v1312_v61, 2  ;;  %v1334_v7 = vunpack.i.l.bf16 %v1332_v62  ;;  %v1335_v8 = vunpack.i.h.bf16 %v1332_v62 }
  0xeb   :  { %v1347_v9 = vunpack.i.l.bf16 %v1345_v63  ;;  %v2264_v10 = vsel %vm2518_vm2, %v1278_v1, %v2263_v60  ;;  %v1291_v11 = vpack.i.bf16 %v1290_v2, %v1290_v2  ;;  %v1303_v12 = vmax.f32 %v1301_v58, %v1302_v3  ;;  %v167_v1 = vld [vmem:[%s4386_s0 + $0x9e] sm:$0x1] }
  0xec   :  { %v1325_v15 = vmax.f32 %v1323_v59, %v1324_v4  ;;  %2265 = vst [vmem:[%s4387_s1 + $0x43] sm:$0x1] %v2264_v10  ;;  %v1314_v18 = vmax.f32 %v1312_v61, %v1313_v6  ;;  %v1336_v19 = vmax.f32 %v1334_v7, %v1335_v8  ;;  %v1348_v20 = vunpack.i.h.bf16 %v1345_v63  ;;  %v160_v6 = vld [vmem:[%s4386_s0 + $0x97] sm:$0x1]  ;;  %v168_v7 = vld [vmem:[%s4386_s0 + $0x9f] sm:$0x1] }
  0xed   :  { %v1358_v21 = vsel %vm393_vm0, %v339_v0, 4286644096  ;;  %v2267_v24 = vsel %vm2518_vm2, %v1291_v11, %v2266_v5  ;;  %v1304_v25 = vpack.i.bf16 %v1303_v12, %v1303_v12  ;;  %v340_v36 = vmax.bf16 %v164_v17, %v156_v16  ;;  %v159_v0 = vld [vmem:[%s4386_s0 + $0x96] sm:$0x1]  ;;  %v2278_v17 = vld [vmem:[%s4387_s1 + $0x48] sm:$0x1] }
  0xee   :  { %v1326_v26 = vrot.slane %v1325_v15, 2  ;;  %v1360_v27 = vunpack.i.l.bf16 %v1358_v21  ;;  %2268 = vst [vmem:[%s4387_s1 + $0x44] sm:$0x1] %v2267_v24  ;;  %v1315_v28 = vrot.slane %v1314_v18, 1  ;;  %v1337_v29 = vrot.slane %v1336_v19, 4 }
  0xef   :  { %v1349_v30 = vmax.f32 %v1347_v9, %v1348_v20  ;;  %v1361_v31 = vunpack.i.h.bf16 %v1358_v21  ;;  %v2270_v34 = vsel %vm2518_vm2, %v1304_v25, %v2269_v13  ;;  %v341_v37 = vmax.bf16 %v165_v23, %v157_v22 }
  0xf0   :  { %v1327_v35 = vmax.f32 %v1325_v15, %v1326_v26  ;;  %2271 = vst [vmem:[%s4387_s1 + $0x45] sm:$0x1] %v2270_v34  ;;  %v1316_v38 = vmax.f32 %v1314_v18, %v1315_v28  ;;  %v1338_v40 = vmax.f32 %v1336_v19, %v1337_v29  ;;  %v1371_v44 = vsel %vm393_vm0, %v340_v36, 4286644096  ;;  %v2281_v26 = vld [vmem:[%s4387_s1 + $0x49] sm:$0x1] }
  0xf1   :  { %v1350_v41 = vrot.slane %v1349_v30, 4  ;;  %v1362_v42 = vmax.f32 %v1360_v27, %v1361_v31  ;;  %v1384_v45 = vsel %vm393_vm0, %v341_v37, 4286644096  ;;  %v342_v46 = vmax.bf16 %v166_v33, %v158_v32  ;;  %v169_v31 = vld [vmem:[%s4386_s0 + $0xa0] sm:$0x1] }
  0xf2   :  { %v1328_v43 = vrot.slane %v1327_v35, 1  ;;  %v1317_v47 = vpack.i.bf16 %v1316_v38, %v1316_v38  ;;  %v1339_v48 = vrot.slane %v1338_v40, 2  ;;  %v1373_v52 = vunpack.i.l.bf16 %v1371_v44  ;;  %v177_v37 = vld [vmem:[%s4386_s0 + $0xa8] sm:$0x1]  ;;  %v170_v38 = vld [vmem:[%s4386_s0 + $0xa1] sm:$0x1] }
  0xf3   :  { %v1351_v49 = vmax.f32 %v1349_v30, %v1350_v41  ;;  %v1363_v50 = vrot.slane %v1362_v42, 4  ;;  %v1374_v53 = vunpack.i.h.bf16 %v1371_v44  ;;  %v1386_v54 = vunpack.i.l.bf16 %v1384_v45 }
  0xf4   :  { %v1329_v51 = vmax.f32 %v1327_v35, %v1328_v43  ;;  %v2273_v55 = vsel %vm2518_vm2, %v1317_v47, %v2272_v39  ;;  %v1340_v57 = vmax.f32 %v1338_v40, %v1339_v48  ;;  %v1387_v62 = vunpack.i.h.bf16 %v1384_v45  ;;  %v2284_v35 = vld [vmem:[%s4387_s1 + $0x4a] sm:$0x1]  ;;  %v178_v43 = vld [vmem:[%s4386_s0 + $0xa9] sm:$0x1] }
  0xf5   :  { %v1352_v58 = vrot.slane %v1351_v49, 2  ;;  %v1364_v59 = vmax.f32 %v1362_v42, %v1363_v50  ;;  %2274 = vst [vmem:[%s4387_s1 + $0x46] sm:$0x1] %v2273_v55  ;;  %v1375_v61 = vmax.f32 %v1373_v52, %v1374_v53  ;;  %v1397_v63 = vsel %vm393_vm0, %v342_v46, 4286644096 }
  0xf6   :  { %v1330_v60 = vpack.i.bf16 %v1329_v51, %v1329_v51  ;;  %v1341_v2 = vrot.slane %v1340_v57, 1  ;;  %v1399_v5 = vunpack.i.l.bf16 %v1397_v63  ;;  %v1388_v10 = vmax.f32 %v1386_v54, %v1387_v62  ;;  %v171_v52 = vld [vmem:[%s4386_s0 + $0xa2] sm:$0x1]  ;;  %v179_v53 = vld [vmem:[%s4386_s0 + $0xaa] sm:$0x1] }
  0xf7   :  { %v1353_v3 = vmax.f32 %v1351_v49, %v1352_v58  ;;  %v1365_v4 = vrot.slane %v1364_v59, 2  ;;  %v1376_v9 = vrot.slane %v1375_v61, 4  ;;  %v1400_v11 = vunpack.i.h.bf16 %v1397_v63  ;;  %v2287_v62 = vld [vmem:[%s4387_s1 + $0x4b] sm:$0x1] }
  0xf8   :  { %v2276_v8 = vsel %vm2518_vm2, %v1330_v60, %v2275_v56  ;;  %v1342_v12 = vmax.f32 %v1340_v57, %v1341_v2  ;;  %v343_v16 = vmax.bf16 %v167_v1, %v159_v0  ;;  %v1389_v19 = vrot.slane %v1388_v10, 4 }
  0xf9   :  { %2277 = vst [vmem:[%s4387_s1 + $0x47] sm:$0x1] %v2276_v8  ;;  %v1354_v13 = vrot.slane %v1353_v3, 1  ;;  %v1366_v15 = vmax.f32 %v1364_v59, %v1365_v4  ;;  %v1377_v18 = vmax.f32 %v1375_v61, %v1376_v9  ;;  %v1401_v20 = vmax.f32 %v1399_v5, %v1400_v11 }
  0xfa   :  { %v344_v21 = vmax.bf16 %v168_v7, %v160_v6  ;;  %v1343_v22 = vpack.i.bf16 %v1342_v12, %v1342_v12  ;;  %v1410_v25 = vsel %vm393_vm0, %v343_v16, 4286644096  ;;  %v1390_v28 = vmax.f32 %v1388_v10, %v1389_v19  ;;  %v2290_v7 = vld [vmem:[%s4387_s1 + $0x4c] sm:$0x1]  ;;  %v2293_v16 = vld [vmem:[%s4387_s1 + $0x4d] sm:$0x1] }
  0xfb   :  { %v1355_v23 = vmax.f32 %v1353_v3, %v1354_v13  ;;  %v1367_v24 = vrot.slane %v1366_v15, 1  ;;  %v1378_v27 = vrot.slane %v1377_v18, 2  ;;  %v1402_v29 = vrot.slane %v1401_v20, 4  ;;  %v180_v19 = vld [vmem:[%s4386_s0 + $0xab] sm:$0x1] }
  0xfc   :  { %v1412_v30 = vunpack.i.l.bf16 %v1410_v25  ;;  %v2279_v32 = vsel %vm2518_vm2, %v1343_v22, %v2278_v17  ;;  %v1413_v36 = vunpack.i.h.bf16 %v1410_v25  ;;  %v1391_v40 = vrot.slane %v1390_v28, 2  ;;  %v181_v25 = vld [vmem:[%s4386_s0 + $0xac] sm:$0x1] }
  0xfd   :  { %v1356_v33 = vpack.i.bf16 %v1355_v23, %v1355_v23  ;;  %v1368_v34 = vmax.f32 %v1366_v15, %v1367_v24  ;;  %2280 = vst [vmem:[%s4387_s1 + $0x48] sm:$0x1] %v2279_v32  ;;  %v1379_v39 = vmax.f32 %v1377_v18, %v1378_v27  ;;  %v1403_v41 = vmax.f32 %v1401_v20, %v1402_v29  ;;  %v172_v18 = vld [vmem:[%s4386_s0 + $0xa3] sm:$0x1]  ;;  %v173_v24 = vld [vmem:[%s4386_s0 + $0xa4] sm:$0x1] }
  0xfe   :  { %v1423_v42 = vsel %vm393_vm0, %v344_v21, 4286644096  ;;  %v1414_v46 = vmax.f32 %v1412_v30, %v1413_v36  ;;  %v1392_v49 = vmax.f32 %v1390_v28, %v1391_v40  ;;  %v345_v56 = vmax.bf16 %v177_v37, %v169_v31 }
  0xff   :  { %v2282_v44 = vsel %vm2518_vm2, %v1356_v33, %v2281_v26  ;;  %v1369_v45 = vpack.i.bf16 %v1368_v34, %v1368_v34  ;;  %v1425_v47 = vunpack.i.l.bf16 %v1423_v42  ;;  %v1380_v48 = vrot.slane %v1379_v39, 1  ;;  %v174_v34 = vld [vmem:[%s4386_s0 + $0xa5] sm:$0x1] }
 0x100   :  { %2283 = vst [vmem:[%s4387_s1 + $0x49] sm:$0x1] %v2282_v44  ;;  %v1404_v50 = vrot.slane %v1403_v41, 2  ;;  %v1426_v51 = vunpack.i.h.bf16 %v1423_v42  ;;  %v1415_v55 = vrot.slane %v1414_v46, 4  ;;  %v346_v57 = vmax.bf16 %v178_v43, %v170_v38 }
 0x101   :  { %v2285_v54 = vsel %vm2518_vm2, %v1369_v45, %v2284_v35  ;;  %v1381_v58 = vmax.f32 %v1379_v39, %v1380_v48  ;;  %v1393_v59 = vrot.slane %v1392_v49, 1  ;;  %v1436_v0 = vsel %vm393_vm0, %v345_v56, 4286644096  ;;  %v182_v35 = vld [vmem:[%s4386_s0 + $0xad] sm:$0x1] }
 0x102   :  { %2286 = vst [vmem:[%s4387_s1 + $0x4a] sm:$0x1] %v2285_v54  ;;  %v1405_v60 = vmax.f32 %v1403_v41, %v1404_v50  ;;  %v1427_v61 = vmax.f32 %v1425_v47, %v1426_v51  ;;  %v1416_v63 = vmax.f32 %v1414_v46, %v1415_v55  ;;  %v1449_v1 = vsel %vm393_vm0, %v346_v57, 4286644096  ;;  %v2296_v41 = vld [vmem:[%s4387_s1 + $0x4e] sm:$0x1] }
 0x103   :  { %v347_v2 = vmax.bf16 %v179_v53, %v171_v52  ;;  %v1382_v3 = vpack.i.bf16 %v1381_v58, %v1381_v58  ;;  %v1394_v4 = vmax.f32 %v1392_v49, %v1393_v59  ;;  %v1438_v9 = vunpack.i.l.bf16 %v1436_v0  ;;  %v2299_v58 = vld [vmem:[%s4387_s1 + $0x4f] sm:$0x1] }
 0x104   :  { %v1406_v5 = vrot.slane %v1405_v60, 1  ;;  %v1428_v6 = vrot.slane %v1427_v61, 4  ;;  %v1417_v8 = vrot.slane %v1416_v63, 2  ;;  %v1439_v10 = vunpack.i.h.bf16 %v1436_v0 }
 0x105   :  { %v1451_v11 = vunpack.i.l.bf16 %v1449_v1  ;;  %v2288_v12 = vsel %vm2518_vm2, %v1382_v3, %v2287_v62  ;;  %v1395_v13 = vpack.i.bf16 %v1394_v4, %v1394_v4  ;;  %v1452_v22 = vunpack.i.h.bf16 %v1449_v1  ;;  %v183_v3 = vld [vmem:[%s4386_s0 + $0xae] sm:$0x1] }
 0x106   :  { %v1407_v15 = vmax.f32 %v1405_v60, %v1406_v5  ;;  %v1429_v17 = vmax.f32 %v1427_v61, %v1428_v6  ;;  %2289 = vst [vmem:[%s4387_s1 + $0x4b] sm:$0x1] %v2288_v12  ;;  %v1418_v20 = vmax.f32 %v1416_v63, %v1417_v8  ;;  %v1440_v21 = vmax.f32 %v1438_v9, %v1439_v10  ;;  %v176_v8 = vld [vmem:[%s4386_s0 + $0xa7] sm:$0x1]  ;;  %v184_v9 = vld [vmem:[%s4386_s0 + $0xaf] sm:$0x1] }
 0x107   :  { %v1462_v23 = vsel %vm393_vm0, %v347_v2, 4286644096  ;;  %v2291_v26 = vsel %vm2518_vm2, %v1395_v13, %v2290_v7  ;;  %v1453_v32 = vmax.f32 %v1451_v11, %v1452_v22  ;;  %v348_v38 = vmax.bf16 %v180_v19, %v172_v18  ;;  %v175_v2 = vld [vmem:[%s4386_s0 + $0xa6] sm:$0x1]  ;;  %v2302_v19 = vld [vmem:[%s4387_s1 + $0x50] sm:$0x1] }
 0x108   :  { %v1408_v27 = vpack.i.bf16 %v1407_v15, %v1407_v15  ;;  %v1430_v28 = vrot.slane %v1429_v17, 2  ;;  %v1464_v29 = vunpack.i.l.bf16 %v1462_v23  ;;  %2292 = vst [vmem:[%s4387_s1 + $0x4c] sm:$0x1] %v2291_v26  ;;  %v1419_v30 = vrot.slane %v1418_v20, 1 }
 0x109   :  { %v1441_v31 = vrot.slane %v1440_v21, 4  ;;  %v1465_v33 = vunpack.i.h.bf16 %v1462_v23  ;;  %v349_v39 = vmax.bf16 %v181_v25, %v173_v24  ;;  %v1454_v43 = vrot.slane %v1453_v32, 4 }
 0x10a   :  { %v2294_v36 = vsel %vm2518_vm2, %v1408_v27, %v2293_v16  ;;  %v1431_v37 = vmax.f32 %v1429_v17, %v1430_v28  ;;  %v1420_v40 = vmax.f32 %v1418_v20, %v1419_v30  ;;  %v1475_v46 = vsel %vm393_vm0, %v348_v38, 4286644096  ;;  %v2305_v28 = vld [vmem:[%s4387_s1 + $0x51] sm:$0x1] }
 0x10b   :  { %2295 = vst [vmem:[%s4387_s1 + $0x4d] sm:$0x1] %v2294_v36  ;;  %v1442_v42 = vmax.f32 %v1440_v21, %v1441_v31  ;;  %v1466_v44 = vmax.f32 %v1464_v29, %v1465_v33  ;;  %v1488_v47 = vsel %vm393_vm0, %v349_v39, 4286644096  ;;  %v350_v48 = vmax.bf16 %v182_v35, %v174_v34  ;;  %v185_v33 = vld [vmem:[%s4386_s0 + $0xb0] sm:$0x1] }
 0x10c   :  { %v1432_v45 = vrot.slane %v1431_v37, 1  ;;  %v1421_v49 = vpack.i.bf16 %v1420_v40, %v1420_v40  ;;  %v1455_v51 = vmax.f32 %v1453_v32, %v1454_v43  ;;  %v1477_v54 = vunpack.i.l.bf16 %v1475_v46  ;;  %v193_v39 = vld [vmem:[%s4386_s0 + $0xb8] sm:$0x1]  ;;  %v186_v40 = vld [vmem:[%s4386_s0 + $0xb1] sm:$0x1] }
 0x10d   :  { %v1443_v50 = vrot.slane %v1442_v42, 2  ;;  %v1467_v52 = vrot.slane %v1466_v44, 4  ;;  %v1478_v55 = vunpack.i.h.bf16 %v1475_v46  ;;  %v1490_v56 = vunpack.i.l.bf16 %v1488_v47 }
 0x10e   :  { %v1433_v53 = vmax.f32 %v1431_v37, %v1432_v45  ;;  %v2297_v57 = vsel %vm2518_vm2, %v1421_v49, %v2296_v41  ;;  %v1456_v60 = vrot.slane %v1455_v51, 2  ;;  %v1491_v0 = vunpack.i.h.bf16 %v1488_v47  ;;  %v2308_v37 = vld [vmem:[%s4387_s1 + $0x52] sm:$0x1]  ;;  %v194_v45 = vld [vmem:[%s4386_s0 + $0xb9] sm:$0x1] }
 0x10f   :  { %v1444_v59 = vmax.f32 %v1442_v42, %v1443_v50  ;;  %v1468_v61 = vmax.f32 %v1466_v44, %v1467_v52  ;;  %2298 = vst [vmem:[%s4387_s1 + $0x4e] sm:$0x1] %v2297_v57  ;;  %v1479_v63 = vmax.f32 %v1477_v54, %v1478_v55  ;;  %v1501_v1 = vsel %vm393_vm0, %v350_v48, 4286644096  ;;  %v187_v54 = vld [vmem:[%s4386_s0 + $0xb2] sm:$0x1] }
 0x110   :  { %v1434_v62 = vpack.i.bf16 %v1433_v53, %v1433_v53  ;;  %v1457_v5 = vmax.f32 %v1455_v51, %v1456_v60  ;;  %v1503_v7 = vunpack.i.l.bf16 %v1501_v1  ;;  %v1492_v12 = vmax.f32 %v1490_v56, %v1491_v0  ;;  %v195_v55 = vld [vmem:[%s4386_s0 + $0xba] sm:$0x1]  ;;  %v2311_v0 = vld [vmem:[%s4387_s1 + $0x53] sm:$0x1] }
 0x111   :  { %v1445_v4 = vrot.slane %v1444_v59, 1  ;;  %v1469_v6 = vrot.slane %v1468_v61, 2  ;;  %v1480_v11 = vrot.slane %v1479_v63, 4  ;;  %v1504_v13 = vunpack.i.h.bf16 %v1501_v1 }
 0x112   :  { %v2300_v10 = vsel %vm2518_vm2, %v1434_v62, %v2299_v58  ;;  %v1458_v16 = vrot.slane %v1457_v5, 1  ;;  %v351_v18 = vmax.bf16 %v183_v3, %v175_v2  ;;  %v1493_v21 = vrot.slane %v1492_v12, 4 }
 0x113   :  { %2301 = vst [vmem:[%s4387_s1 + $0x4f] sm:$0x1] %v2300_v10  ;;  %v1446_v15 = vmax.f32 %v1444_v59, %v1445_v4  ;;  %v1470_v17 = vmax.f32 %v1468_v61, %v1469_v6  ;;  %v1481_v20 = vmax.f32 %v1479_v63, %v1480_v11  ;;  %v1505_v22 = vmax.f32 %v1503_v7, %v1504_v13 }
 0x114   :  { %v352_v23 = vmax.bf16 %v184_v9, %v176_v8  ;;  %v1459_v25 = vmax.f32 %v1457_v5, %v1458_v16  ;;  %v1514_v27 = vsel %vm393_vm0, %v351_v18, 4286644096  ;;  %v1494_v30 = vmax.f32 %v1492_v12, %v1493_v21  ;;  %v2314_v9 = vld [vmem:[%s4387_s1 + $0x54] sm:$0x1]  ;;  %v2317_v18 = vld [vmem:[%s4387_s1 + $0x55] sm:$0x1] }
 0x115   :  { %v1447_v24 = vpack.i.bf16 %v1446_v15, %v1446_v15  ;;  %v1471_v26 = vrot.slane %v1470_v17, 1  ;;  %v1482_v29 = vrot.slane %v1481_v20, 2  ;;  %v1506_v31 = vrot.slane %v1505_v22, 4  ;;  %v196_v21 = vld [vmem:[%s4386_s0 + $0xbb] sm:$0x1] }
 0x116   :  { %v1516_v32 = vunpack.i.l.bf16 %v1514_v27  ;;  %v1460_v35 = vpack.i.bf16 %v1459_v25, %v1459_v25  ;;  %v1517_v38 = vunpack.i.h.bf16 %v1514_v27  ;;  %v1495_v42 = vrot.slane %v1494_v30, 2  ;;  %v197_v27 = vld [vmem:[%s4386_s0 + $0xbc] sm:$0x1] }
 0x117   :  { %v2303_v34 = vsel %vm2518_vm2, %v1447_v24, %v2302_v19  ;;  %v1472_v36 = vmax.f32 %v1470_v17, %v1471_v26  ;;  %v1483_v41 = vmax.f32 %v1481_v20, %v1482_v29  ;;  %v1507_v43 = vmax.f32 %v1505_v22, %v1506_v31  ;;  %v188_v20 = vld [vmem:[%s4386_s0 + $0xb3] sm:$0x1]  ;;  %v189_v26 = vld [vmem:[%s4386_s0 + $0xb4] sm:$0x1] }
 0x118   :  { %2304 = vst [vmem:[%s4387_s1 + $0x50] sm:$0x1] %v2303_v34  ;;  %v1527_v44 = vsel %vm393_vm0, %v352_v23, 4286644096  ;;  %v2306_v46 = vsel %vm2518_vm2, %v1460_v35, %v2305_v28  ;;  %v1518_v48 = vmax.f32 %v1516_v32, %v1517_v38  ;;  %v1496_v51 = vmax.f32 %v1494_v30, %v1495_v42 }
 0x119   :  { %v1473_v47 = vpack.i.bf16 %v1472_v36, %v1472_v36  ;;  %v1529_v49 = vunpack.i.l.bf16 %v1527_v44  ;;  %2307 = vst [vmem:[%s4387_s1 + $0x51] sm:$0x1] %v2306_v46  ;;  %v1484_v50 = vrot.slane %v1483_v41, 1  ;;  %v1508_v52 = vrot.slane %v1507_v43, 2  ;;  %v190_v36 = vld [vmem:[%s4386_s0 + $0xb5] sm:$0x1] }
 0x11a   :  { %v1530_v53 = vunpack.i.h.bf16 %v1527_v44  ;;  %v1519_v57 = vrot.slane %v1518_v48, 4  ;;  %v353_v58 = vmax.bf16 %v193_v39, %v185_v33  ;;  %v354_v59 = vmax.bf16 %v194_v45, %v186_v40 }
 0x11b   :  { %v2309_v56 = vsel %vm2518_vm2, %v1473_v47, %v2308_v37  ;;  %v1485_v60 = vmax.f32 %v1483_v41, %v1484_v50  ;;  %v1497_v61 = vrot.slane %v1496_v51, 1  ;;  %v1509_v62 = vmax.f32 %v1507_v43, %v1508_v52  ;;  %v198_v37 = vld [vmem:[%s4386_s0 + $0xbd] sm:$0x1]  ;;  %v2320_v43 = vld [vmem:[%s4387_s1 + $0x56] sm:$0x1] }
 0x11c   :  { %2310 = vst [vmem:[%s4387_s1 + $0x52] sm:$0x1] %v2309_v56  ;;  %v1531_v63 = vmax.f32 %v1529_v49, %v1530_v53  ;;  %v1520_v1 = vmax.f32 %v1518_v48, %v1519_v57  ;;  %v1540_v2 = vsel %vm393_vm0, %v353_v58, 4286644096  ;;  %v1553_v3 = vsel %vm393_vm0, %v354_v59, 4286644096 }
 0x11d   :  { %v355_v4 = vmax.bf16 %v195_v55, %v187_v54  ;;  %v1486_v5 = vpack.i.bf16 %v1485_v60, %v1485_v60  ;;  %v1498_v6 = vmax.f32 %v1496_v51, %v1497_v61  ;;  %v1510_v7 = vrot.slane %v1509_v62, 1  ;;  %v2323_v60 = vld [vmem:[%s4387_s1 + $0x57] sm:$0x1] }
 0x11e   :  { %v1532_v8 = vrot.slane %v1531_v63, 4  ;;  %v1521_v10 = vrot.slane %v1520_v1, 2  ;;  %v1542_v11 = vunpack.i.l.bf16 %v1540_v2  ;;  %v1543_v12 = vunpack.i.h.bf16 %v1540_v2 }
 0x11f   :  { %v1555_v13 = vunpack.i.l.bf16 %v1553_v3  ;;  %v2312_v15 = vsel %vm2518_vm2, %v1486_v5, %v2311_v0  ;;  %v1499_v16 = vpack.i.bf16 %v1498_v6, %v1498_v6  ;;  %v1511_v17 = vmax.f32 %v1509_v62, %v1510_v7  ;;  %v199_v5 = vld [vmem:[%s4386_s0 + $0xbe] sm:$0x1] }
 0x120   :  { %v1533_v19 = vmax.f32 %v1531_v63, %v1532_v8  ;;  %2313 = vst [vmem:[%s4387_s1 + $0x53] sm:$0x1] %v2312_v15  ;;  %v1522_v22 = vmax.f32 %v1520_v1, %v1521_v10  ;;  %v1544_v23 = vmax.f32 %v1542_v11, %v1543_v12  ;;  %v1556_v24 = vunpack.i.h.bf16 %v1553_v3  ;;  %v192_v10 = vld [vmem:[%s4386_s0 + $0xb7] sm:$0x1]  ;;  %v200_v11 = vld [vmem:[%s4386_s0 + $0xbf] sm:$0x1] }
 0x121   :  { %v1566_v25 = vsel %vm393_vm0, %v355_v4, 4286644096  ;;  %v2315_v28 = vsel %vm2518_vm2, %v1499_v16, %v2314_v9  ;;  %v1512_v29 = vpack.i.bf16 %v1511_v17, %v1511_v17  ;;  %v356_v40 = vmax.bf16 %v196_v21, %v188_v20  ;;  %v191_v4 = vld [vmem:[%s4386_s0 + $0xb6] sm:$0x1]  ;;  %v2326_v21 = vld [vmem:[%s4387_s1 + $0x58] sm:$0x1] }
 0x122   :  { %v1534_v30 = vrot.slane %v1533_v19, 2  ;;  %v1568_v31 = vunpack.i.l.bf16 %v1566_v25  ;;  %2316 = vst [vmem:[%s4387_s1 + $0x54] sm:$0x1] %v2315_v28  ;;  %v1523_v32 = vrot.slane %v1522_v22, 1  ;;  %v1545_v33 = vrot.slane %v1544_v23, 4 }
 0x123   :  { %v1557_v34 = vmax.f32 %v1555_v13, %v1556_v24  ;;  %v1569_v35 = vunpack.i.h.bf16 %v1566_v25  ;;  %v2318_v38 = vsel %vm2518_vm2, %v1512_v29, %v2317_v18  ;;  %v357_v41 = vmax.bf16 %v197_v27, %v189_v26 }
 0x124   :  { %v1535_v39 = vmax.f32 %v1533_v19, %v1534_v30  ;;  %2319 = vst [vmem:[%s4387_s1 + $0x55] sm:$0x1] %v2318_v38  ;;  %v1524_v42 = vmax.f32 %v1522_v22, %v1523_v32  ;;  %v1546_v44 = vmax.f32 %v1544_v23, %v1545_v33  ;;  %v1579_v48 = vsel %vm393_vm0, %v356_v40, 4286644096  ;;  %v2329_v30 = vld [vmem:[%s4387_s1 + $0x59] sm:$0x1] }
 0x125   :  { %v1558_v45 = vrot.slane %v1557_v34, 4  ;;  %v1570_v46 = vmax.f32 %v1568_v31, %v1569_v35  ;;  %v1592_v49 = vsel %vm393_vm0, %v357_v41, 4286644096  ;;  %v358_v50 = vmax.bf16 %v198_v37, %v190_v36  ;;  %v201_v35 = vld [vmem:[%s4386_s0 + $0xc0] sm:$0x1] }
 0x126   :  { %v1536_v47 = vrot.slane %v1535_v39, 1  ;;  %v1525_v51 = vpack.i.bf16 %v1524_v42, %v1524_v42  ;;  %v1547_v52 = vrot.slane %v1546_v44, 2  ;;  %v1581_v56 = vunpack.i.l.bf16 %v1579_v48  ;;  %v209_v41 = vld [vmem:[%s4386_s0 + $0xc8] sm:$0x1]  ;;  %v202_v42 = vld [vmem:[%s4386_s0 + $0xc1] sm:$0x1] }
 0x127   :  { %v1559_v53 = vmax.f32 %v1557_v34, %v1558_v45  ;;  %v1571_v54 = vrot.slane %v1570_v46, 4  ;;  %v1582_v57 = vunpack.i.h.bf16 %v1579_v48  ;;  %v1594_v58 = vunpack.i.l.bf16 %v1592_v49 }
 0x128   :  { %v1537_v55 = vmax.f32 %v1535_v39, %v1536_v47  ;;  %v2321_v59 = vsel %vm2518_vm2, %v1525_v51, %v2320_v43  ;;  %v1548_v61 = vmax.f32 %v1546_v44, %v1547_v52  ;;  %v1595_v2 = vunpack.i.h.bf16 %v1592_v49  ;;  %v2332_v39 = vld [vmem:[%s4387_s1 + $0x5a] sm:$0x1]  ;;  %v210_v47 = vld [vmem:[%s4386_s0 + $0xc9] sm:$0x1] }
 0x129   :  { %v1560_v62 = vrot.slane %v1559_v53, 2  ;;  %v1572_v63 = vmax.f32 %v1570_v46, %v1571_v54  ;;  %2322 = vst [vmem:[%s4387_s1 + $0x56] sm:$0x1] %v2321_v59  ;;  %v1583_v1 = vmax.f32 %v1581_v56, %v1582_v57  ;;  %v1605_v3 = vsel %vm393_vm0, %v358_v50, 4286644096 }
 0x12a   :  { %v1538_v0 = vpack.i.bf16 %v1537_v55, %v1537_v55  ;;  %v1549_v6 = vrot.slane %v1548_v61, 1  ;;  %v1607_v9 = vunpack.i.l.bf16 %v1605_v3  ;;  %v1596_v15 = vmax.f32 %v1594_v58, %v1595_v2  ;;  %v203_v56 = vld [vmem:[%s4386_s0 + $0xc2] sm:$0x1]  ;;  %v211_v57 = vld [vmem:[%s4386_s0 + $0xca] sm:$0x1] }
 0x12b   :  { %v1561_v7 = vmax.f32 %v1559_v53, %v1560_v62  ;;  %v1573_v8 = vrot.slane %v1572_v63, 2  ;;  %v1584_v13 = vrot.slane %v1583_v1, 4  ;;  %v1608_v16 = vunpack.i.h.bf16 %v1605_v3  ;;  %v2335_v2 = vld [vmem:[%s4387_s1 + $0x5b] sm:$0x1] }
 0x12c   :  { %v2324_v12 = vsel %vm2518_vm2, %v1538_v0, %v2323_v60  ;;  %v1550_v17 = vmax.f32 %v1548_v61, %v1549_v6  ;;  %v359_v20 = vmax.bf16 %v199_v5, %v191_v4  ;;  %v1597_v23 = vrot.slane %v1596_v15, 4 }
 0x12d   :  { %2325 = vst [vmem:[%s4387_s1 + $0x57] sm:$0x1] %v2324_v12  ;;  %v1562_v18 = vrot.slane %v1561_v7, 1  ;;  %v1574_v19 = vmax.f32 %v1572_v63, %v1573_v8  ;;  %v1585_v22 = vmax.f32 %v1583_v1, %v1584_v13  ;;  %v1609_v24 = vmax.f32 %v1607_v9, %v1608_v16 }
 0x12e   :  { %v360_v25 = vmax.bf16 %v200_v11, %v192_v10  ;;  %v1551_v26 = vpack.i.bf16 %v1550_v17, %v1550_v17  ;;  %v1618_v29 = vsel %vm393_vm0, %v359_v20, 4286644096  ;;  %v1598_v32 = vmax.f32 %v1596_v15, %v1597_v23  ;;  %v2338_v11 = vld [vmem:[%s4387_s1 + $0x5c] sm:$0x1]  ;;  %v2341_v20 = vld [vmem:[%s4387_s1 + $0x5d] sm:$0x1] }
 0x12f   :  { %v1563_v27 = vmax.f32 %v1561_v7, %v1562_v18  ;;  %v1575_v28 = vrot.slane %v1574_v19, 1  ;;  %v1586_v31 = vrot.slane %v1585_v22, 2  ;;  %v1610_v33 = vrot.slane %v1609_v24, 4  ;;  %v212_v23 = vld [vmem:[%s4386_s0 + $0xcb] sm:$0x1] }
 0x130   :  { %v1620_v34 = vunpack.i.l.bf16 %v1618_v29  ;;  %v2327_v36 = vsel %vm2518_vm2, %v1551_v26, %v2326_v21  ;;  %v1621_v40 = vunpack.i.h.bf16 %v1618_v29  ;;  %v1599_v44 = vrot.slane %v1598_v32, 2  ;;  %v213_v29 = vld [vmem:[%s4386_s0 + $0xcc] sm:$0x1] }
 0x131   :  { %v1564_v37 = vpack.i.bf16 %v1563_v27, %v1563_v27  ;;  %v1576_v38 = vmax.f32 %v1574_v19, %v1575_v28  ;;  %2328 = vst [vmem:[%s4387_s1 + $0x58] sm:$0x1] %v2327_v36  ;;  %v1587_v43 = vmax.f32 %v1585_v22, %v1586_v31  ;;  %v1611_v45 = vmax.f32 %v1609_v24, %v1610_v33  ;;  %v204_v22 = vld [vmem:[%s4386_s0 + $0xc3] sm:$0x1]  ;;  %v205_v28 = vld [vmem:[%s4386_s0 + $0xc4] sm:$0x1] }
 0x132   :  { %v1631_v46 = vsel %vm393_vm0, %v360_v25, 4286644096  ;;  %v1622_v50 = vmax.f32 %v1620_v34, %v1621_v40  ;;  %v1600_v53 = vmax.f32 %v1598_v32, %v1599_v44  ;;  %v361_v60 = vmax.bf16 %v209_v41, %v201_v35 }
 0x133   :  { %v2330_v48 = vsel %vm2518_vm2, %v1564_v37, %v2329_v30  ;;  %v1577_v49 = vpack.i.bf16 %v1576_v38, %v1576_v38  ;;  %v1633_v51 = vunpack.i.l.bf16 %v1631_v46  ;;  %v1588_v52 = vrot.slane %v1587_v43, 1  ;;  %v206_v38 = vld [vmem:[%s4386_s0 + $0xc5] sm:$0x1] }
 0x134   :  { %2331 = vst [vmem:[%s4387_s1 + $0x59] sm:$0x1] %v2330_v48  ;;  %v1612_v54 = vrot.slane %v1611_v45, 2  ;;  %v1634_v55 = vunpack.i.h.bf16 %v1631_v46  ;;  %v1623_v59 = vrot.slane %v1622_v50, 4  ;;  %v362_v61 = vmax.bf16 %v210_v47, %v202_v42 }
 0x135   :  { %v2333_v58 = vsel %vm2518_vm2, %v1577_v49, %v2332_v39  ;;  %v1589_v62 = vmax.f32 %v1587_v43, %v1588_v52  ;;  %v1601_v63 = vrot.slane %v1600_v53, 1  ;;  %v1644_v4 = vsel %vm393_vm0, %v361_v60, 4286644096  ;;  %v214_v39 = vld [vmem:[%s4386_s0 + $0xcd] sm:$0x1] }
 0x136   :  { %2334 = vst [vmem:[%s4387_s1 + $0x5a] sm:$0x1] %v2333_v58  ;;  %v1613_v0 = vmax.f32 %v1611_v45, %v1612_v54  ;;  %v1635_v1 = vmax.f32 %v1633_v51, %v1634_v55  ;;  %v1624_v3 = vmax.f32 %v1622_v50, %v1623_v59  ;;  %v1657_v5 = vsel %vm393_vm0, %v362_v61, 4286644096  ;;  %v2344_v45 = vld [vmem:[%s4387_s1 + $0x5e] sm:$0x1] }
 0x137   :  { %v363_v6 = vmax.bf16 %v211_v57, %v203_v56  ;;  %v1590_v7 = vpack.i.bf16 %v1589_v62, %v1589_v62  ;;  %v1602_v8 = vmax.f32 %v1600_v53, %v1601_v63  ;;  %v1646_v13 = vunpack.i.l.bf16 %v1644_v4  ;;  %v2347_v62 = vld [vmem:[%s4387_s1 + $0x5f] sm:$0x1] }
 0x138   :  { %v1614_v9 = vrot.slane %v1613_v0, 1  ;;  %v1636_v10 = vrot.slane %v1635_v1, 4  ;;  %v1625_v12 = vrot.slane %v1624_v3, 2  ;;  %v1647_v15 = vunpack.i.h.bf16 %v1644_v4 }
 0x139   :  { %v1659_v16 = vunpack.i.l.bf16 %v1657_v5  ;;  %v2336_v17 = vsel %vm2518_vm2, %v1590_v7, %v2335_v2  ;;  %v1603_v18 = vpack.i.bf16 %v1602_v8, %v1602_v8  ;;  %v1660_v26 = vunpack.i.h.bf16 %v1657_v5  ;;  %v215_v7 = vld [vmem:[%s4386_s0 + $0xce] sm:$0x1] }
 0x13a   :  { %v1615_v19 = vmax.f32 %v1613_v0, %v1614_v9  ;;  %v1637_v21 = vmax.f32 %v1635_v1, %v1636_v10  ;;  %2337 = vst [vmem:[%s4387_s1 + $0x5b] sm:$0x1] %v2336_v17  ;;  %v1626_v24 = vmax.f32 %v1624_v3, %v1625_v12  ;;  %v1648_v25 = vmax.f32 %v1646_v13, %v1647_v15  ;;  %v208_v12 = vld [vmem:[%s4386_s0 + $0xc7] sm:$0x1]  ;;  %v216_v13 = vld [vmem:[%s4386_s0 + $0xcf] sm:$0x1] }
 0x13b   :  { %v1670_v27 = vsel %vm393_vm0, %v363_v6, 4286644096  ;;  %v2339_v30 = vsel %vm2518_vm2, %v1603_v18, %v2338_v11  ;;  %v1661_v36 = vmax.f32 %v1659_v16, %v1660_v26  ;;  %v364_v42 = vmax.bf16 %v212_v23, %v204_v22  ;;  %v207_v6 = vld [vmem:[%s4386_s0 + $0xc6] sm:$0x1]  ;;  %v2350_v23 = vld [vmem:[%s4387_s1 + $0x60] sm:$0x1] }
 0x13c   :  { %v1616_v31 = vpack.i.bf16 %v1615_v19, %v1615_v19  ;;  %v1638_v32 = vrot.slane %v1637_v21, 2  ;;  %v1672_v33 = vunpack.i.l.bf16 %v1670_v27  ;;  %2340 = vst [vmem:[%s4387_s1 + $0x5c] sm:$0x1] %v2339_v30  ;;  %v1627_v34 = vrot.slane %v1626_v24, 1 }
 0x13d   :  { %v1649_v35 = vrot.slane %v1648_v25, 4  ;;  %v1673_v37 = vunpack.i.h.bf16 %v1670_v27  ;;  %v365_v43 = vmax.bf16 %v213_v29, %v205_v28  ;;  %v1662_v47 = vrot.slane %v1661_v36, 4 }
 0x13e   :  { %v2342_v40 = vsel %vm2518_vm2, %v1616_v31, %v2341_v20  ;;  %v1639_v41 = vmax.f32 %v1637_v21, %v1638_v32  ;;  %v1628_v44 = vmax.f32 %v1626_v24, %v1627_v34  ;;  %v1683_v50 = vsel %vm393_vm0, %v364_v42, 4286644096  ;;  %v2353_v32 = vld [vmem:[%s4387_s1 + $0x61] sm:$0x1] }
 0x13f   :  { %2343 = vst [vmem:[%s4387_s1 + $0x5d] sm:$0x1] %v2342_v40  ;;  %v1650_v46 = vmax.f32 %v1648_v25, %v1649_v35  ;;  %v1674_v48 = vmax.f32 %v1672_v33, %v1673_v37  ;;  %v1696_v51 = vsel %vm393_vm0, %v365_v43, 4286644096  ;;  %v366_v52 = vmax.bf16 %v214_v39, %v206_v38  ;;  %v217_v37 = vld [vmem:[%s4386_s0 + $0xd0] sm:$0x1] }
 0x140   :  { %v1640_v49 = vrot.slane %v1639_v41, 1  ;;  %v1629_v53 = vpack.i.bf16 %v1628_v44, %v1628_v44  ;;  %v1663_v55 = vmax.f32 %v1661_v36, %v1662_v47  ;;  %v1685_v58 = vunpack.i.l.bf16 %v1683_v50  ;;  %v225_v43 = vld [vmem:[%s4386_s0 + $0xd8] sm:$0x1]  ;;  %v218_v44 = vld [vmem:[%s4386_s0 + $0xd1] sm:$0x1] }
 0x141   :  { %v1651_v54 = vrot.slane %v1650_v46, 2  ;;  %v1675_v56 = vrot.slane %v1674_v48, 4  ;;  %v1686_v59 = vunpack.i.h.bf16 %v1683_v50  ;;  %v1698_v60 = vunpack.i.l.bf16 %v1696_v51 }
 0x142   :  { %v1641_v57 = vmax.f32 %v1639_v41, %v1640_v49  ;;  %v2345_v61 = vsel %vm2518_vm2, %v1629_v53, %v2344_v45  ;;  %v1664_v0 = vrot.slane %v1663_v55, 2  ;;  %v1699_v4 = vunpack.i.h.bf16 %v1696_v51  ;;  %v2356_v41 = vld [vmem:[%s4387_s1 + $0x62] sm:$0x1]  ;;  %v226_v49 = vld [vmem:[%s4386_s0 + $0xd9] sm:$0x1] }
 0x143   :  { %v1652_v63 = vmax.f32 %v1650_v46, %v1651_v54  ;;  %v1676_v1 = vmax.f32 %v1674_v48, %v1675_v56  ;;  %2346 = vst [vmem:[%s4387_s1 + $0x5e] sm:$0x1] %v2345_v61  ;;  %v1687_v3 = vmax.f32 %v1685_v58, %v1686_v59  ;;  %v1709_v5 = vsel %vm393_vm0, %v366_v52, 4286644096  ;;  %v219_v58 = vld [vmem:[%s4386_s0 + $0xd2] sm:$0x1] }
 0x144   :  { %v1642_v2 = vpack.i.bf16 %v1641_v57, %v1641_v57  ;;  %v1665_v9 = vmax.f32 %v1663_v55, %v1664_v0  ;;  %v1711_v11 = vunpack.i.l.bf16 %v1709_v5  ;;  %v1700_v17 = vmax.f32 %v1698_v60, %v1699_v4  ;;  %v227_v59 = vld [vmem:[%s4386_s0 + $0xda] sm:$0x1]  ;;  %v2359_v4 = vld [vmem:[%s4387_s1 + $0x63] sm:$0x1] }
 0x145   :  { %v1653_v8 = vrot.slane %v1652_v63, 1  ;;  %v1677_v10 = vrot.slane %v1676_v1, 2  ;;  %v1688_v16 = vrot.slane %v1687_v3, 4  ;;  %v1712_v18 = vunpack.i.h.bf16 %v1709_v5 }
 0x146   :  { %v2348_v15 = vsel %vm2518_vm2, %v1642_v2, %v2347_v62  ;;  %v1666_v20 = vrot.slane %v1665_v9, 1  ;;  %v367_v22 = vmax.bf16 %v215_v7, %v207_v6  ;;  %v1701_v25 = vrot.slane %v1700_v17, 4 }
 0x147   :  { %2349 = vst [vmem:[%s4387_s1 + $0x5f] sm:$0x1] %v2348_v15  ;;  %v1654_v19 = vmax.f32 %v1652_v63, %v1653_v8  ;;  %v1678_v21 = vmax.f32 %v1676_v1, %v1677_v10  ;;  %v1689_v24 = vmax.f32 %v1687_v3, %v1688_v16  ;;  %v1713_v26 = vmax.f32 %v1711_v11, %v1712_v18 }
 0x148   :  { %v368_v27 = vmax.bf16 %v216_v13, %v208_v12  ;;  %v1667_v29 = vmax.f32 %v1665_v9, %v1666_v20  ;;  %v1722_v31 = vsel %vm393_vm0, %v367_v22, 4286644096  ;;  %v1702_v34 = vmax.f32 %v1700_v17, %v1701_v25  ;;  %v2362_v13 = vld [vmem:[%s4387_s1 + $0x64] sm:$0x1]  ;;  %v2365_v22 = vld [vmem:[%s4387_s1 + $0x65] sm:$0x1] }
 0x149   :  { %v1655_v28 = vpack.i.bf16 %v1654_v19, %v1654_v19  ;;  %v1679_v30 = vrot.slane %v1678_v21, 1  ;;  %v1690_v33 = vrot.slane %v1689_v24, 2  ;;  %v1714_v35 = vrot.slane %v1713_v26, 4  ;;  %v228_v25 = vld [vmem:[%s4386_s0 + $0xdb] sm:$0x1] }
 0x14a   :  { %v1724_v36 = vunpack.i.l.bf16 %v1722_v31  ;;  %v1668_v39 = vpack.i.bf16 %v1667_v29, %v1667_v29  ;;  %v1725_v42 = vunpack.i.h.bf16 %v1722_v31  ;;  %v1703_v46 = vrot.slane %v1702_v34, 2  ;;  %v229_v31 = vld [vmem:[%s4386_s0 + $0xdc] sm:$0x1] }
 0x14b   :  { %v2351_v38 = vsel %vm2518_vm2, %v1655_v28, %v2350_v23  ;;  %v1680_v40 = vmax.f32 %v1678_v21, %v1679_v30  ;;  %v1691_v45 = vmax.f32 %v1689_v24, %v1690_v33  ;;  %v1715_v47 = vmax.f32 %v1713_v26, %v1714_v35  ;;  %v220_v24 = vld [vmem:[%s4386_s0 + $0xd3] sm:$0x1]  ;;  %v221_v30 = vld [vmem:[%s4386_s0 + $0xd4] sm:$0x1] }
 0x14c   :  { %2352 = vst [vmem:[%s4387_s1 + $0x60] sm:$0x1] %v2351_v38  ;;  %v1735_v48 = vsel %vm393_vm0, %v368_v27, 4286644096  ;;  %v2354_v50 = vsel %vm2518_vm2, %v1668_v39, %v2353_v32  ;;  %v1726_v52 = vmax.f32 %v1724_v36, %v1725_v42  ;;  %v1704_v55 = vmax.f32 %v1702_v34, %v1703_v46 }
 0x14d   :  { %v1681_v51 = vpack.i.bf16 %v1680_v40, %v1680_v40  ;;  %v1737_v53 = vunpack.i.l.bf16 %v1735_v48  ;;  %2355 = vst [vmem:[%s4387_s1 + $0x61] sm:$0x1] %v2354_v50  ;;  %v1692_v54 = vrot.slane %v1691_v45, 1  ;;  %v1716_v56 = vrot.slane %v1715_v47, 2  ;;  %v222_v40 = vld [vmem:[%s4386_s0 + $0xd5] sm:$0x1] }
 0x14e   :  { %v1738_v57 = vunpack.i.h.bf16 %v1735_v48  ;;  %v1727_v61 = vrot.slane %v1726_v52, 4  ;;  %v369_v62 = vmax.bf16 %v225_v43, %v217_v37  ;;  %v370_v63 = vmax.bf16 %v226_v49, %v218_v44 }
 0x14f   :  { %v2357_v60 = vsel %vm2518_vm2, %v1681_v51, %v2356_v41  ;;  %v1693_v0 = vmax.f32 %v1691_v45, %v1692_v54  ;;  %v1705_v1 = vrot.slane %v1704_v55, 1  ;;  %v1717_v2 = vmax.f32 %v1715_v47, %v1716_v56  ;;  %v230_v41 = vld [vmem:[%s4386_s0 + $0xdd] sm:$0x1]  ;;  %v2368_v47 = vld [vmem:[%s4387_s1 + $0x66] sm:$0x1] }
 0x150   :  { %2358 = vst [vmem:[%s4387_s1 + $0x62] sm:$0x1] %v2357_v60  ;;  %v1739_v3 = vmax.f32 %v1737_v53, %v1738_v57  ;;  %v1728_v5 = vmax.f32 %v1726_v52, %v1727_v61  ;;  %v1748_v6 = vsel %vm393_vm0, %v369_v62, 4286644096  ;;  %v1761_v7 = vsel %vm393_vm0, %v370_v63, 4286644096 }
 0x151   :  { %v371_v8 = vmax.bf16 %v227_v59, %v219_v58  ;;  %v1694_v9 = vpack.i.bf16 %v1693_v0, %v1693_v0  ;;  %v1706_v10 = vmax.f32 %v1704_v55, %v1705_v1  ;;  %v1718_v11 = vrot.slane %v1717_v2, 1  ;;  %v2371_v0 = vld [vmem:[%s4387_s1 + $0x67] sm:$0x1] }
 0x152   :  { %v1740_v12 = vrot.slane %v1739_v3, 4  ;;  %v1729_v15 = vrot.slane %v1728_v5, 2  ;;  %v1750_v16 = vunpack.i.l.bf16 %v1748_v6  ;;  %v1751_v17 = vunpack.i.h.bf16 %v1748_v6 }
 0x153   :  { %v1763_v18 = vunpack.i.l.bf16 %v1761_v7  ;;  %v2360_v19 = vsel %vm2518_vm2, %v1694_v9, %v2359_v4  ;;  %v1707_v20 = vpack.i.bf16 %v1706_v10, %v1706_v10  ;;  %v1719_v21 = vmax.f32 %v1717_v2, %v1718_v11  ;;  %v231_v9 = vld [vmem:[%s4386_s0 + $0xde] sm:$0x1] }
 0x154   :  { %v1741_v23 = vmax.f32 %v1739_v3, %v1740_v12  ;;  %2361 = vst [vmem:[%s4387_s1 + $0x63] sm:$0x1] %v2360_v19  ;;  %v1730_v26 = vmax.f32 %v1728_v5, %v1729_v15  ;;  %v1752_v27 = vmax.f32 %v1750_v16, %v1751_v17  ;;  %v1764_v28 = vunpack.i.h.bf16 %v1761_v7  ;;  %v224_v15 = vld [vmem:[%s4386_s0 + $0xd7] sm:$0x1]  ;;  %v232_v16 = vld [vmem:[%s4386_s0 + $0xdf] sm:$0x1] }
 0x155   :  { %v1774_v29 = vsel %vm393_vm0, %v371_v8, 4286644096  ;;  %v2363_v32 = vsel %vm2518_vm2, %v1707_v20, %v2362_v13  ;;  %v1720_v33 = vpack.i.bf16 %v1719_v21, %v1719_v21  ;;  %v372_v44 = vmax.bf16 %v228_v25, %v220_v24  ;;  %v223_v8 = vld [vmem:[%s4386_s0 + $0xd6] sm:$0x1]  ;;  %v2374_v25 = vld [vmem:[%s4387_s1 + $0x68] sm:$0x1] }
 0x156   :  { %v1742_v34 = vrot.slane %v1741_v23, 2  ;;  %v1776_v35 = vunpack.i.l.bf16 %v1774_v29  ;;  %2364 = vst [vmem:[%s4387_s1 + $0x64] sm:$0x1] %v2363_v32  ;;  %v1731_v36 = vrot.slane %v1730_v26, 1  ;;  %v1753_v37 = vrot.slane %v1752_v27, 4 }
 0x157   :  { %v1765_v38 = vmax.f32 %v1763_v18, %v1764_v28  ;;  %v1777_v39 = vunpack.i.h.bf16 %v1774_v29  ;;  %v2366_v42 = vsel %vm2518_vm2, %v1720_v33, %v2365_v22  ;;  %v373_v45 = vmax.bf16 %v229_v31, %v221_v30 }
 0x158   :  { %v1743_v43 = vmax.f32 %v1741_v23, %v1742_v34  ;;  %2367 = vst [vmem:[%s4387_s1 + $0x65] sm:$0x1] %v2366_v42  ;;  %v1732_v46 = vmax.f32 %v1730_v26, %v1731_v36  ;;  %v1754_v48 = vmax.f32 %v1752_v27, %v1753_v37  ;;  %v1787_v52 = vsel %vm393_vm0, %v372_v44, 4286644096  ;;  %v2377_v34 = vld [vmem:[%s4387_s1 + $0x69] sm:$0x1] }
 0x159   :  { %v1766_v49 = vrot.slane %v1765_v38, 4  ;;  %v1778_v50 = vmax.f32 %v1776_v35, %v1777_v39  ;;  %v1800_v53 = vsel %vm393_vm0, %v373_v45, 4286644096  ;;  %v374_v54 = vmax.bf16 %v230_v41, %v222_v40  ;;  %v233_v39 = vld [vmem:[%s4386_s0 + $0xe0] sm:$0x1] }
 0x15a   :  { %v1744_v51 = vrot.slane %v1743_v43, 1  ;;  %v1733_v55 = vpack.i.bf16 %v1732_v46, %v1732_v46  ;;  %v1755_v56 = vrot.slane %v1754_v48, 2  ;;  %v1789_v60 = vunpack.i.l.bf16 %v1787_v52  ;;  %v241_v45 = vld [vmem:[%s4386_s0 + $0xe8] sm:$0x1]  ;;  %v234_v46 = vld [vmem:[%s4386_s0 + $0xe1] sm:$0x1] }
 0x15b   :  { %v1767_v57 = vmax.f32 %v1765_v38, %v1766_v49  ;;  %v1779_v58 = vrot.slane %v1778_v50, 4  ;;  %v1790_v61 = vunpack.i.h.bf16 %v1787_v52  ;;  %v1802_v62 = vunpack.i.l.bf16 %v1800_v53 }
 0x15c   :  { %v1745_v59 = vmax.f32 %v1743_v43, %v1744_v51  ;;  %v2369_v63 = vsel %vm2518_vm2, %v1733_v55, %v2368_v47  ;;  %v1756_v1 = vmax.f32 %v1754_v48, %v1755_v56  ;;  %v1803_v6 = vunpack.i.h.bf16 %v1800_v53  ;;  %v2380_v43 = vld [vmem:[%s4387_s1 + $0x6a] sm:$0x1]  ;;  %v242_v51 = vld [vmem:[%s4386_s0 + $0xe9] sm:$0x1] }
 0x15d   :  { %v1768_v2 = vrot.slane %v1767_v57, 2  ;;  %v1780_v3 = vmax.f32 %v1778_v50, %v1779_v58  ;;  %2370 = vst [vmem:[%s4387_s1 + $0x66] sm:$0x1] %v2369_v63  ;;  %v1791_v5 = vmax.f32 %v1789_v60, %v1790_v61  ;;  %v1813_v7 = vsel %vm393_vm0, %v374_v54, 4286644096 }
 0x15e   :  { %v1746_v4 = vpack.i.bf16 %v1745_v59, %v1745_v59  ;;  %v1757_v10 = vrot.slane %v1756_v1, 1  ;;  %v1815_v13 = vunpack.i.l.bf16 %v1813_v7  ;;  %v1804_v19 = vmax.f32 %v1802_v62, %v1803_v6  ;;  %v235_v60 = vld [vmem:[%s4386_s0 + $0xe2] sm:$0x1]  ;;  %v243_v61 = vld [vmem:[%s4386_s0 + $0xea] sm:$0x1] }
 0x15f   :  { %v1769_v11 = vmax.f32 %v1767_v57, %v1768_v2  ;;  %v1781_v12 = vrot.slane %v1780_v3, 2  ;;  %v1792_v18 = vrot.slane %v1791_v5, 4  ;;  %v1816_v20 = vunpack.i.h.bf16 %v1813_v7  ;;  %v2383_v6 = vld [vmem:[%s4387_s1 + $0x6b] sm:$0x1] }
 0x160   :  { %v2372_v17 = vsel %vm2518_vm2, %v1746_v4, %v2371_v0  ;;  %v1758_v21 = vmax.f32 %v1756_v1, %v1757_v10  ;;  %v375_v24 = vmax.bf16 %v231_v9, %v223_v8  ;;  %v1805_v27 = vrot.slane %v1804_v19, 4 }
 0x161   :  { %2373 = vst [vmem:[%s4387_s1 + $0x67] sm:$0x1] %v2372_v17  ;;  %v1770_v22 = vrot.slane %v1769_v11, 1  ;;  %v1782_v23 = vmax.f32 %v1780_v3, %v1781_v12  ;;  %v1793_v26 = vmax.f32 %v1791_v5, %v1792_v18  ;;  %v1817_v28 = vmax.f32 %v1815_v13, %v1816_v20 }
 0x162   :  { %v376_v29 = vmax.bf16 %v232_v16, %v224_v15  ;;  %v1759_v30 = vpack.i.bf16 %v1758_v21, %v1758_v21  ;;  %v1826_v33 = vsel %vm393_vm0, %v375_v24, 4286644096  ;;  %v1806_v36 = vmax.f32 %v1804_v19, %v1805_v27  ;;  %v2386_v16 = vld [vmem:[%s4387_s1 + $0x6c] sm:$0x1]  ;;  %v2389_v24 = vld [vmem:[%s4387_s1 + $0x6d] sm:$0x1] }
 0x163   :  { %v1771_v31 = vmax.f32 %v1769_v11, %v1770_v22  ;;  %v1783_v32 = vrot.slane %v1782_v23, 1  ;;  %v1794_v35 = vrot.slane %v1793_v26, 2  ;;  %v1818_v37 = vrot.slane %v1817_v28, 4  ;;  %v244_v27 = vld [vmem:[%s4386_s0 + $0xeb] sm:$0x1] }
 0x164   :  { %v1828_v38 = vunpack.i.l.bf16 %v1826_v33  ;;  %v2375_v40 = vsel %vm2518_vm2, %v1759_v30, %v2374_v25  ;;  %v1829_v44 = vunpack.i.h.bf16 %v1826_v33  ;;  %v1807_v48 = vrot.slane %v1806_v36, 2  ;;  %v245_v33 = vld [vmem:[%s4386_s0 + $0xec] sm:$0x1] }
 0x165   :  { %v1772_v41 = vpack.i.bf16 %v1771_v31, %v1771_v31  ;;  %v1784_v42 = vmax.f32 %v1782_v23, %v1783_v32  ;;  %2376 = vst [vmem:[%s4387_s1 + $0x68] sm:$0x1] %v2375_v40  ;;  %v1795_v47 = vmax.f32 %v1793_v26, %v1794_v35  ;;  %v1819_v49 = vmax.f32 %v1817_v28, %v1818_v37  ;;  %v236_v26 = vld [vmem:[%s4386_s0 + $0xe3] sm:$0x1]  ;;  %v237_v32 = vld [vmem:[%s4386_s0 + $0xe4] sm:$0x1] }
 0x166   :  { %v1839_v50 = vsel %vm393_vm0, %v376_v29, 4286644096  ;;  %v1830_v54 = vmax.f32 %v1828_v38, %v1829_v44  ;;  %v1808_v57 = vmax.f32 %v1806_v36, %v1807_v48  ;;  %v377_v0 = vmax.bf16 %v241_v45, %v233_v39 }
 0x167   :  { %v2378_v52 = vsel %vm2518_vm2, %v1772_v41, %v2377_v34  ;;  %v1785_v53 = vpack.i.bf16 %v1784_v42, %v1784_v42  ;;  %v1841_v55 = vunpack.i.l.bf16 %v1839_v50  ;;  %v1796_v56 = vrot.slane %v1795_v47, 1  ;;  %v238_v42 = vld [vmem:[%s4386_s0 + $0xe5] sm:$0x1] }
 0x168   :  { %2379 = vst [vmem:[%s4387_s1 + $0x69] sm:$0x1] %v2378_v52  ;;  %v1820_v58 = vrot.slane %v1819_v49, 2  ;;  %v1842_v59 = vunpack.i.h.bf16 %v1839_v50  ;;  %v1831_v63 = vrot.slane %v1830_v54, 4  ;;  %v378_v1 = vmax.bf16 %v242_v51, %v234_v46 }
 0x169   :  { %v2381_v62 = vsel %vm2518_vm2, %v1785_v53, %v2380_v43  ;;  %v1797_v2 = vmax.f32 %v1795_v47, %v1796_v56  ;;  %v1809_v3 = vrot.slane %v1808_v57, 1  ;;  %v1852_v8 = vsel %vm393_vm0, %v377_v0, 4286644096  ;;  %v246_v43 = vld [vmem:[%s4386_s0 + $0xed] sm:$0x1] }
 0x16a   :  { %2382 = vst [vmem:[%s4387_s1 + $0x6a] sm:$0x1] %v2381_v62  ;;  %v1821_v4 = vmax.f32 %v1819_v49, %v1820_v58  ;;  %v1843_v5 = vmax.f32 %v1841_v55, %v1842_v59  ;;  %v1832_v7 = vmax.f32 %v1830_v54, %v1831_v63  ;;  %v1865_v9 = vsel %vm393_vm0, %v378_v1, 4286644096  ;;  %v2392_v49 = vld [vmem:[%s4387_s1 + $0x6e] sm:$0x1] }
 0x16b   :  { %v379_v10 = vmax.bf16 %v243_v61, %v235_v60  ;;  %v1798_v11 = vpack.i.bf16 %v1797_v2, %v1797_v2  ;;  %v1810_v12 = vmax.f32 %v1808_v57, %v1809_v3  ;;  %v1854_v18 = vunpack.i.l.bf16 %v1852_v8  ;;  %v2395_v2 = vld [vmem:[%s4387_s1 + $0x6f] sm:$0x1] }
 0x16c   :  { %v1822_v13 = vrot.slane %v1821_v4, 1  ;;  %v1844_v15 = vrot.slane %v1843_v5, 4  ;;  %v1833_v17 = vrot.slane %v1832_v7, 2  ;;  %v1855_v19 = vunpack.i.h.bf16 %v1852_v8 }
 0x16d   :  { %v1867_v20 = vunpack.i.l.bf16 %v1865_v9  ;;  %v2384_v21 = vsel %vm2518_vm2, %v1798_v11, %v2383_v6  ;;  %v1811_v22 = vpack.i.bf16 %v1810_v12, %v1810_v12  ;;  %v1868_v30 = vunpack.i.h.bf16 %v1865_v9  ;;  %v247_v11 = vld [vmem:[%s4386_s0 + $0xee] sm:$0x1] }
 0x16e   :  { %v1823_v23 = vmax.f32 %v1821_v4, %v1822_v13  ;;  %v1845_v25 = vmax.f32 %v1843_v5, %v1844_v15  ;;  %2385 = vst [vmem:[%s4387_s1 + $0x6b] sm:$0x1] %v2384_v21  ;;  %v1834_v28 = vmax.f32 %v1832_v7, %v1833_v17  ;;  %v1856_v29 = vmax.f32 %v1854_v18, %v1855_v19  ;;  %v240_v17 = vld [vmem:[%s4386_s0 + $0xe7] sm:$0x1]  ;;  %v248_v18 = vld [vmem:[%s4386_s0 + $0xef] sm:$0x1] }
 0x16f   :  { %v1878_v31 = vsel %vm393_vm0, %v379_v10, 4286644096  ;;  %v2387_v34 = vsel %vm2518_vm2, %v1811_v22, %v2386_v16  ;;  %v1869_v40 = vmax.f32 %v1867_v20, %v1868_v30  ;;  %v380_v46 = vmax.bf16 %v244_v27, %v236_v26  ;;  %v239_v10 = vld [vmem:[%s4386_s0 + $0xe6] sm:$0x1]  ;;  %v2398_v27 = vld [vmem:[%s4387_s1 + $0x70] sm:$0x1] }
 0x170   :  { %v1824_v35 = vpack.i.bf16 %v1823_v23, %v1823_v23  ;;  %v1846_v36 = vrot.slane %v1845_v25, 2  ;;  %v1880_v37 = vunpack.i.l.bf16 %v1878_v31  ;;  %2388 = vst [vmem:[%s4387_s1 + $0x6c] sm:$0x1] %v2387_v34  ;;  %v1835_v38 = vrot.slane %v1834_v28, 1 }
 0x171   :  { %v1857_v39 = vrot.slane %v1856_v29, 4  ;;  %v1881_v41 = vunpack.i.h.bf16 %v1878_v31  ;;  %v381_v47 = vmax.bf16 %v245_v33, %v237_v32  ;;  %v1870_v51 = vrot.slane %v1869_v40, 4 }
 0x172   :  { %v2390_v44 = vsel %vm2518_vm2, %v1824_v35, %v2389_v24  ;;  %v1847_v45 = vmax.f32 %v1845_v25, %v1846_v36  ;;  %v1836_v48 = vmax.f32 %v1834_v28, %v1835_v38  ;;  %v1891_v54 = vsel %vm393_vm0, %v380_v46, 4286644096  ;;  %v2401_v36 = vld [vmem:[%s4387_s1 + $0x71] sm:$0x1] }
 0x173   :  { %2391 = vst [vmem:[%s4387_s1 + $0x6d] sm:$0x1] %v2390_v44  ;;  %v1858_v50 = vmax.f32 %v1856_v29, %v1857_v39  ;;  %v1882_v52 = vmax.f32 %v1880_v37, %v1881_v41  ;;  %v1904_v55 = vsel %vm393_vm0, %v381_v47, 4286644096  ;;  %v382_v56 = vmax.bf16 %v246_v43, %v238_v42  ;;  %v249_v41 = vld [vmem:[%s4386_s0 + $0xf0] sm:$0x1] }
 0x174   :  { %v1848_v53 = vrot.slane %v1847_v45, 1  ;;  %v1837_v57 = vpack.i.bf16 %v1836_v48, %v1836_v48  ;;  %v1871_v59 = vmax.f32 %v1869_v40, %v1870_v51  ;;  %v1893_v62 = vunpack.i.l.bf16 %v1891_v54  ;;  %v257_v47 = vld [vmem:[%s4386_s0 + $0xf8] sm:$0x1]  ;;  %v250_v48 = vld [vmem:[%s4386_s0 + $0xf1] sm:$0x1] }
 0x175   :  { %v1859_v58 = vrot.slane %v1858_v50, 2  ;;  %v1883_v60 = vrot.slane %v1882_v52, 4  ;;  %v1894_v63 = vunpack.i.h.bf16 %v1891_v54  ;;  %v1906_v0 = vunpack.i.l.bf16 %v1904_v55 }
 0x176   :  { %v1849_v61 = vmax.f32 %v1847_v45, %v1848_v53  ;;  %v2393_v1 = vsel %vm2518_vm2, %v1837_v57, %v2392_v49  ;;  %v1872_v4 = vrot.slane %v1871_v59, 2  ;;  %v1907_v8 = vunpack.i.h.bf16 %v1904_v55  ;;  %v2404_v45 = vld [vmem:[%s4387_s1 + $0x72] sm:$0x1]  ;;  %v258_v53 = vld [vmem:[%s4386_s0 + $0xf9] sm:$0x1] }
 0x177   :  { %v1860_v3 = vmax.f32 %v1858_v50, %v1859_v58  ;;  %v1884_v5 = vmax.f32 %v1882_v52, %v1883_v60  ;;  %2394 = vst [vmem:[%s4387_s1 + $0x6e] sm:$0x1] %v2393_v1  ;;  %v1895_v7 = vmax.f32 %v1893_v62, %v1894_v63  ;;  %v1917_v9 = vsel %vm393_vm0, %v382_v56, 4286644096  ;;  %v251_v62 = vld [vmem:[%s4386_s0 + $0xf2] sm:$0x1] }
 0x178   :  { %v1850_v6 = vpack.i.bf16 %v1849_v61, %v1849_v61  ;;  %v1873_v13 = vmax.f32 %v1871_v59, %v1872_v4  ;;  %v1919_v16 = vunpack.i.l.bf16 %v1917_v9  ;;  %v1908_v21 = vmax.f32 %v1906_v0, %v1907_v8  ;;  %v259_v63 = vld [vmem:[%s4386_s0 + $0xfa] sm:$0x1]  ;;  %v2407_v8 = vld [vmem:[%s4387_s1 + $0x73] sm:$0x1] }
 0x179   :  { %v1861_v12 = vrot.slane %v1860_v3, 1  ;;  %v1885_v15 = vrot.slane %v1884_v5, 2  ;;  %v1896_v20 = vrot.slane %v1895_v7, 4  ;;  %v1920_v22 = vunpack.i.h.bf16 %v1917_v9 }
 0x17a   :  { %v2396_v19 = vsel %vm2518_vm2, %v1850_v6, %v2395_v2  ;;  %v1874_v24 = vrot.slane %v1873_v13, 1  ;;  %v383_v26 = vmax.bf16 %v247_v11, %v239_v10  ;;  %v1909_v29 = vrot.slane %v1908_v21, 4 }
 0x17b   :  { %2397 = vst [vmem:[%s4387_s1 + $0x6f] sm:$0x1] %v2396_v19  ;;  %v1862_v23 = vmax.f32 %v1860_v3, %v1861_v12  ;;  %v1886_v25 = vmax.f32 %v1884_v5, %v1885_v15  ;;  %v1897_v28 = vmax.f32 %v1895_v7, %v1896_v20  ;;  %v1921_v30 = vmax.f32 %v1919_v16, %v1920_v22 }
 0x17c   :  { %v384_v31 = vmax.bf16 %v248_v18, %v240_v17  ;;  %v1875_v33 = vmax.f32 %v1873_v13, %v1874_v24  ;;  %v1930_v35 = vsel %vm393_vm0, %v383_v26, 4286644096  ;;  %v1910_v38 = vmax.f32 %v1908_v21, %v1909_v29  ;;  %v2410_v18 = vld [vmem:[%s4387_s1 + $0x74] sm:$0x1]  ;;  %v2413_v26 = vld [vmem:[%s4387_s1 + $0x75] sm:$0x1] }
 0x17d   :  { %v1863_v32 = vpack.i.bf16 %v1862_v23, %v1862_v23  ;;  %v1887_v34 = vrot.slane %v1886_v25, 1  ;;  %v1898_v37 = vrot.slane %v1897_v28, 2  ;;  %v1922_v39 = vrot.slane %v1921_v30, 4  ;;  %v260_v29 = vld [vmem:[%s4386_s0 + $0xfb] sm:$0x1] }
 0x17e   :  { %v1932_v40 = vunpack.i.l.bf16 %v1930_v35  ;;  %v1876_v43 = vpack.i.bf16 %v1875_v33, %v1875_v33  ;;  %v1933_v46 = vunpack.i.h.bf16 %v1930_v35  ;;  %v1911_v50 = vrot.slane %v1910_v38, 2  ;;  %v261_v35 = vld [vmem:[%s4386_s0 + $0xfc] sm:$0x1] }
 0x17f   :  { %v2399_v42 = vsel %vm2518_vm2, %v1863_v32, %v2398_v27  ;;  %v1888_v44 = vmax.f32 %v1886_v25, %v1887_v34  ;;  %v1899_v49 = vmax.f32 %v1897_v28, %v1898_v37  ;;  %v1923_v51 = vmax.f32 %v1921_v30, %v1922_v39  ;;  %v252_v28 = vld [vmem:[%s4386_s0 + $0xf3] sm:$0x1]  ;;  %v253_v34 = vld [vmem:[%s4386_s0 + $0xf4] sm:$0x1] }
 0x180   :  { %2400 = vst [vmem:[%s4387_s1 + $0x70] sm:$0x1] %v2399_v42  ;;  %v1943_v52 = vsel %vm393_vm0, %v384_v31, 4286644096  ;;  %v2402_v54 = vsel %vm2518_vm2, %v1876_v43, %v2401_v36  ;;  %v1934_v56 = vmax.f32 %v1932_v40, %v1933_v46  ;;  %v1912_v59 = vmax.f32 %v1910_v38, %v1911_v50 }
 0x181   :  { %v1889_v55 = vpack.i.bf16 %v1888_v44, %v1888_v44  ;;  %v1945_v57 = vunpack.i.l.bf16 %v1943_v52  ;;  %2403 = vst [vmem:[%s4387_s1 + $0x71] sm:$0x1] %v2402_v54  ;;  %v1900_v58 = vrot.slane %v1899_v49, 1  ;;  %v1924_v60 = vrot.slane %v1923_v51, 2  ;;  %v254_v44 = vld [vmem:[%s4386_s0 + $0xf5] sm:$0x1] }
 0x182   :  { %v1946_v61 = vunpack.i.h.bf16 %v1943_v52  ;;  %v1935_v1 = vrot.slane %v1934_v56, 4  ;;  %v385_v2 = vmax.bf16 %v257_v47, %v249_v41  ;;  %v386_v3 = vmax.bf16 %v258_v53, %v250_v48 }
 0x183   :  { %v2405_v0 = vsel %vm2518_vm2, %v1889_v55, %v2404_v45  ;;  %v1901_v4 = vmax.f32 %v1899_v49, %v1900_v58  ;;  %v1913_v5 = vrot.slane %v1912_v59, 1  ;;  %v1925_v6 = vmax.f32 %v1923_v51, %v1924_v60  ;;  %v262_v45 = vld [vmem:[%s4386_s0 + $0xfd] sm:$0x1]  ;;  %v2416_v51 = vld [vmem:[%s4387_s1 + $0x76] sm:$0x1] }
 0x184   :  { %2406 = vst [vmem:[%s4387_s1 + $0x72] sm:$0x1] %v2405_v0  ;;  %v1947_v7 = vmax.f32 %v1945_v57, %v1946_v61  ;;  %v1936_v9 = vmax.f32 %v1934_v56, %v1935_v1  ;;  %v1956_v10 = vsel %vm393_vm0, %v385_v2, 4286644096  ;;  %v1969_v11 = vsel %vm393_vm0, %v386_v3, 4286644096 }
 0x185   :  { %v387_v12 = vmax.bf16 %v259_v63, %v251_v62  ;;  %v1902_v13 = vpack.i.bf16 %v1901_v4, %v1901_v4  ;;  %v1914_v15 = vmax.f32 %v1912_v59, %v1913_v5  ;;  %v1926_v16 = vrot.slane %v1925_v6, 1  ;;  %v2419_v4 = vld [vmem:[%s4387_s1 + $0x77] sm:$0x1] }
 0x186   :  { %v1948_v17 = vrot.slane %v1947_v7, 4  ;;  %v1937_v19 = vrot.slane %v1936_v9, 2  ;;  %v1958_v20 = vunpack.i.l.bf16 %v1956_v10  ;;  %v1959_v21 = vunpack.i.h.bf16 %v1956_v10 }
 0x187   :  { %v1971_v22 = vunpack.i.l.bf16 %v1969_v11  ;;  %v2408_v23 = vsel %vm2518_vm2, %v1902_v13, %v2407_v8  ;;  %v1915_v24 = vpack.i.bf16 %v1914_v15, %v1914_v15  ;;  %v1927_v25 = vmax.f32 %v1925_v6, %v1926_v16  ;;  %v263_v13 = vld [vmem:[%s4386_s0 + $0xfe] sm:$0x1] }
 0x188   :  { %v1949_v27 = vmax.f32 %v1947_v7, %v1948_v17  ;;  %2409 = vst [vmem:[%s4387_s1 + $0x73] sm:$0x1] %v2408_v23  ;;  %v1938_v30 = vmax.f32 %v1936_v9, %v1937_v19  ;;  %v1960_v31 = vmax.f32 %v1958_v20, %v1959_v21  ;;  %v1972_v32 = vunpack.i.h.bf16 %v1969_v11  ;;  %v256_v19 = vld [vmem:[%s4386_s0 + $0xf7] sm:$0x1]  ;;  %v264_v20 = vld [vmem:[%s4386_s0 + $0xff] sm:$0x1] }
 0x189   :  { %v1982_v33 = vsel %vm393_vm0, %v387_v12, 4286644096  ;;  %v2411_v36 = vsel %vm2518_vm2, %v1915_v24, %v2410_v18  ;;  %v1928_v37 = vpack.i.bf16 %v1927_v25, %v1927_v25  ;;  %v388_v48 = vmax.bf16 %v260_v29, %v252_v28  ;;  %v255_v12 = vld [vmem:[%s4386_s0 + $0xf6] sm:$0x1]  ;;  %v2422_v29 = vld [vmem:[%s4387_s1 + $0x78] sm:$0x1] }
 0x18a   :  { %v1950_v38 = vrot.slane %v1949_v27, 2  ;;  %v1984_v39 = vunpack.i.l.bf16 %v1982_v33  ;;  %2412 = vst [vmem:[%s4387_s1 + $0x74] sm:$0x1] %v2411_v36  ;;  %v1939_v40 = vrot.slane %v1938_v30, 1  ;;  %v1961_v41 = vrot.slane %v1960_v31, 4 }
 0x18b   :  { %v1973_v42 = vmax.f32 %v1971_v22, %v1972_v32  ;;  %v1985_v43 = vunpack.i.h.bf16 %v1982_v33  ;;  %v2414_v46 = vsel %vm2518_vm2, %v1928_v37, %v2413_v26  ;;  %v389_v49 = vmax.bf16 %v261_v35, %v253_v34 }
 0x18c   :  { %v1951_v47 = vmax.f32 %v1949_v27, %v1950_v38  ;;  %2415 = vst [vmem:[%s4387_s1 + $0x75] sm:$0x1] %v2414_v46  ;;  %v1940_v50 = vmax.f32 %v1938_v30, %v1939_v40  ;;  %v1962_v52 = vmax.f32 %v1960_v31, %v1961_v41  ;;  %v1995_v56 = vsel %vm393_vm0, %v388_v48, 4286644096  ;;  %v2425_v38 = vld [vmem:[%s4387_s1 + $0x79] sm:$0x1] }
 0x18d   :  { %v1974_v53 = vrot.slane %v1973_v42, 4  ;;  %v1986_v54 = vmax.f32 %v1984_v39, %v1985_v43  ;;  %v2008_v57 = vsel %vm393_vm0, %v389_v49, 4286644096  ;;  %v390_v58 = vmax.bf16 %v262_v45, %v254_v44 }
 0x18e   :  { %v1952_v55 = vrot.slane %v1951_v47, 1  ;;  %v1941_v59 = vpack.i.bf16 %v1940_v50, %v1940_v50  ;;  %v1963_v60 = vrot.slane %v1962_v52, 2  ;;  %v1997_v0 = vunpack.i.l.bf16 %v1995_v56 }
 0x18f   :  { %v1975_v61 = vmax.f32 %v1973_v42, %v1974_v53  ;;  %v1987_v62 = vrot.slane %v1986_v54, 4  ;;  %v1998_v1 = vunpack.i.h.bf16 %v1995_v56  ;;  %v2010_v2 = vunpack.i.l.bf16 %v2008_v57 }
 0x190   :  { %v1953_v63 = vmax.f32 %v1951_v47, %v1952_v55  ;;  %v2417_v3 = vsel %vm2518_vm2, %v1941_v59, %v2416_v51  ;;  %v1964_v5 = vmax.f32 %v1962_v52, %v1963_v60  ;;  %v2011_v10 = vunpack.i.h.bf16 %v2008_v57  ;;  %v2428_v47 = vld [vmem:[%s4387_s1 + $0x7a] sm:$0x1] }
 0x191   :  { %v1976_v6 = vrot.slane %v1975_v61, 2  ;;  %v1988_v7 = vmax.f32 %v1986_v54, %v1987_v62  ;;  %2418 = vst [vmem:[%s4387_s1 + $0x76] sm:$0x1] %v2417_v3  ;;  %v1999_v9 = vmax.f32 %v1997_v0, %v1998_v1  ;;  %v2021_v11 = vsel %vm393_vm0, %v390_v58, 4286644096 }
 0x192   :  { %v1954_v8 = vpack.i.bf16 %v1953_v63, %v1953_v63  ;;  %v1965_v15 = vrot.slane %v1964_v5, 1  ;;  %v2023_v18 = vunpack.i.l.bf16 %v2021_v11  ;;  %v2012_v23 = vmax.f32 %v2010_v2, %v2011_v10  ;;  %v2431_v2 = vld [vmem:[%s4387_s1 + $0x7b] sm:$0x1] }
 0x193   :  { %v1977_v16 = vmax.f32 %v1975_v61, %v1976_v6  ;;  %v1989_v17 = vrot.slane %v1988_v7, 2  ;;  %v2000_v22 = vrot.slane %v1999_v9, 4  ;;  %v2024_v24 = vunpack.i.h.bf16 %v2021_v11 }
 0x194   :  { %v2420_v21 = vsel %vm2518_vm2, %v1954_v8, %v2419_v4  ;;  %v1966_v25 = vmax.f32 %v1964_v5, %v1965_v15  ;;  %v391_v28 = vmax.bf16 %v263_v13, %v255_v12  ;;  %v2013_v31 = vrot.slane %v2012_v23, 4  ;;  %v2434_v8 = vld [vmem:[%s4387_s1 + $0x7c] sm:$0x1]  ;;  %v2437_v15 = vld [vmem:[%s4387_s1 + $0x7d] sm:$0x1] }
 0x195   :  { %2421 = vst [vmem:[%s4387_s1 + $0x77] sm:$0x1] %v2420_v21  ;;  %v1978_v26 = vrot.slane %v1977_v16, 1  ;;  %v1990_v27 = vmax.f32 %v1988_v7, %v1989_v17  ;;  %v2001_v30 = vmax.f32 %v1999_v9, %v2000_v22  ;;  %v2025_v32 = vmax.f32 %v2023_v18, %v2024_v24  ;;  %v2440_v24 = vld [vmem:[%s4387_s1 + $0x7e] sm:$0x1] }
 0x196   :  { %v392_v33 = vmax.bf16 %v264_v20, %v256_v19  ;;  %v1967_v34 = vpack.i.bf16 %v1966_v25, %v1966_v25  ;;  %v2034_v37 = vsel %vm393_vm0, %v391_v28, 4286644096  ;;  %v2014_v40 = vmax.f32 %v2012_v23, %v2013_v31 }
 0x197   :  { %v1979_v35 = vmax.f32 %v1977_v16, %v1978_v26  ;;  %v1991_v36 = vrot.slane %v1990_v27, 1  ;;  %v2002_v39 = vrot.slane %v2001_v30, 2  ;;  %v2026_v41 = vrot.slane %v2025_v32, 4 }
 0x198   :  { %v2036_v42 = vunpack.i.l.bf16 %v2034_v37  ;;  %v2423_v43 = vsel %vm2518_vm2, %v1967_v34, %v2422_v29  ;;  %v2037_v46 = vunpack.i.h.bf16 %v2034_v37  ;;  %v2015_v49 = vrot.slane %v2014_v40, 2  ;;  %v2443_v29 = vld [vmem:[%s4387_s1 + $0x7f] sm:$0x1] }
 0x199   :  { %v1980_v44 = vpack.i.bf16 %v1979_v35, %v1979_v35  ;;  %v1992_v45 = vmax.f32 %v1990_v27, %v1991_v36  ;;  %2424 = vst [vmem:[%s4387_s1 + $0x78] sm:$0x1] %v2423_v43  ;;  %v2003_v48 = vmax.f32 %v2001_v30, %v2002_v39  ;;  %v2027_v50 = vmax.f32 %v2025_v32, %v2026_v41 }
 0x19a   :  { %v2047_v51 = vsel %vm393_vm0, %v392_v33, 4286644096  ;;  %v2038_v54 = vmax.f32 %v2036_v42, %v2037_v46  ;;  %v2016_v57 = vmax.f32 %v2014_v40, %v2015_v49 }
 0x19b   :  { %v2426_v52 = vsel %vm2518_vm2, %v1980_v44, %v2425_v38  ;;  %v1993_v53 = vpack.i.bf16 %v1992_v45, %v1992_v45  ;;  %v2049_v55 = vunpack.i.l.bf16 %v2047_v51  ;;  %v2004_v56 = vrot.slane %v2003_v48, 1 }
 0x19c   :  { %2427 = vst [vmem:[%s4387_s1 + $0x79] sm:$0x1] %v2426_v52  ;;  %v2028_v58 = vrot.slane %v2027_v50, 2  ;;  %v2050_v59 = vunpack.i.h.bf16 %v2047_v51  ;;  %v2039_v61 = vrot.slane %v2038_v54, 4  ;;  %v2017_v63 = vrot.slane %v2016_v57, 1 }
 0x19d   :  { %v2429_v60 = vsel %vm2518_vm2, %v1993_v53, %v2428_v47  ;;  %v2005_v62 = vmax.f32 %v2003_v48, %v2004_v56 }
 0x19e   :  { %2430 = vst [vmem:[%s4387_s1 + $0x7a] sm:$0x1] %v2429_v60  ;;  %v2029_v0 = vmax.f32 %v2027_v50, %v2028_v58  ;;  %v2051_v1 = vmax.f32 %v2049_v55, %v2050_v59  ;;  %v2040_v3 = vmax.f32 %v2038_v54, %v2039_v61  ;;  %v2018_v5 = vmax.f32 %v2016_v57, %v2017_v63 }
 0x19f   :  { %v2006_v4 = vpack.i.bf16 %v2005_v62, %v2005_v62 }
 0x1a0   :  { %v2030_v6 = vrot.slane %v2029_v0, 1  ;;  %v2052_v7 = vrot.slane %v2051_v1, 4  ;;  %v2041_v9 = vrot.slane %v2040_v3, 2  ;;  %v2019_v11 = vpack.i.bf16 %v2018_v5, %v2018_v5 }
 0x1a1   :  { %v2432_v10 = vsel %vm2518_vm2, %v2006_v4, %v2431_v2 }
 0x1a2   :  { %v2031_v12 = vmax.f32 %v2029_v0, %v2030_v6  ;;  %v2053_v13 = vmax.f32 %v2051_v1, %v2052_v7  ;;  %2433 = vst [vmem:[%s4387_s1 + $0x7b] sm:$0x1] %v2432_v10  ;;  %v2042_v16 = vmax.f32 %v2040_v3, %v2041_v9  ;;  %v2435_v17 = vsel %vm2518_vm2, %v2019_v11, %v2434_v8 }
 0x1a3   :  { %2436 = vst [vmem:[%s4387_s1 + $0x7c] sm:$0x1] %v2435_v17 }
 0x1a4   :  { %v2032_v18 = vpack.i.bf16 %v2031_v12, %v2031_v12  ;;  %v2054_v19 = vrot.slane %v2053_v13, 2  ;;  %v2043_v20 = vrot.slane %v2042_v16, 1 }
 0x1a6   :  { %v2438_v21 = vsel %vm2518_vm2, %v2032_v18, %v2437_v15  ;;  %v2055_v22 = vmax.f32 %v2053_v13, %v2054_v19  ;;  %v2044_v23 = vmax.f32 %v2042_v16, %v2043_v20 }
 0x1a7   :  { %2439 = vst [vmem:[%s4387_s1 + $0x7d] sm:$0x1] %v2438_v21 }
 0x1a8   :  { %v2056_v25 = vrot.slane %v2055_v22, 1  ;;  %v2045_v26 = vpack.i.bf16 %v2044_v23, %v2044_v23 }
 0x1aa   :  { %v2057_v27 = vmax.f32 %v2055_v22, %v2056_v25  ;;  %v2441_v28 = vsel %vm2518_vm2, %v2045_v26, %v2440_v24 }
 0x1ab   :  { %2442 = vst [vmem:[%s4387_s1 + $0x7e] sm:$0x1] %v2441_v28 }
 0x1ac   :  { %v2058_v30 = vpack.i.bf16 %v2057_v27, %v2057_v27 }
 0x1ae   :  { %v2444_v31 = vsel %vm2518_vm2, %v2058_v30, %v2443_v29 }
 0x1af   :  { %2445 = vst [vmem:[%s4387_s1 + $0x7f] sm:$0x1] %v2444_v31 }

// kernel: unet_forward.30
= control target key start
LH: loop header
LB: loop body
LE: loop exit
PB: predicated region body
PF: predicated region fallthrough
CT: control target
= control target key end

     0   :  { %vm168_vm0 = vcmask 1043456   ;;  %vm143_vm1 = vcmask 588800   ;;  %s743_s1 = inlined_call_operand.vmem [shape: bf16[72,128], index: 1, kind: input, shape index: {}]   ;;  %s744_s0 = inlined_call_operand.vmem [shape: bf16[128,72], index: 0, kind: input, shape index: {}]   ;;  %s745_s2 = inlined_call_operand.vmem [shape: bf16[128,128], index: 2, kind: output, shape index: {0}]   ;;  %s746_s3 = inlined_call_operand.vmem [shape: f32[1,8,128], index: 3, kind: output, shape index: {1}]   ;;  %s747_s4 = inlined_call_operand.vmem [shape: f32[1,8,128], index: 4, kind: output, shape index: {2}]  }
   0x1   :  { %v628_v0 = vld [vmem:[%s743_s1 + $0x20] ss:$0 sps:$4 sm:$0xff]   ;;  %v629_v1 = vld [vmem:[%s743_s1 + $0x18] sm:$0xff]   ;;  %v630_v3 = vld [vmem:[%s743_s1 + $0x10] sm:$0xff]  }
   0x2   :  { %626 = vmatprep.subr.msk.bf16.mxu0 %vm168_vm0, %v628_v0  ;;  %v170_v2 = vsel %vm168_vm0, %v628_v0, 0  ;;  %627 = vmatprep.subr.msk.bf16.mxu1 %vm168_vm0, %v628_v0  ;;  %v633_v4 = vld [vmem:[%s744_s0] sm:$0xff]   ;;  %v631_v5 = vld [vmem:[%s743_s1 + $0x8] sm:$0xff]   ;;  %v635_v10 = vld [vmem:[%s744_s0 + $0x10] sm:$0xff]  }
   0x3   :  { %591 = vmatpush3.bf16.msra.mxu0 %v170_v2  ;;  %621 = vmatpush3.bf16.msra.mxu1 %v170_v2  ;;  %v637_v6 = vld [vmem:[%s744_s0 + $0x20] sm:$0xff]   ;;  %v634_v8 = vld [vmem:[%s744_s0 + $0x8] sm:$0xff]   ;;  %v639_v11 = vld [vmem:[%s744_s0 + $0x30] sm:$0xff]  }
   0x4   :  { %592 = vmatprep.subr.bf16.mxu0 %v629_v1  ;;  %617 = vmatprep.subr.bf16.mxu1 %v629_v1  ;;  %v632_v7 = vld [vmem:[%s743_s1] sm:$0xff]   ;;  %v638_v9 = vld [vmem:[%s744_s0 + $0x28] sm:$0xff]   ;;  %v636_v12 = vld [vmem:[%s744_s0 + $0x18] sm:$0xff]  }
   0x5   :  { %600 = vmatprep.mubr.msk.bf16.mxu0 %vm143_vm1, %v633_v4  ;;  %608 = vmatprep.mubr.msk.bf16.mxu1 %vm143_vm1, %v637_v6  ;;  %v640_v13 = vld [vmem:[%s744_s0 + $0x38] sm:$0xff]  }
   0x7   :  { %593 = vmatpush3.bf16.msra.mxu0 %v629_v1  ;;  %622 = vmatpush3.bf16.msra.mxu1 %v629_v1 }
   0x8   :  { %594 = vmatprep.subr.bf16.mxu0 %v630_v3  ;;  %618 = vmatprep.subr.bf16.mxu1 %v630_v3 }
   0xb   :  { %595 = vmatpush3.bf16.msra.mxu0 %v630_v3  ;;  %623 = vmatpush3.bf16.msra.mxu1 %v630_v3 }
   0xc   :  { %596 = vmatprep.subr.bf16.mxu0 %v631_v5  ;;  %619 = vmatprep.subr.bf16.mxu1 %v631_v5 }
   0xf   :  { %597 = vmatpush3.bf16.msra.mxu0 %v631_v5  ;;  %624 = vmatpush3.bf16.msra.mxu1 %v631_v5 }
  0x10   :  { %598 = vmatprep.subr.bf16.mxu0 %v632_v7  ;;  %620 = vmatprep.subr.bf16.mxu1 %v632_v7 }
  0x13   :  { %599 = vmatpush3.bf16.msra.mxu0 %v632_v7  ;;  %625 = vmatpush3.bf16.msra.mxu1 %v632_v7 }
  0x16   :  { %601 = vmatmul.mubr.msk.bf16.vlgmr.msra.gmra.mxu0 %vm143_vm1, %v634_v8  ;;  %609 = vmatmul.mubr.msk.bf16.vlgmr.msra.gmra.mxu1 %vm143_vm1, %v638_v9 }
  0x17   :  { %604 = vmatprep.mubr.msk.bf16.mxu0 %vm143_vm1, %v635_v10  ;;  %612 = vmatprep.mubr.msk.bf16.mxu1 %vm143_vm1, %v639_v11 }
  0x1e   :  { %605 = vmatmul.mubr.msk.bf16.gmra.mxu0 %vm143_vm1, %v636_v12  ;;  %613 = vmatmul.mubr.msk.bf16.gmra.mxu1 %vm143_vm1, %v640_v13 }
  0xd6   :  { %v602_v14 = vpop.f32.mrf.mxu0  ;;  %v610_v15 = vpop.f32.mrf.mxu1 }
  0xd7   :  { %v428_v31 = vmul.f32 %v602_v14, %v602_v14  ;;  %v436_v1 = vmul.f32 %v610_v15, %v610_v15 }
  0xd8   :  { %v206_v16 = vpop.f32.mrf.mxu0  ;;  %v238_v17 = vpop.f32.mrf.mxu1 }
  0xd9   :  { %v426_v22 = vmul.f32 %v206_v16, %v206_v16  ;;  %v434_v59 = vmul.f32 %v238_v17, %v238_v17 }
  0xda   :  { %v603_v18 = vpop.f32.mrf.mxu0  ;;  %v611_v19 = vpop.f32.mrf.mxu1 }
  0xdb   :  { %v538_v20 = vpack.c.bf16 %v603_v18, %v602_v14  ;;  %v558_v21 = vpack.c.bf16 %v611_v19, %v610_v15  ;;  %v429_v36 = vmul.f32 %v603_v18, %v603_v18  ;;  %v437_v4 = vmul.f32 %v611_v19, %v611_v19 }
  0xdc   :  { %v209_v23 = vpop.f32.mrf.mxu0  ;;  %v241_v24 = vpop.f32.mrf.mxu1 }
  0xdd   :  { %570 = vst [vmem:[%s745_s2 + $0x8] sm:$0xff] %v538_v20   ;;  %v533_v25 = vpack.c.bf16 %v209_v23, %v206_v16  ;;  %v403_v26 = vadd.f32 %v209_v23, %v206_v16  ;;  %v427_v27 = vmul.f32 %v209_v23, %v209_v23  ;;  %574 = vst [vmem:[%s745_s2 + $0x28] sm:$0xff] %v558_v21   ;;  %v400_v23 = vlaneseq }
  0xde   :  { %v553_v28 = vpack.c.bf16 %v241_v24, %v238_v17  ;;  %v606_v29 = vpop.f32.mrf.mxu0  ;;  %v614_v30 = vpop.f32.mrf.mxu1  ;;  %v435_v63 = vmul.f32 %v241_v24, %v241_v24 }
  0xdf   :  { %534 = vst [vmem:[%s745_s2] sm:$0xff] %v533_v25   ;;  %v404_v32 = vadd.f32 %v602_v14, %v403_v26  ;;  %v442_v33 = vadd.f32 %v427_v27, %v426_v22  ;;  %v432_v53 = vmul.f32 %v606_v29, %v606_v29  ;;  %v440_v13 = vmul.f32 %v614_v30, %v614_v30 }
  0xe0   :  { %573 = vst [vmem:[%s745_s2 + $0x20] sm:$0xff] %v553_v28   ;;  %v222_v34 = vpop.f32.mrf.mxu0  ;;  %v254_v35 = vpop.f32.mrf.mxu1 }
  0xe1   :  { %v443_v37 = vadd.f32 %v442_v33, %v428_v31  ;;  %v405_v38 = vadd.f32 %v603_v18, %v404_v32  ;;  %v430_v42 = vmul.f32 %v222_v34, %v222_v34  ;;  %v438_v8 = vmul.f32 %v254_v35, %v254_v35 }
  0xe2   :  { %v607_v39 = vpop.f32.mrf.mxu0  ;;  %v615_v40 = vpop.f32.mrf.mxu1 }
  0xe3   :  { %v406_v41 = vadd.f32 %v405_v38, %v222_v34  ;;  %v444_v43 = vadd.f32 %v443_v37, %v429_v36  ;;  %v548_v44 = vpack.c.bf16 %v607_v39, %v606_v29  ;;  %v568_v46 = vpack.c.bf16 %v615_v40, %v614_v30 }
  0xe4   :  { %v225_v45 = vpop.f32.mrf.mxu0  ;;  %v257_v47 = vpop.f32.mrf.mxu1  ;;  %v433_v56 = vmul.f32 %v607_v39, %v607_v39  ;;  %v441_v18 = vmul.f32 %v615_v40, %v615_v40 }
  0xe5   :  { %v445_v48 = vadd.f32 %v444_v43, %v430_v42  ;;  %572 = vst [vmem:[%s745_s2 + $0x18] sm:$0xff] %v548_v44   ;;  %v543_v49 = vpack.c.bf16 %v225_v45, %v222_v34  ;;  %v407_v50 = vadd.f32 %v406_v41, %v225_v45  ;;  %v431_v51 = vmul.f32 %v225_v45, %v225_v45 }
  0xe6   :  { %576 = vst [vmem:[%s745_s2 + $0x38] sm:$0xff] %v568_v46   ;;  %v563_v52 = vpack.c.bf16 %v257_v47, %v254_v35  ;;  %v439_v12 = vmul.f32 %v257_v47, %v257_v47 }
  0xe7   :  { %571 = vst [vmem:[%s745_s2 + $0x10] sm:$0xff] %v543_v49   ;;  %v408_v54 = vadd.f32 %v606_v29, %v407_v50  ;;  %v446_v55 = vadd.f32 %v445_v48, %v431_v51 }
  0xe8   :  { %575 = vst [vmem:[%s745_s2 + $0x30] sm:$0xff] %v563_v52  }
  0xe9   :  { %v409_v57 = vadd.f32 %v607_v39, %v408_v54  ;;  %v447_v58 = vadd.f32 %v446_v55, %v432_v53 }
  0xeb   :  { %v448_v60 = vadd.f32 %v447_v58, %v433_v56  ;;  %v410_v61 = vadd.f32 %v409_v57, %v238_v17 }
  0xed   :  { %v411_v62 = vadd.f32 %v410_v61, %v241_v24  ;;  %v449_v0 = vadd.f32 %v448_v60, %v434_v59 }
  0xef   :  { %v412_v2 = vadd.f32 %v610_v15, %v411_v62  ;;  %v450_v3 = vadd.f32 %v449_v0, %v435_v63 }
  0xf1   :  { %v451_v5 = vadd.f32 %v450_v3, %v436_v1  ;;  %v413_v6 = vadd.f32 %v611_v19, %v412_v2  ;;  %v401_v19 = vshrl.u32 %v400_v23, 7 }
  0xf3   :  { %v414_v7 = vadd.f32 %v413_v6, %v254_v35  ;;  %v452_v9 = vadd.f32 %v451_v5, %v437_v4  ;;  %vm402_vm2 = vcmp.eq.s32.totalorder %v401_v19, 0 }
  0xf5   :  { %v453_v10 = vadd.f32 %v452_v9, %v438_v8  ;;  %v415_v11 = vadd.f32 %v414_v7, %v257_v47 }
  0xf7   :  { %v416_v14 = vadd.f32 %v614_v30, %v415_v11  ;;  %v454_v16 = vadd.f32 %v453_v10, %v439_v12 }
  0xf9   :  { %v417_v17 = vadd.f32 %v615_v40, %v416_v14  ;;  %v455_v20 = vadd.f32 %v454_v16, %v440_v13 }
  0xfb   :  { %v418_v21 = vrot.slane %v417_v17, 4  ;;  %v456_v22 = vadd.f32 %v455_v20, %v441_v18 }
  0xfd   :  { %v419_v15 = vadd.f32 %v418_v21, %v417_v17  ;;  %v457_v24 = vrot.slane %v456_v22, 4 }
  0xff   :  { %v420_v25 = vrot.slane %v419_v15, 2  ;;  %v458_v26 = vadd.f32 %v457_v24, %v456_v22 }
 0x101   :  { %v421_v27 = vadd.f32 %v420_v25, %v419_v15  ;;  %v459_v28 = vrot.slane %v458_v26, 2 }
 0x103   :  { %v422_v29 = vrot.slane %v421_v27, 1  ;;  %v460_v31 = vadd.f32 %v459_v28, %v458_v26 }
 0x105   :  { %v423_v32 = vadd.f32 %v422_v29, %v421_v27  ;;  %v461_v33 = vrot.slane %v460_v31, 1 }
 0x107   :  { %v424_v30 = vsel %vm402_vm2, %v423_v32, 0.0  ;;  %v462_v34 = vadd.f32 %v461_v33, %v460_v31 }
 0x108   :  { %425 = vst [vmem:[%s746_s3] sm:$0xff] %v424_v30 }
 0x109   :  { %v463_v35 = vsel %vm402_vm2, %v462_v34, 0.0 }
 0x10a   :  { %464 = vst [vmem:[%s747_s4] sm:$0xff] %v463_v35 }

// kernel: unet_forward.31
= control target key start
LH: loop header
LB: loop body
LE: loop exit
PB: predicated region body
PF: predicated region fallthrough
CT: control target
= control target key end

     0   :  { %vm172_vm0 = vcmask 125952   ;;  %s416_s0 = inlined_call_operand.vmem [shape: bf16[128,128], index: 0, kind: input, shape index: {}]   ;;  %s417_s1 = inlined_call_operand.vmem [shape: f32[1,128], index: 1, kind: input, shape index: {}]   ;;  %s418_s2 = inlined_call_operand.vmem [shape: f32[1,128], index: 2, kind: input, shape index: {}]   ;;  %s419_s3 = inlined_call_operand.vmem [shape: bf16[128,16], index: 3, kind: output, shape index: {}]  }
   0x1   :  { %v228_v0 = vld [vmem:[%s416_s0] sm:$0xff]   ;;  %v259_v4 = vld [vmem:[%s416_s0 + $0x8] sm:$0xff]   ;;  %v260_v5 = vld [vmem:[%s416_s0 + $0x10] sm:$0xff]  }
   0x2   :  { %v292_v1 = vld [vmem:[%s417_s1] ss:$0 sm:$0xff]  ;;  %v229_v2 = vunpack.c.l.bf16 %v228_v0  ;;  %v230_v3 = vunpack.c.h.bf16 %v228_v0  ;;  %v261_v6 = vld [vmem:[%s416_s0 + $0x18] sm:$0xff]   ;;  %v233_v8 = vunpack.c.l.bf16 %v259_v4  ;;  %v234_v9 = vunpack.c.h.bf16 %v259_v4  ;;  %v263_v41 = vld [vmem:[%s416_s0 + $0x28] sm:$0xff]  }
   0x3   :  { %v306_v7 = vld [vmem:[%s418_s2] ss:$0 sm:$0xff]  ;;  %v237_v10 = vunpack.c.l.bf16 %v260_v5  ;;  %v238_v11 = vunpack.c.h.bf16 %v260_v5  ;;  %v241_v14 = vunpack.c.l.bf16 %v261_v6  ;;  %v242_v15 = vunpack.c.h.bf16 %v261_v6  ;;  %v264_v42 = vld [vmem:[%s416_s0 + $0x30] sm:$0xff]   ;;  %v265_v47 = vld [vmem:[%s416_s0 + $0x38] sm:$0xff]  }
   0x4   :  { %v53_v12 = vmul.f32 %v229_v2, %v292_v1  ;;  %v54_v13 = vmul.f32 %v230_v3, %v292_v1  ;;  %v55_v16 = vmul.f32 %v233_v8, %v292_v1  ;;  %v56_v17 = vmul.f32 %v234_v9, %v292_v1  ;;  %v262_v36 = vld [vmem:[%s416_s0 + $0x20] sm:$0xff]  }
   0x5   :  { %v57_v18 = vmul.f32 %v237_v10, %v292_v1  ;;  %v58_v19 = vmul.f32 %v238_v11, %v292_v1  ;;  %v59_v22 = vmul.f32 %v241_v14, %v292_v1  ;;  %v60_v23 = vmul.f32 %v242_v15, %v292_v1 }
   0x6   :  { %v76_v20 = vadd.f32 %v306_v7, %v53_v12  ;;  %v77_v21 = vadd.f32 %v306_v7, %v54_v13  ;;  %v78_v24 = vadd.f32 %v306_v7, %v55_v16  ;;  %v79_v25 = vadd.f32 %v306_v7, %v56_v17 }
   0x7   :  { %v80_v26 = vadd.f32 %v306_v7, %v57_v18  ;;  %v81_v27 = vadd.f32 %v306_v7, %v58_v19  ;;  %v82_v30 = vadd.f32 %v306_v7, %v59_v22  ;;  %v83_v31 = vadd.f32 %v306_v7, %v60_v23 }
   0x8   :  { %v92_v28 = vmax.f32 %v76_v20, 0.0  ;;  %v93_v29 = vmax.f32 %v77_v21, 0.0  ;;  %v94_v32 = vmax.f32 %v78_v24, 0.0  ;;  %v95_v33 = vmax.f32 %v79_v25, 0.0 }
   0x9   :  { %v96_v34 = vmax.f32 %v80_v26, 0.0  ;;  %v97_v35 = vmax.f32 %v81_v27, 0.0  ;;  %v98_v39 = vmax.f32 %v82_v30, 0.0  ;;  %v99_v40 = vmax.f32 %v83_v31, 0.0 }
   0xa   :  { %v211_v37 = vpack.c.bf16 %v92_v28, %v92_v28  ;;  %v212_v38 = vpack.c.bf16 %v93_v29, %v93_v29  ;;  %v213_v43 = vpack.c.bf16 %v94_v32, %v94_v32  ;;  %v214_v44 = vpack.c.bf16 %v95_v33, %v95_v33 }
   0xb   :  { %v215_v45 = vpack.c.bf16 %v96_v34, %v96_v34  ;;  %v216_v46 = vpack.c.bf16 %v97_v35, %v97_v35  ;;  %v217_v48 = vpack.c.bf16 %v98_v39, %v98_v39  ;;  %v218_v49 = vpack.c.bf16 %v99_v40, %v99_v40 }
   0xc   :  { %173 = vst.msk [vmem:[%s419_s3] sm:$0xf] %vm172_vm0, %v211_v37  ;;  %174 = vst.msk [vmem:[%s419_s3 + $0x4] sm:$0xf] %vm172_vm0, %v212_v38  ;;  %v245_v50 = vunpack.c.l.bf16 %v262_v36  ;;  %v246_v51 = vunpack.c.h.bf16 %v262_v36  ;;  %v249_v52 = vunpack.c.l.bf16 %v263_v41  ;;  %v250_v53 = vunpack.c.h.bf16 %v263_v41 }
   0xd   :  { %175 = vst.msk [vmem:[%s419_s3 + $0x8] sm:$0xf] %vm172_vm0, %v213_v43  ;;  %176 = vst.msk [vmem:[%s419_s3 + $0xc] sm:$0xf] %vm172_vm0, %v214_v44  ;;  %v253_v54 = vunpack.c.l.bf16 %v264_v42  ;;  %v254_v55 = vunpack.c.h.bf16 %v264_v42  ;;  %v257_v58 = vunpack.c.l.bf16 %v265_v47  ;;  %v258_v59 = vunpack.c.h.bf16 %v265_v47 }
   0xe   :  { %177 = vst.msk [vmem:[%s419_s3 + $0x10] sm:$0xf] %vm172_vm0, %v215_v45  ;;  %178 = vst.msk [vmem:[%s419_s3 + $0x14] sm:$0xf] %vm172_vm0, %v216_v46  ;;  %v61_v56 = vmul.f32 %v245_v50, %v292_v1  ;;  %v62_v57 = vmul.f32 %v246_v51, %v292_v1  ;;  %v63_v60 = vmul.f32 %v249_v52, %v292_v1 }
   0xf   :  { %179 = vst.msk [vmem:[%s419_s3 + $0x18] sm:$0xf] %vm172_vm0, %v217_v48  ;;  %180 = vst.msk [vmem:[%s419_s3 + $0x1c] sm:$0xf] %vm172_vm0, %v218_v49  ;;  %v64_v61 = vmul.f32 %v250_v53, %v292_v1  ;;  %v65_v62 = vmul.f32 %v253_v54, %v292_v1  ;;  %v66_v63 = vmul.f32 %v254_v55, %v292_v1 }
  0x10   :  { %v84_v0 = vadd.f32 %v306_v7, %v61_v56  ;;  %v85_v2 = vadd.f32 %v306_v7, %v62_v57  ;;  %v67_v3 = vmul.f32 %v257_v58, %v292_v1  ;;  %v68_v4 = vmul.f32 %v258_v59, %v292_v1 }
  0x11   :  { %v86_v5 = vadd.f32 %v306_v7, %v63_v60  ;;  %v87_v6 = vadd.f32 %v306_v7, %v64_v61  ;;  %v88_v8 = vadd.f32 %v306_v7, %v65_v62  ;;  %v89_v9 = vadd.f32 %v306_v7, %v66_v63 }
  0x12   :  { %v100_v10 = vmax.f32 %v84_v0, 0.0  ;;  %v101_v11 = vmax.f32 %v85_v2, 0.0  ;;  %v90_v12 = vadd.f32 %v306_v7, %v67_v3  ;;  %v91_v13 = vadd.f32 %v306_v7, %v68_v4 }
  0x13   :  { %v102_v14 = vmax.f32 %v86_v5, 0.0  ;;  %v103_v15 = vmax.f32 %v87_v6, 0.0  ;;  %v104_v16 = vmax.f32 %v88_v8, 0.0  ;;  %v105_v17 = vmax.f32 %v89_v9, 0.0 }
  0x14   :  { %v219_v18 = vpack.c.bf16 %v100_v10, %v100_v10  ;;  %v220_v1 = vpack.c.bf16 %v101_v11, %v101_v11  ;;  %v106_v19 = vmax.f32 %v90_v12, 0.0  ;;  %v107_v20 = vmax.f32 %v91_v13, 0.0 }
  0x15   :  { %v221_v21 = vpack.c.bf16 %v102_v14, %v102_v14  ;;  %v222_v22 = vpack.c.bf16 %v103_v15, %v103_v15  ;;  %v223_v23 = vpack.c.bf16 %v104_v16, %v104_v16  ;;  %v224_v24 = vpack.c.bf16 %v105_v17, %v105_v17 }
  0x16   :  { %181 = vst.msk [vmem:[%s419_s3 + $0x20] sm:$0xf] %vm172_vm0, %v219_v18  ;;  %182 = vst.msk [vmem:[%s419_s3 + $0x24] sm:$0xf] %vm172_vm0, %v220_v1  ;;  %v225_v7 = vpack.c.bf16 %v106_v19, %v106_v19  ;;  %v226_v25 = vpack.c.bf16 %v107_v20, %v107_v20 }
  0x17   :  { %183 = vst.msk [vmem:[%s419_s3 + $0x28] sm:$0xf] %vm172_vm0, %v221_v21  ;;  %184 = vst.msk [vmem:[%s419_s3 + $0x2c] sm:$0xf] %vm172_vm0, %v222_v22 }
  0x18   :  { %185 = vst.msk [vmem:[%s419_s3 + $0x30] sm:$0xf] %vm172_vm0, %v223_v23  ;;  %186 = vst.msk [vmem:[%s419_s3 + $0x34] sm:$0xf] %vm172_vm0, %v224_v24 }
  0x19   :  { %187 = vst.msk [vmem:[%s419_s3 + $0x38] sm:$0xf] %vm172_vm0, %v225_v7  ;;  %188 = vst.msk [vmem:[%s419_s3 + $0x3c] sm:$0xf] %vm172_vm0, %v226_v25 }

// kernel: unet_forward.32
= control target key start
LH: loop header
LB: loop body
LE: loop exit
PB: predicated region body
PF: predicated region fallthrough
CT: control target
= control target key end

     0   :  { %v705_v0 = vmov 0   ;;  %vm211_vm0 = vcmask 130048   ;;  %s862_s1 = inlined_call_operand.vmem [shape: bf16[144,128], index: 1, kind: input, shape index: {}]   ;;  %s863_s0 = inlined_call_operand.vmem [shape: bf16[128,144], index: 0, kind: input, shape index: {}]   ;;  %s864_s2 = inlined_call_operand.vmem [shape: bf16[128,128], index: 2, kind: output, shape index: {0}]   ;;  %s865_s3 = inlined_call_operand.vmem [shape: f32[1,8,128], index: 3, kind: output, shape index: {1}]   ;;  %s866_s4 = inlined_call_operand.vmem [shape: f32[1,8,128], index: 4, kind: output, shape index: {2}]  }
   0x1   :  { %236 = vmatprep.subr.bf16.mxu0 %v705_v0  ;;  %v672_v1 = vld [vmem:[%s862_s1 + $0x38] sm:$0xff]   ;;  %653 = vmatprep.subr.bf16.mxu1 %v705_v0  ;;  %v673_v2 = vld [vmem:[%s862_s1 + $0x30] sm:$0xff]   ;;  %v674_v3 = vld [vmem:[%s862_s1 + $0x28] sm:$0xff]  }
   0x2   :  { %237 = vmatpush1.bf16.msra.mxu0 %v672_v1  ;;  %662 = vmatpush1.bf16.msra.mxu1 %v672_v1  ;;  %v675_v4 = vld [vmem:[%s862_s1 + $0x20] sm:$0xff]   ;;  %v676_v7 = vld [vmem:[%s862_s1 + $0x18] sm:$0xff]   ;;  %v677_v8 = vld [vmem:[%s862_s1 + $0x10] sm:$0xff]  }
   0x3   :  { %238 = vmatprep.subr.bf16.mxu0 %v705_v0  ;;  %654 = vmatprep.subr.bf16.mxu1 %v705_v0  ;;  %v683_v5 = vld [vmem:[%s863_s0 + $0x4] ss:$8 sps:$4 sm:$0xff]   ;;  %v681_v12 = vld [vmem:[%s863_s0] ss:$8 sps:$4 sm:$0xff]   ;;  %v684_v14 = vld [vmem:[%s863_s0 + $0x14] ss:$8 sps:$4 sm:$0xff]  }
   0x4   :  { %566 = vmatprep.mubr.msk.bf16.mxu0 %vm211_vm0, %v683_v5  ;;  %v689_v6 = vld [vmem:[%s863_s0 + $0x44] ss:$8 sps:$4 sm:$0xff]   ;;  %v687_v13 = vld [vmem:[%s863_s0 + $0x40] ss:$8 sps:$4 sm:$0xff]   ;;  %v693_v15 = vld [vmem:[%s863_s0 + $0x54] ss:$8 sps:$4 sm:$0xff]  }
   0x5   :  { %570 = vmatprep.mubr.msk.bf16.mxu1 %vm211_vm0, %v689_v6  ;;  %v678_v9 = vld [vmem:[%s862_s1 + $0x8] sm:$0xff]   ;;  %v679_v10 = vld [vmem:[%s862_s1] sm:$0xff]   ;;  %v686_v16 = vld [vmem:[%s863_s0 + $0x10] ss:$8 sps:$4 sm:$0xff]  }
   0x6   :  { %239 = vmatpush1.bf16.msra.mxu0 %v673_v2  ;;  %663 = vmatpush1.bf16.msra.mxu1 %v673_v2  ;;  %v680_v11 = vld [vmem:[%s862_s1 + $0x40] sm:$0xff]   ;;  %v695_v17 = vld [vmem:[%s863_s0 + $0x50] ss:$8 sps:$4 sm:$0xff]   ;;  %v696_v22 = vld [vmem:[%s863_s0 + $0x34] ss:$8 sps:$4 sm:$0xff]  }
   0x7   :  { %240 = vmatprep.subr.bf16.mxu0 %v705_v0  ;;  %655 = vmatprep.subr.bf16.mxu1 %v705_v0  ;;  %v690_v18 = vld [vmem:[%s863_s0 + $0x24] ss:$8 sps:$4 sm:$0xff]   ;;  %v692_v20 = vld [vmem:[%s863_s0 + $0x20] ss:$8 sps:$4 sm:$0xff]   ;;  %v702_v23 = vld [vmem:[%s863_s0 + $0x74] ss:$8 sps:$4 sm:$0xff]  }
   0x8   :  { %v699_v19 = vld [vmem:[%s863_s0 + $0x64] ss:$8 sps:$4 sm:$0xff]   ;;  %v701_v21 = vld [vmem:[%s863_s0 + $0x60] ss:$8 sps:$4 sm:$0xff]   ;;  %v698_v24 = vld [vmem:[%s863_s0 + $0x30] ss:$8 sps:$4 sm:$0xff]  }
   0x9   :  { %v704_v25 = vld [vmem:[%s863_s0 + $0x70] ss:$8 sps:$4 sm:$0xff]  }
   0xa   :  { %241 = vmatpush1.bf16.msra.mxu0 %v674_v3  ;;  %664 = vmatpush1.bf16.msra.mxu1 %v674_v3 }
   0xb   :  { %242 = vmatprep.subr.bf16.mxu0 %v705_v0  ;;  %656 = vmatprep.subr.bf16.mxu1 %v705_v0 }
   0xe   :  { %243 = vmatpush1.bf16.msra.mxu0 %v675_v4  ;;  %665 = vmatpush1.bf16.msra.mxu1 %v675_v4 }
   0xf   :  { %244 = vmatprep.subr.bf16.mxu0 %v705_v0  ;;  %657 = vmatprep.subr.bf16.mxu1 %v705_v0 }
  0x12   :  { %245 = vmatpush1.bf16.msra.mxu0 %v676_v7  ;;  %666 = vmatpush1.bf16.msra.mxu1 %v676_v7 }
  0x13   :  { %246 = vmatprep.subr.bf16.mxu0 %v705_v0  ;;  %658 = vmatprep.subr.bf16.mxu1 %v705_v0 }
  0x16   :  { %247 = vmatpush1.bf16.msra.mxu0 %v677_v8  ;;  %667 = vmatpush1.bf16.msra.mxu1 %v677_v8 }
  0x17   :  { %248 = vmatprep.subr.bf16.mxu0 %v705_v0  ;;  %659 = vmatprep.subr.bf16.mxu1 %v705_v0 }
  0x1a   :  { %249 = vmatpush1.bf16.msra.mxu0 %v678_v9  ;;  %668 = vmatpush1.bf16.msra.mxu1 %v678_v9 }
  0x1b   :  { %250 = vmatprep.subr.bf16.mxu0 %v705_v0  ;;  %660 = vmatprep.subr.bf16.mxu1 %v705_v0 }
  0x1e   :  { %251 = vmatpush1.bf16.msra.mxu0 %v679_v10  ;;  %669 = vmatpush1.bf16.msra.mxu1 %v679_v10 }
  0x1f   :  { %266 = vmatprep.subr.bf16.mxu0 %v705_v0  ;;  %661 = vmatprep.subr.bf16.mxu1 %v705_v0 }
  0x22   :  { %267 = vmatpush2.bf16.msra.mxu0 %v680_v11  ;;  %670 = vmatpush2.bf16.msra.mxu1 %v680_v11 }
  0x25   :  { %269 = vmatmul.mubr.bf16.vlgmr.msra.gmra.mxu0 %v681_v12  ;;  %301 = vmatmul.mubr.bf16.vlgmr.msra.gmra.mxu1 %v687_v13 }
  0x26   :  { %567 = vmatprep.mubr.msk.bf16.mxu0 %vm211_vm0, %v684_v14  ;;  %571 = vmatprep.mubr.msk.bf16.mxu1 %vm211_vm0, %v693_v15 }
  0x2d   :  { %277 = vmatmul.mubr.bf16.gmra.mxu0 %v686_v16  ;;  %309 = vmatmul.mubr.bf16.gmra.mxu1 %v695_v17 }
  0x2e   :  { %568 = vmatprep.mubr.msk.bf16.mxu0 %vm211_vm0, %v690_v18  ;;  %572 = vmatprep.mubr.msk.bf16.mxu1 %vm211_vm0, %v699_v19 }
  0x35   :  { %285 = vmatmul.mubr.bf16.gmra.mxu0 %v692_v20  ;;  %317 = vmatmul.mubr.bf16.gmra.mxu1 %v701_v21 }
  0x36   :  { %569 = vmatprep.mubr.msk.bf16.mxu0 %vm211_vm0, %v696_v22  ;;  %573 = vmatprep.mubr.msk.bf16.mxu1 %vm211_vm0, %v702_v23 }
  0x3d   :  { %293 = vmatmul.mubr.bf16.gmra.mxu0 %v698_v24  ;;  %325 = vmatmul.mubr.bf16.gmra.mxu1 %v704_v25 }
  0xe5   :  { %v270_v26 = vpop.f32.mrf.mxu0  ;;  %v814_v27 = vpop.f32.mrf.mxu1 }
  0xe6   :  { %v490_v47 = vmul.f32 %v270_v26, %v270_v26  ;;  %v498_v23 = vmul.f32 %v814_v27, %v814_v27 }
  0xe7   :  { %v272_v28 = vpop.f32.mrf.mxu0  ;;  %v304_v29 = vpop.f32.mrf.mxu1 }
  0xe9   :  { %v273_v30 = vpop.f32.mrf.mxu0  ;;  %v816_v31 = vpop.f32.mrf.mxu1 }
  0xea   :  { %v609_v32 = vpack.c.bf16 %v273_v30, %v270_v26  ;;  %v629_v33 = vpack.c.bf16 %v816_v31, %v814_v27  ;;  %v491_v44 = vmul.f32 %v273_v30, %v273_v30  ;;  %v467_v51 = vadd.f32 %v273_v30, %v270_v26 }
  0xeb   :  { %v275_v34 = vpop.f32.mrf.mxu0  ;;  %v307_v35 = vpop.f32.mrf.mxu1  ;;  %v499_v26 = vmul.f32 %v816_v31, %v816_v31 }
  0xec   :  { %610 = vst [vmem:[%s864_s2] sm:$0xff] %v609_v32   ;;  %649 = vst [vmem:[%s864_s2 + $0x20] sm:$0xff] %v629_v33   ;;  %v506_v52 = vadd.f32 %v491_v44, %v490_v47 }
  0xed   :  { %v278_v36 = vpop.f32.mrf.mxu0  ;;  %v826_v37 = vpop.f32.mrf.mxu1 }
  0xee   :  { %v492_v48 = vmul.f32 %v278_v36, %v278_v36  ;;  %v468_v56 = vadd.f32 %v467_v51, %v278_v36  ;;  %v500_v30 = vmul.f32 %v826_v37, %v826_v37 }
  0xef   :  { %v280_v38 = vpop.f32.mrf.mxu0  ;;  %v312_v39 = vpop.f32.mrf.mxu1 }
  0xf0   :  { %v507_v57 = vadd.f32 %v506_v52, %v492_v48  ;;  %v464_v52 = vlaneseq }
  0xf1   :  { %v281_v40 = vpop.f32.mrf.mxu0  ;;  %v313_v41 = vpop.f32.mrf.mxu1 }
  0xf2   :  { %v614_v42 = vpack.c.bf16 %v281_v40, %v278_v36  ;;  %v634_v43 = vpack.c.bf16 %v313_v41, %v826_v37  ;;  %v493_v53 = vmul.f32 %v281_v40, %v281_v40  ;;  %v469_v61 = vadd.f32 %v468_v56, %v281_v40 }
  0xf3   :  { %v283_v45 = vpop.f32.mrf.mxu0  ;;  %v315_v46 = vpop.f32.mrf.mxu1  ;;  %v501_v34 = vmul.f32 %v313_v41, %v313_v41 }
  0xf4   :  { %646 = vst [vmem:[%s864_s2 + $0x8] sm:$0xff] %v614_v42   ;;  %650 = vst [vmem:[%s864_s2 + $0x28] sm:$0xff] %v634_v43   ;;  %v508_v0 = vadd.f32 %v507_v57, %v493_v53 }
  0xf5   :  { %v286_v49 = vpop.f32.mrf.mxu0  ;;  %v318_v50 = vpop.f32.mrf.mxu1 }
  0xf6   :  { %v494_v58 = vmul.f32 %v286_v49, %v286_v49  ;;  %v470_v4 = vadd.f32 %v469_v61, %v286_v49  ;;  %v502_v36 = vmul.f32 %v318_v50, %v318_v50 }
  0xf7   :  { %v288_v54 = vpop.f32.mrf.mxu0  ;;  %v320_v55 = vpop.f32.mrf.mxu1 }
  0xf8   :  { %v509_v5 = vadd.f32 %v508_v0, %v494_v58  ;;  %v465_v55 = vshrl.u32 %v464_v52, 7 }
  0xf9   :  { %v289_v59 = vpop.f32.mrf.mxu0  ;;  %v321_v60 = vpop.f32.mrf.mxu1 }
  0xfa   :  { %v619_v62 = vpack.c.bf16 %v289_v59, %v286_v49  ;;  %v639_v63 = vpack.c.bf16 %v321_v60, %v318_v50  ;;  %v495_v1 = vmul.f32 %v289_v59, %v289_v59  ;;  %v471_v8 = vadd.f32 %v470_v4, %v289_v59 }
  0xfb   :  { %v291_v2 = vpop.f32.mrf.mxu0  ;;  %v323_v3 = vpop.f32.mrf.mxu1  ;;  %v503_v42 = vmul.f32 %v321_v60, %v321_v60  ;;  %vm466_vm1 = vcmp.eq.s32.totalorder %v465_v55, 0 }
  0xfc   :  { %647 = vst [vmem:[%s864_s2 + $0x10] sm:$0xff] %v619_v62   ;;  %651 = vst [vmem:[%s864_s2 + $0x30] sm:$0xff] %v639_v63   ;;  %v510_v10 = vadd.f32 %v509_v5, %v495_v1 }
  0xfd   :  { %v294_v6 = vpop.f32.mrf.mxu0  ;;  %v326_v7 = vpop.f32.mrf.mxu1 }
  0xfe   :  { %v496_v9 = vmul.f32 %v294_v6, %v294_v6  ;;  %v472_v13 = vadd.f32 %v471_v8, %v294_v6  ;;  %v504_v46 = vmul.f32 %v326_v7, %v326_v7 }
  0xff   :  { %v296_v11 = vpop.f32.mrf.mxu0  ;;  %v328_v12 = vpop.f32.mrf.mxu1 }
 0x100   :  { %v511_v14 = vadd.f32 %v510_v10, %v496_v9 }
 0x101   :  { %v297_v15 = vpop.f32.mrf.mxu0  ;;  %v329_v16 = vpop.f32.mrf.mxu1 }
 0x102   :  { %v624_v17 = vpack.c.bf16 %v297_v15, %v294_v6  ;;  %v473_v18 = vadd.f32 %v472_v13, %v297_v15  ;;  %v497_v19 = vmul.f32 %v297_v15, %v297_v15  ;;  %v644_v20 = vpack.c.bf16 %v329_v16, %v326_v7 }
 0x103   :  { %v299_v21 = vpop.f32.mrf.mxu0  ;;  %v331_v22 = vpop.f32.mrf.mxu1  ;;  %v505_v48 = vmul.f32 %v329_v16, %v329_v16 }
 0x104   :  { %648 = vst [vmem:[%s864_s2 + $0x18] sm:$0xff] %v624_v17   ;;  %v474_v24 = vadd.f32 %v473_v18, %v814_v27  ;;  %v512_v25 = vadd.f32 %v511_v14, %v497_v19  ;;  %652 = vst [vmem:[%s864_s2 + $0x38] sm:$0xff] %v644_v20  }
 0x106   :  { %v475_v28 = vadd.f32 %v474_v24, %v816_v31  ;;  %v513_v29 = vadd.f32 %v512_v25, %v498_v23 }
 0x108   :  { %v514_v32 = vadd.f32 %v513_v29, %v499_v26  ;;  %v476_v33 = vadd.f32 %v475_v28, %v826_v37 }
 0x10a   :  { %v477_v35 = vadd.f32 %v476_v33, %v313_v41  ;;  %v515_v27 = vadd.f32 %v514_v32, %v500_v30 }
 0x10c   :  { %v478_v38 = vadd.f32 %v477_v35, %v318_v50  ;;  %v516_v39 = vadd.f32 %v515_v27, %v501_v34 }
 0x10e   :  { %v479_v40 = vadd.f32 %v478_v38, %v321_v60  ;;  %v517_v43 = vadd.f32 %v516_v39, %v502_v36 }
 0x110   :  { %v518_v44 = vadd.f32 %v517_v43, %v503_v42  ;;  %v480_v45 = vadd.f32 %v479_v40, %v326_v7 }
 0x112   :  { %v519_v31 = vadd.f32 %v518_v44, %v504_v46  ;;  %v481_v47 = vadd.f32 %v480_v45, %v329_v16 }
 0x114   :  { %v482_v49 = vrot.slane %v481_v47, 4  ;;  %v520_v51 = vadd.f32 %v519_v31, %v505_v48 }
 0x116   :  { %v483_v53 = vadd.f32 %v482_v49, %v481_v47  ;;  %v521_v37 = vrot.slane %v520_v51, 4 }
 0x118   :  { %v484_v54 = vrot.slane %v483_v53, 2  ;;  %v522_v41 = vadd.f32 %v521_v37, %v520_v51 }
 0x11a   :  { %v485_v56 = vadd.f32 %v484_v54, %v483_v53  ;;  %v523_v50 = vrot.slane %v522_v41, 2 }
 0x11c   :  { %v486_v57 = vrot.slane %v485_v56, 1  ;;  %v524_v58 = vadd.f32 %v523_v50, %v522_v41 }
 0x11e   :  { %v487_v59 = vadd.f32 %v486_v57, %v485_v56  ;;  %v525_v60 = vrot.slane %v524_v58, 1 }
 0x120   :  { %v488_v61 = vsel %vm466_vm1, %v487_v59, 0.0  ;;  %v526_v62 = vadd.f32 %v525_v60, %v524_v58 }
 0x121   :  { %489 = vst [vmem:[%s865_s3] sm:$0xff] %v488_v61 }
 0x122   :  { %v527_v63 = vsel %vm466_vm1, %v526_v62, 0.0 }
 0x123   :  { %528 = vst [vmem:[%s866_s4] sm:$0xff] %v527_v63 }

// kernel: unet_forward.34
= control target key start
LH: loop header
LB: loop body
LE: loop exit
PB: predicated region body
PF: predicated region fallthrough
CT: control target
= control target key end

     0   :  { %vm105_vm0 = vcmask 122880   ;;  %vm524_vm1 = vsmask.f32 256  ;;  %s1122_s0 = inlined_call_operand.vmem [shape: bf16[8,2,4,2,16], index: 0, kind: input, shape index: {}]   ;;  %s1123_s1 = inlined_call_operand.vmem [shape: bf16[8,4,1,16], index: 1, kind: output, shape index: {}]  }
   0x1   :  { %v9_v0 = vld [vmem:[%s1122_s0] sm:$0x1]  ;;  %v13_v1 = vld [vmem:[%s1122_s0 + $0x4] sm:$0x1]  ;;  %v10_v3 = vld [vmem:[%s1122_s0 + $0x1] sm:$0x1] }
   0x2   :  { %v73_v2 = vmax.bf16 %v13_v1, %v9_v0  ;;  %v14_v4 = vld [vmem:[%s1122_s0 + $0x5] sm:$0x1]  ;;  %v11_v6 = vld [vmem:[%s1122_s0 + $0x2] sm:$0x1]  ;;  %v15_v7 = vld [vmem:[%s1122_s0 + $0x6] sm:$0x1] }
   0x3   :  { %v74_v5 = vmax.bf16 %v14_v4, %v10_v3  ;;  %v75_v9 = vmax.bf16 %v15_v7, %v11_v6  ;;  %v12_v10 = vld [vmem:[%s1122_s0 + $0x3] sm:$0x1]  ;;  %v16_v14 = vld [vmem:[%s1122_s0 + $0x7] sm:$0x1]  ;;  %v17_v19 = vld [vmem:[%s1122_s0 + $0x8] sm:$0x1] }
   0x4   :  { %v108_v8 = vsel %vm105_vm0, %v73_v2, 4286644096  ;;  %v76_v18 = vmax.bf16 %v16_v14, %v12_v10  ;;  %v21_v20 = vld [vmem:[%s1122_s0 + $0xc] sm:$0x1]  ;;  %v18_v25 = vld [vmem:[%s1122_s0 + $0x9] sm:$0x1]  ;;  %vm694_vm2 = vmand %vm105_vm0, %vm524_vm1 }
   0x5   :  { %v110_v11 = vunpack.i.l.bf16 %v108_v8  ;;  %v111_v12 = vunpack.i.h.bf16 %v108_v8  ;;  %v121_v13 = vsel %vm105_vm0, %v74_v5, 4286644096  ;;  %v134_v17 = vsel %vm105_vm0, %v75_v9, 4286644096  ;;  %v22_v26 = vld [vmem:[%s1122_s0 + $0xd] sm:$0x1] }
   0x6   :  { %v123_v15 = vunpack.i.l.bf16 %v121_v13  ;;  %v124_v16 = vunpack.i.h.bf16 %v121_v13  ;;  %v136_v22 = vunpack.i.l.bf16 %v134_v17  ;;  %v137_v23 = vunpack.i.h.bf16 %v134_v17  ;;  %v19_v30 = vld [vmem:[%s1122_s0 + $0xa] sm:$0x1]  ;;  %v23_v35 = vld [vmem:[%s1122_s0 + $0xe] sm:$0x1]  ;;  %v20_v48 = vld [vmem:[%s1122_s0 + $0xb] sm:$0x1] }
   0x7   :  { %v112_v21 = vmax.f32 %v110_v11, %v111_v12  ;;  %v77_v24 = vmax.bf16 %v21_v20, %v17_v19  ;;  %v147_v28 = vsel %vm105_vm0, %v76_v18, 4286644096  ;;  %v78_v29 = vmax.bf16 %v22_v26, %v18_v25  ;;  %v24_v53 = vld [vmem:[%s1122_s0 + $0xf] sm:$0x1] }
   0x8   :  { %v125_v27 = vmax.f32 %v123_v15, %v124_v16  ;;  %v138_v32 = vmax.f32 %v136_v22, %v137_v23  ;;  %v149_v33 = vunpack.i.l.bf16 %v147_v28  ;;  %v150_v34 = vunpack.i.h.bf16 %v147_v28  ;;  %v526_v15 = vld [vmem:[%s1123_s1] sm:$0x1]  ;;  %v532_v23 = vld [vmem:[%s1123_s1 + $0x2] sm:$0x1] }
   0x9   :  { %v113_v31 = vrot.slane %v112_v21, 4  ;;  %v160_v37 = vsel %vm105_vm0, %v77_v24, 4286644096  ;;  %v173_v38 = vsel %vm105_vm0, %v78_v29, 4286644096  ;;  %v79_v39 = vmax.bf16 %v23_v35, %v19_v30 }
   0xa   :  { %v126_v36 = vrot.slane %v125_v27, 4  ;;  %v139_v41 = vrot.slane %v138_v32, 4  ;;  %v151_v42 = vmax.f32 %v149_v33, %v150_v34  ;;  %v162_v43 = vunpack.i.l.bf16 %v160_v37 }
   0xb   :  { %v114_v40 = vmax.f32 %v112_v21, %v113_v31  ;;  %v163_v45 = vunpack.i.h.bf16 %v160_v37  ;;  %v175_v46 = vunpack.i.l.bf16 %v173_v38  ;;  %v176_v47 = vunpack.i.h.bf16 %v173_v38  ;;  %v529_v21 = vld [vmem:[%s1123_s1 + $0x1] sm:$0x1]  ;;  %v25_v31 = vld [vmem:[%s1122_s0 + $0x10] sm:$0x1]  ;;  %v26_v37 = vld [vmem:[%s1122_s0 + $0x11] sm:$0x1] }
   0xc   :  { %v127_v44 = vmax.f32 %v125_v27, %v126_v36  ;;  %v140_v50 = vmax.f32 %v138_v32, %v139_v41  ;;  %v152_v51 = vrot.slane %v151_v42, 4  ;;  %v186_v52 = vsel %vm105_vm0, %v79_v39, 4286644096  ;;  %v535_v27 = vld [vmem:[%s1123_s1 + $0x3] sm:$0x1] }
   0xd   :  { %v115_v49 = vrot.slane %v114_v40, 2  ;;  %v164_v55 = vmax.f32 %v162_v43, %v163_v45  ;;  %v177_v56 = vmax.f32 %v175_v46, %v176_v47  ;;  %v188_v57 = vunpack.i.l.bf16 %v186_v52  ;;  %v29_v32 = vld [vmem:[%s1122_s0 + $0x14] sm:$0x1]  ;;  %v30_v38 = vld [vmem:[%s1122_s0 + $0x15] sm:$0x1] }
   0xe   :  { %v128_v54 = vrot.slane %v127_v44, 2  ;;  %v141_v59 = vrot.slane %v140_v50, 2  ;;  %v153_v60 = vmax.f32 %v151_v42, %v152_v51  ;;  %v189_v61 = vunpack.i.h.bf16 %v186_v52  ;;  %v27_v43 = vld [vmem:[%s1122_s0 + $0x12] sm:$0x1] }
   0xf   :  { %v116_v58 = vmax.f32 %v114_v40, %v115_v49  ;;  %v165_v63 = vrot.slane %v164_v55, 4  ;;  %v178_v0 = vrot.slane %v177_v56, 4  ;;  %v80_v1 = vmax.bf16 %v24_v53, %v20_v48 }
  0x10   :  { %v129_v62 = vmax.f32 %v127_v44, %v128_v54  ;;  %v142_v3 = vmax.f32 %v140_v50, %v141_v59  ;;  %v154_v4 = vrot.slane %v153_v60, 2  ;;  %v190_v5 = vmax.f32 %v188_v57, %v189_v61  ;;  %v31_v44 = vld [vmem:[%s1122_s0 + $0x16] sm:$0x1]  ;;  %v538_v50 = vld [vmem:[%s1123_s1 + $0x4] sm:$0x1] }
  0x11   :  { %v117_v2 = vrot.slane %v116_v58, 1  ;;  %v166_v7 = vmax.f32 %v164_v55, %v165_v63  ;;  %v179_v8 = vmax.f32 %v177_v56, %v178_v0  ;;  %v199_v9 = vsel %vm105_vm0, %v80_v1, 4286644096  ;;  %v541_v55 = vld [vmem:[%s1123_s1 + $0x5] sm:$0x1] }
  0x12   :  { %v130_v6 = vrot.slane %v129_v62, 1  ;;  %v143_v11 = vrot.slane %v142_v3, 1  ;;  %v155_v12 = vmax.f32 %v153_v60, %v154_v4  ;;  %v191_v13 = vrot.slane %v190_v5, 4  ;;  %v544_v61 = vld [vmem:[%s1123_s1 + $0x6] sm:$0x1] }
  0x13   :  { %v118_v10 = vmax.f32 %v116_v58, %v117_v2  ;;  %v167_v17 = vrot.slane %v166_v7, 2  ;;  %v180_v18 = vrot.slane %v179_v8, 2  ;;  %v201_v19 = vunpack.i.l.bf16 %v199_v9  ;;  %v28_v0 = vld [vmem:[%s1122_s0 + $0x13] sm:$0x1]  ;;  %v32_v1 = vld [vmem:[%s1122_s0 + $0x17] sm:$0x1] }
  0x14   :  { %v131_v16 = vmax.f32 %v129_v62, %v130_v6  ;;  %v144_v22 = vmax.f32 %v142_v3, %v143_v11  ;;  %v156_v24 = vrot.slane %v155_v12, 1  ;;  %v192_v25 = vmax.f32 %v190_v5, %v191_v13  ;;  %v33_v2 = vld [vmem:[%s1122_s0 + $0x18] sm:$0x1]  ;;  %v38_v13 = vld [vmem:[%s1122_s0 + $0x1d] sm:$0x1] }
  0x15   :  { %v119_v20 = vpack.i.bf16 %v118_v10, %v118_v10  ;;  %v168_v28 = vmax.f32 %v166_v7, %v167_v17  ;;  %v181_v29 = vmax.f32 %v179_v8, %v180_v18  ;;  %v202_v30 = vunpack.i.h.bf16 %v199_v9  ;;  %v37_v7 = vld [vmem:[%s1122_s0 + $0x1c] sm:$0x1] }
  0x16   :  { %v132_v26 = vpack.i.bf16 %v131_v16, %v131_v16  ;;  %v145_v34 = vpack.i.bf16 %v144_v22, %v144_v22  ;;  %v157_v35 = vmax.f32 %v155_v12, %v156_v24  ;;  %v193_v36 = vrot.slane %v192_v25, 2  ;;  %v34_v12 = vld [vmem:[%s1122_s0 + $0x19] sm:$0x1] }
  0x17   :  { %v527_v33 = vsel %vm694_vm2, %v119_v20, %v526_v15  ;;  %v169_v40 = vrot.slane %v168_v28, 1  ;;  %v182_v41 = vrot.slane %v181_v29, 1  ;;  %v203_v42 = vmax.f32 %v201_v19, %v202_v30 }
  0x18   :  { %528 = vst [vmem:[%s1123_s1] sm:$0x1] %v527_v33  ;;  %v530_v39 = vsel %vm694_vm2, %v132_v26, %v529_v21  ;;  %v533_v45 = vsel %vm694_vm2, %v145_v34, %v532_v23  ;;  %v158_v46 = vpack.i.bf16 %v157_v35, %v157_v35  ;;  %v194_v47 = vmax.f32 %v192_v25, %v193_v36  ;;  %v547_v36 = vld [vmem:[%s1123_s1 + $0x7] sm:$0x1] }
  0x19   :  { %531 = vst [vmem:[%s1123_s1 + $0x1] sm:$0x1] %v530_v39  ;;  %v81_v48 = vmax.bf16 %v29_v32, %v25_v31  ;;  %534 = vst [vmem:[%s1123_s1 + $0x2] sm:$0x1] %v533_v45  ;;  %v170_v49 = vmax.f32 %v168_v28, %v169_v40  ;;  %v183_v51 = vmax.f32 %v181_v29, %v182_v41  ;;  %v204_v52 = vrot.slane %v203_v42, 4 }
  0x1a   :  { %v82_v53 = vmax.bf16 %v30_v38, %v26_v37  ;;  %v536_v54 = vsel %vm694_vm2, %v158_v46, %v535_v27  ;;  %v195_v56 = vrot.slane %v194_v47, 1  ;;  %v83_v58 = vmax.bf16 %v31_v44, %v27_v43  ;;  %v35_v40 = vld [vmem:[%s1122_s0 + $0x1a] sm:$0x1]  ;;  %v39_v45 = vld [vmem:[%s1122_s0 + $0x1e] sm:$0x1] }
  0x1b   :  { %v212_v57 = vsel %vm105_vm0, %v81_v48, 4286644096  ;;  %537 = vst [vmem:[%s1123_s1 + $0x3] sm:$0x1] %v536_v54  ;;  %v171_v59 = vpack.i.bf16 %v170_v49, %v170_v49  ;;  %v184_v60 = vpack.i.bf16 %v183_v51, %v183_v51  ;;  %v205_v62 = vmax.f32 %v203_v42, %v204_v52  ;;  %v36_v54 = vld [vmem:[%s1122_s0 + $0x1b] sm:$0x1] }
  0x1c   :  { %v214_v63 = vunpack.i.l.bf16 %v212_v57  ;;  %v196_v3 = vmax.f32 %v194_v47, %v195_v56  ;;  %v215_v4 = vunpack.i.h.bf16 %v212_v57  ;;  %v225_v5 = vsel %vm105_vm0, %v82_v53, 4286644096 }
  0x1d   :  { %v238_v6 = vsel %vm105_vm0, %v83_v58, 4286644096  ;;  %v539_v8 = vsel %vm694_vm2, %v171_v59, %v538_v50  ;;  %v542_v9 = vsel %vm694_vm2, %v184_v60, %v541_v55  ;;  %v206_v10 = vrot.slane %v205_v62, 2  ;;  %v40_v55 = vld [vmem:[%s1122_s0 + $0x1f] sm:$0x1] }
  0x1e   :  { %v227_v11 = vunpack.i.l.bf16 %v225_v5  ;;  %540 = vst [vmem:[%s1123_s1 + $0x4] sm:$0x1] %v539_v8  ;;  %543 = vst [vmem:[%s1123_s1 + $0x5] sm:$0x1] %v542_v9  ;;  %v197_v15 = vpack.i.bf16 %v196_v3, %v196_v3  ;;  %v216_v16 = vmax.f32 %v214_v63, %v215_v4  ;;  %v228_v17 = vunpack.i.h.bf16 %v225_v5  ;;  %v550_v8 = vld [vmem:[%s1123_s1 + $0x8] sm:$0x1] }
  0x1f   :  { %v240_v18 = vunpack.i.l.bf16 %v238_v6  ;;  %v207_v19 = vmax.f32 %v205_v62, %v206_v10  ;;  %v241_v20 = vunpack.i.h.bf16 %v238_v6  ;;  %v84_v21 = vmax.bf16 %v32_v1, %v28_v0 }
  0x20   :  { %v85_v22 = vmax.bf16 %v37_v7, %v33_v2  ;;  %v545_v23 = vsel %vm694_vm2, %v197_v15, %v544_v61  ;;  %v217_v24 = vrot.slane %v216_v16, 4  ;;  %v229_v25 = vmax.f32 %v227_v11, %v228_v17 }
  0x21   :  { %v86_v26 = vmax.bf16 %v38_v13, %v34_v12  ;;  %546 = vst [vmem:[%s1123_s1 + $0x6] sm:$0x1] %v545_v23  ;;  %v208_v27 = vrot.slane %v207_v19, 1  ;;  %v242_v28 = vmax.f32 %v240_v18, %v241_v20  ;;  %v251_v29 = vsel %vm105_vm0, %v84_v21, 4286644096 }
  0x22   :  { %v264_v30 = vsel %vm105_vm0, %v85_v22, 4286644096  ;;  %v218_v31 = vmax.f32 %v216_v16, %v217_v24  ;;  %v230_v32 = vrot.slane %v229_v25, 4  ;;  %v253_v33 = vunpack.i.l.bf16 %v251_v29  ;;  %v553_v18 = vld [vmem:[%s1123_s1 + $0x9] sm:$0x1] }
  0x23   :  { %v254_v34 = vunpack.i.h.bf16 %v251_v29  ;;  %v209_v35 = vmax.f32 %v207_v19, %v208_v27  ;;  %v243_v37 = vrot.slane %v242_v28, 4  ;;  %v266_v38 = vunpack.i.l.bf16 %v264_v30  ;;  %v556_v20 = vld [vmem:[%s1123_s1 + $0xa] sm:$0x1]  ;;  %v45_v29 = vld [vmem:[%s1122_s0 + $0x24] sm:$0x1] }
  0x24   :  { %v267_v39 = vunpack.i.h.bf16 %v264_v30  ;;  %v219_v41 = vrot.slane %v218_v31, 2  ;;  %v231_v42 = vmax.f32 %v229_v25, %v230_v32  ;;  %v277_v44 = vsel %vm105_vm0, %v86_v26, 4286644096 }
  0x25   :  { %v255_v43 = vmax.f32 %v253_v33, %v254_v34  ;;  %v210_v46 = vpack.i.bf16 %v209_v35, %v209_v35  ;;  %v244_v47 = vmax.f32 %v242_v28, %v243_v37  ;;  %v279_v49 = vunpack.i.l.bf16 %v277_v44  ;;  %v41_v28 = vld [vmem:[%s1122_s0 + $0x20] sm:$0x1]  ;;  %v42_v34 = vld [vmem:[%s1122_s0 + $0x21] sm:$0x1]  ;;  %v46_v35 = vld [vmem:[%s1122_s0 + $0x25] sm:$0x1] }
  0x26   :  { %v268_v48 = vmax.f32 %v266_v38, %v267_v39  ;;  %v220_v50 = vmax.f32 %v218_v31, %v219_v41  ;;  %v232_v51 = vrot.slane %v231_v42, 2  ;;  %v280_v53 = vunpack.i.h.bf16 %v277_v44  ;;  %v47_v41 = vld [vmem:[%s1122_s0 + $0x26] sm:$0x1] }
  0x27   :  { %v256_v52 = vrot.slane %v255_v43, 4  ;;  %v548_v56 = vsel %vm694_vm2, %v210_v46, %v547_v36  ;;  %v245_v57 = vrot.slane %v244_v47, 2  ;;  %v87_v59 = vmax.bf16 %v39_v45, %v35_v40  ;;  %v43_v40 = vld [vmem:[%s1122_s0 + $0x22] sm:$0x1] }
  0x28   :  { %v269_v58 = vrot.slane %v268_v48, 4  ;;  %549 = vst [vmem:[%s1123_s1 + $0x7] sm:$0x1] %v548_v56  ;;  %v221_v60 = vrot.slane %v220_v50, 1  ;;  %v233_v61 = vmax.f32 %v231_v42, %v232_v51  ;;  %v281_v63 = vmax.f32 %v279_v49, %v280_v53 }
  0x29   :  { %v257_v62 = vmax.f32 %v255_v43, %v256_v52  ;;  %v246_v0 = vmax.f32 %v244_v47, %v245_v57  ;;  %v290_v2 = vsel %vm105_vm0, %v87_v59, 4286644096  ;;  %v88_v3 = vmax.bf16 %v40_v55, %v36_v54  ;;  %v559_v43 = vld [vmem:[%s1123_s1 + $0xb] sm:$0x1] }
  0x2a   :  { %v270_v1 = vmax.f32 %v268_v48, %v269_v58  ;;  %v222_v4 = vmax.f32 %v220_v50, %v221_v60  ;;  %v234_v5 = vrot.slane %v233_v61, 1  ;;  %v282_v7 = vrot.slane %v281_v63, 4  ;;  %v562_v48 = vld [vmem:[%s1123_s1 + $0xc] sm:$0x1]  ;;  %v44_v60 = vld [vmem:[%s1122_s0 + $0x23] sm:$0x1] }
  0x2b   :  { %v258_v6 = vrot.slane %v257_v62, 2  ;;  %v247_v9 = vrot.slane %v246_v0, 1  ;;  %v292_v11 = vunpack.i.l.bf16 %v290_v2  ;;  %v293_v12 = vunpack.i.h.bf16 %v290_v2 }
  0x2c   :  { %v271_v10 = vrot.slane %v270_v1, 2  ;;  %v223_v13 = vpack.i.bf16 %v222_v4, %v222_v4  ;;  %v235_v15 = vmax.f32 %v233_v61, %v234_v5  ;;  %v283_v17 = vmax.f32 %v281_v63, %v282_v7  ;;  %v48_v61 = vld [vmem:[%s1122_s0 + $0x27] sm:$0x1]  ;;  %v565_v63 = vld [vmem:[%s1123_s1 + $0xd] sm:$0x1] }
  0x2d   :  { %v259_v16 = vmax.f32 %v257_v62, %v258_v6  ;;  %v248_v19 = vmax.f32 %v246_v0, %v247_v9  ;;  %v294_v22 = vmax.f32 %v292_v11, %v293_v12  ;;  %v303_v23 = vsel %vm105_vm0, %v88_v3, 4286644096  ;;  %v49_v11 = vld [vmem:[%s1122_s0 + $0x28] sm:$0x1] }
  0x2e   :  { %v272_v21 = vmax.f32 %v270_v1, %v271_v10  ;;  %v551_v24 = vsel %vm694_vm2, %v223_v13, %v550_v8  ;;  %v236_v25 = vpack.i.bf16 %v235_v15, %v235_v15  ;;  %v284_v27 = vrot.slane %v283_v17, 2 }
  0x2f   :  { %v260_v26 = vrot.slane %v259_v16, 1  ;;  %552 = vst [vmem:[%s1123_s1 + $0x8] sm:$0x1] %v551_v24  ;;  %v249_v30 = vpack.i.bf16 %v248_v19, %v248_v19  ;;  %v295_v32 = vrot.slane %v294_v22, 4  ;;  %v305_v33 = vunpack.i.l.bf16 %v303_v23  ;;  %v568_v24 = vld [vmem:[%s1123_s1 + $0xe] sm:$0x1] }
  0x30   :  { %v273_v31 = vrot.slane %v272_v21, 1  ;;  %v554_v36 = vsel %vm694_vm2, %v236_v25, %v553_v18  ;;  %v285_v38 = vmax.f32 %v283_v17, %v284_v27  ;;  %v306_v39 = vunpack.i.h.bf16 %v303_v23  ;;  %v53_v17 = vld [vmem:[%s1122_s0 + $0x2c] sm:$0x1]  ;;  %v50_v18 = vld [vmem:[%s1122_s0 + $0x29] sm:$0x1] }
  0x31   :  { %v261_v37 = vmax.f32 %v259_v16, %v260_v26  ;;  %555 = vst [vmem:[%s1123_s1 + $0x9] sm:$0x1] %v554_v36  ;;  %v557_v42 = vsel %vm694_vm2, %v249_v30, %v556_v20  ;;  %v296_v45 = vmax.f32 %v294_v22, %v295_v32  ;;  %v89_v46 = vmax.bf16 %v45_v29, %v41_v28  ;;  %v54_v23 = vld [vmem:[%s1122_s0 + $0x2d] sm:$0x1] }
  0x32   :  { %v274_v44 = vmax.f32 %v272_v21, %v273_v31  ;;  %558 = vst [vmem:[%s1123_s1 + $0xa] sm:$0x1] %v557_v42  ;;  %v286_v49 = vrot.slane %v285_v38, 1  ;;  %v307_v50 = vmax.f32 %v305_v33, %v306_v39  ;;  %v90_v51 = vmax.bf16 %v46_v35, %v42_v34  ;;  %v571_v42 = vld [vmem:[%s1123_s1 + $0xf] sm:$0x1] }
  0x33   :  { %v262_v47 = vpack.i.bf16 %v261_v37, %v261_v37  ;;  %v297_v53 = vrot.slane %v296_v45, 2  ;;  %v316_v54 = vsel %vm105_vm0, %v89_v46, 4286644096  ;;  %v91_v55 = vmax.bf16 %v47_v41, %v43_v40 }
  0x34   :  { %v275_v52 = vpack.i.bf16 %v274_v44, %v274_v44  ;;  %v287_v57 = vmax.f32 %v285_v38, %v286_v49  ;;  %v308_v58 = vrot.slane %v307_v50, 4  ;;  %v318_v59 = vunpack.i.l.bf16 %v316_v54 }
  0x35   :  { %v560_v56 = vsel %vm694_vm2, %v262_v47, %v559_v43  ;;  %v298_v0 = vmax.f32 %v296_v45, %v297_v53  ;;  %v319_v1 = vunpack.i.h.bf16 %v316_v54  ;;  %v329_v2 = vsel %vm105_vm0, %v90_v51, 4286644096  ;;  %v55_v51 = vld [vmem:[%s1122_s0 + $0x2e] sm:$0x1] }
  0x36   :  { %561 = vst [vmem:[%s1123_s1 + $0xb] sm:$0x1] %v560_v56  ;;  %v563_v62 = vsel %vm694_vm2, %v275_v52, %v562_v48  ;;  %v288_v3 = vpack.i.bf16 %v287_v57, %v287_v57  ;;  %v309_v4 = vmax.f32 %v307_v50, %v308_v58  ;;  %v331_v5 = vunpack.i.l.bf16 %v329_v2  ;;  %v51_v50 = vld [vmem:[%s1122_s0 + $0x2a] sm:$0x1] }
  0x37   :  { %564 = vst [vmem:[%s1123_s1 + $0xc] sm:$0x1] %v563_v62  ;;  %v332_v6 = vunpack.i.h.bf16 %v329_v2  ;;  %v299_v7 = vrot.slane %v298_v0, 1  ;;  %v320_v8 = vmax.f32 %v318_v59, %v319_v1  ;;  %v342_v9 = vsel %vm105_vm0, %v91_v55, 4286644096 }
  0x38   :  { %v92_v10 = vmax.bf16 %v48_v61, %v44_v60  ;;  %v566_v12 = vsel %vm694_vm2, %v288_v3, %v565_v63  ;;  %v310_v13 = vrot.slane %v309_v4, 2  ;;  %v344_v16 = vunpack.i.l.bf16 %v342_v9  ;;  %v52_v60 = vld [vmem:[%s1122_s0 + $0x2b] sm:$0x1]  ;;  %v56_v61 = vld [vmem:[%s1122_s0 + $0x2f] sm:$0x1] }
  0x39   :  { %v333_v15 = vmax.f32 %v331_v5, %v332_v6  ;;  %567 = vst [vmem:[%s1123_s1 + $0xd] sm:$0x1] %v566_v12  ;;  %v300_v19 = vmax.f32 %v298_v0, %v299_v7  ;;  %v321_v20 = vrot.slane %v320_v8, 4  ;;  %v345_v21 = vunpack.i.h.bf16 %v342_v9  ;;  %v574_v6 = vld [vmem:[%s1123_s1 + $0x10] sm:$0x1] }
  0x3a   :  { %v355_v22 = vsel %vm105_vm0, %v92_v10, 4286644096  ;;  %v311_v25 = vmax.f32 %v309_v4, %v310_v13  ;;  %v93_v32 = vmax.bf16 %v53_v17, %v49_v11  ;;  %v94_v36 = vmax.bf16 %v54_v23, %v50_v18  ;;  %v577_v12 = vld [vmem:[%s1123_s1 + $0x11] sm:$0x1]  ;;  %v580_v18 = vld [vmem:[%s1123_s1 + $0x12] sm:$0x1] }
  0x3b   :  { %v334_v26 = vrot.slane %v333_v15, 4  ;;  %v357_v27 = vunpack.i.l.bf16 %v355_v22  ;;  %v358_v28 = vunpack.i.h.bf16 %v355_v22  ;;  %v301_v29 = vpack.i.bf16 %v300_v19, %v300_v19 }
  0x3c   :  { %v322_v30 = vmax.f32 %v320_v8, %v321_v20  ;;  %v346_v31 = vmax.f32 %v344_v16, %v345_v21  ;;  %v312_v33 = vrot.slane %v311_v25, 1  ;;  %v368_v40 = vsel %vm105_vm0, %v93_v32, 4286644096  ;;  %v58_v32 = vld [vmem:[%s1122_s0 + $0x31] sm:$0x1] }
  0x3d   :  { %v335_v34 = vmax.f32 %v333_v15, %v334_v26  ;;  %v359_v35 = vmax.f32 %v357_v27, %v358_v28  ;;  %v569_v37 = vsel %vm694_vm2, %v301_v29, %v568_v24  ;;  %v370_v45 = vunpack.i.l.bf16 %v368_v40  ;;  %v57_v26 = vld [vmem:[%s1122_s0 + $0x30] sm:$0x1]  ;;  %v61_v27 = vld [vmem:[%s1122_s0 + $0x34] sm:$0x1] }
  0x3e   :  { %v323_v38 = vrot.slane %v322_v30, 2  ;;  %v347_v39 = vrot.slane %v346_v31, 4  ;;  %570 = vst [vmem:[%s1123_s1 + $0xe] sm:$0x1] %v569_v37  ;;  %v313_v41 = vmax.f32 %v311_v25, %v312_v33  ;;  %v371_v48 = vunpack.i.h.bf16 %v368_v40  ;;  %v62_v33 = vld [vmem:[%s1122_s0 + $0x35] sm:$0x1] }
  0x3f   :  { %v336_v43 = vrot.slane %v335_v34, 2  ;;  %v360_v44 = vrot.slane %v359_v35, 4  ;;  %v381_v49 = vsel %vm105_vm0, %v94_v36, 4286644096  ;;  %v95_v1 = vmax.bf16 %v55_v51, %v51_v50 }
  0x40   :  { %v324_v46 = vmax.f32 %v322_v30, %v323_v38  ;;  %v348_v47 = vmax.f32 %v346_v31, %v347_v39  ;;  %v314_v52 = vpack.i.bf16 %v313_v41, %v313_v41  ;;  %v383_v55 = vunpack.i.l.bf16 %v381_v49 }
  0x41   :  { %v337_v53 = vmax.f32 %v335_v34, %v336_v43  ;;  %v361_v54 = vmax.f32 %v359_v35, %v360_v44  ;;  %v372_v58 = vmax.f32 %v370_v45, %v371_v48  ;;  %v384_v59 = vunpack.i.h.bf16 %v381_v49  ;;  %v583_v35 = vld [vmem:[%s1123_s1 + $0x13] sm:$0x1]  ;;  %v63_v48 = vld [vmem:[%s1122_s0 + $0x36] sm:$0x1] }
  0x42   :  { %v325_v56 = vrot.slane %v324_v46, 1  ;;  %v349_v57 = vrot.slane %v348_v47, 2  ;;  %v572_v62 = vsel %vm694_vm2, %v314_v52, %v571_v42  ;;  %v394_v9 = vsel %vm105_vm0, %v95_v1, 4286644096 }
  0x43   :  { %v338_v63 = vrot.slane %v337_v53, 1  ;;  %v362_v0 = vrot.slane %v361_v54, 2  ;;  %573 = vst [vmem:[%s1123_s1 + $0xf] sm:$0x1] %v572_v62  ;;  %v373_v4 = vrot.slane %v372_v58, 4  ;;  %v385_v5 = vmax.f32 %v383_v55, %v384_v59 }
  0x44   :  { %v326_v2 = vmax.f32 %v324_v46, %v325_v56  ;;  %v350_v3 = vmax.f32 %v348_v47, %v349_v57  ;;  %v96_v10 = vmax.bf16 %v56_v61, %v52_v60  ;;  %v396_v20 = vunpack.i.l.bf16 %v394_v9  ;;  %v59_v47 = vld [vmem:[%s1122_s0 + $0x32] sm:$0x1]  ;;  %v586_v57 = vld [vmem:[%s1123_s1 + $0x14] sm:$0x1] }
  0x45   :  { %v339_v7 = vmax.f32 %v337_v53, %v338_v63  ;;  %v363_v8 = vmax.f32 %v361_v54, %v362_v0  ;;  %v374_v15 = vmax.f32 %v372_v58, %v373_v4  ;;  %v386_v16 = vrot.slane %v385_v5, 4  ;;  %v589_v0 = vld [vmem:[%s1123_s1 + $0x15] sm:$0x1]  ;;  %v64_v4 = vld [vmem:[%s1122_s0 + $0x37] sm:$0x1] }
  0x46   :  { %v327_v11 = vpack.i.bf16 %v326_v2, %v326_v2  ;;  %v351_v13 = vrot.slane %v350_v3, 1  ;;  %v397_v21 = vunpack.i.h.bf16 %v394_v9  ;;  %v407_v31 = vsel %vm105_vm0, %v96_v10, 4286644096  ;;  %v65_v9 = vld [vmem:[%s1122_s0 + $0x38] sm:$0x1] }
  0x47   :  { %v340_v17 = vpack.i.bf16 %v339_v7, %v339_v7  ;;  %v364_v19 = vrot.slane %v363_v8, 1  ;;  %v375_v24 = vrot.slane %v374_v15, 2  ;;  %v387_v25 = vmax.f32 %v385_v5, %v386_v16  ;;  %v69_v10 = vld [vmem:[%s1122_s0 + $0x3c] sm:$0x1] }
  0x48   :  { %v575_v22 = vsel %vm694_vm2, %v327_v11, %v574_v6  ;;  %v352_v23 = vmax.f32 %v350_v3, %v351_v13  ;;  %v398_v30 = vmax.f32 %v396_v20, %v397_v21  ;;  %v409_v38 = vunpack.i.l.bf16 %v407_v31  ;;  %v60_v3 = vld [vmem:[%s1122_s0 + $0x33] sm:$0x1]  ;;  %v66_v20 = vld [vmem:[%s1122_s0 + $0x39] sm:$0x1]  ;;  %v70_v21 = vld [vmem:[%s1122_s0 + $0x3d] sm:$0x1] }
  0x49   :  { %576 = vst [vmem:[%s1123_s1 + $0x10] sm:$0x1] %v575_v22  ;;  %v578_v28 = vsel %vm694_vm2, %v340_v17, %v577_v12  ;;  %v365_v29 = vmax.f32 %v363_v8, %v364_v19  ;;  %v376_v36 = vmax.f32 %v374_v15, %v375_v24  ;;  %v388_v37 = vrot.slane %v387_v25, 2 }
  0x4a   :  { %579 = vst [vmem:[%s1123_s1 + $0x11] sm:$0x1] %v578_v28  ;;  %v353_v34 = vpack.i.bf16 %v352_v23, %v352_v23  ;;  %v399_v40 = vrot.slane %v398_v30, 4  ;;  %v410_v41 = vunpack.i.h.bf16 %v407_v31  ;;  %v97_v42 = vmax.bf16 %v61_v27, %v57_v26  ;;  %v592_v27 = vld [vmem:[%s1123_s1 + $0x16] sm:$0x1] }
  0x4b   :  { %v366_v39 = vpack.i.bf16 %v365_v29, %v365_v29  ;;  %v377_v44 = vrot.slane %v376_v36, 1  ;;  %v389_v45 = vmax.f32 %v387_v25, %v388_v37  ;;  %v98_v46 = vmax.bf16 %v62_v33, %v58_v32 }
  0x4c   :  { %v581_v43 = vsel %vm694_vm2, %v353_v34, %v580_v18  ;;  %v400_v50 = vmax.f32 %v398_v30, %v399_v40  ;;  %v411_v51 = vmax.f32 %v409_v38, %v410_v41  ;;  %v420_v52 = vsel %vm105_vm0, %v97_v42, 4286644096 }
  0x4d   :  { %582 = vst [vmem:[%s1123_s1 + $0x12] sm:$0x1] %v581_v43  ;;  %v584_v49 = vsel %vm694_vm2, %v366_v39, %v583_v35  ;;  %v378_v53 = vmax.f32 %v376_v36, %v377_v44  ;;  %v390_v54 = vrot.slane %v389_v45, 1  ;;  %v422_v55 = vunpack.i.l.bf16 %v420_v52 }
  0x4e   :  { %585 = vst [vmem:[%s1123_s1 + $0x13] sm:$0x1] %v584_v49  ;;  %v423_v56 = vunpack.i.h.bf16 %v420_v52  ;;  %v401_v58 = vrot.slane %v400_v50, 2  ;;  %v412_v59 = vrot.slane %v411_v51, 4  ;;  %v433_v60 = vsel %vm105_vm0, %v98_v46, 4286644096 }
  0x4f   :  { %v99_v61 = vmax.bf16 %v63_v48, %v59_v47  ;;  %v379_v62 = vpack.i.bf16 %v378_v53, %v378_v53  ;;  %v391_v63 = vmax.f32 %v389_v45, %v390_v54  ;;  %v435_v2 = vunpack.i.l.bf16 %v433_v60  ;;  %v595_v45 = vld [vmem:[%s1123_s1 + $0x17] sm:$0x1]  ;;  %v67_v48 = vld [vmem:[%s1122_s0 + $0x3a] sm:$0x1]  ;;  %v71_v53 = vld [vmem:[%s1122_s0 + $0x3e] sm:$0x1] }
  0x50   :  { %v424_v1 = vmax.f32 %v422_v55, %v423_v56  ;;  %v402_v5 = vmax.f32 %v400_v50, %v401_v58  ;;  %v413_v6 = vmax.f32 %v411_v51, %v412_v59  ;;  %v436_v7 = vunpack.i.h.bf16 %v433_v60 }
  0x51   :  { %v446_v8 = vsel %vm105_vm0, %v99_v61, 4286644096  ;;  %v587_v11 = vsel %vm694_vm2, %v379_v62, %v586_v57  ;;  %v392_v12 = vpack.i.bf16 %v391_v63, %v391_v63  ;;  %v100_v24 = vmax.bf16 %v64_v4, %v60_v3  ;;  %v68_v62 = vld [vmem:[%s1122_s0 + $0x3b] sm:$0x1]  ;;  %v72_v63 = vld [vmem:[%s1122_s0 + $0x3f] sm:$0x1] }
  0x52   :  { %v425_v13 = vrot.slane %v424_v1, 4  ;;  %v448_v15 = vunpack.i.l.bf16 %v446_v8  ;;  %588 = vst [vmem:[%s1123_s1 + $0x14] sm:$0x1] %v587_v11  ;;  %v403_v16 = vrot.slane %v402_v5, 1  ;;  %v414_v17 = vrot.slane %v413_v6, 2 }
  0x53   :  { %v437_v18 = vmax.f32 %v435_v2, %v436_v7  ;;  %v449_v19 = vunpack.i.h.bf16 %v446_v8  ;;  %v590_v22 = vsel %vm694_vm2, %v392_v12, %v589_v0  ;;  %v101_v25 = vmax.bf16 %v69_v10, %v65_v9 }
  0x54   :  { %v426_v23 = vmax.f32 %v424_v1, %v425_v13  ;;  %591 = vst [vmem:[%s1123_s1 + $0x15] sm:$0x1] %v590_v22  ;;  %v404_v26 = vmax.f32 %v402_v5, %v403_v16  ;;  %v415_v28 = vmax.f32 %v413_v6, %v414_v17  ;;  %v459_v32 = vsel %vm105_vm0, %v100_v24, 4286644096  ;;  %v598_v1 = vld [vmem:[%s1123_s1 + $0x18] sm:$0x1] }
  0x55   :  { %v438_v29 = vrot.slane %v437_v18, 4  ;;  %v450_v30 = vmax.f32 %v448_v15, %v449_v19  ;;  %v472_v33 = vsel %vm105_vm0, %v101_v25, 4286644096  ;;  %v102_v34 = vmax.bf16 %v70_v21, %v66_v20  ;;  %v601_v15 = vld [vmem:[%s1123_s1 + $0x19] sm:$0x1] }
  0x56   :  { %v427_v31 = vrot.slane %v426_v23, 2  ;;  %v405_v35 = vpack.i.bf16 %v404_v26, %v404_v26  ;;  %v416_v36 = vrot.slane %v415_v28, 1  ;;  %v461_v40 = vunpack.i.l.bf16 %v459_v32 }
  0x57   :  { %v439_v37 = vmax.f32 %v437_v18, %v438_v29  ;;  %v451_v38 = vrot.slane %v450_v30, 4  ;;  %v462_v41 = vunpack.i.h.bf16 %v459_v32  ;;  %v474_v42 = vunpack.i.l.bf16 %v472_v33 }
  0x58   :  { %v428_v39 = vmax.f32 %v426_v23, %v427_v31  ;;  %v593_v43 = vsel %vm694_vm2, %v405_v35, %v592_v27  ;;  %v417_v44 = vmax.f32 %v415_v28, %v416_v36  ;;  %v475_v51 = vunpack.i.h.bf16 %v472_v33  ;;  %v604_v23 = vld [vmem:[%s1123_s1 + $0x1a] sm:$0x1] }
  0x59   :  { %v440_v46 = vrot.slane %v439_v37, 2  ;;  %v452_v47 = vmax.f32 %v450_v30, %v451_v38  ;;  %594 = vst [vmem:[%s1123_s1 + $0x16] sm:$0x1] %v593_v43  ;;  %v463_v50 = vmax.f32 %v461_v40, %v462_v41  ;;  %v485_v52 = vsel %vm105_vm0, %v102_v34, 4286644096 }
  0x5a   :  { %v429_v49 = vrot.slane %v428_v39, 1  ;;  %v418_v54 = vpack.i.bf16 %v417_v44, %v417_v44  ;;  %v487_v57 = vunpack.i.l.bf16 %v485_v52  ;;  %v476_v60 = vmax.f32 %v474_v42, %v475_v51  ;;  %v607_v42 = vld [vmem:[%s1123_s1 + $0x1b] sm:$0x1] }
  0x5b   :  { %v441_v55 = vmax.f32 %v439_v37, %v440_v46  ;;  %v453_v56 = vrot.slane %v452_v47, 2  ;;  %v464_v59 = vrot.slane %v463_v50, 4  ;;  %v488_v61 = vunpack.i.h.bf16 %v485_v52 }
  0x5c   :  { %v430_v58 = vmax.f32 %v428_v39, %v429_v49  ;;  %v596_v0 = vsel %vm694_vm2, %v418_v54, %v595_v45  ;;  %v103_v4 = vmax.bf16 %v71_v53, %v67_v48  ;;  %v477_v7 = vrot.slane %v476_v60, 4  ;;  %v610_v48 = vld [vmem:[%s1123_s1 + $0x1c] sm:$0x1]  ;;  %v613_v54 = vld [vmem:[%s1123_s1 + $0x1d] sm:$0x1] }
  0x5d   :  { %v442_v2 = vrot.slane %v441_v55, 1  ;;  %v454_v3 = vmax.f32 %v452_v47, %v453_v56  ;;  %597 = vst [vmem:[%s1123_s1 + $0x17] sm:$0x1] %v596_v0  ;;  %v465_v6 = vmax.f32 %v463_v50, %v464_v59  ;;  %v489_v8 = vmax.f32 %v487_v57, %v488_v61 }
  0x5e   :  { %v431_v5 = vpack.i.bf16 %v430_v58, %v430_v58  ;;  %v498_v11 = vsel %vm105_vm0, %v103_v4, 4286644096  ;;  %v104_v12 = vmax.bf16 %v72_v63, %v68_v62  ;;  %v478_v17 = vmax.f32 %v476_v60, %v477_v7  ;;  %v616_v63 = vld [vmem:[%s1123_s1 + $0x1e] sm:$0x1]  ;;  %v619_v4 = vld [vmem:[%s1123_s1 + $0x1f] sm:$0x1] }
  0x5f   :  { %v443_v9 = vmax.f32 %v441_v55, %v442_v2  ;;  %v455_v10 = vrot.slane %v454_v3, 1  ;;  %v466_v16 = vrot.slane %v465_v6, 2  ;;  %v490_v18 = vrot.slane %v489_v8, 4 }
  0x60   :  { %v599_v13 = vsel %vm694_vm2, %v431_v5, %v598_v1  ;;  %v500_v21 = vunpack.i.l.bf16 %v498_v11  ;;  %v501_v22 = vunpack.i.h.bf16 %v498_v11  ;;  %v479_v25 = vrot.slane %v478_v17, 2 }
  0x61   :  { %600 = vst [vmem:[%s1123_s1 + $0x18] sm:$0x1] %v599_v13  ;;  %v444_v19 = vpack.i.bf16 %v443_v9, %v443_v9  ;;  %v456_v20 = vmax.f32 %v454_v3, %v455_v10  ;;  %v467_v24 = vmax.f32 %v465_v6, %v466_v16  ;;  %v491_v26 = vmax.f32 %v489_v8, %v490_v18 }
  0x62   :  { %v511_v27 = vsel %vm105_vm0, %v104_v12, 4286644096  ;;  %v502_v30 = vmax.f32 %v500_v21, %v501_v22  ;;  %v480_v33 = vmax.f32 %v478_v17, %v479_v25 }
  0x63   :  { %v602_v28 = vsel %vm694_vm2, %v444_v19, %v601_v15  ;;  %v457_v29 = vpack.i.bf16 %v456_v20, %v456_v20  ;;  %v513_v31 = vunpack.i.l.bf16 %v511_v27  ;;  %v468_v32 = vrot.slane %v467_v24, 1 }
  0x64   :  { %603 = vst [vmem:[%s1123_s1 + $0x19] sm:$0x1] %v602_v28  ;;  %v492_v34 = vrot.slane %v491_v26, 2  ;;  %v514_v35 = vunpack.i.h.bf16 %v511_v27  ;;  %v503_v37 = vrot.slane %v502_v30, 4  ;;  %v481_v39 = vrot.slane %v480_v33, 1 }
  0x65   :  { %v605_v36 = vsel %vm694_vm2, %v457_v29, %v604_v23  ;;  %v469_v38 = vmax.f32 %v467_v24, %v468_v32 }
  0x66   :  { %606 = vst [vmem:[%s1123_s1 + $0x1a] sm:$0x1] %v605_v36  ;;  %v493_v40 = vmax.f32 %v491_v26, %v492_v34  ;;  %v515_v41 = vmax.f32 %v513_v31, %v514_v35  ;;  %v504_v43 = vmax.f32 %v502_v30, %v503_v37  ;;  %v482_v45 = vmax.f32 %v480_v33, %v481_v39 }
  0x67   :  { %v470_v44 = vpack.i.bf16 %v469_v38, %v469_v38 }
  0x68   :  { %v494_v46 = vrot.slane %v493_v40, 1  ;;  %v516_v47 = vrot.slane %v515_v41, 4  ;;  %v505_v49 = vrot.slane %v504_v43, 2  ;;  %v483_v51 = vpack.i.bf16 %v482_v45, %v482_v45 }
  0x69   :  { %v608_v50 = vsel %vm694_vm2, %v470_v44, %v607_v42 }
  0x6a   :  { %v495_v52 = vmax.f32 %v493_v40, %v494_v46  ;;  %v517_v53 = vmax.f32 %v515_v41, %v516_v47  ;;  %609 = vst [vmem:[%s1123_s1 + $0x1b] sm:$0x1] %v608_v50  ;;  %v506_v55 = vmax.f32 %v504_v43, %v505_v49  ;;  %v611_v56 = vsel %vm694_vm2, %v483_v51, %v610_v48 }
  0x6b   :  { %612 = vst [vmem:[%s1123_s1 + $0x1c] sm:$0x1] %v611_v56 }
  0x6c   :  { %v496_v57 = vpack.i.bf16 %v495_v52, %v495_v52  ;;  %v518_v58 = vrot.slane %v517_v53, 2  ;;  %v507_v59 = vrot.slane %v506_v55, 1 }
  0x6e   :  { %v614_v60 = vsel %vm694_vm2, %v496_v57, %v613_v54  ;;  %v519_v61 = vmax.f32 %v517_v53, %v518_v58  ;;  %v508_v62 = vmax.f32 %v506_v55, %v507_v59 }
  0x6f   :  { %615 = vst [vmem:[%s1123_s1 + $0x1d] sm:$0x1] %v614_v60 }
  0x70   :  { %v520_v0 = vrot.slane %v519_v61, 1  ;;  %v509_v1 = vpack.i.bf16 %v508_v62, %v508_v62 }
  0x72   :  { %v521_v2 = vmax.f32 %v519_v61, %v520_v0  ;;  %v617_v3 = vsel %vm694_vm2, %v509_v1, %v616_v63 }
  0x73   :  { %618 = vst [vmem:[%s1123_s1 + $0x1e] sm:$0x1] %v617_v3 }
  0x74   :  { %v522_v5 = vpack.i.bf16 %v521_v2, %v521_v2 }
  0x76   :  { %v620_v6 = vsel %vm694_vm2, %v522_v5, %v619_v4 }
  0x77   :  { %621 = vst [vmem:[%s1123_s1 + $0x1f] sm:$0x1] %v620_v6 }

// kernel: unet_forward.35
= control target key start
LH: loop header
LB: loop body
LE: loop exit
PB: predicated region body
PF: predicated region fallthrough
CT: control target
= control target key end

     0   :  { %v321_v0 = vmov 0   ;;  %vm121_vm0 = vcmask 130048   ;;  %v212_v35 = vlaneseq  ;;  %s398_s1 = inlined_call_operand.vmem [shape: bf16[144,128], index: 1, kind: input, shape index: {}]   ;;  %s399_s0 = inlined_call_operand.vmem [shape: bf16[32,144], index: 0, kind: input, shape index: {}]   ;;  %s400_s2 = inlined_call_operand.vmem [shape: bf16[32,128], index: 2, kind: output, shape index: {0}]   ;;  %s401_s3 = inlined_call_operand.vmem [shape: f32[1,8,128], index: 3, kind: output, shape index: {1}]   ;;  %s402_s4 = inlined_call_operand.vmem [shape: f32[1,8,128], index: 4, kind: output, shape index: {2}]  }
   0x1   :  { %128 = vmatprep.subr.bf16.mxu0 %v321_v0  ;;  %287 = vmatprep.subr.bf16.mxu1 %v321_v0  ;;  %v306_v1 = vld [vmem:[%s398_s1 + $0x38] sm:$0xff]   ;;  %v307_v2 = vld [vmem:[%s398_s1 + $0x30] sm:$0xff]   ;;  %v308_v3 = vld [vmem:[%s398_s1 + $0x28] sm:$0xff]  }
   0x2   :  { %129 = vmatpush1.bf16.msra.mxu0 %v306_v1  ;;  %296 = vmatpush1.bf16.msra.mxu1 %v306_v1  ;;  %v309_v4 = vld [vmem:[%s398_s1 + $0x20] sm:$0xff]   ;;  %v320_v6 = vld [vmem:[%s399_s0 + $0x14] ss:$8 sps:$4 sm:$0xff]   ;;  %v312_v9 = vld [vmem:[%s398_s1 + $0x8] sm:$0xff]   ;;  %v213_v40 = vshrl.u32 %v212_v35, 7 }
   0x3   :  { %130 = vmatprep.subr.bf16.mxu0 %v321_v0  ;;  %288 = vmatprep.subr.bf16.mxu1 %v321_v0  ;;  %v317_v5 = vld [vmem:[%s399_s0 + $0x4] ss:$8 sps:$4 sm:$0xff]   ;;  %v310_v7 = vld [vmem:[%s398_s1 + $0x18] sm:$0xff]   ;;  %v311_v8 = vld [vmem:[%s398_s1 + $0x10] sm:$0xff]  }
   0x4   :  { %266 = vmatprep.mubr.msk.bf16.mxu0 %vm121_vm0, %v317_v5  ;;  %267 = vmatprep.mubr.msk.bf16.mxu1 %vm121_vm0, %v320_v6  ;;  %v313_v10 = vld [vmem:[%s398_s1] sm:$0xff]   ;;  %v318_v13 = vld [vmem:[%s399_s0 + $0x10] ss:$8 sps:$4 sm:$0xff]   ;;  %vm214_vm1 = vcmp.eq.s32.totalorder %v213_v40, 0 }
   0x5   :  { %v314_v11 = vld [vmem:[%s398_s1 + $0x40] sm:$0xff]  }
   0x6   :  { %131 = vmatpush1.bf16.msra.mxu0 %v307_v2  ;;  %297 = vmatpush1.bf16.msra.mxu1 %v307_v2  ;;  %v315_v12 = vld [vmem:[%s399_s0] ss:$8 sps:$4 sm:$0xff]  }
   0x7   :  { %132 = vmatprep.subr.bf16.mxu0 %v321_v0  ;;  %289 = vmatprep.subr.bf16.mxu1 %v321_v0 }
   0xa   :  { %133 = vmatpush1.bf16.msra.mxu0 %v308_v3  ;;  %298 = vmatpush1.bf16.msra.mxu1 %v308_v3 }
   0xb   :  { %134 = vmatprep.subr.bf16.mxu0 %v321_v0  ;;  %290 = vmatprep.subr.bf16.mxu1 %v321_v0 }
   0xe   :  { %135 = vmatpush1.bf16.msra.mxu0 %v309_v4  ;;  %299 = vmatpush1.bf16.msra.mxu1 %v309_v4 }
   0xf   :  { %136 = vmatprep.subr.bf16.mxu0 %v321_v0  ;;  %291 = vmatprep.subr.bf16.mxu1 %v321_v0 }
  0x12   :  { %137 = vmatpush1.bf16.msra.mxu0 %v310_v7  ;;  %300 = vmatpush1.bf16.msra.mxu1 %v310_v7 }
  0x13   :  { %138 = vmatprep.subr.bf16.mxu0 %v321_v0  ;;  %292 = vmatprep.subr.bf16.mxu1 %v321_v0 }
  0x16   :  { %139 = vmatpush1.bf16.msra.mxu0 %v311_v8  ;;  %301 = vmatpush1.bf16.msra.mxu1 %v311_v8 }
  0x17   :  { %140 = vmatprep.subr.bf16.mxu0 %v321_v0  ;;  %293 = vmatprep.subr.bf16.mxu1 %v321_v0 }
  0x1a   :  { %141 = vmatpush1.bf16.msra.mxu0 %v312_v9  ;;  %302 = vmatpush1.bf16.msra.mxu1 %v312_v9 }
  0x1b   :  { %142 = vmatprep.subr.bf16.mxu0 %v321_v0  ;;  %294 = vmatprep.subr.bf16.mxu1 %v321_v0 }
  0x1e   :  { %143 = vmatpush1.bf16.msra.mxu0 %v313_v10  ;;  %303 = vmatpush1.bf16.msra.mxu1 %v313_v10 }
  0x1f   :  { %158 = vmatprep.subr.bf16.mxu0 %v321_v0  ;;  %295 = vmatprep.subr.bf16.mxu1 %v321_v0 }
  0x22   :  { %159 = vmatpush2.bf16.msra.mxu0 %v314_v11  ;;  %304 = vmatpush2.bf16.msra.mxu1 %v314_v11 }
  0x25   :  { %161 = vmatmul.mubr.bf16.vlgmr.msra.gmra.mxu0 %v315_v12  ;;  %169 = vmatmul.mubr.bf16.vlgmr.msra.gmra.mxu1 %v318_v13 }
  0xe5   :  { %v162_v14 = vpop.f32.mrf.mxu0  ;;  %v170_v15 = vpop.f32.mrf.mxu1 }
  0xe6   :  { %v226_v18 = vmul.f32 %v162_v14, %v162_v14  ;;  %v228_v27 = vmul.f32 %v170_v15, %v170_v15 }
  0xe7   :  { %v164_v16 = vpop.f32.mrf.mxu0  ;;  %v172_v17 = vpop.f32.mrf.mxu1 }
  0xe9   :  { %v165_v19 = vpop.f32.mrf.mxu0  ;;  %v173_v20 = vpop.f32.mrf.mxu1 }
  0xea   :  { %v279_v21 = vpack.c.bf16 %v165_v19, %v162_v14  ;;  %v215_v22 = vadd.f32 %v165_v19, %v162_v14  ;;  %v227_v23 = vmul.f32 %v165_v19, %v165_v19  ;;  %v284_v24 = vpack.c.bf16 %v173_v20, %v170_v15 }
  0xeb   :  { %v167_v25 = vpop.f32.mrf.mxu0  ;;  %v175_v26 = vpop.f32.mrf.mxu1  ;;  %v229_v31 = vmul.f32 %v173_v20, %v173_v20 }
  0xec   :  { %280 = vst [vmem:[%s400_s2] sm:$0xff] %v279_v21   ;;  %v230_v28 = vadd.f32 %v227_v23, %v226_v18  ;;  %286 = vst [vmem:[%s400_s2 + $0x8] sm:$0xff] %v284_v24   ;;  %v216_v29 = vadd.f32 %v215_v22, %v170_v15 }
  0xee   :  { %v217_v30 = vadd.f32 %v216_v29, %v173_v20  ;;  %v231_v32 = vadd.f32 %v230_v28, %v228_v27 }
  0xf0   :  { %v218_v33 = vrot.slane %v217_v30, 4  ;;  %v232_v34 = vadd.f32 %v231_v32, %v229_v31 }
  0xf2   :  { %v219_v36 = vadd.f32 %v218_v33, %v217_v30  ;;  %v233_v37 = vrot.slane %v232_v34, 4 }
  0xf4   :  { %v220_v38 = vrot.slane %v219_v36, 2  ;;  %v234_v39 = vadd.f32 %v233_v37, %v232_v34 }
  0xf6   :  { %v221_v41 = vadd.f32 %v220_v38, %v219_v36  ;;  %v235_v42 = vrot.slane %v234_v39, 2 }
  0xf8   :  { %v222_v43 = vrot.slane %v221_v41, 1  ;;  %v236_v44 = vadd.f32 %v235_v42, %v234_v39 }
  0xfa   :  { %v223_v45 = vadd.f32 %v222_v43, %v221_v41  ;;  %v237_v46 = vrot.slane %v236_v44, 1 }
  0xfc   :  { %v224_v47 = vsel %vm214_vm1, %v223_v45, 0.0  ;;  %v238_v48 = vadd.f32 %v237_v46, %v236_v44 }
  0xfd   :  { %225 = vst [vmem:[%s401_s3] sm:$0xff] %v224_v47 }
  0xfe   :  { %v239_v49 = vsel %vm214_vm1, %v238_v48, 0.0 }
  0xff   :  { %240 = vst [vmem:[%s402_s4] sm:$0xff] %v239_v49 }

// kernel: unet_forward.36
= control target key start
LH: loop header
LB: loop body
LE: loop exit
PB: predicated region body
PF: predicated region fallthrough
CT: control target
= control target key end

     0   :  { %vm64_vm0 = vcmask 257024   ;;  %s136_s0 = inlined_call_operand.vmem [shape: bf16[32,128], index: 0, kind: input, shape index: {}]   ;;  %s137_s1 = inlined_call_operand.vmem [shape: f32[1,128], index: 1, kind: input, shape index: {}]   ;;  %s138_s2 = inlined_call_operand.vmem [shape: f32[1,128], index: 2, kind: input, shape index: {}]   ;;  %s139_s3 = inlined_call_operand.vmem [shape: bf16[32,32], index: 3, kind: output, shape index: {}]  }
   0x1   :  { %v84_v0 = vld [vmem:[%s136_s0] sm:$0xff]   ;;  %v91_v4 = vld [vmem:[%s136_s0 + $0x8] sm:$0xff]  }
   0x2   :  { %v73_v1 = vld [vmem:[%s137_s1] ss:$0 sm:$0xff]  ;;  %v85_v2 = vunpack.c.l.bf16 %v84_v0  ;;  %v86_v3 = vunpack.c.h.bf16 %v84_v0  ;;  %v89_v6 = vunpack.c.l.bf16 %v91_v4  ;;  %v90_v7 = vunpack.c.h.bf16 %v91_v4 }
   0x3   :  { %v74_v5 = vld [vmem:[%s138_s2] ss:$0 sm:$0xff] }
   0x4   :  { %v29_v8 = vmul.f32 %v85_v2, %v73_v1  ;;  %v30_v9 = vmul.f32 %v86_v3, %v73_v1  ;;  %v31_v10 = vmul.f32 %v89_v6, %v73_v1  ;;  %v32_v11 = vmul.f32 %v90_v7, %v73_v1 }
   0x6   :  { %v40_v12 = vadd.f32 %v74_v5, %v29_v8  ;;  %v41_v13 = vadd.f32 %v74_v5, %v30_v9  ;;  %v42_v14 = vadd.f32 %v74_v5, %v31_v10  ;;  %v43_v15 = vadd.f32 %v74_v5, %v32_v11 }
   0x8   :  { %v44_v16 = vmax.f32 %v40_v12, 0.0  ;;  %v45_v17 = vmax.f32 %v41_v13, 0.0  ;;  %v46_v18 = vmax.f32 %v42_v14, 0.0  ;;  %v47_v19 = vmax.f32 %v43_v15, 0.0 }
   0xa   :  { %v79_v20 = vpack.c.bf16 %v44_v16, %v44_v16  ;;  %v80_v21 = vpack.c.bf16 %v45_v17, %v45_v17  ;;  %v81_v22 = vpack.c.bf16 %v46_v18, %v46_v18  ;;  %v82_v23 = vpack.c.bf16 %v47_v19, %v47_v19 }
   0xc   :  { %65 = vst.msk [vmem:[%s139_s3] sm:$0xf] %vm64_vm0, %v79_v20  ;;  %66 = vst.msk [vmem:[%s139_s3 + $0x4] sm:$0xf] %vm64_vm0, %v80_v21 }
   0xd   :  { %67 = vst.msk [vmem:[%s139_s3 + $0x8] sm:$0xf] %vm64_vm0, %v81_v22  ;;  %68 = vst.msk [vmem:[%s139_s3 + $0xc] sm:$0xf] %vm64_vm0, %v82_v23 }

// kernel: tile.13
= control target key start
LH: loop header
LB: loop body
LE: loop exit
PB: predicated region body
PF: predicated region fallthrough
CT: control target
= control target key end

     0   :  { %s22_s0 = inlined_call_operand.vmem [shape: f32[16], index: 0, kind: input, shape index: {}]   ;;  %s23_s1 = inlined_call_operand.vmem [shape: f32[4,16], index: 1, kind: output, shape index: {}]  }
   0x1   :  { %v4_v0 = vld [vmem:[%s22_s0] ss:$0 sm:$0xff] }
   0x2   :  { %5 = vst [vmem:[%s23_s1] sm:$0xf] %v4_v0 }

// kernel: tile.14
= control target key start
LH: loop header
LB: loop body
LE: loop exit
PB: predicated region body
PF: predicated region fallthrough
CT: control target
= control target key end

     0   :  { %vm8_vm0 = vcmask 130048   ;;  %s40_s8 = smov 16   ;;  %s41_s9 = smov 32   ;;  %vm14_vm1 = vcmask 523648   ;;  %vm20_vm2 = vcmask 392448   ;;  %vm26_vm3 = vcmask 261248   ;;  %s58_s0 = inlined_call_operand.vmem [shape: f32[4,16], index: 0, kind: input, shape index: {}]   ;;  %s59_s1 = inlined_call_operand.vmem [shape: f32[64], index: 1, kind: output, shape index: {}]  }
   0x1   :  { %v5_v0 = vld [vmem:[%s58_s0] sm:$0xf]  ;;  %s39_s0 = smov 48  }
   0x2   :  { %6 = vst [vmem:[#allocation1] sm:$0xf] %v5_v0 }
   0x9   :  { %v11_v1 = vld [vmem:[#allocation1 + $0x3] sm:$0x1]   ;;  %v23_v2 = vld [vmem:[#allocation1 + $0x1] sm:$0x1]   ;;  %v7_v3 = vld [vmem:[#allocation1] sm:$0x1]  }
   0xa   :  { %12 = vrot.lane.b32.xlu0 %v11_v1, %s39_s0  ;;  %24 = vrot.lane.b32.xlu1 %v23_v2, %s40_s8  ;;  %v17_v4 = vld [vmem:[#allocation1 + $0x2] sm:$0x1]   ;;  %9 = vst.msk [vmem:[#allocation0] sm:$0x1] %vm8_vm0, %v7_v3  }
   0xe   :  { %18 = vrot.lane.b32.xlu0 %v17_v4, %s41_s9 }
  0x7c   :  { %v13_v5 = vpop.permute.xlu0 %12   ;;  %v25_v6 = vpop.permute.xlu1 %24  }
  0x7d   :  { %15 = vst.msk [vmem:[#allocation0] sm:$0x1] %vm14_vm1, %v13_v5  }
  0x80   :  { %v19_v7 = vpop.permute.xlu0 %18  }
  0x81   :  { %21 = vst.msk [vmem:[#allocation0] sm:$0x1] %vm20_vm2, %v19_v7  }
  0x82   :  { %27 = vst.msk [vmem:[#allocation0] sm:$0x1] %vm26_vm3, %v25_v6  }
  0x89   :  { %v32_v8 = vld [vmem:[#allocation0] sm:$0x1] }
  0x8a   :  { %35 = vst [vmem:[%s59_s1] sm:$0x1] %v32_v8 }

// kernel: unet_forward.39
= control target key start
LH: loop header
LB: loop body
LE: loop exit
PB: predicated region body
PF: predicated region fallthrough
CT: control target
= control target key end

     0   :  { %vm57_vm0 = vcmask 261120   ;;  %s246_s1 = inlined_call_operand.vmem [shape: bf16[32,128], index: 1, kind: input, shape index: {}]   ;;  %s247_s0 = inlined_call_operand.vmem [shape: bf16[32,32], index: 0, kind: input, shape index: {}]   ;;  %s248_s2 = inlined_call_operand.vmem [shape: f32[1,128], index: 2, kind: input, shape index: {}]   ;;  %s249_s3 = inlined_call_operand.vmem [shape: bf16[32,128], index: 3, kind: output, shape index: {}]  }
   0x1   :  { %v201_v0 = vld [vmem:[%s246_s1 + $0x8] sm:$0xff]   ;;  %v202_v1 = vld [vmem:[%s246_s1] sm:$0xff]  }
   0x2   :  { %193 = vmatprep.subr.bf16.mxu0 %v201_v0  ;;  %v203_v2 = vld [vmem:[%s247_s0] sm:$0xff]   ;;  %v204_v3 = vld [vmem:[%s247_s0 + $0x8] sm:$0xff]  }
   0x3   :  { %194 = vmatpush3.bf16.msra.mxu0 %v201_v0  ;;  %197 = vmatprep.mubr.msk.bf16.mxu0 %vm57_vm0, %v203_v2  ;;  %v169_v5 = vld [vmem:[%s248_s2] ss:$0 sm:$0xff] }
   0x4   :  { %195 = vmatprep.subr.bf16.mxu0 %v202_v1 }
   0x7   :  { %196 = vmatpush3.bf16.msra.mxu0 %v202_v1 }
   0xa   :  { %198 = vmatmul.mubr.msk.bf16.vlgmr.msra.gmra.mxu0 %vm57_vm0, %v204_v3 }
  0xca   :  { %v199_v4 = vpop.f32.mrf.mxu0 }
  0xcb   :  { %v137_v8 = vadd.f32 %v199_v4, %v169_v5 }
  0xcc   :  { %v98_v6 = vpop.f32.mrf.mxu0 }
  0xcd   :  { %v135_v11 = vadd.f32 %v169_v5, %v98_v6 }
  0xce   :  { %v200_v7 = vpop.f32.mrf.mxu0 }
  0xcf   :  { %v138_v9 = vadd.f32 %v200_v7, %v169_v5 }
  0xd0   :  { %v101_v10 = vpop.f32.mrf.mxu0 }
  0xd1   :  { %v186_v12 = vpack.c.bf16 %v138_v9, %v137_v8  ;;  %v136_v13 = vadd.f32 %v169_v5, %v101_v10 }
  0xd3   :  { %188 = vst [vmem:[%s249_s3 + $0x8] sm:$0xff] %v186_v12   ;;  %v181_v14 = vpack.c.bf16 %v136_v13, %v135_v11 }
  0xd5   :  { %182 = vst [vmem:[%s249_s3] sm:$0xff] %v181_v14  }

// kernel: unet_forward.37
= control target key start
LH: loop header
LB: loop body
LE: loop exit
PB: predicated region body
PF: predicated region fallthrough
CT: control target
= control target key end

     0   :  { %vm209_vm0 = vcmask 261120   ;;  %v349_v57 = vlaneseq  ;;  %s610_s1 = inlined_call_operand.vmem [shape: bf16[288,128], index: 1, kind: input, shape index: {}]   ;;  %s611_s0 = inlined_call_operand.vmem [shape: bf16[32,288], index: 0, kind: input, shape index: {}]   ;;  %s612_s2 = inlined_call_operand.vmem [shape: bf16[32,128], index: 2, kind: output, shape index: {0}]   ;;  %s613_s3 = inlined_call_operand.vmem [shape: f32[1,8,128], index: 3, kind: output, shape index: {1}]   ;;  %s614_s4 = inlined_call_operand.vmem [shape: f32[1,8,128], index: 4, kind: output, shape index: {2}]  }
   0x1   :  { %v475_v0 = vld [vmem:[%s610_s1 + $0x78] sm:$0xff]   ;;  %v477_v2 = vld [vmem:[%s610_s1 + $0x70] sm:$0xff]   ;;  %v479_v4 = vld [vmem:[%s610_s1 + $0x68] sm:$0xff]  }
   0x2   :  { %v476_v1 = vld [vmem:[%s610_s1 + $0x38] sm:$0xff]   ;;  %435 = vmatprep.subr.bf16.mxu0 %v475_v0  ;;  %v478_v3 = vld [vmem:[%s610_s1 + $0x30] sm:$0xff]   ;;  %v480_v5 = vld [vmem:[%s610_s1 + $0x28] sm:$0xff]   ;;  %v350_v62 = vshrl.u32 %v349_v57, 7 }
   0x3   :  { %436 = vmatpush3.bf16.msra.mxu0 %v476_v1  ;;  %v481_v6 = vld [vmem:[%s610_s1 + $0x60] sm:$0xff]   ;;  %v483_v8 = vld [vmem:[%s610_s1 + $0x58] sm:$0xff]   ;;  %v488_v9 = vld [vmem:[%s610_s1 + $0x88] sm:$0xff]  }
   0x4   :  { %437 = vmatprep.subr.bf16.mxu0 %v477_v2  ;;  %v482_v7 = vld [vmem:[%s610_s1 + $0x20] sm:$0xff]   ;;  %v484_v10 = vld [vmem:[%s610_s1 + $0x18] sm:$0xff]   ;;  %v485_v11 = vld [vmem:[%s610_s1 + $0x50] sm:$0xff]   ;;  %467 = vmatprep.subr.bf16.mxu1 %v488_v9  ;;  %vm351_vm1 = vcmp.eq.s32.totalorder %v350_v62, 0 }
   0x5   :  { %468 = vmatpush3.bf16.msra.mxu1 %v488_v9  ;;  %v491_v12 = vld [vmem:[%s610_s1 + $0x80] sm:$0xff]   ;;  %v486_v13 = vld [vmem:[%s610_s1 + $0x10] sm:$0xff]   ;;  %v487_v14 = vld [vmem:[%s610_s1 + $0x48] sm:$0xff]  }
   0x6   :  { %469 = vmatprep.subr.bf16.mxu1 %v491_v12  ;;  %v495_v15 = vld [vmem:[%s611_s0 + $0x4] ss:$12 sps:$4 sm:$0xff]   ;;  %v496_v16 = vld [vmem:[%s611_s0 + $0x8] ss:$12 sps:$4 sm:$0xff]   ;;  %v497_v17 = vld [vmem:[%s611_s0 + $0x20] ss:$12 sps:$4 sm:$0xff]  }
   0x7   :  { %438 = vmatpush3.bf16.msra.mxu0 %v478_v3  ;;  %248 = vmatprep.mubr.bf16.mxu0 %v495_v15  ;;  %v489_v18 = vld [vmem:[%s610_s1 + $0x8] sm:$0xff]   ;;  %v490_v19 = vld [vmem:[%s610_s1 + $0x40] sm:$0xff]  }
   0x8   :  { %439 = vmatprep.subr.bf16.mxu0 %v479_v4  ;;  %471 = vmatprep.mubr.msk.bf16.mxu1 %vm209_vm0, %v496_v16  ;;  %v492_v20 = vld [vmem:[%s610_s1] sm:$0xff]   ;;  %v498_v22 = vld [vmem:[%s611_s0 + $0x1c] ss:$12 sps:$4 sm:$0xff]  }
   0x9   :  { %470 = vmatpush3.bf16.msra.mxu1 %v491_v12  ;;  %v493_v21 = vld [vmem:[%s611_s0] ss:$12 sps:$4 sm:$0xff]   ;;  %v500_v23 = vld [vmem:[%s611_s0 + $0x18] ss:$12 sps:$4 sm:$0xff]  }
   0xb   :  { %440 = vmatpush3.bf16.msra.mxu0 %v480_v5 }
   0xc   :  { %441 = vmatprep.subr.bf16.mxu0 %v481_v6  ;;  %472 = vmatmul.mubr.msk.bf16.vlgmr.msra.gmra.mxu1 %vm209_vm0, %v497_v17 }
   0xf   :  { %442 = vmatpush3.bf16.msra.mxu0 %v482_v7 }
  0x10   :  { %443 = vmatprep.subr.bf16.mxu0 %v483_v8 }
  0x13   :  { %444 = vmatpush3.bf16.msra.mxu0 %v484_v10 }
  0x14   :  { %445 = vmatprep.subr.bf16.mxu0 %v485_v11 }
  0x17   :  { %446 = vmatpush3.bf16.msra.mxu0 %v486_v13 }
  0x18   :  { %447 = vmatprep.subr.bf16.mxu0 %v487_v14 }
  0x1b   :  { %448 = vmatpush3.bf16.msra.mxu0 %v489_v18 }
  0x1c   :  { %449 = vmatprep.subr.bf16.mxu0 %v490_v19 }
  0x1f   :  { %450 = vmatpush3.bf16.msra.mxu0 %v492_v20 }
  0x22   :  { %249 = vmatmul.mubr.bf16.vlgmr.msra.gmra.mxu0 %v493_v21 }
  0x23   :  { %256 = vmatprep.mubr.bf16.mxu0 %v498_v22 }
  0x2a   :  { %257 = vmatmul.mubr.bf16.gmra.mxu0 %v500_v23 }
  0xcc   :  { %v473_v24 = vpop.f32.mrf.mxu1 }
  0xce   :  { %v299_v26 = vpop.f32.mrf.mxu1 }
  0xd0   :  { %v474_v29 = vpop.f32.mrf.mxu1 }
  0xd2   :  { %v302_v33 = vpop.f32.mrf.mxu1 }
  0xe2   :  { %v451_v25 = vpop.f32.mrf.mxu0 }
  0xe4   :  { %v452_v27 = vpop.f32.mrf.mxu0 }
  0xe5   :  { %v453_v30 = vadd.f32 %v452_v27, %v451_v25 }
  0xe6   :  { %v454_v28 = vpop.f32.mrf.mxu0 }
  0xe7   :  { %v300_v35 = vadd.f32 %v453_v30, %v299_v26 }
  0xe8   :  { %v455_v31 = vpop.f32.mrf.mxu0 }
  0xe9   :  { %v456_v32 = vadd.f32 %v455_v31, %v454_v28  ;;  %v363_v44 = vmul.f32 %v300_v35, %v300_v35 }
  0xea   :  { %v457_v34 = vpop.f32.mrf.mxu0 }
  0xeb   :  { %v303_v36 = vadd.f32 %v456_v32, %v302_v33 }
  0xec   :  { %v458_v37 = vpop.f32.mrf.mxu0 }
  0xed   :  { %v427_v38 = vpack.c.bf16 %v303_v36, %v300_v35  ;;  %v459_v39 = vadd.f32 %v458_v37, %v457_v34  ;;  %v364_v41 = vmul.f32 %v303_v36, %v303_v36  ;;  %v352_v45 = vadd.f32 %v303_v36, %v300_v35 }
  0xee   :  { %v460_v40 = vpop.f32.mrf.mxu0 }
  0xef   :  { %428 = vst [vmem:[%s612_s2] sm:$0xff] %v427_v38   ;;  %v308_v42 = vadd.f32 %v473_v24, %v459_v39  ;;  %v367_v48 = vadd.f32 %v364_v41, %v363_v44 }
  0xf0   :  { %v461_v43 = vpop.f32.mrf.mxu0 }
  0xf1   :  { %v365_v46 = vmul.f32 %v308_v42, %v308_v42  ;;  %v462_v47 = vadd.f32 %v461_v43, %v460_v40  ;;  %v353_v49 = vadd.f32 %v352_v45, %v308_v42 }
  0xf3   :  { %v311_v50 = vadd.f32 %v474_v29, %v462_v47  ;;  %v368_v51 = vadd.f32 %v367_v48, %v365_v46 }
  0xf5   :  { %v432_v52 = vpack.c.bf16 %v311_v50, %v308_v42  ;;  %v354_v53 = vadd.f32 %v353_v49, %v311_v50  ;;  %v366_v54 = vmul.f32 %v311_v50, %v311_v50 }
  0xf7   :  { %434 = vst [vmem:[%s612_s2 + $0x8] sm:$0xff] %v432_v52   ;;  %v355_v55 = vrot.slane %v354_v53, 4  ;;  %v369_v56 = vadd.f32 %v368_v51, %v366_v54 }
  0xf9   :  { %v356_v58 = vadd.f32 %v355_v55, %v354_v53  ;;  %v370_v59 = vrot.slane %v369_v56, 4 }
  0xfb   :  { %v357_v60 = vrot.slane %v356_v58, 2  ;;  %v371_v61 = vadd.f32 %v370_v59, %v369_v56 }
  0xfd   :  { %v358_v63 = vadd.f32 %v357_v60, %v356_v58  ;;  %v372_v0 = vrot.slane %v371_v61, 2 }
  0xff   :  { %v359_v1 = vrot.slane %v358_v63, 1  ;;  %v373_v2 = vadd.f32 %v372_v0, %v371_v61 }
 0x101   :  { %v360_v3 = vadd.f32 %v359_v1, %v358_v63  ;;  %v374_v4 = vrot.slane %v373_v2, 1 }
 0x103   :  { %v361_v5 = vsel %vm351_vm1, %v360_v3, 0.0  ;;  %v375_v6 = vadd.f32 %v374_v4, %v373_v2 }
 0x104   :  { %362 = vst [vmem:[%s613_s3] sm:$0xff] %v361_v5 }
 0x105   :  { %v376_v7 = vsel %vm351_vm1, %v375_v6, 0.0 }
 0x106   :  { %377 = vst [vmem:[%s614_s4] sm:$0xff] %v376_v7 }

// kernel: tile.18
= control target key start
LH: loop header
LB: loop body
LE: loop exit
PB: predicated region body
PF: predicated region fallthrough
CT: control target
= control target key end

     0   :  { %s22_s0 = inlined_call_operand.vmem [shape: f32[8], index: 0, kind: input, shape index: {}]   ;;  %s23_s1 = inlined_call_operand.vmem [shape: f32[4,8], index: 1, kind: output, shape index: {}]  }
   0x1   :  { %v4_v0 = vld [vmem:[%s22_s0] ss:$0 sm:$0xff] }
   0x2   :  { %5 = vst [vmem:[%s23_s1] sm:$0xf] %v4_v0 }

// kernel: tile.19
= control target key start
LH: loop header
LB: loop body
LE: loop exit
PB: predicated region body
PF: predicated region fallthrough
CT: control target
= control target key end

     0   :  { %vm8_vm0 = vcmask 64512   ;;  %s40_s8 = smov 8   ;;  %s41_s9 = smov 16   ;;  %vm14_vm1 = vcmask 261312   ;;  %vm20_vm2 = vcmask 195712   ;;  %vm26_vm3 = vcmask 130112   ;;  %s58_s0 = inlined_call_operand.vmem [shape: f32[4,8], index: 0, kind: input, shape index: {}]   ;;  %s59_s1 = inlined_call_operand.vmem [shape: f32[32], index: 1, kind: output, shape index: {}]  }
   0x1   :  { %v5_v0 = vld [vmem:[%s58_s0] sm:$0xf]  ;;  %s39_s0 = smov 24  }
   0x2   :  { %6 = vst [vmem:[#allocation1] sm:$0xf] %v5_v0 }
   0x9   :  { %v11_v1 = vld [vmem:[#allocation1 + $0x3] sm:$0x1]   ;;  %v23_v2 = vld [vmem:[#allocation1 + $0x1] sm:$0x1]   ;;  %v7_v3 = vld [vmem:[#allocation1] sm:$0x1]  }
   0xa   :  { %12 = vrot.lane.b32.xlu0 %v11_v1, %s39_s0  ;;  %24 = vrot.lane.b32.xlu1 %v23_v2, %s40_s8  ;;  %v17_v4 = vld [vmem:[#allocation1 + $0x2] sm:$0x1]   ;;  %9 = vst.msk [vmem:[#allocation0] sm:$0x1] %vm8_vm0, %v7_v3  }
   0xe   :  { %18 = vrot.lane.b32.xlu0 %v17_v4, %s41_s9 }
  0x7c   :  { %v13_v5 = vpop.permute.xlu0 %12   ;;  %v25_v6 = vpop.permute.xlu1 %24  }
  0x7d   :  { %15 = vst.msk [vmem:[#allocation0] sm:$0x1] %vm14_vm1, %v13_v5  }
  0x80   :  { %v19_v7 = vpop.permute.xlu0 %18  }
  0x81   :  { %21 = vst.msk [vmem:[#allocation0] sm:$0x1] %vm20_vm2, %v19_v7  }
  0x82   :  { %27 = vst.msk [vmem:[#allocation0] sm:$0x1] %vm26_vm3, %v25_v6  }
  0x89   :  { %v32_v8 = vld [vmem:[#allocation0] sm:$0x1] }
  0x8a   :  { %35 = vst [vmem:[%s59_s1] sm:$0x1] %v32_v8 }

// kernel: unet_forward.40
= control target key start
LH: loop header
LB: loop body
LE: loop exit
PB: predicated region body
PF: predicated region fallthrough
CT: control target
= control target key end

     0   :  { %vm347_vm0 = vcmask 261120   ;;  %s1276_s1 = inlined_call_operand.vmem [shape: bf16[288,128], index: 1, kind: input, shape index: {}]   ;;  %s1277_s0 = inlined_call_operand.vmem [shape: bf16[128,288], index: 0, kind: input, shape index: {}]   ;;  %s1278_s2 = inlined_call_operand.vmem [shape: bf16[128,128], index: 2, kind: output, shape index: {0}]   ;;  %s1279_s3 = inlined_call_operand.vmem [shape: f32[1,8,128], index: 3, kind: output, shape index: {1}]   ;;  %s1280_s4 = inlined_call_operand.vmem [shape: f32[1,8,128], index: 4, kind: output, shape index: {2}]  }
   0x1   :  { %v1013_v0 = vld [vmem:[%s1276_s1 + $0x78] sm:$0xff]   ;;  %v1015_v2 = vld [vmem:[%s1276_s1 + $0x70] sm:$0xff]   ;;  %v1017_v4 = vld [vmem:[%s1276_s1 + $0x68] sm:$0xff]  }
   0x2   :  { %v1014_v1 = vld [vmem:[%s1276_s1 + $0x38] sm:$0xff]   ;;  %903 = vmatprep.subr.bf16.mxu0 %v1013_v0  ;;  %997 = vmatprep.subr.bf16.mxu1 %v1013_v0  ;;  %v1016_v3 = vld [vmem:[%s1276_s1 + $0x30] sm:$0xff]   ;;  %v1018_v5 = vld [vmem:[%s1276_s1 + $0x28] sm:$0xff]  }
   0x3   :  { %904 = vmatpush3.bf16.msra.mxu0 %v1014_v1  ;;  %1005 = vmatpush3.bf16.msra.mxu1 %v1014_v1  ;;  %v1019_v6 = vld [vmem:[%s1276_s1 + $0x60] sm:$0xff]   ;;  %v1021_v8 = vld [vmem:[%s1276_s1 + $0x58] sm:$0xff]   ;;  %v1023_v10 = vld [vmem:[%s1276_s1 + $0x50] sm:$0xff]  }
   0x4   :  { %905 = vmatprep.subr.bf16.mxu0 %v1015_v2  ;;  %998 = vmatprep.subr.bf16.mxu1 %v1015_v2  ;;  %v1020_v7 = vld [vmem:[%s1276_s1 + $0x20] sm:$0xff]   ;;  %v1022_v9 = vld [vmem:[%s1276_s1 + $0x18] sm:$0xff]   ;;  %v1024_v13 = vld [vmem:[%s1276_s1 + $0x10] sm:$0xff]  }
   0x5   :  { %v1031_v11 = vld [vmem:[%s1277_s0 + $0x4] ss:$12 sps:$4 sm:$0xff]   ;;  %v1034_v12 = vld [vmem:[%s1277_s0 + $0x94] ss:$12 sps:$4 sm:$0xff]   ;;  %v1025_v14 = vld [vmem:[%s1276_s1 + $0x48] sm:$0xff]  }
   0x6   :  { %404 = vmatprep.mubr.bf16.mxu0 %v1031_v11  ;;  %452 = vmatprep.mubr.bf16.mxu1 %v1034_v12  ;;  %v1026_v15 = vld [vmem:[%s1276_s1 + $0x8] sm:$0xff]   ;;  %v1027_v16 = vld [vmem:[%s1276_s1 + $0x40] sm:$0xff]   ;;  %v1032_v20 = vld [vmem:[%s1277_s0 + $0x90] ss:$12 sps:$4 sm:$0xff]  }
   0x7   :  { %906 = vmatpush3.bf16.msra.mxu0 %v1016_v3  ;;  %1006 = vmatpush3.bf16.msra.mxu1 %v1016_v3  ;;  %v1028_v17 = vld [vmem:[%s1276_s1] sm:$0xff]   ;;  %v1035_v19 = vld [vmem:[%s1276_s1 + $0x88] sm:$0xff]   ;;  %v1046_v28 = vld [vmem:[%s1277_s0 + $0x30] ss:$12 sps:$4 sm:$0xff]  }
   0x8   :  { %907 = vmatprep.subr.bf16.mxu0 %v1017_v4  ;;  %999 = vmatprep.subr.bf16.mxu1 %v1017_v4  ;;  %v1029_v18 = vld [vmem:[%s1277_s0] ss:$12 sps:$4 sm:$0xff]   ;;  %v1036_v21 = vld [vmem:[%s1277_s0 + $0x1c] ss:$12 sps:$4 sm:$0xff]   ;;  %v1040_v24 = vld [vmem:[%s1277_s0 + $0x18] ss:$12 sps:$4 sm:$0xff]  }
   0x9   :  { %v1038_v22 = vld [vmem:[%s1277_s0 + $0xac] ss:$12 sps:$4 sm:$0xff]   ;;  %v1042_v23 = vld [vmem:[%s1276_s1 + $0x80] sm:$0xff]   ;;  %v1041_v25 = vld [vmem:[%s1277_s0 + $0xa8] ss:$12 sps:$4 sm:$0xff]  }
   0xa   :  { %v1043_v26 = vld [vmem:[%s1277_s0 + $0x34] ss:$12 sps:$4 sm:$0xff]   ;;  %v1048_v30 = vld [vmem:[%s1277_s0 + $0x4c] ss:$12 sps:$4 sm:$0xff]   ;;  %v1052_v33 = vld [vmem:[%s1277_s0 + $0x50] ss:$12 sps:$4 sm:$0xff]  }
   0xb   :  { %908 = vmatpush3.bf16.msra.mxu0 %v1018_v5  ;;  %1007 = vmatpush3.bf16.msra.mxu1 %v1018_v5  ;;  %v1045_v27 = vld [vmem:[%s1277_s0 + $0x8] ss:$12 sps:$4 sm:$0xff]   ;;  %v1047_v29 = vld [vmem:[%s1277_s0 + $0x20] ss:$12 sps:$4 sm:$0xff]   ;;  %v1050_v31 = vld [vmem:[%s1277_s0 + $0x38] ss:$12 sps:$4 sm:$0xff]  }
   0xc   :  { %909 = vmatprep.subr.bf16.mxu0 %v1019_v6  ;;  %1000 = vmatprep.subr.bf16.mxu1 %v1019_v6  ;;  %v1051_v32 = vld [vmem:[%s1277_s0 + $0x48] ss:$12 sps:$4 sm:$0xff]   ;;  %v1053_v34 = vld [vmem:[%s1277_s0 + $0x64] ss:$12 sps:$4 sm:$0xff]   ;;  %v1056_v36 = vld [vmem:[%s1277_s0 + $0x60] ss:$12 sps:$4 sm:$0xff]  }
   0xd   :  { %v1055_v35 = vld [vmem:[%s1277_s0 + $0x68] ss:$12 sps:$4 sm:$0xff]   ;;  %v1057_v37 = vld [vmem:[%s1277_s0 + $0x80] ss:$12 sps:$4 sm:$0xff]   ;;  %v1060_v39 = vld [vmem:[%s1277_s0 + $0x98] ss:$12 sps:$4 sm:$0xff]  }
   0xe   :  { %v1058_v38 = vld [vmem:[%s1277_s0 + $0x7c] ss:$12 sps:$4 sm:$0xff]   ;;  %v1061_v40 = vld [vmem:[%s1277_s0 + $0x78] ss:$12 sps:$4 sm:$0xff]  }
   0xf   :  { %910 = vmatpush3.bf16.msra.mxu0 %v1020_v7  ;;  %1008 = vmatpush3.bf16.msra.mxu1 %v1020_v7  ;;  %v1062_v41 = vld [vmem:[%s1277_s0 + $0xb0] ss:$12 sps:$4 sm:$0xff]  }
  0x10   :  { %911 = vmatprep.subr.bf16.mxu0 %v1021_v8  ;;  %1001 = vmatprep.subr.bf16.mxu1 %v1021_v8 }
  0x13   :  { %912 = vmatpush3.bf16.msra.mxu0 %v1022_v9  ;;  %1009 = vmatpush3.bf16.msra.mxu1 %v1022_v9 }
  0x14   :  { %913 = vmatprep.subr.bf16.mxu0 %v1023_v10  ;;  %1002 = vmatprep.subr.bf16.mxu1 %v1023_v10 }
  0x17   :  { %914 = vmatpush3.bf16.msra.mxu0 %v1024_v13  ;;  %1010 = vmatpush3.bf16.msra.mxu1 %v1024_v13 }
  0x18   :  { %915 = vmatprep.subr.bf16.mxu0 %v1025_v14  ;;  %1003 = vmatprep.subr.bf16.mxu1 %v1025_v14 }
  0x1b   :  { %916 = vmatpush3.bf16.msra.mxu0 %v1026_v15  ;;  %1011 = vmatpush3.bf16.msra.mxu1 %v1026_v15 }
  0x1c   :  { %917 = vmatprep.subr.bf16.mxu0 %v1027_v16  ;;  %1004 = vmatprep.subr.bf16.mxu1 %v1027_v16 }
  0x1f   :  { %918 = vmatpush3.bf16.msra.mxu0 %v1028_v17  ;;  %1012 = vmatpush3.bf16.msra.mxu1 %v1028_v17 }
  0x20   :  { %977 = vmatprep.subr.bf16.mxu1 %v1035_v19 }
  0x22   :  { %405 = vmatmul.mubr.bf16.vlgmr.msra.gmra.mxu0 %v1029_v18  ;;  %453 = vmatmul.mubr.bf16.vlgmr.msra.gmra.mxu1 %v1032_v20 }
  0x23   :  { %978 = vmatpush3.bf16.msra.mxu1 %v1035_v19  ;;  %412 = vmatprep.mubr.bf16.mxu0 %v1036_v21 }
  0x24   :  { %460 = vmatprep.mubr.bf16.mxu1 %v1038_v22  ;;  %979 = vmatprep.subr.bf16.mxu1 %v1042_v23 }
  0x27   :  { %980 = vmatpush3.bf16.msra.mxu1 %v1042_v23 }
  0x2a   :  { %413 = vmatmul.mubr.bf16.gmra.mxu0 %v1040_v24  ;;  %461 = vmatmul.mubr.bf16.gmra.mxu1 %v1041_v25 }
  0x2b   :  { %420 = vmatprep.mubr.bf16.mxu0 %v1043_v26  ;;  %981 = vmatprep.mubr.msk.bf16.mxu1 %vm347_vm0, %v1045_v27 }
  0x32   :  { %421 = vmatmul.mubr.bf16.gmra.mxu0 %v1046_v28  ;;  %982 = vmatmul.mubr.msk.bf16.vlgmr.msra.gmra.mxu1 %vm347_vm0, %v1047_v29 }
  0x33   :  { %428 = vmatprep.mubr.bf16.mxu0 %v1048_v30  ;;  %985 = vmatprep.mubr.msk.bf16.mxu1 %vm347_vm0, %v1050_v31 }
  0x3a   :  { %429 = vmatmul.mubr.bf16.gmra.mxu0 %v1051_v32  ;;  %986 = vmatmul.mubr.msk.bf16.gmra.mxu1 %vm347_vm0, %v1052_v33 }
  0x3b   :  { %436 = vmatprep.mubr.bf16.mxu0 %v1053_v34  ;;  %989 = vmatprep.mubr.msk.bf16.mxu1 %vm347_vm0, %v1055_v35 }
  0x42   :  { %437 = vmatmul.mubr.bf16.gmra.mxu0 %v1056_v36  ;;  %990 = vmatmul.mubr.msk.bf16.gmra.mxu1 %vm347_vm0, %v1057_v37 }
  0x43   :  { %444 = vmatprep.mubr.bf16.mxu0 %v1058_v38  ;;  %993 = vmatprep.mubr.msk.bf16.mxu1 %vm347_vm0, %v1060_v39 }
  0x4a   :  { %445 = vmatmul.mubr.bf16.gmra.mxu0 %v1061_v40  ;;  %994 = vmatmul.mubr.msk.bf16.gmra.mxu1 %vm347_vm0, %v1062_v41 }
  0xe2   :  { %v919_v42 = vpop.f32.mrf.mxu0  ;;  %v1222_v43 = vpop.f32.mrf.mxu1 }
  0xe4   :  { %v920_v44 = vpop.f32.mrf.mxu0  ;;  %v1224_v45 = vpop.f32.mrf.mxu1 }
  0xe5   :  { %v921_v62 = vadd.f32 %v920_v44, %v919_v42 }
  0xe6   :  { %v922_v46 = vpop.f32.mrf.mxu0  ;;  %v1226_v47 = vpop.f32.mrf.mxu1 }
  0xe8   :  { %v923_v48 = vpop.f32.mrf.mxu0  ;;  %v1228_v49 = vpop.f32.mrf.mxu1 }
  0xe9   :  { %v924_v3 = vadd.f32 %v923_v48, %v922_v46 }
  0xea   :  { %v925_v50 = vpop.f32.mrf.mxu0  ;;  %v1230_v51 = vpop.f32.mrf.mxu1 }
  0xec   :  { %v926_v52 = vpop.f32.mrf.mxu0  ;;  %v1232_v53 = vpop.f32.mrf.mxu1 }
  0xed   :  { %v927_v63 = vadd.f32 %v926_v52, %v925_v50 }
  0xee   :  { %v928_v54 = vpop.f32.mrf.mxu0  ;;  %v1234_v55 = vpop.f32.mrf.mxu1 }
  0xf0   :  { %v929_v56 = vpop.f32.mrf.mxu0  ;;  %v1236_v57 = vpop.f32.mrf.mxu1 }
  0xf1   :  { %v930_v0 = vadd.f32 %v929_v56, %v928_v54 }
  0xf2   :  { %v931_v58 = vpop.f32.mrf.mxu0  ;;  %v983_v59 = vpop.f32.mrf.mxu1 }
  0xf3   :  { %v512_v4 = vadd.f32 %v983_v59, %v927_v63 }
  0xf4   :  { %v932_v60 = vpop.f32.mrf.mxu0  ;;  %v503_v61 = vpop.f32.mrf.mxu1 }
  0xf5   :  { %v504_v5 = vadd.f32 %v921_v62, %v503_v61  ;;  %v933_v11 = vadd.f32 %v932_v60, %v931_v58  ;;  %v725_v20 = vmul.f32 %v512_v4, %v512_v4 }
  0xf6   :  { %v934_v1 = vpop.f32.mrf.mxu0  ;;  %v984_v2 = vpop.f32.mrf.mxu1 }
  0xf7   :  { %v515_v6 = vadd.f32 %v984_v2, %v930_v0  ;;  %v723_v14 = vmul.f32 %v504_v5, %v504_v5 }
  0xf8   :  { %v935_v7 = vpop.f32.mrf.mxu0  ;;  %v506_v8 = vpop.f32.mrf.mxu1 }
  0xf9   :  { %v864_v9 = vpack.c.bf16 %v515_v6, %v512_v4  ;;  %v507_v10 = vadd.f32 %v924_v3, %v506_v8  ;;  %v726_v27 = vmul.f32 %v515_v6, %v515_v6  ;;  %v936_v30 = vadd.f32 %v935_v7, %v934_v1 }
  0xfa   :  { %v937_v12 = vpop.f32.mrf.mxu0  ;;  %v987_v13 = vpop.f32.mrf.mxu1 }
  0xfb   :  { %896 = vst [vmem:[%s1278_s2 + $0x8] sm:$0xff] %v864_v9   ;;  %v859_v15 = vpack.c.bf16 %v507_v10, %v504_v5  ;;  %v700_v16 = vadd.f32 %v507_v10, %v504_v5  ;;  %v724_v17 = vmul.f32 %v507_v10, %v507_v10 }
  0xfc   :  { %v938_v18 = vpop.f32.mrf.mxu0  ;;  %v519_v19 = vpop.f32.mrf.mxu1 }
  0xfd   :  { %860 = vst [vmem:[%s1278_s2] sm:$0xff] %v859_v15   ;;  %v701_v21 = vadd.f32 %v700_v16, %v512_v4  ;;  %v739_v22 = vadd.f32 %v724_v17, %v723_v14  ;;  %v520_v23 = vadd.f32 %v933_v11, %v519_v19  ;;  %v939_v24 = vadd.f32 %v938_v18, %v937_v12 }
  0xfe   :  { %v940_v25 = vpop.f32.mrf.mxu0  ;;  %v988_v26 = vpop.f32.mrf.mxu1  ;;  %v966_v14 = vadd.f32 %v1236_v57, %v1234_v55  ;;  %v957_v16 = vadd.f32 %v1224_v45, %v1222_v43 }
  0xff   :  { %v740_v28 = vadd.f32 %v739_v22, %v725_v20  ;;  %v702_v29 = vadd.f32 %v701_v21, %v515_v6  ;;  %v727_v34 = vmul.f32 %v520_v23, %v520_v23  ;;  %v528_v37 = vadd.f32 %v987_v13, %v939_v24 }
 0x100   :  { %v941_v31 = vpop.f32.mrf.mxu0  ;;  %v522_v32 = vpop.f32.mrf.mxu1  ;;  %v963_v13 = vadd.f32 %v1232_v53, %v1230_v51  ;;  %v960_v21 = vadd.f32 %v1228_v49, %v1226_v47 }
 0x101   :  { %v703_v33 = vadd.f32 %v702_v29, %v520_v23  ;;  %v741_v35 = vadd.f32 %v740_v28, %v726_v27  ;;  %v942_v36 = vadd.f32 %v941_v31, %v940_v25  ;;  %v523_v38 = vadd.f32 %v936_v30, %v522_v32 }
 0x102   :  { %v943_v39 = vpop.f32.mrf.mxu0  ;;  %v991_v40 = vpop.f32.mrf.mxu1  ;;  %v729_v58 = vmul.f32 %v528_v37, %v528_v37 }
 0x103   :  { %v742_v41 = vadd.f32 %v741_v35, %v727_v34  ;;  %v531_v42 = vadd.f32 %v988_v26, %v942_v36  ;;  %v869_v44 = vpack.c.bf16 %v523_v38, %v520_v23  ;;  %v704_v46 = vadd.f32 %v703_v33, %v523_v38 }
 0x104   :  { %v728_v48 = vmul.f32 %v523_v38, %v523_v38  ;;  %v944_v50 = vpop.f32.mrf.mxu0  ;;  %v535_v52 = vpop.f32.mrf.mxu1 }
 0x105   :  { %v874_v54 = vpack.c.bf16 %v531_v42, %v528_v37  ;;  %v945_v56 = vadd.f32 %v944_v50, %v943_v39  ;;  %897 = vst [vmem:[%s1278_s2 + $0x10] sm:$0xff] %v869_v44   ;;  %v705_v59 = vadd.f32 %v704_v46, %v528_v37  ;;  %v730_v4 = vmul.f32 %v531_v42, %v531_v42 }
 0x106   :  { %v743_v60 = vadd.f32 %v742_v41, %v728_v48  ;;  %v946_v61 = vpop.f32.mrf.mxu0  ;;  %v992_v62 = vpop.f32.mrf.mxu1 }
 0x107   :  { %898 = vst [vmem:[%s1278_s2 + $0x18] sm:$0xff] %v874_v54   ;;  %v536_v0 = vadd.f32 %v945_v56, %v535_v52  ;;  %v706_v5 = vadd.f32 %v705_v59, %v531_v42  ;;  %v697_v56 = vlaneseq }
 0x108   :  { %v744_v63 = vadd.f32 %v743_v60, %v729_v58  ;;  %v947_v1 = vpop.f32.mrf.mxu0  ;;  %v538_v2 = vpop.f32.mrf.mxu1 }
 0x109   :  { %v948_v3 = vadd.f32 %v947_v1, %v946_v61  ;;  %v731_v9 = vmul.f32 %v536_v0, %v536_v0  ;;  %v707_v17 = vadd.f32 %v706_v5, %v536_v0 }
 0x10a   :  { %v949_v6 = vpop.f32.mrf.mxu0  ;;  %v995_v7 = vpop.f32.mrf.mxu1  ;;  %v745_v10 = vadd.f32 %v744_v63, %v730_v4 }
 0x10b   :  { %v539_v8 = vadd.f32 %v948_v3, %v538_v2  ;;  %v560_v51 = vadd.f32 %v995_v7, %v963_v13 }
 0x10c   :  { %v950_v11 = vpop.f32.mrf.mxu0  ;;  %v551_v12 = vpop.f32.mrf.mxu1  ;;  %v746_v23 = vadd.f32 %v745_v10, %v731_v9 }
 0x10d   :  { %v879_v15 = vpack.c.bf16 %v539_v8, %v536_v0  ;;  %v951_v18 = vadd.f32 %v950_v11, %v949_v6  ;;  %v732_v22 = vmul.f32 %v539_v8, %v539_v8  ;;  %v708_v55 = vadd.f32 %v707_v17, %v539_v8 }
 0x10e   :  { %v952_v19 = vpop.f32.mrf.mxu0  ;;  %v996_v20 = vpop.f32.mrf.mxu1  ;;  %v552_v43 = vadd.f32 %v957_v16, %v551_v12  ;;  %v737_v41 = vmul.f32 %v560_v51, %v560_v51 }
 0x10f   :  { %899 = vst [vmem:[%s1278_s2 + $0x20] sm:$0xff] %v879_v15   ;;  %v563_v53 = vadd.f32 %v996_v20, %v966_v14  ;;  %v544_v57 = vadd.f32 %v991_v40, %v951_v18  ;;  %v747_v29 = vadd.f32 %v746_v23, %v732_v22 }
 0x110   :  { %v953_v24 = vpop.f32.mrf.mxu0  ;;  %v554_v25 = vpop.f32.mrf.mxu1  ;;  %v735_v35 = vmul.f32 %v552_v43, %v552_v43 }
 0x111   :  { %v894_v45 = vpack.c.bf16 %v563_v53, %v560_v51  ;;  %v954_v26 = vadd.f32 %v953_v24, %v952_v19  ;;  %v555_v27 = vadd.f32 %v960_v21, %v554_v25  ;;  %v733_v28 = vmul.f32 %v544_v57, %v544_v57 }
 0x112   :  { %v709_v30 = vadd.f32 %v708_v55, %v544_v57  ;;  %v738_v46 = vmul.f32 %v563_v53, %v563_v53 }
 0x113   :  { %902 = vst [vmem:[%s1278_s2 + $0x38] sm:$0xff] %v894_v45   ;;  %v547_v47 = vadd.f32 %v992_v62, %v954_v26  ;;  %v889_v49 = vpack.c.bf16 %v555_v27, %v552_v43  ;;  %v748_v31 = vadd.f32 %v747_v29, %v733_v28  ;;  %v736_v39 = vmul.f32 %v555_v27, %v555_v27 }
 0x114   :  { %v698_v62 = vshrl.u32 %v697_v56, 7 }
 0x115   :  { %v884_v32 = vpack.c.bf16 %v547_v47, %v544_v57  ;;  %v710_v33 = vadd.f32 %v709_v30, %v547_v47  ;;  %v734_v34 = vmul.f32 %v547_v47, %v547_v47  ;;  %901 = vst [vmem:[%s1278_s2 + $0x30] sm:$0xff] %v889_v49  }
 0x116   :  { %vm699_vm1 = vcmp.eq.s32.totalorder %v698_v62, 0 }
 0x117   :  { %900 = vst [vmem:[%s1278_s2 + $0x28] sm:$0xff] %v884_v32   ;;  %v749_v36 = vadd.f32 %v748_v31, %v734_v34  ;;  %v711_v37 = vadd.f32 %v710_v33, %v552_v43 }
 0x119   :  { %v712_v38 = vadd.f32 %v711_v37, %v555_v27  ;;  %v750_v40 = vadd.f32 %v749_v36, %v735_v35 }
 0x11b   :  { %v713_v42 = vadd.f32 %v712_v38, %v560_v51  ;;  %v751_v44 = vadd.f32 %v750_v40, %v736_v39 }
 0x11d   :  { %v714_v48 = vadd.f32 %v713_v42, %v563_v53  ;;  %v752_v50 = vadd.f32 %v751_v44, %v737_v41 }
 0x11f   :  { %v715_v52 = vrot.slane %v714_v48, 4  ;;  %v753_v54 = vadd.f32 %v752_v50, %v738_v46 }
 0x121   :  { %v716_v58 = vadd.f32 %v715_v52, %v714_v48  ;;  %v754_v59 = vrot.slane %v753_v54, 4 }
 0x123   :  { %v717_v60 = vrot.slane %v716_v58, 2  ;;  %v755_v61 = vadd.f32 %v754_v59, %v753_v54 }
 0x125   :  { %v718_v63 = vadd.f32 %v717_v60, %v716_v58  ;;  %v756_v0 = vrot.slane %v755_v61, 2 }
 0x127   :  { %v719_v1 = vrot.slane %v718_v63, 1  ;;  %v757_v2 = vadd.f32 %v756_v0, %v755_v61 }
 0x129   :  { %v720_v3 = vadd.f32 %v719_v1, %v718_v63  ;;  %v758_v4 = vrot.slane %v757_v2, 1 }
 0x12b   :  { %v721_v5 = vsel %vm699_vm1, %v720_v3, 0.0  ;;  %v759_v6 = vadd.f32 %v758_v4, %v757_v2 }
 0x12c   :  { %722 = vst [vmem:[%s1279_s3] sm:$0xff] %v721_v5 }
 0x12d   :  { %v760_v7 = vsel %vm699_vm1, %v759_v6, 0.0 }
 0x12e   :  { %761 = vst [vmem:[%s1280_s4] sm:$0xff] %v760_v7 }

// kernel: unet_forward.44
= control target key start
LH: loop header
LB: loop body
LE: loop exit
PB: predicated region body
PF: predicated region fallthrough
CT: control target
= control target key end

     0   :  { %vm115_vm0 = vcmask 130048   ;;  %s612_s1 = inlined_call_operand.vmem [shape: bf16[16,128], index: 1, kind: input, shape index: {}]   ;;  %s613_s0 = inlined_call_operand.vmem [shape: bf16[128,16], index: 0, kind: input, shape index: {}]   ;;  %s614_s2 = inlined_call_operand.vmem [shape: f32[1,128], index: 2, kind: input, shape index: {}]   ;;  %s615_s3 = inlined_call_operand.vmem [shape: bf16[128,128], index: 3, kind: output, shape index: {}]  }
   0x1   :  { %v521_v0 = vld [vmem:[%s612_s1] sm:$0xff]   ;;  %v524_v3 = vld [vmem:[%s613_s0 + $0x8] sm:$0xff]   ;;  %v526_v5 = vld [vmem:[%s613_s0 + $0x10] sm:$0xff]  }
   0x2   :  { %v522_v1 = vld [vmem:[%s613_s0] sm:$0xff]   ;;  %501 = vmatprep.subr.bf16.mxu0 %v521_v0  ;;  %519 = vmatprep.subr.bf16.mxu1 %v521_v0  ;;  %v525_v4 = vld [vmem:[%s613_s0 + $0x28] sm:$0xff]   ;;  %v527_v6 = vld [vmem:[%s613_s0 + $0x30] sm:$0xff]  }
   0x3   :  { %v523_v2 = vld [vmem:[%s613_s0 + $0x20] sm:$0xff]   ;;  %502 = vmatpush3.bf16.msra.mxu0 %v521_v0  ;;  %520 = vmatpush3.bf16.msra.mxu1 %v521_v0  ;;  %v528_v7 = vld [vmem:[%s613_s0 + $0x18] sm:$0xff]  }
   0x4   :  { %503 = vmatprep.mubr.msk.bf16.mxu0 %vm115_vm0, %v522_v1  ;;  %511 = vmatprep.mubr.msk.bf16.mxu1 %vm115_vm0, %v523_v2  ;;  %v529_v8 = vld [vmem:[%s613_s0 + $0x38] sm:$0xff]   ;;  %v412_v11 = vld [vmem:[%s614_s2] ss:$0 sm:$0xff] }
   0x6   :  { %504 = vmatmul.mubr.msk.bf16.vlgmr.msra.gmra.mxu0 %vm115_vm0, %v524_v3  ;;  %512 = vmatmul.mubr.msk.bf16.vlgmr.msra.gmra.mxu1 %vm115_vm0, %v525_v4 }
   0x7   :  { %507 = vmatprep.mubr.msk.bf16.mxu0 %vm115_vm0, %v526_v5  ;;  %515 = vmatprep.mubr.msk.bf16.mxu1 %vm115_vm0, %v527_v6 }
   0xe   :  { %508 = vmatmul.mubr.msk.bf16.gmra.mxu0 %vm115_vm0, %v528_v7  ;;  %516 = vmatmul.mubr.msk.bf16.gmra.mxu1 %vm115_vm0, %v529_v8 }
  0xc6   :  { %v505_v9 = vpop.f32.mrf.mxu0  ;;  %v513_v10 = vpop.f32.mrf.mxu1 }
  0xc7   :  { %v297_v16 = vadd.f32 %v505_v9, %v412_v11  ;;  %v305_v17 = vadd.f32 %v513_v10, %v412_v11 }
  0xc8   :  { %v174_v12 = vpop.f32.mrf.mxu0  ;;  %v206_v13 = vpop.f32.mrf.mxu1 }
  0xc9   :  { %v295_v20 = vadd.f32 %v412_v11, %v174_v12  ;;  %v303_v21 = vadd.f32 %v412_v11, %v206_v13 }
  0xca   :  { %v506_v14 = vpop.f32.mrf.mxu0  ;;  %v514_v15 = vpop.f32.mrf.mxu1 }
  0xcb   :  { %v298_v18 = vadd.f32 %v506_v14, %v412_v11  ;;  %v306_v19 = vadd.f32 %v514_v15, %v412_v11 }
  0xcc   :  { %v177_v22 = vpop.f32.mrf.mxu0  ;;  %v209_v23 = vpop.f32.mrf.mxu1 }
  0xcd   :  { %v453_v24 = vpack.c.bf16 %v298_v18, %v297_v16  ;;  %v473_v25 = vpack.c.bf16 %v306_v19, %v305_v17  ;;  %v296_v26 = vadd.f32 %v412_v11, %v177_v22  ;;  %v304_v27 = vadd.f32 %v412_v11, %v209_v23 }
  0xce   :  { %v509_v28 = vpop.f32.mrf.mxu0  ;;  %v517_v29 = vpop.f32.mrf.mxu1 }
  0xcf   :  { %485 = vst [vmem:[%s615_s3 + $0x8] sm:$0xff] %v453_v24   ;;  %489 = vst [vmem:[%s615_s3 + $0x28] sm:$0xff] %v473_v25   ;;  %v448_v30 = vpack.c.bf16 %v296_v26, %v295_v20  ;;  %v468_v31 = vpack.c.bf16 %v304_v27, %v303_v21  ;;  %v301_v36 = vadd.f32 %v509_v28, %v412_v11 }
  0xd0   :  { %v190_v32 = vpop.f32.mrf.mxu0  ;;  %v222_v33 = vpop.f32.mrf.mxu1  ;;  %v309_v37 = vadd.f32 %v517_v29, %v412_v11 }
  0xd1   :  { %449 = vst [vmem:[%s615_s3] sm:$0xff] %v448_v30   ;;  %488 = vst [vmem:[%s615_s3 + $0x20] sm:$0xff] %v468_v31   ;;  %v299_v40 = vadd.f32 %v412_v11, %v190_v32  ;;  %v307_v41 = vadd.f32 %v412_v11, %v222_v33 }
  0xd2   :  { %v510_v34 = vpop.f32.mrf.mxu0  ;;  %v518_v35 = vpop.f32.mrf.mxu1 }
  0xd3   :  { %v302_v38 = vadd.f32 %v510_v34, %v412_v11  ;;  %v310_v39 = vadd.f32 %v518_v35, %v412_v11 }
  0xd4   :  { %v193_v42 = vpop.f32.mrf.mxu0  ;;  %v225_v43 = vpop.f32.mrf.mxu1 }
  0xd5   :  { %v463_v44 = vpack.c.bf16 %v302_v38, %v301_v36  ;;  %v483_v45 = vpack.c.bf16 %v310_v39, %v309_v37  ;;  %v300_v46 = vadd.f32 %v412_v11, %v193_v42  ;;  %v308_v47 = vadd.f32 %v412_v11, %v225_v43 }
  0xd7   :  { %487 = vst [vmem:[%s615_s3 + $0x18] sm:$0xff] %v463_v44   ;;  %491 = vst [vmem:[%s615_s3 + $0x38] sm:$0xff] %v483_v45   ;;  %v458_v48 = vpack.c.bf16 %v300_v46, %v299_v40  ;;  %v478_v49 = vpack.c.bf16 %v308_v47, %v307_v41 }
  0xd9   :  { %486 = vst [vmem:[%s615_s3 + $0x10] sm:$0xff] %v458_v48   ;;  %490 = vst [vmem:[%s615_s3 + $0x30] sm:$0xff] %v478_v49  }

// kernel: unet_forward.45
= control target key start
LH: loop header
LB: loop body
LE: loop exit
PB: predicated region body
PF: predicated region fallthrough
CT: control target
= control target key end

     0   :  { %v2241_v0 = vmov 0   ;;  %vm571_vm0 = vcmask 130048   ;;  %s2944_s1 = inlined_call_operand.vmem [shape: bf16[144,128], index: 1, kind: input, shape index: {}]   ;;  %s2945_s0 = inlined_call_operand.vmem [shape: bf16[512,144], index: 0, kind: input, shape index: {}]   ;;  %s2946_s2 = inlined_call_operand.vmem [shape: bf16[512,128], index: 2, kind: output, shape index: {0}]   ;;  %s2947_s3 = inlined_call_operand.vmem [shape: f32[1,8,128], index: 3, kind: output, shape index: {1}]   ;;  %s2948_s4 = inlined_call_operand.vmem [shape: f32[1,8,128], index: 4, kind: output, shape index: {2}]  }
   0x1   :  { %668 = vmatprep.subr.bf16.mxu0 %v2241_v0  ;;  %v2136_v1 = vld [vmem:[%s2944_s1 + $0x38] sm:$0xff]   ;;  %2117 = vmatprep.subr.bf16.mxu1 %v2241_v0  ;;  %v2137_v2 = vld [vmem:[%s2944_s1 + $0x30] sm:$0xff]   ;;  %v2138_v3 = vld [vmem:[%s2944_s1 + $0x28] sm:$0xff]  }
   0x2   :  { %669 = vmatpush1.bf16.msra.mxu0 %v2136_v1  ;;  %2126 = vmatpush1.bf16.msra.mxu1 %v2136_v1  ;;  %v2139_v4 = vld [vmem:[%s2944_s1 + $0x20] sm:$0xff]   ;;  %v2140_v6 = vld [vmem:[%s2944_s1 + $0x18] sm:$0xff]   ;;  %v2141_v7 = vld [vmem:[%s2944_s1 + $0x10] sm:$0xff]  }
   0x3   :  { %670 = vmatprep.subr.bf16.mxu0 %v2241_v0  ;;  %2118 = vmatprep.subr.bf16.mxu1 %v2241_v0  ;;  %v2147_v5 = vld [vmem:[%s2945_s0 + $0x4] ss:$8 sps:$4 sm:$0xff]   ;;  %v2145_v12 = vld [vmem:[%s2945_s0] ss:$8 sps:$4 sm:$0xff]   ;;  %v2148_v13 = vld [vmem:[%s2945_s0 + $0x14] ss:$8 sps:$4 sm:$0xff]  }
   0x4   :  { %1766 = vmatprep.mubr.msk.bf16.mxu0 %vm571_vm0, %v2147_v5  ;;  %v2171_v8 = vld [vmem:[%s2945_s0 + $0x104] ss:$8 sps:$4 sm:$0xff]   ;;  %v2169_v14 = vld [vmem:[%s2945_s0 + $0x100] ss:$8 sps:$4 sm:$0xff]   ;;  %v2175_v15 = vld [vmem:[%s2945_s0 + $0x114] ss:$8 sps:$4 sm:$0xff]  }
   0x5   :  { %v2142_v9 = vld [vmem:[%s2944_s1 + $0x8] sm:$0xff]   ;;  %1782 = vmatprep.mubr.msk.bf16.mxu1 %vm571_vm0, %v2171_v8  ;;  %v2143_v10 = vld [vmem:[%s2944_s1] sm:$0xff]   ;;  %v2150_v16 = vld [vmem:[%s2945_s0 + $0x10] ss:$8 sps:$4 sm:$0xff]  }
   0x6   :  { %671 = vmatpush1.bf16.msra.mxu0 %v2137_v2  ;;  %2127 = vmatpush1.bf16.msra.mxu1 %v2137_v2  ;;  %v2144_v11 = vld [vmem:[%s2944_s1 + $0x40] sm:$0xff]   ;;  %v2177_v18 = vld [vmem:[%s2945_s0 + $0x110] ss:$8 sps:$4 sm:$0xff]   ;;  %v2154_v21 = vld [vmem:[%s2945_s0 + $0x34] ss:$8 sps:$4 sm:$0xff]  }
   0x7   :  { %672 = vmatprep.subr.bf16.mxu0 %v2241_v0  ;;  %2119 = vmatprep.subr.bf16.mxu1 %v2241_v0  ;;  %v2151_v17 = vld [vmem:[%s2945_s0 + $0x24] ss:$8 sps:$4 sm:$0xff]   ;;  %v2153_v20 = vld [vmem:[%s2945_s0 + $0x20] ss:$8 sps:$4 sm:$0xff]   ;;  %v2187_v23 = vld [vmem:[%s2945_s0 + $0x134] ss:$8 sps:$4 sm:$0xff]  }
   0x8   :  { %v2181_v19 = vld [vmem:[%s2945_s0 + $0x124] ss:$8 sps:$4 sm:$0xff]   ;;  %v2183_v22 = vld [vmem:[%s2945_s0 + $0x120] ss:$8 sps:$4 sm:$0xff]   ;;  %v2156_v24 = vld [vmem:[%s2945_s0 + $0x30] ss:$8 sps:$4 sm:$0xff]  }
   0x9   :  { %v2189_v25 = vld [vmem:[%s2945_s0 + $0x130] ss:$8 sps:$4 sm:$0xff]   ;;  %v2157_v26 = vld [vmem:[%s2945_s0 + $0x44] ss:$8 sps:$4 sm:$0xff]   ;;  %v2159_v28 = vld [vmem:[%s2945_s0 + $0x40] ss:$8 sps:$4 sm:$0xff]  }
   0xa   :  { %673 = vmatpush1.bf16.msra.mxu0 %v2138_v3  ;;  %2128 = vmatpush1.bf16.msra.mxu1 %v2138_v3  ;;  %v2193_v27 = vld [vmem:[%s2945_s0 + $0x144] ss:$8 sps:$4 sm:$0xff]   ;;  %v2195_v29 = vld [vmem:[%s2945_s0 + $0x140] ss:$8 sps:$4 sm:$0xff]   ;;  %v2160_v30 = vld [vmem:[%s2945_s0 + $0x54] ss:$8 sps:$4 sm:$0xff]  }
   0xb   :  { %674 = vmatprep.subr.bf16.mxu0 %v2241_v0  ;;  %2120 = vmatprep.subr.bf16.mxu1 %v2241_v0  ;;  %v2199_v31 = vld [vmem:[%s2945_s0 + $0x154] ss:$8 sps:$4 sm:$0xff]   ;;  %v2162_v32 = vld [vmem:[%s2945_s0 + $0x50] ss:$8 sps:$4 sm:$0xff]   ;;  %v2163_v34 = vld [vmem:[%s2945_s0 + $0x64] ss:$8 sps:$4 sm:$0xff]  }
   0xc   :  { %v2201_v33 = vld [vmem:[%s2945_s0 + $0x150] ss:$8 sps:$4 sm:$0xff]   ;;  %v2205_v35 = vld [vmem:[%s2945_s0 + $0x164] ss:$8 sps:$4 sm:$0xff]   ;;  %v2165_v36 = vld [vmem:[%s2945_s0 + $0x60] ss:$8 sps:$4 sm:$0xff]  }
   0xd   :  { %v2207_v37 = vld [vmem:[%s2945_s0 + $0x160] ss:$8 sps:$4 sm:$0xff]   ;;  %v2166_v38 = vld [vmem:[%s2945_s0 + $0x74] ss:$8 sps:$4 sm:$0xff]   ;;  %v2168_v40 = vld [vmem:[%s2945_s0 + $0x70] ss:$8 sps:$4 sm:$0xff]  }
   0xe   :  { %675 = vmatpush1.bf16.msra.mxu0 %v2139_v4  ;;  %2129 = vmatpush1.bf16.msra.mxu1 %v2139_v4  ;;  %v2211_v39 = vld [vmem:[%s2945_s0 + $0x174] ss:$8 sps:$4 sm:$0xff]   ;;  %v2213_v41 = vld [vmem:[%s2945_s0 + $0x170] ss:$8 sps:$4 sm:$0xff]   ;;  %v2172_v42 = vld [vmem:[%s2945_s0 + $0x84] ss:$8 sps:$4 sm:$0xff]  }
   0xf   :  { %676 = vmatprep.subr.bf16.mxu0 %v2241_v0  ;;  %2121 = vmatprep.subr.bf16.mxu1 %v2241_v0  ;;  %v2217_v43 = vld [vmem:[%s2945_s0 + $0x184] ss:$8 sps:$4 sm:$0xff]   ;;  %v2174_v44 = vld [vmem:[%s2945_s0 + $0x80] ss:$8 sps:$4 sm:$0xff]   ;;  %v2178_v46 = vld [vmem:[%s2945_s0 + $0x94] ss:$8 sps:$4 sm:$0xff]  }
  0x10   :  { %v2219_v45 = vld [vmem:[%s2945_s0 + $0x180] ss:$8 sps:$4 sm:$0xff]   ;;  %v2220_v47 = vld [vmem:[%s2945_s0 + $0x194] ss:$8 sps:$4 sm:$0xff]   ;;  %v2180_v48 = vld [vmem:[%s2945_s0 + $0x90] ss:$8 sps:$4 sm:$0xff]  }
  0x11   :  { %v2222_v49 = vld [vmem:[%s2945_s0 + $0x190] ss:$8 sps:$4 sm:$0xff]   ;;  %v2184_v50 = vld [vmem:[%s2945_s0 + $0xa4] ss:$8 sps:$4 sm:$0xff]   ;;  %v2186_v52 = vld [vmem:[%s2945_s0 + $0xa0] ss:$8 sps:$4 sm:$0xff]  }
  0x12   :  { %677 = vmatpush1.bf16.msra.mxu0 %v2140_v6  ;;  %2130 = vmatpush1.bf16.msra.mxu1 %v2140_v6  ;;  %v2223_v51 = vld [vmem:[%s2945_s0 + $0x1a4] ss:$8 sps:$4 sm:$0xff]   ;;  %v2225_v53 = vld [vmem:[%s2945_s0 + $0x1a0] ss:$8 sps:$4 sm:$0xff]   ;;  %v2190_v54 = vld [vmem:[%s2945_s0 + $0xb4] ss:$8 sps:$4 sm:$0xff]  }
  0x13   :  { %678 = vmatprep.subr.bf16.mxu0 %v2241_v0  ;;  %2122 = vmatprep.subr.bf16.mxu1 %v2241_v0  ;;  %v2226_v55 = vld [vmem:[%s2945_s0 + $0x1b4] ss:$8 sps:$4 sm:$0xff]   ;;  %v2192_v56 = vld [vmem:[%s2945_s0 + $0xb0] ss:$8 sps:$4 sm:$0xff]   ;;  %v2196_v58 = vld [vmem:[%s2945_s0 + $0xc4] ss:$8 sps:$4 sm:$0xff]  }
  0x14   :  { %v2228_v57 = vld [vmem:[%s2945_s0 + $0x1b0] ss:$8 sps:$4 sm:$0xff]   ;;  %v2229_v59 = vld [vmem:[%s2945_s0 + $0x1c4] ss:$8 sps:$4 sm:$0xff]   ;;  %v2198_v60 = vld [vmem:[%s2945_s0 + $0xc0] ss:$8 sps:$4 sm:$0xff]  }
  0x15   :  { %v2231_v61 = vld [vmem:[%s2945_s0 + $0x1c0] ss:$8 sps:$4 sm:$0xff]   ;;  %v2202_v62 = vld [vmem:[%s2945_s0 + $0xd4] ss:$8 sps:$4 sm:$0xff]   ;;  %v2234_v1 = vld [vmem:[%s2945_s0 + $0x1d0] ss:$8 sps:$4 sm:$0xff]  }
  0x16   :  { %679 = vmatpush1.bf16.msra.mxu0 %v2141_v7  ;;  %2131 = vmatpush1.bf16.msra.mxu1 %v2141_v7  ;;  %v2232_v63 = vld [vmem:[%s2945_s0 + $0x1d4] ss:$8 sps:$4 sm:$0xff]   ;;  %v2208_v2 = vld [vmem:[%s2945_s0 + $0xe4] ss:$8 sps:$4 sm:$0xff]   ;;  %v2210_v4 = vld [vmem:[%s2945_s0 + $0xe0] ss:$8 sps:$4 sm:$0xff]  }
  0x17   :  { %680 = vmatprep.subr.bf16.mxu0 %v2241_v0  ;;  %2123 = vmatprep.subr.bf16.mxu1 %v2241_v0  ;;  %v2235_v3 = vld [vmem:[%s2945_s0 + $0x1e4] ss:$8 sps:$4 sm:$0xff]   ;;  %v2237_v5 = vld [vmem:[%s2945_s0 + $0x1e0] ss:$8 sps:$4 sm:$0xff]   ;;  %v2214_v6 = vld [vmem:[%s2945_s0 + $0xf4] ss:$8 sps:$4 sm:$0xff]  }
  0x18   :  { %v2238_v7 = vld [vmem:[%s2945_s0 + $0x1f4] ss:$8 sps:$4 sm:$0xff]   ;;  %v2216_v8 = vld [vmem:[%s2945_s0 + $0xf0] ss:$8 sps:$4 sm:$0xff]  }
  0x1a   :  { %681 = vmatpush1.bf16.msra.mxu0 %v2142_v9  ;;  %2132 = vmatpush1.bf16.msra.mxu1 %v2142_v9  ;;  %v2240_v9 = vld [vmem:[%s2945_s0 + $0x1f0] ss:$8 sps:$4 sm:$0xff]  }
  0x1b   :  { %682 = vmatprep.subr.bf16.mxu0 %v2241_v0  ;;  %2124 = vmatprep.subr.bf16.mxu1 %v2241_v0 }
  0x1e   :  { %683 = vmatpush1.bf16.msra.mxu0 %v2143_v10  ;;  %2133 = vmatpush1.bf16.msra.mxu1 %v2143_v10 }
  0x1f   :  { %698 = vmatprep.subr.bf16.mxu0 %v2241_v0  ;;  %2125 = vmatprep.subr.bf16.mxu1 %v2241_v0  ;;  %v2204_v0 = vld [vmem:[%s2945_s0 + $0xd0] ss:$8 sps:$4 sm:$0xff]  }
  0x22   :  { %699 = vmatpush2.bf16.msra.mxu0 %v2144_v11  ;;  %2134 = vmatpush2.bf16.msra.mxu1 %v2144_v11 }
  0x25   :  { %701 = vmatmul.mubr.bf16.vlgmr.msra.gmra.mxu0 %v2145_v12  ;;  %829 = vmatmul.mubr.bf16.vlgmr.msra.gmra.mxu1 %v2169_v14 }
  0x26   :  { %1767 = vmatprep.mubr.msk.bf16.mxu0 %vm571_vm0, %v2148_v13  ;;  %1783 = vmatprep.mubr.msk.bf16.mxu1 %vm571_vm0, %v2175_v15 }
  0x2d   :  { %709 = vmatmul.mubr.bf16.gmra.mxu0 %v2150_v16  ;;  %837 = vmatmul.mubr.bf16.gmra.mxu1 %v2177_v18 }
  0x2e   :  { %1768 = vmatprep.mubr.msk.bf16.mxu0 %vm571_vm0, %v2151_v17  ;;  %1784 = vmatprep.mubr.msk.bf16.mxu1 %vm571_vm0, %v2181_v19 }
  0x35   :  { %717 = vmatmul.mubr.bf16.gmra.mxu0 %v2153_v20  ;;  %845 = vmatmul.mubr.bf16.gmra.mxu1 %v2183_v22 }
  0x36   :  { %1769 = vmatprep.mubr.msk.bf16.mxu0 %vm571_vm0, %v2154_v21  ;;  %1785 = vmatprep.mubr.msk.bf16.mxu1 %vm571_vm0, %v2187_v23 }
  0x3d   :  { %725 = vmatmul.mubr.bf16.gmra.mxu0 %v2156_v24  ;;  %853 = vmatmul.mubr.bf16.gmra.mxu1 %v2189_v25 }
  0x3e   :  { %1770 = vmatprep.mubr.msk.bf16.mxu0 %vm571_vm0, %v2157_v26  ;;  %1786 = vmatprep.mubr.msk.bf16.mxu1 %vm571_vm0, %v2193_v27 }
  0x45   :  { %733 = vmatmul.mubr.bf16.gmra.mxu0 %v2159_v28  ;;  %861 = vmatmul.mubr.bf16.gmra.mxu1 %v2195_v29 }
  0x46   :  { %1771 = vmatprep.mubr.msk.bf16.mxu0 %vm571_vm0, %v2160_v30  ;;  %1787 = vmatprep.mubr.msk.bf16.mxu1 %vm571_vm0, %v2199_v31 }
  0x4d   :  { %741 = vmatmul.mubr.bf16.gmra.mxu0 %v2162_v32  ;;  %869 = vmatmul.mubr.bf16.gmra.mxu1 %v2201_v33 }
  0x4e   :  { %1772 = vmatprep.mubr.msk.bf16.mxu0 %vm571_vm0, %v2163_v34  ;;  %1788 = vmatprep.mubr.msk.bf16.mxu1 %vm571_vm0, %v2205_v35 }
  0x55   :  { %749 = vmatmul.mubr.bf16.gmra.mxu0 %v2165_v36  ;;  %877 = vmatmul.mubr.bf16.gmra.mxu1 %v2207_v37 }
  0x56   :  { %1773 = vmatprep.mubr.msk.bf16.mxu0 %vm571_vm0, %v2166_v38  ;;  %1789 = vmatprep.mubr.msk.bf16.mxu1 %vm571_vm0, %v2211_v39 }
  0x5d   :  { %757 = vmatmul.mubr.bf16.gmra.mxu0 %v2168_v40  ;;  %885 = vmatmul.mubr.bf16.gmra.mxu1 %v2213_v41 }
  0x5e   :  { %1774 = vmatprep.mubr.msk.bf16.mxu0 %vm571_vm0, %v2172_v42  ;;  %1790 = vmatprep.mubr.msk.bf16.mxu1 %vm571_vm0, %v2217_v43 }
  0x65   :  { %765 = vmatmul.mubr.bf16.gmra.mxu0 %v2174_v44  ;;  %893 = vmatmul.mubr.bf16.gmra.mxu1 %v2219_v45 }
  0x66   :  { %1775 = vmatprep.mubr.msk.bf16.mxu0 %vm571_vm0, %v2178_v46  ;;  %1791 = vmatprep.mubr.msk.bf16.mxu1 %vm571_vm0, %v2220_v47 }
  0x6d   :  { %773 = vmatmul.mubr.bf16.gmra.mxu0 %v2180_v48  ;;  %901 = vmatmul.mubr.bf16.gmra.mxu1 %v2222_v49 }
  0x6e   :  { %1776 = vmatprep.mubr.msk.bf16.mxu0 %vm571_vm0, %v2184_v50  ;;  %1792 = vmatprep.mubr.msk.bf16.mxu1 %vm571_vm0, %v2223_v51 }
  0x75   :  { %781 = vmatmul.mubr.bf16.gmra.mxu0 %v2186_v52  ;;  %909 = vmatmul.mubr.bf16.gmra.mxu1 %v2225_v53 }
  0x76   :  { %1777 = vmatprep.mubr.msk.bf16.mxu0 %vm571_vm0, %v2190_v54  ;;  %1793 = vmatprep.mubr.msk.bf16.mxu1 %vm571_vm0, %v2226_v55 }
  0x7d   :  { %789 = vmatmul.mubr.bf16.gmra.mxu0 %v2192_v56  ;;  %917 = vmatmul.mubr.bf16.gmra.mxu1 %v2228_v57 }
  0x7e   :  { %1778 = vmatprep.mubr.msk.bf16.mxu0 %vm571_vm0, %v2196_v58  ;;  %1794 = vmatprep.mubr.msk.bf16.mxu1 %vm571_vm0, %v2229_v59 }
  0x85   :  { %797 = vmatmul.mubr.bf16.gmra.mxu0 %v2198_v60  ;;  %925 = vmatmul.mubr.bf16.gmra.mxu1 %v2231_v61 }
  0x86   :  { %1779 = vmatprep.mubr.msk.bf16.mxu0 %vm571_vm0, %v2202_v62  ;;  %1795 = vmatprep.mubr.msk.bf16.mxu1 %vm571_vm0, %v2232_v63 }
  0x8d   :  { %805 = vmatmul.mubr.bf16.gmra.mxu0 %v2204_v0  ;;  %933 = vmatmul.mubr.bf16.gmra.mxu1 %v2234_v1 }
  0x8e   :  { %1780 = vmatprep.mubr.msk.bf16.mxu0 %vm571_vm0, %v2208_v2  ;;  %1796 = vmatprep.mubr.msk.bf16.mxu1 %vm571_vm0, %v2235_v3 }
  0x95   :  { %813 = vmatmul.mubr.bf16.gmra.mxu0 %v2210_v4  ;;  %941 = vmatmul.mubr.bf16.gmra.mxu1 %v2237_v5 }
  0x96   :  { %1781 = vmatprep.mubr.msk.bf16.mxu0 %vm571_vm0, %v2214_v6  ;;  %1797 = vmatprep.mubr.msk.bf16.mxu1 %vm571_vm0, %v2238_v7 }
  0x9d   :  { %821 = vmatmul.mubr.bf16.gmra.mxu0 %v2216_v8  ;;  %949 = vmatmul.mubr.bf16.gmra.mxu1 %v2240_v9 }
  0xe5   :  { %v2518_v10 = vpop.f32.mrf.mxu0  ;;  %v2520_v11 = vpop.f32.mrf.mxu1 }
  0xe7   :  { %v704_v12 = vpop.f32.mrf.mxu0  ;;  %v832_v13 = vpop.f32.mrf.mxu1 }
  0xe9   :  { %v2522_v14 = vpop.f32.mrf.mxu0  ;;  %v2524_v15 = vpop.f32.mrf.mxu1 }
  0xea   :  { %v1929_v16 = vpack.c.bf16 %v2522_v14, %v2518_v10  ;;  %v2009_v17 = vpack.c.bf16 %v2524_v15, %v2520_v11 }
  0xeb   :  { %v707_v18 = vpop.f32.mrf.mxu0  ;;  %v835_v19 = vpop.f32.mrf.mxu1 }
  0xec   :  { %1930 = vst [vmem:[%s2946_s2] sm:$0xff] %v1929_v16   ;;  %2101 = vst [vmem:[%s2946_s2 + $0x80] sm:$0xff] %v2009_v17  }
  0xed   :  { %v2536_v20 = vpop.f32.mrf.mxu0  ;;  %v2538_v21 = vpop.f32.mrf.mxu1 }
  0xef   :  { %v712_v22 = vpop.f32.mrf.mxu0  ;;  %v840_v23 = vpop.f32.mrf.mxu1 }
  0xf1   :  { %v2540_v24 = vpop.f32.mrf.mxu0  ;;  %v2542_v25 = vpop.f32.mrf.mxu1 }
  0xf2   :  { %v1934_v26 = vpack.c.bf16 %v2540_v24, %v2536_v20  ;;  %v2014_v27 = vpack.c.bf16 %v2542_v25, %v2538_v21 }
  0xf3   :  { %v715_v28 = vpop.f32.mrf.mxu0  ;;  %v843_v29 = vpop.f32.mrf.mxu1 }
  0xf4   :  { %2086 = vst [vmem:[%s2946_s2 + $0x8] sm:$0xff] %v1934_v26   ;;  %2102 = vst [vmem:[%s2946_s2 + $0x88] sm:$0xff] %v2014_v27  }
  0xf5   :  { %v2554_v30 = vpop.f32.mrf.mxu0  ;;  %v2556_v31 = vpop.f32.mrf.mxu1 }
  0xf7   :  { %v720_v32 = vpop.f32.mrf.mxu0  ;;  %v848_v33 = vpop.f32.mrf.mxu1 }
  0xf9   :  { %v2558_v34 = vpop.f32.mrf.mxu0  ;;  %v2560_v35 = vpop.f32.mrf.mxu1 }
  0xfa   :  { %v1939_v36 = vpack.c.bf16 %v2558_v34, %v2554_v30  ;;  %v2019_v37 = vpack.c.bf16 %v2560_v35, %v2556_v31 }
  0xfb   :  { %v723_v38 = vpop.f32.mrf.mxu0  ;;  %v851_v39 = vpop.f32.mrf.mxu1 }
  0xfc   :  { %2087 = vst [vmem:[%s2946_s2 + $0x10] sm:$0xff] %v1939_v36   ;;  %2103 = vst [vmem:[%s2946_s2 + $0x90] sm:$0xff] %v2019_v37   ;;  %v1547_v36 = vmul.f32 %v2522_v14, %v2522_v14  ;;  %v1546_v39 = vmul.f32 %v2518_v10, %v2518_v10 }
  0xfd   :  { %v2572_v40 = vpop.f32.mrf.mxu0  ;;  %v2574_v41 = vpop.f32.mrf.mxu1 }
  0xff   :  { %v728_v42 = vpop.f32.mrf.mxu0  ;;  %v856_v43 = vpop.f32.mrf.mxu1 }
 0x100   :  { %v1548_v42 = vmul.f32 %v2536_v20, %v2536_v20 }
 0x101   :  { %v2576_v44 = vpop.f32.mrf.mxu0  ;;  %v2578_v45 = vpop.f32.mrf.mxu1 }
 0x102   :  { %v1944_v46 = vpack.c.bf16 %v2576_v44, %v2572_v40  ;;  %v2024_v47 = vpack.c.bf16 %v2578_v45, %v2574_v41 }
 0x103   :  { %v731_v48 = vpop.f32.mrf.mxu0  ;;  %v859_v49 = vpop.f32.mrf.mxu1 }
 0x104   :  { %2088 = vst [vmem:[%s2946_s2 + $0x18] sm:$0xff] %v1944_v46   ;;  %2104 = vst [vmem:[%s2946_s2 + $0x98] sm:$0xff] %v2024_v47   ;;  %v1475_v47 = vadd.f32 %v2522_v14, %v2518_v10  ;;  %v1610_v48 = vadd.f32 %v1547_v36, %v1546_v39  ;;  %v1549_v49 = vmul.f32 %v2540_v24, %v2540_v24 }
 0x105   :  { %v2590_v50 = vpop.f32.mrf.mxu0  ;;  %v2592_v51 = vpop.f32.mrf.mxu1 }
 0x107   :  { %v736_v52 = vpop.f32.mrf.mxu0  ;;  %v864_v53 = vpop.f32.mrf.mxu1 }
 0x109   :  { %v2594_v54 = vpop.f32.mrf.mxu0  ;;  %v2596_v55 = vpop.f32.mrf.mxu1 }
 0x10a   :  { %v1949_v56 = vpack.c.bf16 %v2594_v54, %v2590_v50  ;;  %v2029_v57 = vpack.c.bf16 %v2596_v55, %v2592_v51 }
 0x10b   :  { %v739_v58 = vpop.f32.mrf.mxu0  ;;  %v867_v59 = vpop.f32.mrf.mxu1 }
 0x10c   :  { %2089 = vst [vmem:[%s2946_s2 + $0x20] sm:$0xff] %v1949_v56   ;;  %2105 = vst [vmem:[%s2946_s2 + $0xa0] sm:$0xff] %v2029_v57   ;;  %v1476_v56 = vadd.f32 %v1475_v47, %v2536_v20  ;;  %v1611_v57 = vadd.f32 %v1610_v48, %v1548_v42  ;;  %v1550_v58 = vmul.f32 %v2554_v30, %v2554_v30 }
 0x10d   :  { %v2608_v60 = vpop.f32.mrf.mxu0  ;;  %v2610_v61 = vpop.f32.mrf.mxu1  ;;  %v1551_v20 = vmul.f32 %v2558_v34, %v2558_v34 }
 0x10f   :  { %v744_v62 = vpop.f32.mrf.mxu0  ;;  %v872_v63 = vpop.f32.mrf.mxu1 }
 0x110   :  { %v1477_v63 = vadd.f32 %v1476_v56, %v2540_v24 }
 0x111   :  { %v2612_v0 = vpop.f32.mrf.mxu0  ;;  %v2614_v1 = vpop.f32.mrf.mxu1 }
 0x112   :  { %v1954_v2 = vpack.c.bf16 %v2612_v0, %v2608_v60  ;;  %v2034_v3 = vpack.c.bf16 %v2614_v1, %v2610_v61 }
 0x113   :  { %v747_v4 = vpop.f32.mrf.mxu0  ;;  %v875_v5 = vpop.f32.mrf.mxu1 }
 0x114   :  { %2090 = vst [vmem:[%s2946_s2 + $0x28] sm:$0xff] %v1954_v2   ;;  %2106 = vst [vmem:[%s2946_s2 + $0xa8] sm:$0xff] %v2034_v3   ;;  %v1612_v2 = vadd.f32 %v1611_v57, %v1549_v49  ;;  %v1478_v5 = vadd.f32 %v1477_v63, %v2554_v30  ;;  %v1553_v30 = vmul.f32 %v2576_v44, %v2576_v44 }
 0x115   :  { %v2626_v6 = vpop.f32.mrf.mxu0  ;;  %v2628_v7 = vpop.f32.mrf.mxu1 }
 0x116   :  { %v1613_v24 = vadd.f32 %v1612_v2, %v1550_v58 }
 0x117   :  { %v752_v8 = vpop.f32.mrf.mxu0  ;;  %v880_v9 = vpop.f32.mrf.mxu1 }
 0x118   :  { %v1552_v8 = vmul.f32 %v2572_v40, %v2572_v40 }
 0x119   :  { %v2630_v12 = vpop.f32.mrf.mxu0  ;;  %v2632_v13 = vpop.f32.mrf.mxu1 }
 0x11a   :  { %v1959_v16 = vpack.c.bf16 %v2630_v12, %v2626_v6  ;;  %v2039_v17 = vpack.c.bf16 %v2632_v13, %v2628_v7 }
 0x11b   :  { %v755_v18 = vpop.f32.mrf.mxu0  ;;  %v883_v19 = vpop.f32.mrf.mxu1 }
 0x11c   :  { %2091 = vst [vmem:[%s2946_s2 + $0x30] sm:$0xff] %v1959_v16   ;;  %2107 = vst [vmem:[%s2946_s2 + $0xb0] sm:$0xff] %v2039_v17   ;;  %v1479_v17 = vadd.f32 %v1478_v5, %v2558_v34  ;;  %v1614_v18 = vadd.f32 %v1613_v24, %v1551_v20  ;;  %v1558_v20 = vmul.f32 %v2626_v6, %v2626_v6 }
 0x11d   :  { %v2644_v22 = vpop.f32.mrf.mxu0  ;;  %v2646_v23 = vpop.f32.mrf.mxu1 }
 0x11f   :  { %v760_v26 = vpop.f32.mrf.mxu0  ;;  %v888_v27 = vpop.f32.mrf.mxu1 }
 0x120   :  { %v1480_v27 = vadd.f32 %v1479_v17, %v2572_v40  ;;  %v1555_v40 = vmul.f32 %v2594_v54, %v2594_v54 }
 0x121   :  { %v2648_v28 = vpop.f32.mrf.mxu0  ;;  %v2650_v29 = vpop.f32.mrf.mxu1 }
 0x122   :  { %v1964_v32 = vpack.c.bf16 %v2648_v28, %v2644_v22  ;;  %v2044_v33 = vpack.c.bf16 %v2650_v29, %v2646_v23 }
 0x123   :  { %v763_v37 = vpop.f32.mrf.mxu0  ;;  %v891_v38 = vpop.f32.mrf.mxu1 }
 0x124   :  { %2092 = vst [vmem:[%s2946_s2 + $0x38] sm:$0xff] %v1964_v32   ;;  %2108 = vst [vmem:[%s2946_s2 + $0xb8] sm:$0xff] %v2044_v33   ;;  %v1615_v32 = vadd.f32 %v1614_v18, %v1552_v8  ;;  %v1554_v33 = vmul.f32 %v2590_v50, %v2590_v50  ;;  %v1481_v38 = vadd.f32 %v1480_v27, %v2576_v44 }
 0x125   :  { %v2668_v43 = vpop.f32.mrf.mxu0  ;;  %v2670_v46 = vpop.f32.mrf.mxu1 }
 0x126   :  { %v1616_v42 = vadd.f32 %v1615_v32, %v1553_v30  ;;  %v1482_v49 = vadd.f32 %v1481_v38, %v2590_v50  ;;  %v1557_v50 = vmul.f32 %v2612_v0, %v2612_v0 }
 0x127   :  { %v768_v52 = vpop.f32.mrf.mxu0  ;;  %v896_v53 = vpop.f32.mrf.mxu1 }
 0x128   :  { %v1617_v44 = vadd.f32 %v1616_v42, %v1554_v33  ;;  %v1556_v52 = vmul.f32 %v2608_v60, %v2608_v60  ;;  %v1483_v57 = vadd.f32 %v1482_v49, %v2594_v54 }
 0x129   :  { %v2679_v59 = vpop.f32.mrf.mxu0  ;;  %v2681_v62 = vpop.f32.mrf.mxu1 }
 0x12a   :  { %v1969_v10 = vpack.c.bf16 %v2679_v59, %v2668_v43  ;;  %v2049_v14 = vpack.c.bf16 %v2681_v62, %v2670_v46  ;;  %v1618_v58 = vadd.f32 %v1617_v44, %v1555_v40  ;;  %v1562_v40 = vmul.f32 %v2668_v43, %v2668_v43 }
 0x12b   :  { %v771_v3 = vpop.f32.mrf.mxu0  ;;  %v899_v4 = vpop.f32.mrf.mxu1 }
 0x12c   :  { %2093 = vst [vmem:[%s2946_s2 + $0x40] sm:$0xff] %v1969_v10   ;;  %2109 = vst [vmem:[%s2946_s2 + $0xc0] sm:$0xff] %v2049_v14   ;;  %v1484_v14 = vadd.f32 %v1483_v57, %v2608_v60  ;;  %v1619_v2 = vadd.f32 %v1618_v58, %v1556_v52  ;;  %v1559_v60 = vmul.f32 %v2630_v12, %v2630_v12 }
 0x12d   :  { %v2699_v9 = vpop.f32.mrf.mxu0  ;;  %v2701_v16 = vpop.f32.mrf.mxu1  ;;  %v1563_v57 = vmul.f32 %v2679_v59, %v2679_v59 }
 0x12e   :  { %v1485_v5 = vadd.f32 %v1484_v14, %v2612_v0  ;;  %v1620_v8 = vadd.f32 %v1619_v2, %v1557_v50 }
 0x12f   :  { %v776_v19 = vpop.f32.mrf.mxu0  ;;  %v904_v26 = vpop.f32.mrf.mxu1 }
 0x130   :  { %v1486_v30 = vadd.f32 %v1485_v5, %v2626_v6  ;;  %v1621_v0 = vadd.f32 %v1620_v8, %v1558_v20  ;;  %v1560_v19 = vmul.f32 %v2644_v22, %v2644_v22  ;;  %v1561_v6 = vmul.f32 %v2648_v28, %v2648_v28 }
 0x131   :  { %v2709_v36 = vpop.f32.mrf.mxu0  ;;  %v2711_v37 = vpop.f32.mrf.mxu1 }
 0x132   :  { %v1974_v34 = vpack.c.bf16 %v2709_v36, %v2699_v9  ;;  %v2054_v39 = vpack.c.bf16 %v2711_v37, %v2701_v16  ;;  %v1487_v32 = vadd.f32 %v1486_v30, %v2630_v12  ;;  %v1622_v33 = vadd.f32 %v1621_v0, %v1559_v60 }
 0x133   :  { %v779_v47 = vpop.f32.mrf.mxu0  ;;  %v907_v48 = vpop.f32.mrf.mxu1 }
 0x134   :  { %2094 = vst [vmem:[%s2946_s2 + $0x48] sm:$0xff] %v1974_v34   ;;  %2110 = vst [vmem:[%s2946_s2 + $0xc8] sm:$0xff] %v2054_v39   ;;  %v1488_v39 = vadd.f32 %v1487_v32, %v2644_v22  ;;  %v1623_v42 = vadd.f32 %v1622_v33, %v1560_v19 }
 0x135   :  { %v2729_v53 = vpop.f32.mrf.mxu0  ;;  %v2731_v56 = vpop.f32.mrf.mxu1 }
 0x136   :  { %v1489_v49 = vadd.f32 %v1488_v39, %v2648_v28  ;;  %v1624_v52 = vadd.f32 %v1623_v42, %v1561_v6  ;;  %v1566_v60 = vmul.f32 %v2729_v53, %v2729_v53 }
 0x137   :  { %v784_v63 = vpop.f32.mrf.mxu0  ;;  %v912_v10 = vpop.f32.mrf.mxu1 }
 0x138   :  { %v1490_v22 = vadd.f32 %v1489_v49, %v2668_v43  ;;  %v1625_v28 = vadd.f32 %v1624_v52, %v1562_v40  ;;  %v1564_v63 = vmul.f32 %v2699_v9, %v2699_v9  ;;  %v1565_v43 = vmul.f32 %v2709_v36, %v2709_v36 }
 0x139   :  { %v2739_v3 = vpop.f32.mrf.mxu0  ;;  %v2741_v4 = vpop.f32.mrf.mxu1 }
 0x13a   :  { %v1979_v54 = vpack.c.bf16 %v2739_v3, %v2729_v53  ;;  %v2059_v24 = vpack.c.bf16 %v2741_v4, %v2731_v56  ;;  %v1491_v2 = vadd.f32 %v1490_v22, %v2679_v59  ;;  %v1626_v20 = vadd.f32 %v1625_v28, %v1563_v57 }
 0x13b   :  { %v787_v17 = vpop.f32.mrf.mxu0  ;;  %v915_v18 = vpop.f32.mrf.mxu1  ;;  %v1567_v32 = vmul.f32 %v2739_v3, %v2739_v3 }
 0x13c   :  { %2095 = vst [vmem:[%s2946_s2 + $0x50] sm:$0xff] %v1979_v54   ;;  %2111 = vst [vmem:[%s2946_s2 + $0xd0] sm:$0xff] %v2059_v24   ;;  %v1492_v24 = vadd.f32 %v1491_v2, %v2699_v9  ;;  %v1627_v8 = vadd.f32 %v1626_v20, %v1564_v63 }
 0x13d   :  { %v790_v26 = vpop.f32.mrf.mxu0  ;;  %v2759_v27 = vpop.f32.mrf.mxu1 }
 0x13e   :  { %v1493_v30 = vadd.f32 %v1492_v24, %v2709_v36  ;;  %v1628_v19 = vadd.f32 %v1627_v8, %v1565_v43 }
 0x13f   :  { %v792_v38 = vpop.f32.mrf.mxu0  ;;  %v920_v34 = vpop.f32.mrf.mxu1 }
 0x140   :  { %v1494_v9 = vadd.f32 %v1493_v30, %v2729_v53  ;;  %v1629_v36 = vadd.f32 %v1628_v19, %v1566_v60  ;;  %v1568_v38 = vmul.f32 %v790_v26, %v790_v26 }
 0x141   :  { %v793_v47 = vpop.f32.mrf.mxu0  ;;  %v2767_v48 = vpop.f32.mrf.mxu1 }
 0x142   :  { %v1984_v44 = vpack.c.bf16 %v793_v47, %v790_v26  ;;  %v2064_v12 = vpack.c.bf16 %v2767_v48, %v2759_v27  ;;  %v1495_v42 = vadd.f32 %v1494_v9, %v2739_v3  ;;  %v1630_v40 = vadd.f32 %v1629_v36, %v1567_v32 }
 0x143   :  { %v795_v58 = vpop.f32.mrf.mxu0  ;;  %v923_v50 = vpop.f32.mrf.mxu1  ;;  %v1569_v49 = vmul.f32 %v793_v47, %v793_v47 }
 0x144   :  { %2096 = vst [vmem:[%s2946_s2 + $0x58] sm:$0xff] %v1984_v44   ;;  %2112 = vst [vmem:[%s2946_s2 + $0xd8] sm:$0xff] %v2064_v12   ;;  %v1496_v53 = vadd.f32 %v1495_v42, %v790_v26  ;;  %v1631_v52 = vadd.f32 %v1630_v40, %v1568_v38 }
 0x145   :  { %v798_v10 = vpop.f32.mrf.mxu0  ;;  %v2783_v14 = vpop.f32.mrf.mxu1 }
 0x146   :  { %v1570_v57 = vmul.f32 %v798_v10, %v798_v10  ;;  %v1497_v22 = vadd.f32 %v1496_v53, %v793_v47  ;;  %v1632_v2 = vadd.f32 %v1631_v52, %v1569_v49 }
 0x147   :  { %v800_v5 = vpop.f32.mrf.mxu0  ;;  %v928_v54 = vpop.f32.mrf.mxu1 }
 0x148   :  { %v1498_v3 = vadd.f32 %v1497_v22, %v798_v10  ;;  %v1633_v26 = vadd.f32 %v1632_v2, %v1570_v57 }
 0x149   :  { %v801_v17 = vpop.f32.mrf.mxu0  ;;  %v2791_v18 = vpop.f32.mrf.mxu1 }
 0x14a   :  { %v1989_v0 = vpack.c.bf16 %v801_v17, %v798_v10  ;;  %v2069_v59 = vpack.c.bf16 %v2791_v18, %v2783_v14  ;;  %v1571_v20 = vmul.f32 %v801_v17, %v801_v17  ;;  %v1499_v8 = vadd.f32 %v1498_v3, %v801_v17 }
 0x14b   :  { %v803_v33 = vpop.f32.mrf.mxu0  ;;  %v931_v6 = vpop.f32.mrf.mxu1 }
 0x14c   :  { %2097 = vst [vmem:[%s2946_s2 + $0x60] sm:$0xff] %v1989_v0   ;;  %2113 = vst [vmem:[%s2946_s2 + $0xe0] sm:$0xff] %v2069_v59   ;;  %v1634_v60 = vadd.f32 %v1633_v26, %v1571_v20 }
 0x14d   :  { %v806_v34 = vpop.f32.mrf.mxu0  ;;  %v2805_v39 = vpop.f32.mrf.mxu1 }
 0x14e   :  { %v1572_v54 = vmul.f32 %v806_v34, %v806_v34  ;;  %v1500_v19 = vadd.f32 %v1499_v8, %v806_v34 }
 0x14f   :  { %v808_v44 = vpop.f32.mrf.mxu0  ;;  %v936_v12 = vpop.f32.mrf.mxu1 }
 0x150   :  { %v1635_v10 = vadd.f32 %v1634_v60, %v1572_v54  ;;  %v1578_v60 = vmul.f32 %v2520_v11, %v2520_v11 }
 0x151   :  { %v809_v58 = vpop.f32.mrf.mxu0  ;;  %v2808_v50 = vpop.f32.mrf.mxu1 }
 0x152   :  { %v1994_v28 = vpack.c.bf16 %v809_v58, %v806_v34  ;;  %v2074_v63 = vpack.c.bf16 %v2808_v50, %v2805_v39  ;;  %v1573_v30 = vmul.f32 %v809_v58, %v809_v58  ;;  %v1501_v9 = vadd.f32 %v1500_v19, %v809_v58 }
 0x153   :  { %v811_v43 = vpop.f32.mrf.mxu0  ;;  %v939_v5 = vpop.f32.mrf.mxu1 }
 0x154   :  { %2098 = vst [vmem:[%s2946_s2 + $0x68] sm:$0xff] %v1994_v28   ;;  %2114 = vst [vmem:[%s2946_s2 + $0xe8] sm:$0xff] %v2074_v63   ;;  %v1636_v42 = vadd.f32 %v1635_v10, %v1573_v30 }
 0x155   :  { %v814_v47 = vpop.f32.mrf.mxu0  ;;  %v2818_v24 = vpop.f32.mrf.mxu1 }
 0x156   :  { %v1574_v32 = vmul.f32 %v814_v47, %v814_v47  ;;  %v1502_v17 = vadd.f32 %v1501_v9, %v814_v47 }
 0x157   :  { %v816_v0 = vpop.f32.mrf.mxu0  ;;  %v944_v59 = vpop.f32.mrf.mxu1 }
 0x158   :  { %v1637_v34 = vadd.f32 %v1636_v42, %v1574_v32  ;;  %v1579_v59 = vmul.f32 %v2524_v15, %v2524_v15  ;;  %v1580_v32 = vmul.f32 %v2538_v21, %v2538_v21  ;;  %v1582_v42 = vmul.f32 %v2556_v31, %v2556_v31 }
 0x159   :  { %v817_v33 = vpop.f32.mrf.mxu0  ;;  %v2820_v6 = vpop.f32.mrf.mxu1 }
 0x15a   :  { %v1999_v36 = vpack.c.bf16 %v817_v33, %v814_v47  ;;  %v2079_v38 = vpack.c.bf16 %v2820_v6, %v2818_v24  ;;  %v1575_v40 = vmul.f32 %v817_v33, %v817_v33  ;;  %v1503_v52 = vadd.f32 %v1502_v17, %v817_v33 }
 0x15b   :  { %v819_v49 = vpop.f32.mrf.mxu0  ;;  %v947_v44 = vpop.f32.mrf.mxu1 }
 0x15c   :  { %2099 = vst [vmem:[%s2946_s2 + $0x70] sm:$0xff] %v1999_v36   ;;  %2115 = vst [vmem:[%s2946_s2 + $0xf0] sm:$0xff] %v2079_v38   ;;  %v1638_v58 = vadd.f32 %v1637_v34, %v1575_v40 }
 0x15d   :  { %v822_v12 = vpop.f32.mrf.mxu0  ;;  %v2830_v53 = vpop.f32.mrf.mxu1 }
 0x15e   :  { %v1576_v57 = vmul.f32 %v822_v12, %v822_v12  ;;  %v1504_v63 = vadd.f32 %v1503_v52, %v822_v12 }
 0x15f   :  { %v824_v22 = vpop.f32.mrf.mxu0  ;;  %v952_v28 = vpop.f32.mrf.mxu1 }
 0x160   :  { %v1639_v2 = vadd.f32 %v1638_v58, %v1576_v57 }
 0x161   :  { %v825_v20 = vpop.f32.mrf.mxu0  ;;  %v2832_v43 = vpop.f32.mrf.mxu1 }
 0x162   :  { %v2004_v5 = vpack.c.bf16 %v825_v20, %v822_v12  ;;  %v1505_v3 = vadd.f32 %v1504_v63, %v825_v20  ;;  %v1577_v26 = vmul.f32 %v825_v20, %v825_v20  ;;  %v2084_v54 = vpack.c.bf16 %v2832_v43, %v2830_v53 }
 0x163   :  { %v827_v47 = vpop.f32.mrf.mxu0  ;;  %v955_v8 = vpop.f32.mrf.mxu1 }
 0x164   :  { %2100 = vst [vmem:[%s2946_s2 + $0x78] sm:$0xff] %v2004_v5   ;;  %v1506_v30 = vadd.f32 %v1505_v3, %v2520_v11  ;;  %v1640_v0 = vadd.f32 %v1639_v2, %v1577_v26  ;;  %2116 = vst [vmem:[%s2946_s2 + $0xf8] sm:$0xff] %v2084_v54   ;;  %v1581_v11 = vmul.f32 %v2542_v25, %v2542_v25 }
 0x166   :  { %v1507_v19 = vadd.f32 %v1506_v30, %v2524_v15  ;;  %v1641_v10 = vadd.f32 %v1640_v0, %v1578_v60  ;;  %v1583_v15 = vmul.f32 %v2560_v35, %v2560_v35 }
 0x168   :  { %v1508_v33 = vadd.f32 %v1507_v19, %v2538_v21  ;;  %v1642_v9 = vadd.f32 %v1641_v10, %v1579_v59  ;;  %v1584_v21 = vmul.f32 %v2574_v41, %v2574_v41 }
 0x16a   :  { %v1509_v36 = vadd.f32 %v1508_v33, %v2542_v25  ;;  %v1643_v38 = vadd.f32 %v1642_v9, %v1580_v32  ;;  %v1585_v25 = vmul.f32 %v2578_v45, %v2578_v45  ;;  %v1595_v32 = vmul.f32 %v2681_v62, %v2681_v62 }
 0x16c   :  { %v1510_v40 = vadd.f32 %v1509_v36, %v2556_v31  ;;  %v1644_v49 = vadd.f32 %v1643_v38, %v1581_v11  ;;  %v1586_v31 = vmul.f32 %v2592_v51, %v2592_v51  ;;  %v1596_v11 = vmul.f32 %v2701_v16, %v2701_v16 }
 0x16d   :  { %v1597_v38 = vmul.f32 %v2711_v37, %v2711_v37 }
 0x16e   :  { %v1511_v44 = vadd.f32 %v1510_v40, %v2560_v35  ;;  %v1645_v17 = vadd.f32 %v1644_v49, %v1582_v42  ;;  %v1587_v35 = vmul.f32 %v2596_v55, %v2596_v55  ;;  %v1598_v40 = vmul.f32 %v2731_v56, %v2731_v56 }
 0x170   :  { %v1512_v34 = vadd.f32 %v1511_v44, %v2574_v41  ;;  %v1646_v12 = vadd.f32 %v1645_v17, %v1583_v15  ;;  %v1588_v41 = vmul.f32 %v2610_v61, %v2610_v61  ;;  %v1599_v15 = vmul.f32 %v2741_v4, %v2741_v4 }
 0x171   :  { %v1600_v17 = vmul.f32 %v2759_v27, %v2759_v27 }
 0x172   :  { %v1513_v52 = vadd.f32 %v1512_v34, %v2578_v45  ;;  %v1647_v57 = vadd.f32 %v1646_v12, %v1584_v21  ;;  %v1589_v45 = vmul.f32 %v2614_v1, %v2614_v1  ;;  %v1601_v34 = vmul.f32 %v2767_v48, %v2767_v48 }
 0x174   :  { %v1648_v58 = vadd.f32 %v1647_v57, %v1585_v25  ;;  %v1514_v22 = vadd.f32 %v1513_v52, %v2592_v51  ;;  %v1590_v51 = vmul.f32 %v2628_v7, %v2628_v7  ;;  %v1602_v25 = vmul.f32 %v2783_v14, %v2783_v14 }
 0x175   :  { %v1603_v57 = vmul.f32 %v2791_v18, %v2791_v18 }
 0x176   :  { %v1515_v28 = vadd.f32 %v1514_v22, %v2596_v55  ;;  %v1649_v63 = vadd.f32 %v1648_v58, %v1586_v31  ;;  %v1591_v55 = vmul.f32 %v2632_v13, %v2632_v13  ;;  %v1604_v58 = vmul.f32 %v2805_v39, %v2805_v39 }
 0x178   :  { %v1516_v2 = vadd.f32 %v1515_v28, %v2610_v61  ;;  %v1650_v20 = vadd.f32 %v1649_v63, %v1587_v35  ;;  %v1592_v61 = vmul.f32 %v2646_v23, %v2646_v23  ;;  %v1605_v35 = vmul.f32 %v2808_v50, %v2808_v50 }
 0x179   :  { %v1606_v63 = vmul.f32 %v2818_v24, %v2818_v24 }
 0x17a   :  { %v1517_v5 = vadd.f32 %v1516_v2, %v2614_v1  ;;  %v1651_v3 = vadd.f32 %v1650_v20, %v1588_v41  ;;  %v1593_v1 = vmul.f32 %v2650_v29, %v2650_v29  ;;  %v1607_v2 = vmul.f32 %v2820_v6, %v2820_v6 }
 0x17c   :  { %v1518_v26 = vadd.f32 %v1517_v5, %v2628_v7  ;;  %v1652_v54 = vadd.f32 %v1651_v3, %v1589_v45  ;;  %v1594_v7 = vmul.f32 %v2670_v46, %v2670_v46  ;;  %v1608_v45 = vmul.f32 %v2830_v53, %v2830_v53 }
 0x17d   :  { %v1609_v3 = vmul.f32 %v2832_v43, %v2832_v43 }
 0x17e   :  { %v1519_v47 = vadd.f32 %v1518_v26, %v2632_v13  ;;  %v1653_v8 = vadd.f32 %v1652_v54, %v1590_v51  ;;  %v1472_v26 = vlaneseq }
 0x180   :  { %v1520_v60 = vadd.f32 %v1519_v47, %v2646_v23  ;;  %v1654_v30 = vadd.f32 %v1653_v8, %v1591_v55 }
 0x182   :  { %v1521_v0 = vadd.f32 %v1520_v60, %v2650_v29  ;;  %v1655_v59 = vadd.f32 %v1654_v30, %v1592_v61 }
 0x184   :  { %v1522_v19 = vadd.f32 %v1521_v0, %v2670_v46  ;;  %v1656_v10 = vadd.f32 %v1655_v59, %v1593_v1 }
 0x186   :  { %v1523_v13 = vadd.f32 %v1522_v19, %v2681_v62  ;;  %v1657_v33 = vadd.f32 %v1656_v10, %v1594_v7 }
 0x188   :  { %v1658_v23 = vadd.f32 %v1657_v33, %v1595_v32  ;;  %v1524_v9 = vadd.f32 %v1523_v13, %v2701_v16 }
 0x18a   :  { %v1659_v29 = vadd.f32 %v1658_v23, %v1596_v11  ;;  %v1525_v36 = vadd.f32 %v1524_v9, %v2711_v37 }
 0x18c   :  { %v1660_v46 = vadd.f32 %v1659_v29, %v1597_v38  ;;  %v1526_v42 = vadd.f32 %v1525_v36, %v2731_v56 }
 0x18e   :  { %v1661_v62 = vadd.f32 %v1660_v46, %v1598_v40  ;;  %v1527_v49 = vadd.f32 %v1526_v42, %v2741_v4 }
 0x190   :  { %v1662_v44 = vadd.f32 %v1661_v62, %v1599_v15  ;;  %v1528_v16 = vadd.f32 %v1527_v49, %v2759_v27 }
 0x192   :  { %v1663_v21 = vadd.f32 %v1662_v44, %v1600_v17  ;;  %v1529_v37 = vadd.f32 %v1528_v16, %v2767_v48 }
 0x194   :  { %v1664_v12 = vadd.f32 %v1663_v21, %v1601_v34  ;;  %v1530_v56 = vadd.f32 %v1529_v37, %v2783_v14 }
 0x196   :  { %v1665_v52 = vadd.f32 %v1664_v12, %v1602_v25  ;;  %v1531_v4 = vadd.f32 %v1530_v56, %v2791_v18 }
 0x198   :  { %v1666_v31 = vadd.f32 %v1665_v52, %v1603_v57  ;;  %v1532_v27 = vadd.f32 %v1531_v4, %v2805_v39 }
 0x19a   :  { %v1667_v22 = vadd.f32 %v1666_v31, %v1604_v58  ;;  %v1533_v48 = vadd.f32 %v1532_v27, %v2808_v50 }
 0x19c   :  { %v1668_v28 = vadd.f32 %v1667_v22, %v1605_v35  ;;  %v1534_v14 = vadd.f32 %v1533_v48, %v2818_v24 }
 0x19e   :  { %v1669_v41 = vadd.f32 %v1668_v28, %v1606_v63  ;;  %v1535_v18 = vadd.f32 %v1534_v14, %v2820_v6  ;;  %v1473_v6 = vshrl.u32 %v1472_v26, 7 }
 0x1a0   :  { %v1670_v20 = vadd.f32 %v1669_v41, %v1607_v2  ;;  %v1536_v39 = vadd.f32 %v1535_v18, %v2830_v53  ;;  %vm1474_vm1 = vcmp.eq.s32.totalorder %v1473_v6, 0 }
 0x1a2   :  { %v1671_v5 = vadd.f32 %v1670_v20, %v1608_v45  ;;  %v1537_v50 = vadd.f32 %v1536_v39, %v2832_v43 }
 0x1a4   :  { %v1538_v51 = vrot.slane %v1537_v50, 4  ;;  %v1672_v24 = vadd.f32 %v1671_v5, %v1609_v3 }
 0x1a6   :  { %v1539_v54 = vadd.f32 %v1538_v51, %v1537_v50  ;;  %v1673_v55 = vrot.slane %v1672_v24, 4 }
 0x1a8   :  { %v1540_v47 = vrot.slane %v1539_v54, 2  ;;  %v1674_v8 = vadd.f32 %v1673_v55, %v1672_v24 }
 0x1aa   :  { %v1541_v61 = vadd.f32 %v1540_v47, %v1539_v54  ;;  %v1675_v60 = vrot.slane %v1674_v8, 2 }
 0x1ac   :  { %v1542_v30 = vrot.slane %v1541_v61, 1  ;;  %v1676_v1 = vadd.f32 %v1675_v60, %v1674_v8 }
 0x1ae   :  { %v1543_v53 = vadd.f32 %v1542_v30, %v1541_v61  ;;  %v1677_v0 = vrot.slane %v1676_v1, 1 }
 0x1b0   :  { %v1544_v59 = vsel %vm1474_vm1, %v1543_v53, 0.0  ;;  %v1678_v7 = vadd.f32 %v1677_v0, %v1676_v1 }
 0x1b1   :  { %1545 = vst [vmem:[%s2947_s3] sm:$0xff] %v1544_v59 }
 0x1b2   :  { %v1679_v43 = vsel %vm1474_vm1, %v1678_v7, 0.0 }
 0x1b3   :  { %1680 = vst [vmem:[%s2948_s4] sm:$0xff] %v1679_v43 }

// kernel: unet_forward.49
= control target key start
LH: loop header
LB: loop body
LE: loop exit
PB: predicated region body
PF: predicated region fallthrough
CT: control target
= control target key end

     0   :  { %vm469_vm0 = vcmask 1043456   ;;  %vm372_vm1 = vcmask 64512   ;;  %s1708_s1 = inlined_call_operand.vmem [shape: bf16[8,128], index: 1, kind: input, shape index: {}]   ;;  %s1709_s0 = inlined_call_operand.vmem [shape: bf16[512,8], index: 0, kind: input, shape index: {}]   ;;  %s1710_s2 = inlined_call_operand.vmem [shape: f32[1,128], index: 2, kind: input, shape index: {}]   ;;  %s1711_s3 = inlined_call_operand.vmem [shape: f32[512,128], index: 3, kind: output, shape index: {}]  }
   0x1   :  { %v211_v0 = vld [vmem:[%s1708_s1] sm:$0xf]  ;;  %v1266_v4 = vld [vmem:[%s1709_s0 + $0x8] sm:$0xff]   ;;  %v1268_v6 = vld [vmem:[%s1709_s0 + $0x10] sm:$0xff]  }
   0x2   :  { %1262 = vmatprep.subr.msk.bf16.mxu0 %vm469_vm0, %v211_v0  ;;  %1263 = vmatprep.subr.msk.bf16.mxu1 %vm469_vm0, %v211_v0  ;;  %v471_v1 = vsel %vm469_vm0, %v211_v0, 0  ;;  %v1264_v2 = vld [vmem:[%s1709_s0] sm:$0xff]   ;;  %v1267_v5 = vld [vmem:[%s1709_s0 + $0x88] sm:$0xff]   ;;  %v1269_v7 = vld [vmem:[%s1709_s0 + $0x90] sm:$0xff]  }
   0x3   :  { %1195 = vmatpush3.bf16.msra.mxu0 %v471_v1  ;;  %1261 = vmatpush3.bf16.msra.mxu1 %v471_v1  ;;  %v1265_v3 = vld [vmem:[%s1709_s0 + $0x80] sm:$0xff]   ;;  %v1270_v8 = vld [vmem:[%s1709_s0 + $0x18] sm:$0xff]   ;;  %v1274_v12 = vld [vmem:[%s1709_s0 + $0x28] sm:$0xff]  }
   0x4   :  { %1196 = vmatprep.mubr.msk.bf16.mxu0 %vm372_vm1, %v1264_v2  ;;  %1228 = vmatprep.mubr.msk.bf16.mxu1 %vm372_vm1, %v1265_v3  ;;  %v1271_v9 = vld [vmem:[%s1709_s0 + $0x98] sm:$0xff]   ;;  %v1272_v10 = vld [vmem:[%s1709_s0 + $0x20] sm:$0xff]   ;;  %v1275_v13 = vld [vmem:[%s1709_s0 + $0xa8] sm:$0xff]  }
   0x5   :  { %v1273_v11 = vld [vmem:[%s1709_s0 + $0xa0] sm:$0xff]   ;;  %v1276_v14 = vld [vmem:[%s1709_s0 + $0x30] sm:$0xff]   ;;  %v1278_v16 = vld [vmem:[%s1709_s0 + $0x38] sm:$0xff]  }
   0x6   :  { %1197 = vmatmul.mubr.msk.bf16.vlgmr.msra.gmra.mxu0 %vm372_vm1, %v1266_v4  ;;  %1229 = vmatmul.mubr.msk.bf16.vlgmr.msra.gmra.mxu1 %vm372_vm1, %v1267_v5  ;;  %v1277_v15 = vld [vmem:[%s1709_s0 + $0xb0] sm:$0xff]   ;;  %v1279_v17 = vld [vmem:[%s1709_s0 + $0xb8] sm:$0xff]   ;;  %v1280_v18 = vld [vmem:[%s1709_s0 + $0x40] sm:$0xff]  }
   0x7   :  { %1200 = vmatprep.mubr.msk.bf16.mxu0 %vm372_vm1, %v1268_v6  ;;  %1232 = vmatprep.mubr.msk.bf16.mxu1 %vm372_vm1, %v1269_v7  ;;  %v1281_v19 = vld [vmem:[%s1709_s0 + $0xc0] sm:$0xff]   ;;  %v1282_v20 = vld [vmem:[%s1709_s0 + $0x48] sm:$0xff]   ;;  %v1284_v22 = vld [vmem:[%s1709_s0 + $0x50] sm:$0xff]  }
   0x8   :  { %v1283_v21 = vld [vmem:[%s1709_s0 + $0xc8] sm:$0xff]   ;;  %v1285_v23 = vld [vmem:[%s1709_s0 + $0xd0] sm:$0xff]   ;;  %v1286_v24 = vld [vmem:[%s1709_s0 + $0x58] sm:$0xff]  }
   0x9   :  { %v1287_v25 = vld [vmem:[%s1709_s0 + $0xd8] sm:$0xff]   ;;  %v1288_v26 = vld [vmem:[%s1709_s0 + $0x60] sm:$0xff]   ;;  %v1290_v28 = vld [vmem:[%s1709_s0 + $0x68] sm:$0xff]  }
   0xa   :  { %v1289_v27 = vld [vmem:[%s1709_s0 + $0xe0] sm:$0xff]   ;;  %v1291_v29 = vld [vmem:[%s1709_s0 + $0xe8] sm:$0xff]   ;;  %v1292_v30 = vld [vmem:[%s1709_s0 + $0x70] sm:$0xff]  }
   0xb   :  { %v1293_v31 = vld [vmem:[%s1709_s0 + $0xf0] sm:$0xff]   ;;  %v1294_v32 = vld [vmem:[%s1709_s0 + $0x78] sm:$0xff]   ;;  %v1450_v34 = vld [vmem:[%s1710_s2] ss:$0 sm:$0xff] }
   0xc   :  { %v1295_v33 = vld [vmem:[%s1709_s0 + $0xf8] sm:$0xff]  }
   0xe   :  { %1201 = vmatmul.mubr.msk.bf16.gmra.mxu0 %vm372_vm1, %v1270_v8  ;;  %1233 = vmatmul.mubr.msk.bf16.gmra.mxu1 %vm372_vm1, %v1271_v9 }
   0xf   :  { %1204 = vmatprep.mubr.msk.bf16.mxu0 %vm372_vm1, %v1272_v10  ;;  %1236 = vmatprep.mubr.msk.bf16.mxu1 %vm372_vm1, %v1273_v11 }
  0x16   :  { %1205 = vmatmul.mubr.msk.bf16.gmra.mxu0 %vm372_vm1, %v1274_v12  ;;  %1237 = vmatmul.mubr.msk.bf16.gmra.mxu1 %vm372_vm1, %v1275_v13 }
  0x17   :  { %1208 = vmatprep.mubr.msk.bf16.mxu0 %vm372_vm1, %v1276_v14  ;;  %1240 = vmatprep.mubr.msk.bf16.mxu1 %vm372_vm1, %v1277_v15 }
  0x1e   :  { %1209 = vmatmul.mubr.msk.bf16.gmra.mxu0 %vm372_vm1, %v1278_v16  ;;  %1241 = vmatmul.mubr.msk.bf16.gmra.mxu1 %vm372_vm1, %v1279_v17 }
  0x1f   :  { %1212 = vmatprep.mubr.msk.bf16.mxu0 %vm372_vm1, %v1280_v18  ;;  %1244 = vmatprep.mubr.msk.bf16.mxu1 %vm372_vm1, %v1281_v19 }
  0x26   :  { %1213 = vmatmul.mubr.msk.bf16.gmra.mxu0 %vm372_vm1, %v1282_v20  ;;  %1245 = vmatmul.mubr.msk.bf16.gmra.mxu1 %vm372_vm1, %v1283_v21 }
  0x27   :  { %1216 = vmatprep.mubr.msk.bf16.mxu0 %vm372_vm1, %v1284_v22  ;;  %1248 = vmatprep.mubr.msk.bf16.mxu1 %vm372_vm1, %v1285_v23 }
  0x2e   :  { %1217 = vmatmul.mubr.msk.bf16.gmra.mxu0 %vm372_vm1, %v1286_v24  ;;  %1249 = vmatmul.mubr.msk.bf16.gmra.mxu1 %vm372_vm1, %v1287_v25 }
  0x2f   :  { %1220 = vmatprep.mubr.msk.bf16.mxu0 %vm372_vm1, %v1288_v26  ;;  %1252 = vmatprep.mubr.msk.bf16.mxu1 %vm372_vm1, %v1289_v27 }
  0x36   :  { %1221 = vmatmul.mubr.msk.bf16.gmra.mxu0 %vm372_vm1, %v1290_v28  ;;  %1253 = vmatmul.mubr.msk.bf16.gmra.mxu1 %vm372_vm1, %v1291_v29 }
  0x37   :  { %1224 = vmatprep.mubr.msk.bf16.mxu0 %vm372_vm1, %v1292_v30  ;;  %1256 = vmatprep.mubr.msk.bf16.mxu1 %vm372_vm1, %v1293_v31 }
  0x3e   :  { %1225 = vmatmul.mubr.msk.bf16.gmra.mxu0 %vm372_vm1, %v1294_v32  ;;  %1257 = vmatmul.mubr.msk.bf16.gmra.mxu1 %vm372_vm1, %v1295_v33 }
  0xc6   :  { %v1198_v35 = vpop.f32.mrf.mxu0  ;;  %v1230_v37 = vpop.f32.mrf.mxu1 }
  0xc7   :  { %v966_v36 = vadd.f32 %v1198_v35, %v1450_v34  ;;  %v998_v38 = vadd.f32 %v1230_v37, %v1450_v34 }
  0xc8   :  { %v507_v39 = vpop.f32.mrf.mxu0  ;;  %v635_v41 = vpop.f32.mrf.mxu1 }
  0xc9   :  { %1030 = vst [vmem:[%s1711_s3 + $0x10] sm:$0xff] %v966_v36  ;;  %v964_v40 = vadd.f32 %v1450_v34, %v507_v39  ;;  %1062 = vst [vmem:[%s1711_s3 + $0x110] sm:$0xff] %v998_v38  ;;  %v996_v42 = vadd.f32 %v1450_v34, %v635_v41 }
  0xca   :  { %v1199_v43 = vpop.f32.mrf.mxu0  ;;  %v1231_v45 = vpop.f32.mrf.mxu1 }
  0xcb   :  { %1028 = vst [vmem:[%s1711_s3] sm:$0xff] %v964_v40  ;;  %v967_v44 = vadd.f32 %v1199_v43, %v1450_v34  ;;  %1060 = vst [vmem:[%s1711_s3 + $0x100] sm:$0xff] %v996_v42  ;;  %v999_v46 = vadd.f32 %v1231_v45, %v1450_v34 }
  0xcc   :  { %v510_v47 = vpop.f32.mrf.mxu0  ;;  %v638_v49 = vpop.f32.mrf.mxu1 }
  0xcd   :  { %1031 = vst [vmem:[%s1711_s3 + $0x18] sm:$0xff] %v967_v44  ;;  %v965_v48 = vadd.f32 %v1450_v34, %v510_v47  ;;  %1063 = vst [vmem:[%s1711_s3 + $0x118] sm:$0xff] %v999_v46  ;;  %v997_v50 = vadd.f32 %v1450_v34, %v638_v49 }
  0xce   :  { %v1202_v51 = vpop.f32.mrf.mxu0  ;;  %v1234_v53 = vpop.f32.mrf.mxu1 }
  0xcf   :  { %1029 = vst [vmem:[%s1711_s3 + $0x8] sm:$0xff] %v965_v48  ;;  %v970_v52 = vadd.f32 %v1202_v51, %v1450_v34  ;;  %1061 = vst [vmem:[%s1711_s3 + $0x108] sm:$0xff] %v997_v50  ;;  %v1002_v54 = vadd.f32 %v1234_v53, %v1450_v34 }
  0xd0   :  { %v523_v55 = vpop.f32.mrf.mxu0  ;;  %v651_v57 = vpop.f32.mrf.mxu1 }
  0xd1   :  { %1034 = vst [vmem:[%s1711_s3 + $0x30] sm:$0xff] %v970_v52  ;;  %v968_v56 = vadd.f32 %v1450_v34, %v523_v55  ;;  %1066 = vst [vmem:[%s1711_s3 + $0x130] sm:$0xff] %v1002_v54  ;;  %v1000_v58 = vadd.f32 %v1450_v34, %v651_v57 }
  0xd2   :  { %v1203_v59 = vpop.f32.mrf.mxu0  ;;  %v1235_v61 = vpop.f32.mrf.mxu1 }
  0xd3   :  { %1032 = vst [vmem:[%s1711_s3 + $0x20] sm:$0xff] %v968_v56  ;;  %v971_v60 = vadd.f32 %v1203_v59, %v1450_v34  ;;  %1064 = vst [vmem:[%s1711_s3 + $0x120] sm:$0xff] %v1000_v58  ;;  %v1003_v62 = vadd.f32 %v1235_v61, %v1450_v34 }
  0xd4   :  { %v526_v63 = vpop.f32.mrf.mxu0  ;;  %v654_v1 = vpop.f32.mrf.mxu1 }
  0xd5   :  { %1035 = vst [vmem:[%s1711_s3 + $0x38] sm:$0xff] %v971_v60  ;;  %v969_v0 = vadd.f32 %v1450_v34, %v526_v63  ;;  %1067 = vst [vmem:[%s1711_s3 + $0x138] sm:$0xff] %v1003_v62  ;;  %v1001_v2 = vadd.f32 %v1450_v34, %v654_v1 }
  0xd6   :  { %v1206_v3 = vpop.f32.mrf.mxu0  ;;  %v1238_v5 = vpop.f32.mrf.mxu1 }
  0xd7   :  { %1033 = vst [vmem:[%s1711_s3 + $0x28] sm:$0xff] %v969_v0  ;;  %v974_v4 = vadd.f32 %v1206_v3, %v1450_v34  ;;  %1065 = vst [vmem:[%s1711_s3 + $0x128] sm:$0xff] %v1001_v2  ;;  %v1006_v6 = vadd.f32 %v1238_v5, %v1450_v34 }
  0xd8   :  { %v539_v7 = vpop.f32.mrf.mxu0  ;;  %v667_v9 = vpop.f32.mrf.mxu1 }
  0xd9   :  { %1038 = vst [vmem:[%s1711_s3 + $0x50] sm:$0xff] %v974_v4  ;;  %v972_v8 = vadd.f32 %v1450_v34, %v539_v7  ;;  %1070 = vst [vmem:[%s1711_s3 + $0x150] sm:$0xff] %v1006_v6  ;;  %v1004_v10 = vadd.f32 %v1450_v34, %v667_v9 }
  0xda   :  { %v1207_v11 = vpop.f32.mrf.mxu0  ;;  %v1239_v13 = vpop.f32.mrf.mxu1 }
  0xdb   :  { %1036 = vst [vmem:[%s1711_s3 + $0x40] sm:$0xff] %v972_v8  ;;  %v975_v12 = vadd.f32 %v1207_v11, %v1450_v34  ;;  %1068 = vst [vmem:[%s1711_s3 + $0x140] sm:$0xff] %v1004_v10  ;;  %v1007_v14 = vadd.f32 %v1239_v13, %v1450_v34 }
  0xdc   :  { %v542_v15 = vpop.f32.mrf.mxu0  ;;  %v670_v17 = vpop.f32.mrf.mxu1 }
  0xdd   :  { %1039 = vst [vmem:[%s1711_s3 + $0x58] sm:$0xff] %v975_v12  ;;  %v973_v16 = vadd.f32 %v1450_v34, %v542_v15  ;;  %1071 = vst [vmem:[%s1711_s3 + $0x158] sm:$0xff] %v1007_v14  ;;  %v1005_v18 = vadd.f32 %v1450_v34, %v670_v17 }
  0xde   :  { %v1210_v19 = vpop.f32.mrf.mxu0  ;;  %v1242_v21 = vpop.f32.mrf.mxu1 }
  0xdf   :  { %1037 = vst [vmem:[%s1711_s3 + $0x48] sm:$0xff] %v973_v16  ;;  %v978_v20 = vadd.f32 %v1210_v19, %v1450_v34  ;;  %1069 = vst [vmem:[%s1711_s3 + $0x148] sm:$0xff] %v1005_v18  ;;  %v1010_v22 = vadd.f32 %v1242_v21, %v1450_v34 }
  0xe0   :  { %v555_v23 = vpop.f32.mrf.mxu0  ;;  %v683_v25 = vpop.f32.mrf.mxu1 }
  0xe1   :  { %1042 = vst [vmem:[%s1711_s3 + $0x70] sm:$0xff] %v978_v20  ;;  %v976_v24 = vadd.f32 %v1450_v34, %v555_v23  ;;  %1074 = vst [vmem:[%s1711_s3 + $0x170] sm:$0xff] %v1010_v22  ;;  %v1008_v26 = vadd.f32 %v1450_v34, %v683_v25 }
  0xe2   :  { %v1211_v27 = vpop.f32.mrf.mxu0  ;;  %v1243_v29 = vpop.f32.mrf.mxu1 }
  0xe3   :  { %1040 = vst [vmem:[%s1711_s3 + $0x60] sm:$0xff] %v976_v24  ;;  %v979_v28 = vadd.f32 %v1211_v27, %v1450_v34  ;;  %1072 = vst [vmem:[%s1711_s3 + $0x160] sm:$0xff] %v1008_v26  ;;  %v1011_v30 = vadd.f32 %v1243_v29, %v1450_v34 }
  0xe4   :  { %v558_v31 = vpop.f32.mrf.mxu0  ;;  %v686_v33 = vpop.f32.mrf.mxu1 }
  0xe5   :  { %1043 = vst [vmem:[%s1711_s3 + $0x78] sm:$0xff] %v979_v28  ;;  %v977_v32 = vadd.f32 %v1450_v34, %v558_v31  ;;  %1075 = vst [vmem:[%s1711_s3 + $0x178] sm:$0xff] %v1011_v30  ;;  %v1009_v35 = vadd.f32 %v1450_v34, %v686_v33 }
  0xe6   :  { %v1214_v36 = vpop.f32.mrf.mxu0  ;;  %v1246_v38 = vpop.f32.mrf.mxu1 }
  0xe7   :  { %1041 = vst [vmem:[%s1711_s3 + $0x68] sm:$0xff] %v977_v32  ;;  %v982_v37 = vadd.f32 %v1214_v36, %v1450_v34  ;;  %1073 = vst [vmem:[%s1711_s3 + $0x168] sm:$0xff] %v1009_v35  ;;  %v1014_v39 = vadd.f32 %v1246_v38, %v1450_v34 }
  0xe8   :  { %v571_v40 = vpop.f32.mrf.mxu0  ;;  %v699_v42 = vpop.f32.mrf.mxu1 }
  0xe9   :  { %1046 = vst [vmem:[%s1711_s3 + $0x90] sm:$0xff] %v982_v37  ;;  %v980_v41 = vadd.f32 %v1450_v34, %v571_v40  ;;  %1078 = vst [vmem:[%s1711_s3 + $0x190] sm:$0xff] %v1014_v39  ;;  %v1012_v43 = vadd.f32 %v1450_v34, %v699_v42 }
  0xea   :  { %v1215_v44 = vpop.f32.mrf.mxu0  ;;  %v1247_v46 = vpop.f32.mrf.mxu1 }
  0xeb   :  { %1044 = vst [vmem:[%s1711_s3 + $0x80] sm:$0xff] %v980_v41  ;;  %v983_v45 = vadd.f32 %v1215_v44, %v1450_v34  ;;  %1076 = vst [vmem:[%s1711_s3 + $0x180] sm:$0xff] %v1012_v43  ;;  %v1015_v47 = vadd.f32 %v1247_v46, %v1450_v34 }
  0xec   :  { %v574_v48 = vpop.f32.mrf.mxu0  ;;  %v702_v50 = vpop.f32.mrf.mxu1 }
  0xed   :  { %1047 = vst [vmem:[%s1711_s3 + $0x98] sm:$0xff] %v983_v45  ;;  %v981_v49 = vadd.f32 %v1450_v34, %v574_v48  ;;  %1079 = vst [vmem:[%s1711_s3 + $0x198] sm:$0xff] %v1015_v47  ;;  %v1013_v51 = vadd.f32 %v1450_v34, %v702_v50 }
  0xee   :  { %v1218_v52 = vpop.f32.mrf.mxu0  ;;  %v1250_v54 = vpop.f32.mrf.mxu1 }
  0xef   :  { %1045 = vst [vmem:[%s1711_s3 + $0x88] sm:$0xff] %v981_v49  ;;  %v986_v53 = vadd.f32 %v1218_v52, %v1450_v34  ;;  %1077 = vst [vmem:[%s1711_s3 + $0x188] sm:$0xff] %v1013_v51  ;;  %v1018_v55 = vadd.f32 %v1250_v54, %v1450_v34 }
  0xf0   :  { %v587_v56 = vpop.f32.mrf.mxu0  ;;  %v715_v58 = vpop.f32.mrf.mxu1 }
  0xf1   :  { %1050 = vst [vmem:[%s1711_s3 + $0xb0] sm:$0xff] %v986_v53  ;;  %v984_v57 = vadd.f32 %v1450_v34, %v587_v56  ;;  %1082 = vst [vmem:[%s1711_s3 + $0x1b0] sm:$0xff] %v1018_v55  ;;  %v1016_v59 = vadd.f32 %v1450_v34, %v715_v58 }
  0xf2   :  { %v1219_v60 = vpop.f32.mrf.mxu0  ;;  %v1251_v62 = vpop.f32.mrf.mxu1 }
  0xf3   :  { %1048 = vst [vmem:[%s1711_s3 + $0xa0] sm:$0xff] %v984_v57  ;;  %v987_v61 = vadd.f32 %v1219_v60, %v1450_v34  ;;  %1080 = vst [vmem:[%s1711_s3 + $0x1a0] sm:$0xff] %v1016_v59  ;;  %v1019_v63 = vadd.f32 %v1251_v62, %v1450_v34 }
  0xf4   :  { %v590_v0 = vpop.f32.mrf.mxu0  ;;  %v718_v2 = vpop.f32.mrf.mxu1 }
  0xf5   :  { %1051 = vst [vmem:[%s1711_s3 + $0xb8] sm:$0xff] %v987_v61  ;;  %v985_v1 = vadd.f32 %v1450_v34, %v590_v0  ;;  %1083 = vst [vmem:[%s1711_s3 + $0x1b8] sm:$0xff] %v1019_v63  ;;  %v1017_v3 = vadd.f32 %v1450_v34, %v718_v2 }
  0xf6   :  { %v1222_v4 = vpop.f32.mrf.mxu0  ;;  %v1254_v6 = vpop.f32.mrf.mxu1 }
  0xf7   :  { %1049 = vst [vmem:[%s1711_s3 + $0xa8] sm:$0xff] %v985_v1  ;;  %v990_v5 = vadd.f32 %v1222_v4, %v1450_v34  ;;  %1081 = vst [vmem:[%s1711_s3 + $0x1a8] sm:$0xff] %v1017_v3  ;;  %v1022_v7 = vadd.f32 %v1254_v6, %v1450_v34 }
  0xf8   :  { %v603_v8 = vpop.f32.mrf.mxu0  ;;  %v731_v10 = vpop.f32.mrf.mxu1 }
  0xf9   :  { %1054 = vst [vmem:[%s1711_s3 + $0xd0] sm:$0xff] %v990_v5  ;;  %v988_v9 = vadd.f32 %v1450_v34, %v603_v8  ;;  %1086 = vst [vmem:[%s1711_s3 + $0x1d0] sm:$0xff] %v1022_v7  ;;  %v1020_v11 = vadd.f32 %v1450_v34, %v731_v10 }
  0xfa   :  { %v1223_v12 = vpop.f32.mrf.mxu0  ;;  %v1255_v14 = vpop.f32.mrf.mxu1 }
  0xfb   :  { %1052 = vst [vmem:[%s1711_s3 + $0xc0] sm:$0xff] %v988_v9  ;;  %v991_v13 = vadd.f32 %v1223_v12, %v1450_v34  ;;  %1084 = vst [vmem:[%s1711_s3 + $0x1c0] sm:$0xff] %v1020_v11  ;;  %v1023_v15 = vadd.f32 %v1255_v14, %v1450_v34 }
  0xfc   :  { %v606_v16 = vpop.f32.mrf.mxu0  ;;  %v734_v18 = vpop.f32.mrf.mxu1 }
  0xfd   :  { %1055 = vst [vmem:[%s1711_s3 + $0xd8] sm:$0xff] %v991_v13  ;;  %v989_v17 = vadd.f32 %v1450_v34, %v606_v16  ;;  %1087 = vst [vmem:[%s1711_s3 + $0x1d8] sm:$0xff] %v1023_v15  ;;  %v1021_v19 = vadd.f32 %v1450_v34, %v734_v18 }
  0xfe   :  { %v1226_v20 = vpop.f32.mrf.mxu0  ;;  %v1258_v22 = vpop.f32.mrf.mxu1 }
  0xff   :  { %1053 = vst [vmem:[%s1711_s3 + $0xc8] sm:$0xff] %v989_v17  ;;  %v994_v21 = vadd.f32 %v1226_v20, %v1450_v34  ;;  %1085 = vst [vmem:[%s1711_s3 + $0x1c8] sm:$0xff] %v1021_v19  ;;  %v1026_v23 = vadd.f32 %v1258_v22, %v1450_v34 }
 0x100   :  { %v619_v24 = vpop.f32.mrf.mxu0  ;;  %v747_v26 = vpop.f32.mrf.mxu1 }
 0x101   :  { %1058 = vst [vmem:[%s1711_s3 + $0xf0] sm:$0xff] %v994_v21  ;;  %v992_v25 = vadd.f32 %v1450_v34, %v619_v24  ;;  %1090 = vst [vmem:[%s1711_s3 + $0x1f0] sm:$0xff] %v1026_v23  ;;  %v1024_v27 = vadd.f32 %v1450_v34, %v747_v26 }
 0x102   :  { %v1227_v28 = vpop.f32.mrf.mxu0  ;;  %v1259_v30 = vpop.f32.mrf.mxu1 }
 0x103   :  { %1056 = vst [vmem:[%s1711_s3 + $0xe0] sm:$0xff] %v992_v25  ;;  %v995_v29 = vadd.f32 %v1227_v28, %v1450_v34  ;;  %1088 = vst [vmem:[%s1711_s3 + $0x1e0] sm:$0xff] %v1024_v27  ;;  %v1027_v31 = vadd.f32 %v1259_v30, %v1450_v34 }
 0x104   :  { %v622_v32 = vpop.f32.mrf.mxu0  ;;  %v750_v35 = vpop.f32.mrf.mxu1 }
 0x105   :  { %1059 = vst [vmem:[%s1711_s3 + $0xf8] sm:$0xff] %v995_v29  ;;  %v993_v33 = vadd.f32 %v1450_v34, %v622_v32  ;;  %1091 = vst [vmem:[%s1711_s3 + $0x1f8] sm:$0xff] %v1027_v31  ;;  %v1025_v36 = vadd.f32 %v1450_v34, %v750_v35 }
 0x107   :  { %1057 = vst [vmem:[%s1711_s3 + $0xe8] sm:$0xff] %v993_v33  ;;  %1089 = vst [vmem:[%s1711_s3 + $0x1e8] sm:$0xff] %v1025_v36 }

</bundles_post_ra>
